<compile_context>
chip_gen: v7x
topology: tpu7x:2x2x1
jax: 0.10.0
libtpu: 0.0.40
codegen_flags: <defaults>
</compile_context>

<pallas_src>
import functools
import numpy as np

import jax
import jax.numpy as jnp
from jax.experimental import pallas as pl
from jax.experimental.pallas import tpu as pltpu

EPS = 1e-5                       # torch GroupNorm default
_VMEM_LIMIT = 64 * 1024 * 1024   # explicit scoped-VMEM budget


# --------------------------------------------------------------------------
# Pallas kernels
# --------------------------------------------------------------------------
def _gn_silu_conv3x3_kernel(x_ref, gmat_ref, gamma_ref, beta_ref, w_ref, bias_ref,
                            *rest, img_w, pad_rows, fuse_residual):
    # x_ref block: (1, HW, Cin) bf16; w_ref: (9*Cin [+Cres], Cout) bf16;
    # bias_ref: (1, 1, Cout) f32.  Optional res_x_ref: (1, HW, Cres) bf16.
    if fuse_residual:
        res_x_ref, o_ref, xp_ref, patch_ref = rest
    else:
        o_ref, xp_ref, patch_ref = rest

    x = x_ref[0].astype(jnp.float32)                                   # (HW, Cin)
    HW, Cin = x.shape

    # GroupNorm (1/HW and 1/channels-per-group folded into gmat at prep time).
    mean = jnp.dot(jnp.sum(x, axis=0, keepdims=True), gmat_ref[...],
                   preferred_element_type=jnp.float32)                 # (1, Cin)
    xc = x - mean
    var = jnp.dot(jnp.sum(xc * xc, axis=0, keepdims=True), gmat_ref[...],
                  preferred_element_type=jnp.float32)
    xn = xc * jax.lax.rsqrt(jnp.maximum(var, 0.0) + EPS)
    xn = xn * gamma_ref[...] + beta_ref[...]
    xn = xn * jax.nn.sigmoid(xn)                                       # SiLU

    # Padded flattened-HW scratch.  Only the two small pad regions are zeroed;
    # interior rows [pad_rows, pad_rows+HW) are fully overwritten every grid step.
    xp_ref[0:pad_rows, :] = jnp.zeros((pad_rows, Cin), jnp.float32)
    xp_ref[pad_rows + HW:2 * pad_rows + HW, :] = jnp.zeros((pad_rows, Cin), jnp.float32)
    xp_ref[pad_rows:pad_rows + HW, :] = xn

    # Column-edge masks for horizontal taps (vertical OOB falls into the zero pads).
    col = jax.lax.broadcasted_iota(jnp.int32, (HW, 1), 0) % img_w
    not_left_edge = col > 0
    not_right_edge = col < (img_w - 1)

    # Assemble the (HW, 9*Cin [+Cres]) bf16 patch: 9 shifted row-slices (+ residual
    # channels), then ONE deep-K MXU matmul (internal accumulation, no f32 adds).
    for k in range(9):                                                 # 3x3 taps
        ky, kx = divmod(k, 3)
        dy, dx = ky - 1, kx - 1
        start = pad_rows + dy * img_w + dx                             # static offset
        sl = xp_ref[start:start + HW, :].astype(jnp.bfloat16)          # (HW, Cin)
        if dx == -1:
            sl = jnp.where(not_left_edge, sl, jnp.zeros_like(sl))
        elif dx == 1:
            sl = jnp.where(not_right_edge, sl, jnp.zeros_like(sl))
        patch_ref[:, k * Cin:(k + 1) * Cin] = sl
    if fuse_residual:
        Cres = res_x_ref.shape[2]
        patch_ref[:, 9 * Cin:9 * Cin + Cres] = res_x_ref[0]            # 1x1 res-conv K cols

    acc = jnp.dot(patch_ref[...], w_ref[...], preferred_element_type=jnp.float32)
    acc = acc + bias_ref[0]                                            # conv bias (+ temb)
    o_ref[0] = acc.astype(o_ref.dtype)


def _attn_kernel(x_ref, gmat_ref, gamma_ref, beta_ref, wqkv_ref, bqkv_ref,
                 wo_ref, bo_ref, o_ref, ho_ref, *, num_heads, head_dim):
    # One batch element: GN (no SiLU) + MHA + out-proj + residual, all in one kernel.
    x = x_ref[0].astype(jnp.float32)                                   # (HW, C)
    HW, C = x.shape

    mean = jnp.dot(jnp.sum(x, axis=0, keepdims=True), gmat_ref[...],
                   preferred_element_type=jnp.float32)
    xc = x - mean
    var = jnp.dot(jnp.sum(xc * xc, axis=0, keepdims=True), gmat_ref[...],
                  preferred_element_type=jnp.float32)
    xn = xc * jax.lax.rsqrt(jnp.maximum(var, 0.0) + EPS)
    xn = xn * gamma_ref[...] + beta_ref[...]
    xb = xn.astype(jnp.bfloat16)

    # Single fused QKV projection (softmax 1/sqrt(Dh) pre-folded into the Q columns).
    qkv = jnp.dot(xb, wqkv_ref[...], preferred_element_type=jnp.float32) + bqkv_ref[...]

    Dh = head_dim
    # TODO(synk): at production HW flash-tile the (HW,HW) scores per head.
    for h in range(num_heads):
        q = qkv[:, h * Dh:(h + 1) * Dh].astype(jnp.bfloat16)
        k = qkv[:, C + h * Dh:C + (h + 1) * Dh].astype(jnp.bfloat16)
        v = qkv[:, 2 * C + h * Dh:2 * C + (h + 1) * Dh].astype(jnp.bfloat16)
        s = jax.lax.dot_general(q, k, (((1,), (1,)), ((), ())),
                                preferred_element_type=jnp.float32)    # (HW, HW)
        m = jnp.max(s, axis=-1, keepdims=True)
        p = jnp.exp(s - m)                                             # unnormalized
        l = jnp.sum(p, axis=-1, keepdims=True)
        ho = jnp.dot(p.astype(jnp.bfloat16), v, preferred_element_type=jnp.float32)
        ho = ho * pl.reciprocal(l, approx=True)                        # deferred softmax norm
        ho_ref[:, h * Dh:(h + 1) * Dh] = ho.astype(jnp.bfloat16)       # head-major concat

    out = jnp.dot(ho_ref[...], wo_ref[...], preferred_element_type=jnp.float32) + bo_ref[...]
    o_ref[0] = (x + out).astype(o_ref.dtype)                           # fused residual add


# --------------------------------------------------------------------------
# Wrappers
# --------------------------------------------------------------------------
def fused_gn_silu_conv3x3(x, gmat, gamma, beta, w, bias, img_w, res_x=None):
    # x: (B, HW, Cin) bf16; w: (9*Cin [+Cres], Cout) bf16; bias: (B,1,Cout) or (1,1,Cout)
    B, HW, Cin = x.shape
    K, Cout = w.shape
    pad_rows = ((img_w + 1 + 7) // 8) * 8          # sublane-aligned interior offset
    fuse_res = res_x is not None
    per_batch_bias = bias.shape[0] == B
    kern = functools.partial(_gn_silu_conv3x3_kernel, img_w=img_w,
                             pad_rows=pad_rows, fuse_residual=fuse_res)
    bias_map = (lambda b: (b, 0, 0)) if per_batch_bias else (lambda b: (0, 0, 0))
    in_specs = [
        pl.BlockSpec((1, HW, Cin), lambda b: (b, 0, 0)),
        pl.BlockSpec((Cin, Cin), lambda b: (0, 0)),
        pl.BlockSpec((1, Cin), lambda b: (0, 0)),
        pl.BlockSpec((1, Cin), lambda b: (0, 0)),
        pl.BlockSpec((K, Cout), lambda b: (0, 0)),
        pl.BlockSpec((1, 1, Cout), bias_map),
    ]
    args = [x, gmat, gamma, beta, w, bias]
    if fuse_res:
        Cres = res_x.shape[-1]
        in_specs.append(pl.BlockSpec((1, HW, Cres), lambda b: (b, 0, 0)))
        args.append(res_x)
    return pl.pallas_call(
        kern,
        out_shape=jax.ShapeDtypeStruct((B, HW, Cout), jnp.bfloat16),
        grid=(B,),
        in_specs=in_specs,
        out_specs=pl.BlockSpec((1, HW, Cout), lambda b: (b, 0, 0)),
        scratch_shapes=[pltpu.VMEM((2 * pad_rows + HW, Cin), jnp.float32),   # padded act
                        pltpu.VMEM((HW, K), jnp.bfloat16)],                  # im2col patch
        compiler_params=pltpu.CompilerParams(
            dimension_semantics=("parallel",),
            vmem_limit_bytes=_VMEM_LIMIT),
    )(*args)


def fused_attention(x, a, num_heads):
    # x: (B, HW, C) bf16; a: prepared attention params dict.
    B, HW, C = x.shape
    Dh = C // num_heads
    kern = functools.partial(_attn_kernel, num_heads=num_heads, head_dim=Dh)
    return pl.pallas_call(
        kern,
        out_shape=jax.ShapeDtypeStruct((B, HW, C), jnp.bfloat16),
        grid=(B,),
        in_specs=[pl.BlockSpec((1, HW, C), lambda b: (b, 0, 0)),
                  pl.BlockSpec((C, C), lambda b: (0, 0)),
                  pl.BlockSpec((1, C), lambda b: (0, 0)),
                  pl.BlockSpec((1, C), lambda b: (0, 0)),
                  pl.BlockSpec((C, 3 * C), lambda b: (0, 0)),
                  pl.BlockSpec((1, 3 * C), lambda b: (0, 0)),
                  pl.BlockSpec((C, C), lambda b: (0, 0)),
                  pl.BlockSpec((1, C), lambda b: (0, 0))],
        out_specs=pl.BlockSpec((1, HW, C), lambda b: (b, 0, 0)),
        scratch_shapes=[pltpu.VMEM((HW, C), jnp.bfloat16)],   # head-major concat buffer
        compiler_params=pltpu.CompilerParams(
            dimension_semantics=("parallel",),
            vmem_limit_bytes=_VMEM_LIMIT),
    )(x, a["gmat"], a["gamma"], a["beta"], a["wqkv"], a["bqkv"], a["wo"], a["bo"])


# --------------------------------------------------------------------------
# One-time parameter preparation (hoisted reshapes / transposes / bias & scale folds)
# --------------------------------------------------------------------------
def _group_matrix(C, groups, hw):
    cg = C // groups
    gidx = jnp.arange(C) // cg
    # Group-average matrix with BOTH the 1/channels-per-group and 1/HW scales folded in.
    return (gidx[:, None] == gidx[None, :]).astype(jnp.float32) / float(cg * hw)


def prepare_params(p, num_heads, num_layers, hw, groups=8):
    n = num_layers + 1
    prep = {"conv1": [], "conv2": [], "attn": [], "t_w": [], "t_b": [], "conv1_b": []}
    for i in range(n):
        w1 = p["rcf_conv_w"][i]                           # (Cout, Cin_i, 3, 3)
        Cout, Cin_i = w1.shape[0], w1.shape[1]
        prep["conv1"].append(dict(
            gmat=_group_matrix(Cin_i, groups, hw),
            gamma=p["rcf_gn_w"][i].reshape(1, Cin_i),
            beta=p["rcf_gn_b"][i].reshape(1, Cin_i),
            w=w1.transpose(2, 3, 1, 0).reshape(9 * Cin_i, Cout).astype(jnp.bfloat16),
        ))
        prep["conv1_b"].append(p["rcf_conv_b"][i])
        prep["t_w"].append(p["t_lin_w"][i].T)             # (T, Cout)
        prep["t_b"].append(p["t_lin_b"][i])
        w2 = p["rcs_conv_w"][i]                           # (Cout, Cout, 3, 3)
        w2_flat = w2.transpose(2, 3, 1, 0).reshape(9 * Cout, Cout)
        res_w = p["res_conv_w"][i][:, :, 0, 0].T          # (Cres, Cout) -> extra K rows
        prep["conv2"].append(dict(
            gmat=_group_matrix(Cout, groups, hw),
            gamma=p["rcs_gn_w"][i].reshape(1, Cout),
            beta=p["rcs_gn_b"][i].reshape(1, Cout),
            w=jnp.concatenate([w2_flat, res_w], axis=0).astype(jnp.bfloat16),
            bias=(p["rcs_conv_b"][i] + p["res_conv_b"][i]).reshape(1, 1, Cout),
        ))
    for i in range(num_layers):
        C = p["attn_gn_w"][i].shape[0]
        Dh = C // num_heads
        scale = 1.0 / float(Dh) ** 0.5
        scale_vec = jnp.concatenate([jnp.full((C,), scale, jnp.float32),
                                     jnp.ones((2 * C,), jnp.float32)])
        ipw, ipb = p["in_proj_w"][i], p["in_proj_b"][i]   # (3C, C), (3C,)
        prep["attn"].append(dict(
            gmat=_group_matrix(C, groups, hw),
            gamma=p["attn_gn_w"][i].reshape(1, C),
            beta=p["attn_gn_b"][i].reshape(1, C),
            wqkv=(ipw.T * scale_vec[None, :]).astype(jnp.bfloat16),   # (C, 3C), Q pre-scaled
            bqkv=(ipb * scale_vec).reshape(1, 3 * C),
            wo=p["out_proj_w"][i].T.astype(jnp.bfloat16),             # (C, C)
            bo=p["out_proj_b"][i].reshape(1, C),
        ))
    return prep


# --------------------------------------------------------------------------
# Full MidBlock forward (Pallas)
# --------------------------------------------------------------------------
def midblock_forward(x_nchw, t_emb, prep, num_heads=4, num_layers=1):
    B, Cin, H, W = x_nchw.shape
    HW = H * W
    # bf16 activations between kernels (halves HBM traffic); f32 only at boundary.
    out = jnp.transpose(x_nchw, (0, 2, 3, 1)).reshape(B, HW, Cin).astype(jnp.bfloat16)
    t_act = t_emb * jax.nn.sigmoid(t_emb)                               # tiny glue

    def resnet_block(out, i):
        resnet_input = out
        c1 = prep["conv1"][i]
        temb = t_act @ prep["t_w"][i] + prep["t_b"][i]                  # (B, Cout)
        bias1 = (temb + prep["conv1_b"][i])[:, None, :]                 # conv bias + temb
        h = fused_gn_silu_conv3x3(out, c1["gmat"], c1["gamma"], c1["beta"],
                                  c1["w"], bias1, W)
        c2 = prep["conv2"][i]
        return fused_gn_silu_conv3x3(h, c2["gmat"], c2["gamma"], c2["beta"],
                                     c2["w"], c2["bias"], W, res_x=resnet_input)

    out = resnet_block(out, 0)
    for i in range(num_layers):
        out = fused_attention(out, prep["attn"][i], num_heads)
        out = resnet_block(out, i + 1)

    Cout = out.shape[-1]
    return jnp.transpose(out.reshape(B, H, W, Cout), (0, 3, 1, 2)).astype(jnp.float32)


# --------------------------------------------------------------------------
# Pure-JAX reference (mirrors PyTorch semantics, used for verification)
# --------------------------------------------------------------------------
def _silu(x):
    return x * jax.nn.sigmoid(x)


def _ref_groupnorm(x, gamma, beta, groups):
    B, C = x.shape[:2]
    orig = x.shape
    xr = x.reshape(B, groups, -1)
    mean = jnp.mean(xr, axis=-1, keepdims=True)
    var = jnp.mean((xr - mean) ** 2, axis=-1, keepdims=True)
    xh = ((xr - mean) / jnp.sqrt(var + EPS)).reshape(orig)
    bshape = (1, C) + (1,) * (len(orig) - 2)
    return xh * gamma.reshape(bshape) + beta.reshape(bshape)


def _ref_conv(x, w, b, pad):
    out = jax.lax.conv_general_dilated(
        x, w, window_strides=(1, 1), padding=((pad, pad), (pad, pad)),
        dimension_numbers=("NCHW", "OIHW", "NCHW"),
        precision=jax.lax.Precision.HIGHEST)
    return out + b[None, :, None, None]


def _ref_mha(x, ipw, ipb, wo, bo, heads):
    B, L, C = x.shape
    Dh = C // heads
    hp = jax.lax.Precision.HIGHEST
    qkv = jnp.einsum("blc,dc->bld", x, ipw, precision=hp) + ipb
    q, k, v = qkv[..., :C], qkv[..., C:2 * C], qkv[..., 2 * C:]
    sh = lambda t: t.reshape(B, L, heads, Dh).transpose(0, 2, 1, 3)
    q, k, v = sh(q), sh(k), sh(v)
    s = jnp.einsum("bhld,bhmd->bhlm", q, k, precision=hp) / jnp.sqrt(jnp.float32(Dh))
    pw = jax.nn.softmax(s, axis=-1)
    o = jnp.einsum("bhlm,bhmd->bhld", pw, v, precision=hp)
    o = o.transpose(0, 2, 1, 3).reshape(B, L, C)
    return jnp.einsum("blc,dc->bld", o, wo, precision=hp) + bo


def ref_forward(x, t_emb, p, heads=4, num_layers=1):
    hp = jax.lax.Precision.HIGHEST

    def resnet(out, i):
        resnet_input = out
        h = _silu(_ref_groupnorm(out, p["rcf_gn_w"][i], p["rcf_gn_b"][i], 8))
        h = _ref_conv(h, p["rcf_conv_w"][i], p["rcf_conv_b"][i], 1)
        temb = jnp.einsum("bt,ct->bc", _silu(t_emb), p["t_lin_w"][i], precision=hp) + p["t_lin_b"][i]
        h = h + temb[:, :, None, None]
        h = _silu(_ref_groupnorm(h, p["rcs_gn_w"][i], p["rcs_gn_b"][i], 8))
        h = _ref_conv(h, p["rcs_conv_w"][i], p["rcs_conv_b"][i], 1)
        res = _ref_conv(resnet_input, p["res_conv_w"][i], p["res_conv_b"][i], 0)
        return h + res

    out = resnet(x, 0)
    for i in range(num_layers):
        B, C, H, W = out.shape
        a = out.reshape(B, C, H * W)
        a = _ref_groupnorm(a, p["attn_gn_w"][i], p["attn_gn_b"][i], 8)
        a = jnp.transpose(a, (0, 2, 1))
        oa = _ref_mha(a, p["in_proj_w"][i], p["in_proj_b"][i],
                      p["out_proj_w"][i], p["out_proj_b"][i], heads)
        oa = jnp.transpose(oa, (0, 2, 1)).reshape(B, C, H, W)
        out = out + oa
        out = resnet(out, i + 1)
    return out


# --------------------------------------------------------------------------
# Deterministic parameter init (PyTorch weight layouts)
# --------------------------------------------------------------------------
def init_params(key, Cin, Cout, T, num_layers):
    n = num_layers + 1
    keys = iter(jax.random.split(key, 64))
    nrm = lambda shape, s=0.1: jax.random.normal(next(keys), shape, jnp.float32) * s
    p = {}
    p["rcf_gn_w"] = [nrm((Cin if i == 0 else Cout,)) + 1.0 for i in range(n)]
    p["rcf_gn_b"] = [nrm((Cin if i == 0 else Cout,)) for i in range(n)]
    p["rcf_conv_w"] = [nrm((Cout, Cin if i == 0 else Cout, 3, 3)) for i in range(n)]
    p["rcf_conv_b"] = [nrm((Cout,)) for i in range(n)]
    p["t_lin_w"] = [nrm((Cout, T)) for _ in range(n)]
    p["t_lin_b"] = [nrm((Cout,)) for _ in range(n)]
    p["rcs_gn_w"] = [nrm((Cout,)) + 1.0 for _ in range(n)]
    p["rcs_gn_b"] = [nrm((Cout,)) for _ in range(n)]
    p["rcs_conv_w"] = [nrm((Cout, Cout, 3, 3)) for _ in range(n)]
    p["rcs_conv_b"] = [nrm((Cout,)) for _ in range(n)]
    p["attn_gn_w"] = [nrm((Cout,)) + 1.0 for _ in range(num_layers)]
    p["attn_gn_b"] = [nrm((Cout,)) for _ in range(num_layers)]
    p["in_proj_w"] = [nrm((3 * Cout, Cout)) for _ in range(num_layers)]
    p["in_proj_b"] = [nrm((3 * Cout,)) for _ in range(num_layers)]
    p["out_proj_w"] = [nrm((Cout, Cout)) for _ in range(num_layers)]
    p["out_proj_b"] = [nrm((Cout,)) for _ in range(num_layers)]
    p["res_conv_w"] = [nrm((Cout, Cin if i == 0 else Cout, 1, 1)) for i in range(n)]
    p["res_conv_b"] = [nrm((Cout,)) for i in range(n)]
    return p


if __name__ == "__main__":
    B, Cin, Cout, H, W, T, heads, layers = 2, 8, 16, 8, 8, 32, 4, 1
    key = jax.random.PRNGKey(0)
    kx, kt, kp = jax.random.split(key, 3)
    x = jax.random.normal(kx, (B, Cin, H, W), jnp.float32)
    t_emb = jax.random.normal(kt, (B, T), jnp.float32)
    params = init_params(kp, Cin, Cout, T, layers)
    prep = prepare_params(params, heads, layers, H * W)

    fwd = jax.jit(functools.partial(midblock_forward, num_heads=heads, num_layers=layers))
    out = jax.block_until_ready(fwd(x, t_emb, prep))

    ref = ref_forward(x, t_emb, params, heads=heads, num_layers=layers)
    # bf16 MXU operands + bf16 inter-kernel activations, f32 accumulation -> loose tolerance.
    np.testing.assert_allclose(np.asarray(out), np.asarray(ref), rtol=5e-2, atol=5e-2)
    print("KERNEL_OK")
</pallas_src>

<mosaic_0001>
module attributes {stable_mosaic.version = 11 : i64} {
  func.func @_gn_silu_conv3x3_kernel(%arg0: i32, %arg1: memref<1x64x8xbf16, #tpu.memory_space<vmem>>, %arg2: memref<8x8xf32, #tpu.memory_space<vmem>>, %arg3: memref<1x8xf32, #tpu.memory_space<vmem>>, %arg4: memref<1x8xf32, #tpu.memory_space<vmem>>, %arg5: memref<72x16xbf16, #tpu.memory_space<vmem>>, %arg6: memref<1x1x16xf32, #tpu.memory_space<vmem>>, %arg7: memref<1x64x16xbf16, #tpu.memory_space<vmem>>, %arg8: memref<96x8xf32, #tpu.memory_space<vmem>>, %arg9: memref<64x72xbf16, #tpu.memory_space<vmem>>) attributes {dimension_semantics = [#tpu.dimension_semantics<parallel>], iteration_bounds = array<i64: 2>, scalar_prefetch = 0 : i64, scratch_operands = 2 : i64, tpu.core_type = #tpu.core_type<tc>, window_params = [{transform_indices = @transform_0, window_bounds = array<i64: 1, 64, 8>}, {pipeline_mode = #tpu.pipeline_mode<synchronous>, transform_indices = @transform_1, window_bounds = array<i64: 8, 8>}, {pipeline_mode = #tpu.pipeline_mode<synchronous>, transform_indices = @transform_2, window_bounds = array<i64: 1, 8>}, {pipeline_mode = #tpu.pipeline_mode<synchronous>, transform_indices = @transform_3, window_bounds = array<i64: 1, 8>}, {pipeline_mode = #tpu.pipeline_mode<synchronous>, transform_indices = @transform_4, window_bounds = array<i64: 72, 16>}, {transform_indices = @transform_5, window_bounds = array<i64: 1, 1, 16>}, {transform_indices = @transform_6, window_bounds = array<i64: 1, 64, 16>}]} {
    %c0 = arith.constant 0 : index
    %c0_0 = arith.constant 0 : index
    %c0_1 = arith.constant 0 : index
    %0 = vector.load %arg1[%c0, %c0_0, %c0_1] : memref<1x64x8xbf16, #tpu.memory_space<vmem>>, vector<1x64x8xbf16>
    %1 = vector.shape_cast %0 : vector<1x64x8xbf16> to vector<64x8xbf16>
    %2 = arith.extf %1 : vector<64x8xbf16> to vector<64x8xf32>
    %cst = arith.constant dense<0.000000e+00> : vector<8xf32>
    %3 = vector.multi_reduction <add>, %2, %cst [0] : vector<64x8xf32> to vector<8xf32>
    %4 = vector.shape_cast %3 : vector<8xf32> to vector<1x8xf32>
    %c0_2 = arith.constant 0 : index
    %c0_3 = arith.constant 0 : index
    %5 = vector.load %arg2[%c0_2, %c0_3] : memref<8x8xf32, #tpu.memory_space<vmem>>, vector<8x8xf32>
    %cst_4 = arith.constant dense<0.000000e+00> : vector<1x8xf32>
    %6 = tpu.matmul %4, %5, %cst_4 {dimension_numbers = #tpu.dot_dimension_numbers<[1], [0], [0], [1], [0, 0, 1, 1], [], []>} : vector<1x8xf32>, vector<8x8xf32>, vector<1x8xf32> -> vector<1x8xf32>
    %7 = vector.broadcast %6 : vector<1x8xf32> to vector<64x8xf32>
    %8 = arith.subf %2, %7 : vector<64x8xf32>
    %9 = arith.mulf %8, %8 : vector<64x8xf32>
    %cst_5 = arith.constant dense<0.000000e+00> : vector<8xf32>
    %10 = vector.multi_reduction <add>, %9, %cst_5 [0] : vector<64x8xf32> to vector<8xf32>
    %11 = vector.shape_cast %10 : vector<8xf32> to vector<1x8xf32>
    %c0_6 = arith.constant 0 : index
    %c0_7 = arith.constant 0 : index
    %12 = vector.load %arg2[%c0_6, %c0_7] : memref<8x8xf32, #tpu.memory_space<vmem>>, vector<8x8xf32>
    %cst_8 = arith.constant dense<0.000000e+00> : vector<1x8xf32>
    %13 = tpu.matmul %11, %12, %cst_8 {dimension_numbers = #tpu.dot_dimension_numbers<[1], [0], [0], [1], [0, 0, 1, 1], [], []>} : vector<1x8xf32>, vector<8x8xf32>, vector<1x8xf32> -> vector<1x8xf32>
    %cst_9 = arith.constant 0.000000e+00 : f32
    %14 = vector.broadcast %cst_9 : f32 to vector<1x8xf32>
    %15 = arith.maximumf %13, %14 : vector<1x8xf32>
    %cst_10 = arith.constant 9.99999974E-6 : f32
    %16 = vector.broadcast %cst_10 : f32 to vector<1x8xf32>
    %17 = arith.addf %15, %16 : vector<1x8xf32>
    %18 = math.rsqrt %17 : vector<1x8xf32>
    %19 = vector.broadcast %18 : vector<1x8xf32> to vector<64x8xf32>
    %20 = arith.mulf %8, %19 : vector<64x8xf32>
    %c0_11 = arith.constant 0 : index
    %c0_12 = arith.constant 0 : index
    %21 = vector.load %arg3[%c0_11, %c0_12] : memref<1x8xf32, #tpu.memory_space<vmem>>, vector<1x8xf32>
    %22 = vector.broadcast %21 : vector<1x8xf32> to vector<64x8xf32>
    %23 = arith.mulf %20, %22 : vector<64x8xf32>
    %c0_13 = arith.constant 0 : index
    %c0_14 = arith.constant 0 : index
    %24 = vector.load %arg4[%c0_13, %c0_14] : memref<1x8xf32, #tpu.memory_space<vmem>>, vector<1x8xf32>
    %25 = vector.broadcast %24 : vector<1x8xf32> to vector<64x8xf32>
    %26 = arith.addf %23, %25 : vector<64x8xf32>
    %27 = arith.negf %26 : vector<64x8xf32>
    %28 = math.exp %27 : vector<64x8xf32>
    %cst_15 = arith.constant 1.000000e+00 : f32
    %29 = vector.broadcast %cst_15 : f32 to vector<64x8xf32>
    %30 = arith.addf %29, %28 : vector<64x8xf32>
    %31 = arith.divf %29, %30 : vector<64x8xf32>
    %32 = arith.mulf %26, %31 : vector<64x8xf32>
    %cst_16 = arith.constant 0.000000e+00 : f32
    %33 = vector.broadcast %cst_16 : f32 to vector<16x8xf32>
    %c0_17 = arith.constant 0 : index
    %c0_18 = arith.constant 0 : index
    %34 = vector.load %arg8[%c0_17, %c0_18] : memref<96x8xf32, #tpu.memory_space<vmem>>, vector<16x8xf32>
    tpu.vector_store %arg8[%c0_17, %c0_18], %33 {strides = array<i32>} : memref<96x8xf32, #tpu.memory_space<vmem>>, vector<16x8xf32>,
    %cst_19 = arith.constant 0.000000e+00 : f32
    %35 = vector.broadcast %cst_19 : f32 to vector<16x8xf32>
    %c80 = arith.constant 80 : index
    %c0_20 = arith.constant 0 : index
    %36 = vector.load %arg8[%c80, %c0_20] : memref<96x8xf32, #tpu.memory_space<vmem>>, vector<16x8xf32>
    tpu.vector_store %arg8[%c80, %c0_20], %35 {strides = array<i32>} : memref<96x8xf32, #tpu.memory_space<vmem>>, vector<16x8xf32>,
    %c16 = arith.constant 16 : index
    %c0_21 = arith.constant 0 : index
    %37 = vector.load %arg8[%c16, %c0_21] : memref<96x8xf32, #tpu.memory_space<vmem>>, vector<64x8xf32>
    tpu.vector_store %arg8[%c16, %c0_21], %32 {strides = array<i32>} : memref<96x8xf32, #tpu.memory_space<vmem>>, vector<64x8xf32>,
    %38 = tpu.iota {dimensions = array<i32: 0>} : vector<64x1xi32>
    %c8_i32 = arith.constant 8 : i32
    %c0_i32 = arith.constant 0 : i32
    %39 = arith.cmpi eq, %c8_i32, %c0_i32 : i32
    %c1_i32 = arith.constant 1 : i32
    %40 = arith.select %39, %c1_i32, %c8_i32 : i32
    %41 = vector.broadcast %40 : i32 to vector<64x1xi32>
    %42 = arith.remsi %38, %41 : vector<64x1xi32>
    %c0_i32_22 = arith.constant 0 : i32
    %43 = vector.broadcast %c0_i32_22 : i32 to vector<64x1xi32>
    %44 = arith.cmpi ne, %42, %43 : vector<64x1xi32>
    %c0_i32_23 = arith.constant 0 : i32
    %45 = vector.broadcast %c0_i32_23 : i32 to vector<64x1xi32>
    %46 = arith.cmpi slt, %42, %45 : vector<64x1xi32>
    %c0_i32_24 = arith.constant 0 : i32
    %47 = arith.cmpi slt, %40, %c0_i32_24 : i32
    %48 = vector.broadcast %47 : i1 to vector<64x1xi1>
    %49 = vector.broadcast %48 : vector<64x1xi1> to vector<64x1xi1>
    %50 = arith.xori %46, %49 : vector<64x1xi1>
    %51 = arith.andi %50, %44 : vector<64x1xi1>
    %52 = vector.broadcast %40 : i32 to vector<64x1xi32>
    %53 = arith.addi %42, %52 : vector<64x1xi32>
    %54 = arith.select %51, %53, %42 : vector<64x1xi1>, vector<64x1xi32>
    %c0_i32_25 = arith.constant 0 : i32
    %55 = vector.broadcast %c0_i32_25 : i32 to vector<64x1xi32>
    %56 = arith.cmpi sgt, %54, %55 : vector<64x1xi32>
    %c7_i32 = arith.constant 7 : i32
    %57 = vector.broadcast %c7_i32 : i32 to vector<64x1xi32>
    %58 = arith.cmpi slt, %54, %57 : vector<64x1xi32>
    %c7 = arith.constant 7 : index
    %c0_26 = arith.constant 0 : index
    %59 = vector.load %arg8[%c7, %c0_26] : memref<96x8xf32, #tpu.memory_space<vmem>>, vector<64x8xf32>
    %60 = arith.truncf %59 : vector<64x8xf32> to vector<64x8xbf16>
    %cst_27 = arith.constant 0.000000e+00 : bf16
    %61 = vector.broadcast %cst_27 : bf16 to vector<64x8xbf16>
    %62 = vector.shape_cast %56 : vector<64x1xi1> to vector<64x1xi1>
    %63 = vector.broadcast %62 : vector<64x1xi1> to vector<64x8xi1>
    %64 = arith.select %63, %60, %61 : vector<64x8xi1>, vector<64x8xbf16>
    %c0_28 = arith.constant 0 : index
    %c0_29 = arith.constant 0 : index
    %65 = vector.load %arg9[%c0_28, %c0_29] : memref<64x72xbf16, #tpu.memory_space<vmem>>, vector<64x8xbf16>
    tpu.vector_store %arg9[%c0_28, %c0_29], %64 {strides = array<i32>} : memref<64x72xbf16, #tpu.memory_space<vmem>>, vector<64x8xbf16>,
    %c8 = arith.constant 8 : index
    %c0_30 = arith.constant 0 : index
    %66 = vector.load %arg8[%c8, %c0_30] : memref<96x8xf32, #tpu.memory_space<vmem>>, vector<64x8xf32>
    %67 = arith.truncf %66 : vector<64x8xf32> to vector<64x8xbf16>
    %c0_31 = arith.constant 0 : index
    %c8_32 = arith.constant 8 : index
    %68 = vector.load %arg9[%c0_31, %c8_32] : memref<64x72xbf16, #tpu.memory_space<vmem>>, vector<64x8xbf16>
    tpu.vector_store %arg9[%c0_31, %c8_32], %67 {strides = array<i32>} : memref<64x72xbf16, #tpu.memory_space<vmem>>, vector<64x8xbf16>,
    %c9 = arith.constant 9 : index
    %c0_33 = arith.constant 0 : index
    %69 = vector.load %arg8[%c9, %c0_33] : memref<96x8xf32, #tpu.memory_space<vmem>>, vector<64x8xf32>
    %70 = arith.truncf %69 : vector<64x8xf32> to vector<64x8xbf16>
    %cst_34 = arith.constant 0.000000e+00 : bf16
    %71 = vector.broadcast %cst_34 : bf16 to vector<64x8xbf16>
    %72 = vector.shape_cast %58 : vector<64x1xi1> to vector<64x1xi1>
    %73 = vector.broadcast %72 : vector<64x1xi1> to vector<64x8xi1>
    %74 = arith.select %73, %70, %71 : vector<64x8xi1>, vector<64x8xbf16>
    %c0_35 = arith.constant 0 : index
    %c16_36 = arith.constant 16 : index
    %75 = vector.load %arg9[%c0_35, %c16_36] : memref<64x72xbf16, #tpu.memory_space<vmem>>, vector<64x8xbf16>
    tpu.vector_store %arg9[%c0_35, %c16_36], %74 {strides = array<i32>} : memref<64x72xbf16, #tpu.memory_space<vmem>>, vector<64x8xbf16>,
    %c15 = arith.constant 15 : index
    %c0_37 = arith.constant 0 : index
    %76 = vector.load %arg8[%c15, %c0_37] : memref<96x8xf32, #tpu.memory_space<vmem>>, vector<64x8xf32>
    %77 = arith.truncf %76 : vector<64x8xf32> to vector<64x8xbf16>
    %cst_38 = arith.constant 0.000000e+00 : bf16
    %78 = vector.broadcast %cst_38 : bf16 to vector<64x8xbf16>
    %79 = vector.shape_cast %56 : vector<64x1xi1> to vector<64x1xi1>
    %80 = vector.broadcast %79 : vector<64x1xi1> to vector<64x8xi1>
    %81 = arith.select %80, %77, %78 : vector<64x8xi1>, vector<64x8xbf16>
    %c0_39 = arith.constant 0 : index
    %c24 = arith.constant 24 : index
    %82 = vector.load %arg9[%c0_39, %c24] : memref<64x72xbf16, #tpu.memory_space<vmem>>, vector<64x8xbf16>
    tpu.vector_store %arg9[%c0_39, %c24], %81 {strides = array<i32>} : memref<64x72xbf16, #tpu.memory_space<vmem>>, vector<64x8xbf16>,
    %c16_40 = arith.constant 16 : index
    %c0_41 = arith.constant 0 : index
    %83 = vector.load %arg8[%c16_40, %c0_41] : memref<96x8xf32, #tpu.memory_space<vmem>>, vector<64x8xf32>
    %84 = arith.truncf %83 : vector<64x8xf32> to vector<64x8xbf16>
    %c0_42 = arith.constant 0 : index
    %c32 = arith.constant 32 : index
    %85 = vector.load %arg9[%c0_42, %c32] : memref<64x72xbf16, #tpu.memory_space<vmem>>, vector<64x8xbf16>
    tpu.vector_store %arg9[%c0_42, %c32], %84 {strides = array<i32>} : memref<64x72xbf16, #tpu.memory_space<vmem>>, vector<64x8xbf16>,
    %c17 = arith.constant 17 : index
    %c0_43 = arith.constant 0 : index
    %86 = vector.load %arg8[%c17, %c0_43] : memref<96x8xf32, #tpu.memory_space<vmem>>, vector<64x8xf32>
    %87 = arith.truncf %86 : vector<64x8xf32> to vector<64x8xbf16>
    %cst_44 = arith.constant 0.000000e+00 : bf16
    %88 = vector.broadcast %cst_44 : bf16 to vector<64x8xbf16>
    %89 = vector.shape_cast %58 : vector<64x1xi1> to vector<64x1xi1>
    %90 = vector.broadcast %89 : vector<64x1xi1> to vector<64x8xi1>
    %91 = arith.select %90, %87, %88 : vector<64x8xi1>, vector<64x8xbf16>
    %c0_45 = arith.constant 0 : index
    %c40 = arith.constant 40 : index
    %92 = vector.load %arg9[%c0_45, %c40] : memref<64x72xbf16, #tpu.memory_space<vmem>>, vector<64x8xbf16>
    tpu.vector_store %arg9[%c0_45, %c40], %91 {strides = array<i32>} : memref<64x72xbf16, #tpu.memory_space<vmem>>, vector<64x8xbf16>,
    %c23 = arith.constant 23 : index
    %c0_46 = arith.constant 0 : index
    %93 = vector.load %arg8[%c23, %c0_46] : memref<96x8xf32, #tpu.memory_space<vmem>>, vector<64x8xf32>
    %94 = arith.truncf %93 : vector<64x8xf32> to vector<64x8xbf16>
    %cst_47 = arith.constant 0.000000e+00 : bf16
    %95 = vector.broadcast %cst_47 : bf16 to vector<64x8xbf16>
    %96 = vector.shape_cast %56 : vector<64x1xi1> to vector<64x1xi1>
    %97 = vector.broadcast %96 : vector<64x1xi1> to vector<64x8xi1>
    %98 = arith.select %97, %94, %95 : vector<64x8xi1>, vector<64x8xbf16>
    %c0_48 = arith.constant 0 : index
    %c48 = arith.constant 48 : index
    %99 = vector.load %arg9[%c0_48, %c48] : memref<64x72xbf16, #tpu.memory_space<vmem>>, vector<64x8xbf16>
    tpu.vector_store %arg9[%c0_48, %c48], %98 {strides = array<i32>} : memref<64x72xbf16, #tpu.memory_space<vmem>>, vector<64x8xbf16>,
    %c24_49 = arith.constant 24 : index
    %c0_50 = arith.constant 0 : index
    %100 = vector.load %arg8[%c24_49, %c0_50] : memref<96x8xf32, #tpu.memory_space<vmem>>, vector<64x8xf32>
    %101 = arith.truncf %100 : vector<64x8xf32> to vector<64x8xbf16>
    %c0_51 = arith.constant 0 : index
    %c56 = arith.constant 56 : index
    %102 = vector.load %arg9[%c0_51, %c56] : memref<64x72xbf16, #tpu.memory_space<vmem>>, vector<64x8xbf16>
    tpu.vector_store %arg9[%c0_51, %c56], %101 {strides = array<i32>} : memref<64x72xbf16, #tpu.memory_space<vmem>>, vector<64x8xbf16>,
    %c25 = arith.constant 25 : index
    %c0_52 = arith.constant 0 : index
    %103 = vector.load %arg8[%c25, %c0_52] : memref<96x8xf32, #tpu.memory_space<vmem>>, vector<64x8xf32>
    %104 = arith.truncf %103 : vector<64x8xf32> to vector<64x8xbf16>
    %cst_53 = arith.constant 0.000000e+00 : bf16
    %105 = vector.broadcast %cst_53 : bf16 to vector<64x8xbf16>
    %106 = vector.shape_cast %58 : vector<64x1xi1> to vector<64x1xi1>
    %107 = vector.broadcast %106 : vector<64x1xi1> to vector<64x8xi1>
    %108 = arith.select %107, %104, %105 : vector<64x8xi1>, vector<64x8xbf16>
    %c0_54 = arith.constant 0 : index
    %c64 = arith.constant 64 : index
    %109 = vector.load %arg9[%c0_54, %c64] : memref<64x72xbf16, #tpu.memory_space<vmem>>, vector<64x8xbf16>
    tpu.vector_store %arg9[%c0_54, %c64], %108 {strides = array<i32>} : memref<64x72xbf16, #tpu.memory_space<vmem>>, vector<64x8xbf16>,
    %c0_55 = arith.constant 0 : index
    %c0_56 = arith.constant 0 : index
    %110 = vector.load %arg9[%c0_55, %c0_56] : memref<64x72xbf16, #tpu.memory_space<vmem>>, vector<64x72xbf16>
    %c0_57 = arith.constant 0 : index
    %c0_58 = arith.constant 0 : index
    %111 = vector.load %arg5[%c0_57, %c0_58] : memref<72x16xbf16, #tpu.memory_space<vmem>>, vector<72x16xbf16>
    %cst_59 = arith.constant dense<0.000000e+00> : vector<64x16xf32>
    %112 = tpu.matmul %110, %111, %cst_59 {dimension_numbers = #tpu.dot_dimension_numbers<[1], [0], [0], [1], [0, 0, 1, 1], [], []>} : vector<64x72xbf16>, vector<72x16xbf16>, vector<64x16xf32> -> vector<64x16xf32>
    %c0_60 = arith.constant 0 : index
    %c0_61 = arith.constant 0 : index
    %c0_62 = arith.constant 0 : index
    %113 = vector.load %arg6[%c0_60, %c0_61, %c0_62] : memref<1x1x16xf32, #tpu.memory_space<vmem>>, vector<1x1x16xf32>
    %114 = vector.shape_cast %113 : vector<1x1x16xf32> to vector<1x16xf32>
    %115 = vector.broadcast %114 : vector<1x16xf32> to vector<64x16xf32>
    %116 = arith.addf %112, %115 : vector<64x16xf32>
    %117 = arith.truncf %116 : vector<64x16xf32> to vector<64x16xbf16>
    %c0_63 = arith.constant 0 : index
    %c0_64 = arith.constant 0 : index
    %c0_65 = arith.constant 0 : index
    %118 = vector.load %arg7[%c0_63, %c0_64, %c0_65] : memref<1x64x16xbf16, #tpu.memory_space<vmem>>, vector<1x64x16xbf16>
    %119 = vector.shape_cast %118 : vector<1x64x16xbf16> to vector<64x16xbf16>
    %120 = vector.shape_cast %117 : vector<64x16xbf16> to vector<1x64x16xbf16>
    tpu.vector_store %arg7[%c0_63, %c0_64, %c0_65], %120 {strides = array<i32>} : memref<1x64x16xbf16, #tpu.memory_space<vmem>>, vector<1x64x16xbf16>,
    return
  }
  func.func @transform_0(%arg0: i32) -> (i32, i32, i32) {
    %c0_i32 = arith.constant 0 : i32
    %c0_i32_0 = arith.constant 0 : i32
    %c0_i32_1 = arith.constant 0 : i32
    return %arg0, %c0_i32, %c0_i32_0 : i32, i32, i32
  }
  func.func @transform_1(%arg0: i32) -> (i32, i32) {
    %c0_i32 = arith.constant 0 : i32
    %c0_i32_0 = arith.constant 0 : i32
    %c0_i32_1 = arith.constant 0 : i32
    return %c0_i32, %c0_i32_0 : i32, i32
  }
  func.func @transform_2(%arg0: i32) -> (i32, i32) {
    %c0_i32 = arith.constant 0 : i32
    %c0_i32_0 = arith.constant 0 : i32
    %c0_i32_1 = arith.constant 0 : i32
    return %c0_i32, %c0_i32_0 : i32, i32
  }
  func.func @transform_3(%arg0: i32) -> (i32, i32) {
    %c0_i32 = arith.constant 0 : i32
    %c0_i32_0 = arith.constant 0 : i32
    %c0_i32_1 = arith.constant 0 : i32
    return %c0_i32, %c0_i32_0 : i32, i32
  }
  func.func @transform_4(%arg0: i32) -> (i32, i32) {
    %c0_i32 = arith.constant 0 : i32
    %c0_i32_0 = arith.constant 0 : i32
    %c0_i32_1 = arith.constant 0 : i32
    return %c0_i32, %c0_i32_0 : i32, i32
  }
  func.func @transform_5(%arg0: i32) -> (i32, i32, i32) {
    %c0_i32 = arith.constant 0 : i32
    %c0_i32_0 = arith.constant 0 : i32
    %c0_i32_1 = arith.constant 0 : i32
    return %arg0, %c0_i32, %c0_i32_0 : i32, i32, i32
  }
  func.func @transform_6(%arg0: i32) -> (i32, i32, i32) {
    %c0_i32 = arith.constant 0 : i32
    %c0_i32_0 = arith.constant 0 : i32
    %c0_i32_1 = arith.constant 0 : i32
    return %arg0, %c0_i32, %c0_i32_0 : i32, i32, i32
  }
}

module attributes {stable_mosaic.version = 11 : i64} {
  func.func @_attn_kernel(%arg0: i32, %arg1: memref<1x64x16xbf16, #tpu.memory_space<vmem>>, %arg2: memref<16x16xf32, #tpu.memory_space<vmem>>, %arg3: memref<1x16xf32, #tpu.memory_space<vmem>>, %arg4: memref<1x16xf32, #tpu.memory_space<vmem>>, %arg5: memref<16x48xbf16, #tpu.memory_space<vmem>>, %arg6: memref<1x48xf32, #tpu.memory_space<vmem>>, %arg7: memref<16x16xbf16, #tpu.memory_space<vmem>>, %arg8: memref<1x16xf32, #tpu.memory_space<vmem>>, %arg9: memref<1x64x16xbf16, #tpu.memory_space<vmem>>, %arg10: memref<64x16xbf16, #tpu.memory_space<vmem>>) attributes {dimension_semantics = [#tpu.dimension_semantics<parallel>], iteration_bounds = array<i64: 2>, scalar_prefetch = 0 : i64, scratch_operands = 1 : i64, tpu.core_type = #tpu.core_type<tc>, window_params = [{transform_indices = @transform_0, window_bounds = array<i64: 1, 64, 16>}, {pipeline_mode = #tpu.pipeline_mode<synchronous>, transform_indices = @transform_1, window_bounds = array<i64: 16, 16>}, {pipeline_mode = #tpu.pipeline_mode<synchronous>, transform_indices = @transform_2, window_bounds = array<i64: 1, 16>}, {pipeline_mode = #tpu.pipeline_mode<synchronous>, transform_indices = @transform_3, window_bounds = array<i64: 1, 16>}, {pipeline_mode = #tpu.pipeline_mode<synchronous>, transform_indices = @transform_4, window_bounds = array<i64: 16, 48>}, {pipeline_mode = #tpu.pipeline_mode<synchronous>, transform_indices = @transform_5, window_bounds = array<i64: 1, 48>}, {pipeline_mode = #tpu.pipeline_mode<synchronous>, transform_indices = @transform_6, window_bounds = array<i64: 16, 16>}, {pipeline_mode = #tpu.pipeline_mode<synchronous>, transform_indices = @transform_7, window_bounds = array<i64: 1, 16>}, {transform_indices = @transform_8, window_bounds = array<i64: 1, 64, 16>}]} {
    %c0 = arith.constant 0 : index
    %c0_0 = arith.constant 0 : index
    %c0_1 = arith.constant 0 : index
    %0 = vector.load %arg1[%c0, %c0_0, %c0_1] : memref<1x64x16xbf16, #tpu.memory_space<vmem>>, vector<1x64x16xbf16>
    %1 = vector.shape_cast %0 : vector<1x64x16xbf16> to vector<64x16xbf16>
    %2 = arith.extf %1 : vector<64x16xbf16> to vector<64x16xf32>
    %cst = arith.constant dense<0.000000e+00> : vector<16xf32>
    %3 = vector.multi_reduction <add>, %2, %cst [0] : vector<64x16xf32> to vector<16xf32>
    %4 = vector.shape_cast %3 : vector<16xf32> to vector<1x16xf32>
    %c0_2 = arith.constant 0 : index
    %c0_3 = arith.constant 0 : index
    %5 = vector.load %arg2[%c0_2, %c0_3] : memref<16x16xf32, #tpu.memory_space<vmem>>, vector<16x16xf32>
    %cst_4 = arith.constant dense<0.000000e+00> : vector<1x16xf32>
    %6 = tpu.matmul %4, %5, %cst_4 {dimension_numbers = #tpu.dot_dimension_numbers<[1], [0], [0], [1], [0, 0, 1, 1], [], []>} : vector<1x16xf32>, vector<16x16xf32>, vector<1x16xf32> -> vector<1x16xf32>
    %7 = vector.broadcast %6 : vector<1x16xf32> to vector<64x16xf32>
    %8 = arith.subf %2, %7 : vector<64x16xf32>
    %9 = arith.mulf %8, %8 : vector<64x16xf32>
    %cst_5 = arith.constant dense<0.000000e+00> : vector<16xf32>
    %10 = vector.multi_reduction <add>, %9, %cst_5 [0] : vector<64x16xf32> to vector<16xf32>
    %11 = vector.shape_cast %10 : vector<16xf32> to vector<1x16xf32>
    %c0_6 = arith.constant 0 : index
    %c0_7 = arith.constant 0 : index
    %12 = vector.load %arg2[%c0_6, %c0_7] : memref<16x16xf32, #tpu.memory_space<vmem>>, vector<16x16xf32>
    %cst_8 = arith.constant dense<0.000000e+00> : vector<1x16xf32>
    %13 = tpu.matmul %11, %12, %cst_8 {dimension_numbers = #tpu.dot_dimension_numbers<[1], [0], [0], [1], [0, 0, 1, 1], [], []>} : vector<1x16xf32>, vector<16x16xf32>, vector<1x16xf32> -> vector<1x16xf32>
    %cst_9 = arith.constant 0.000000e+00 : f32
    %14 = vector.broadcast %cst_9 : f32 to vector<1x16xf32>
    %15 = arith.maximumf %13, %14 : vector<1x16xf32>
    %cst_10 = arith.constant 9.99999974E-6 : f32
    %16 = vector.broadcast %cst_10 : f32 to vector<1x16xf32>
    %17 = arith.addf %15, %16 : vector<1x16xf32>
    %18 = math.rsqrt %17 : vector<1x16xf32>
    %19 = vector.broadcast %18 : vector<1x16xf32> to vector<64x16xf32>
    %20 = arith.mulf %8, %19 : vector<64x16xf32>
    %c0_11 = arith.constant 0 : index
    %c0_12 = arith.constant 0 : index
    %21 = vector.load %arg3[%c0_11, %c0_12] : memref<1x16xf32, #tpu.memory_space<vmem>>, vector<1x16xf32>
    %22 = vector.broadcast %21 : vector<1x16xf32> to vector<64x16xf32>
    %23 = arith.mulf %20, %22 : vector<64x16xf32>
    %c0_13 = arith.constant 0 : index
    %c0_14 = arith.constant 0 : index
    %24 = vector.load %arg4[%c0_13, %c0_14] : memref<1x16xf32, #tpu.memory_space<vmem>>, vector<1x16xf32>
    %25 = vector.broadcast %24 : vector<1x16xf32> to vector<64x16xf32>
    %26 = arith.addf %23, %25 : vector<64x16xf32>
    %27 = arith.truncf %26 : vector<64x16xf32> to vector<64x16xbf16>
    %c0_15 = arith.constant 0 : index
    %c0_16 = arith.constant 0 : index
    %28 = vector.load %arg5[%c0_15, %c0_16] : memref<16x48xbf16, #tpu.memory_space<vmem>>, vector<16x48xbf16>
    %cst_17 = arith.constant dense<0.000000e+00> : vector<64x48xf32>
    %29 = tpu.matmul %27, %28, %cst_17 {dimension_numbers = #tpu.dot_dimension_numbers<[1], [0], [0], [1], [0, 0, 1, 1], [], []>} : vector<64x16xbf16>, vector<16x48xbf16>, vector<64x48xf32> -> vector<64x48xf32>
    %c0_18 = arith.constant 0 : index
    %c0_19 = arith.constant 0 : index
    %30 = vector.load %arg6[%c0_18, %c0_19] : memref<1x48xf32, #tpu.memory_space<vmem>>, vector<1x48xf32>
    %31 = vector.broadcast %30 : vector<1x48xf32> to vector<64x48xf32>
    %32 = arith.addf %29, %31 : vector<64x48xf32>
    %33 = vector.extract_strided_slice %32 {offsets = [0, 0], sizes = [64, 4], strides = [1, 1]} : vector<64x48xf32> to vector<64x4xf32>
    %34 = arith.truncf %33 : vector<64x4xf32> to vector<64x4xbf16>
    %35 = vector.extract_strided_slice %32 {offsets = [0, 16], sizes = [64, 4], strides = [1, 1]} : vector<64x48xf32> to vector<64x4xf32>
    %36 = arith.truncf %35 : vector<64x4xf32> to vector<64x4xbf16>
    %37 = vector.extract_strided_slice %32 {offsets = [0, 32], sizes = [64, 4], strides = [1, 1]} : vector<64x48xf32> to vector<64x4xf32>
    %38 = arith.truncf %37 : vector<64x4xf32> to vector<64x4xbf16>
    %cst_20 = arith.constant dense<0.000000e+00> : vector<64x64xf32>
    %39 = tpu.matmul %34, %36, %cst_20 {dimension_numbers = #tpu.dot_dimension_numbers<[1], [1], [0], [0], [0, 0, 1, 0], [], []>} : vector<64x4xbf16>, vector<64x4xbf16>, vector<64x64xf32> -> vector<64x64xf32>
    %cst_21 = arith.constant dense<0xFF800000> : vector<64xf32>
    %40 = vector.multi_reduction <maximumf>, %39, %cst_21 [1] : vector<64x64xf32> to vector<64xf32>
    %41 = vector.shape_cast %40 : vector<64xf32> to vector<64x1xf32>
    %42 = vector.broadcast %41 : vector<64x1xf32> to vector<64x64xf32>
    %43 = arith.subf %39, %42 : vector<64x64xf32>
    %44 = math.exp %43 : vector<64x64xf32>
    %cst_22 = arith.constant dense<0.000000e+00> : vector<64xf32>
    %45 = vector.multi_reduction <add>, %44, %cst_22 [1] : vector<64x64xf32> to vector<64xf32>
    %46 = vector.shape_cast %45 : vector<64xf32> to vector<64x1xf32>
    %47 = arith.truncf %44 : vector<64x64xf32> to vector<64x64xbf16>
    %cst_23 = arith.constant dense<0.000000e+00> : vector<64x4xf32>
    %48 = tpu.matmul %47, %38, %cst_23 {dimension_numbers = #tpu.dot_dimension_numbers<[1], [0], [0], [1], [0, 0, 1, 1], [], []>} : vector<64x64xbf16>, vector<64x4xbf16>, vector<64x4xf32> -> vector<64x4xf32>
    %49 = tpu.reciprocal %46 {approx = true} : vector<64x1xf32> -> vector<64x1xf32>
    %50 = vector.broadcast %49 : vector<64x1xf32> to vector<64x4xf32>
    %51 = arith.mulf %48, %50 : vector<64x4xf32>
    %52 = arith.truncf %51 : vector<64x4xf32> to vector<64x4xbf16>
    %c0_24 = arith.constant 0 : index
    %c0_25 = arith.constant 0 : index
    %53 = vector.load %arg10[%c0_24, %c0_25] : memref<64x16xbf16, #tpu.memory_space<vmem>>, vector<64x4xbf16>
    tpu.vector_store %arg10[%c0_24, %c0_25], %52 {strides = array<i32>} : memref<64x16xbf16, #tpu.memory_space<vmem>>, vector<64x4xbf16>,
    %54 = vector.extract_strided_slice %32 {offsets = [0, 4], sizes = [64, 4], strides = [1, 1]} : vector<64x48xf32> to vector<64x4xf32>
    %55 = arith.truncf %54 : vector<64x4xf32> to vector<64x4xbf16>
    %56 = vector.extract_strided_slice %32 {offsets = [0, 20], sizes = [64, 4], strides = [1, 1]} : vector<64x48xf32> to vector<64x4xf32>
    %57 = arith.truncf %56 : vector<64x4xf32> to vector<64x4xbf16>
    %58 = vector.extract_strided_slice %32 {offsets = [0, 36], sizes = [64, 4], strides = [1, 1]} : vector<64x48xf32> to vector<64x4xf32>
    %59 = arith.truncf %58 : vector<64x4xf32> to vector<64x4xbf16>
    %cst_26 = arith.constant dense<0.000000e+00> : vector<64x64xf32>
    %60 = tpu.matmul %55, %57, %cst_26 {dimension_numbers = #tpu.dot_dimension_numbers<[1], [1], [0], [0], [0, 0, 1, 0], [], []>} : vector<64x4xbf16>, vector<64x4xbf16>, vector<64x64xf32> -> vector<64x64xf32>
    %cst_27 = arith.constant dense<0xFF800000> : vector<64xf32>
    %61 = vector.multi_reduction <maximumf>, %60, %cst_27 [1] : vector<64x64xf32> to vector<64xf32>
    %62 = vector.shape_cast %61 : vector<64xf32> to vector<64x1xf32>
    %63 = vector.broadcast %62 : vector<64x1xf32> to vector<64x64xf32>
    %64 = arith.subf %60, %63 : vector<64x64xf32>
    %65 = math.exp %64 : vector<64x64xf32>
    %cst_28 = arith.constant dense<0.000000e+00> : vector<64xf32>
    %66 = vector.multi_reduction <add>, %65, %cst_28 [1] : vector<64x64xf32> to vector<64xf32>
    %67 = vector.shape_cast %66 : vector<64xf32> to vector<64x1xf32>
    %68 = arith.truncf %65 : vector<64x64xf32> to vector<64x64xbf16>
    %cst_29 = arith.constant dense<0.000000e+00> : vector<64x4xf32>
    %69 = tpu.matmul %68, %59, %cst_29 {dimension_numbers = #tpu.dot_dimension_numbers<[1], [0], [0], [1], [0, 0, 1, 1], [], []>} : vector<64x64xbf16>, vector<64x4xbf16>, vector<64x4xf32> -> vector<64x4xf32>
    %70 = tpu.reciprocal %67 {approx = true} : vector<64x1xf32> -> vector<64x1xf32>
    %71 = vector.broadcast %70 : vector<64x1xf32> to vector<64x4xf32>
    %72 = arith.mulf %69, %71 : vector<64x4xf32>
    %73 = arith.truncf %72 : vector<64x4xf32> to vector<64x4xbf16>
    %c0_30 = arith.constant 0 : index
    %c4 = arith.constant 4 : index
    %74 = vector.load %arg10[%c0_30, %c4] : memref<64x16xbf16, #tpu.memory_space<vmem>>, vector<64x4xbf16>
    tpu.vector_store %arg10[%c0_30, %c4], %73 {strides = array<i32>} : memref<64x16xbf16, #tpu.memory_space<vmem>>, vector<64x4xbf16>,
    %75 = vector.extract_strided_slice %32 {offsets = [0, 8], sizes = [64, 4], strides = [1, 1]} : vector<64x48xf32> to vector<64x4xf32>
    %76 = arith.truncf %75 : vector<64x4xf32> to vector<64x4xbf16>
    %77 = vector.extract_strided_slice %32 {offsets = [0, 24], sizes = [64, 4], strides = [1, 1]} : vector<64x48xf32> to vector<64x4xf32>
    %78 = arith.truncf %77 : vector<64x4xf32> to vector<64x4xbf16>
    %79 = vector.extract_strided_slice %32 {offsets = [0, 40], sizes = [64, 4], strides = [1, 1]} : vector<64x48xf32> to vector<64x4xf32>
    %80 = arith.truncf %79 : vector<64x4xf32> to vector<64x4xbf16>
    %cst_31 = arith.constant dense<0.000000e+00> : vector<64x64xf32>
    %81 = tpu.matmul %76, %78, %cst_31 {dimension_numbers = #tpu.dot_dimension_numbers<[1], [1], [0], [0], [0, 0, 1, 0], [], []>} : vector<64x4xbf16>, vector<64x4xbf16>, vector<64x64xf32> -> vector<64x64xf32>
    %cst_32 = arith.constant dense<0xFF800000> : vector<64xf32>
    %82 = vector.multi_reduction <maximumf>, %81, %cst_32 [1] : vector<64x64xf32> to vector<64xf32>
    %83 = vector.shape_cast %82 : vector<64xf32> to vector<64x1xf32>
    %84 = vector.broadcast %83 : vector<64x1xf32> to vector<64x64xf32>
    %85 = arith.subf %81, %84 : vector<64x64xf32>
    %86 = math.exp %85 : vector<64x64xf32>
    %cst_33 = arith.constant dense<0.000000e+00> : vector<64xf32>
    %87 = vector.multi_reduction <add>, %86, %cst_33 [1] : vector<64x64xf32> to vector<64xf32>
    %88 = vector.shape_cast %87 : vector<64xf32> to vector<64x1xf32>
    %89 = arith.truncf %86 : vector<64x64xf32> to vector<64x64xbf16>
    %cst_34 = arith.constant dense<0.000000e+00> : vector<64x4xf32>
    %90 = tpu.matmul %89, %80, %cst_34 {dimension_numbers = #tpu.dot_dimension_numbers<[1], [0], [0], [1], [0, 0, 1, 1], [], []>} : vector<64x64xbf16>, vector<64x4xbf16>, vector<64x4xf32> -> vector<64x4xf32>
    %91 = tpu.reciprocal %88 {approx = true} : vector<64x1xf32> -> vector<64x1xf32>
    %92 = vector.broadcast %91 : vector<64x1xf32> to vector<64x4xf32>
    %93 = arith.mulf %90, %92 : vector<64x4xf32>
    %94 = arith.truncf %93 : vector<64x4xf32> to vector<64x4xbf16>
    %c0_35 = arith.constant 0 : index
    %c8 = arith.constant 8 : index
    %95 = vector.load %arg10[%c0_35, %c8] : memref<64x16xbf16, #tpu.memory_space<vmem>>, vector<64x4xbf16>
    tpu.vector_store %arg10[%c0_35, %c8], %94 {strides = array<i32>} : memref<64x16xbf16, #tpu.memory_space<vmem>>, vector<64x4xbf16>,
    %96 = vector.extract_strided_slice %32 {offsets = [0, 12], sizes = [64, 4], strides = [1, 1]} : vector<64x48xf32> to vector<64x4xf32>
    %97 = arith.truncf %96 : vector<64x4xf32> to vector<64x4xbf16>
    %98 = vector.extract_strided_slice %32 {offsets = [0, 28], sizes = [64, 4], strides = [1, 1]} : vector<64x48xf32> to vector<64x4xf32>
    %99 = arith.truncf %98 : vector<64x4xf32> to vector<64x4xbf16>
    %100 = vector.extract_strided_slice %32 {offsets = [0, 44], sizes = [64, 4], strides = [1, 1]} : vector<64x48xf32> to vector<64x4xf32>
    %101 = arith.truncf %100 : vector<64x4xf32> to vector<64x4xbf16>
    %cst_36 = arith.constant dense<0.000000e+00> : vector<64x64xf32>
    %102 = tpu.matmul %97, %99, %cst_36 {dimension_numbers = #tpu.dot_dimension_numbers<[1], [1], [0], [0], [0, 0, 1, 0], [], []>} : vector<64x4xbf16>, vector<64x4xbf16>, vector<64x64xf32> -> vector<64x64xf32>
    %cst_37 = arith.constant dense<0xFF800000> : vector<64xf32>
    %103 = vector.multi_reduction <maximumf>, %102, %cst_37 [1] : vector<64x64xf32> to vector<64xf32>
    %104 = vector.shape_cast %103 : vector<64xf32> to vector<64x1xf32>
    %105 = vector.broadcast %104 : vector<64x1xf32> to vector<64x64xf32>
    %106 = arith.subf %102, %105 : vector<64x64xf32>
    %107 = math.exp %106 : vector<64x64xf32>
    %cst_38 = arith.constant dense<0.000000e+00> : vector<64xf32>
    %108 = vector.multi_reduction <add>, %107, %cst_38 [1] : vector<64x64xf32> to vector<64xf32>
    %109 = vector.shape_cast %108 : vector<64xf32> to vector<64x1xf32>
    %110 = arith.truncf %107 : vector<64x64xf32> to vector<64x64xbf16>
    %cst_39 = arith.constant dense<0.000000e+00> : vector<64x4xf32>
    %111 = tpu.matmul %110, %101, %cst_39 {dimension_numbers = #tpu.dot_dimension_numbers<[1], [0], [0], [1], [0, 0, 1, 1], [], []>} : vector<64x64xbf16>, vector<64x4xbf16>, vector<64x4xf32> -> vector<64x4xf32>
    %112 = tpu.reciprocal %109 {approx = true} : vector<64x1xf32> -> vector<64x1xf32>
    %113 = vector.broadcast %112 : vector<64x1xf32> to vector<64x4xf32>
    %114 = arith.mulf %111, %113 : vector<64x4xf32>
    %115 = arith.truncf %114 : vector<64x4xf32> to vector<64x4xbf16>
    %c0_40 = arith.constant 0 : index
    %c12 = arith.constant 12 : index
    %116 = vector.load %arg10[%c0_40, %c12] : memref<64x16xbf16, #tpu.memory_space<vmem>>, vector<64x4xbf16>
    tpu.vector_store %arg10[%c0_40, %c12], %115 {strides = array<i32>} : memref<64x16xbf16, #tpu.memory_space<vmem>>, vector<64x4xbf16>,
    %c0_41 = arith.constant 0 : index
    %c0_42 = arith.constant 0 : index
    %117 = vector.load %arg10[%c0_41, %c0_42] : memref<64x16xbf16, #tpu.memory_space<vmem>>, vector<64x16xbf16>
    %c0_43 = arith.constant 0 : index
    %c0_44 = arith.constant 0 : index
    %118 = vector.load %arg7[%c0_43, %c0_44] : memref<16x16xbf16, #tpu.memory_space<vmem>>, vector<16x16xbf16>
    %cst_45 = arith.constant dense<0.000000e+00> : vector<64x16xf32>
    %119 = tpu.matmul %117, %118, %cst_45 {dimension_numbers = #tpu.dot_dimension_numbers<[1], [0], [0], [1], [0, 0, 1, 1], [], []>} : vector<64x16xbf16>, vector<16x16xbf16>, vector<64x16xf32> -> vector<64x16xf32>
    %c0_46 = arith.constant 0 : index
    %c0_47 = arith.constant 0 : index
    %120 = vector.load %arg8[%c0_46, %c0_47] : memref<1x16xf32, #tpu.memory_space<vmem>>, vector<1x16xf32>
    %121 = vector.broadcast %120 : vector<1x16xf32> to vector<64x16xf32>
    %122 = arith.addf %119, %121 : vector<64x16xf32>
    %123 = arith.addf %2, %122 : vector<64x16xf32>
    %124 = arith.truncf %123 : vector<64x16xf32> to vector<64x16xbf16>
    %c0_48 = arith.constant 0 : index
    %c0_49 = arith.constant 0 : index
    %c0_50 = arith.constant 0 : index
    %125 = vector.load %arg9[%c0_48, %c0_49, %c0_50] : memref<1x64x16xbf16, #tpu.memory_space<vmem>>, vector<1x64x16xbf16>
    %126 = vector.shape_cast %125 : vector<1x64x16xbf16> to vector<64x16xbf16>
    %127 = vector.shape_cast %124 : vector<64x16xbf16> to vector<1x64x16xbf16>
    tpu.vector_store %arg9[%c0_48, %c0_49, %c0_50], %127 {strides = array<i32>} : memref<1x64x16xbf16, #tpu.memory_space<vmem>>, vector<1x64x16xbf16>,
    return
  }
  func.func @transform_0(%arg0: i32) -> (i32, i32, i32) {
    %c0_i32 = arith.constant 0 : i32
    %c0_i32_0 = arith.constant 0 : i32
    %c0_i32_1 = arith.constant 0 : i32
    return %arg0, %c0_i32, %c0_i32_0 : i32, i32, i32
  }
  func.func @transform_1(%arg0: i32) -> (i32, i32) {
    %c0_i32 = arith.constant 0 : i32
    %c0_i32_0 = arith.constant 0 : i32
    %c0_i32_1 = arith.constant 0 : i32
    return %c0_i32, %c0_i32_0 : i32, i32
  }
  func.func @transform_2(%arg0: i32) -> (i32, i32) {
    %c0_i32 = arith.constant 0 : i32
    %c0_i32_0 = arith.constant 0 : i32
    %c0_i32_1 = arith.constant 0 : i32
    return %c0_i32, %c0_i32_0 : i32, i32
  }
  func.func @transform_3(%arg0: i32) -> (i32, i32) {
    %c0_i32 = arith.constant 0 : i32
    %c0_i32_0 = arith.constant 0 : i32
    %c0_i32_1 = arith.constant 0 : i32
    return %c0_i32, %c0_i32_0 : i32, i32
  }
  func.func @transform_4(%arg0: i32) -> (i32, i32) {
    %c0_i32 = arith.constant 0 : i32
    %c0_i32_0 = arith.constant 0 : i32
    %c0_i32_1 = arith.constant 0 : i32
    return %c0_i32, %c0_i32_0 : i32, i32
  }
  func.func @transform_5(%arg0: i32) -> (i32, i32) {
    %c0_i32 = arith.constant 0 : i32
    %c0_i32_0 = arith.constant 0 : i32
    %c0_i32_1 = arith.constant 0 : i32
    return %c0_i32, %c0_i32_0 : i32, i32
  }
  func.func @transform_6(%arg0: i32) -> (i32, i32) {
    %c0_i32 = arith.constant 0 : i32
    %c0_i32_0 = arith.constant 0 : i32
    %c0_i32_1 = arith.constant 0 : i32
    return %c0_i32, %c0_i32_0 : i32, i32
  }
  func.func @transform_7(%arg0: i32) -> (i32, i32) {
    %c0_i32 = arith.constant 0 : i32
    %c0_i32_0 = arith.constant 0 : i32
    %c0_i32_1 = arith.constant 0 : i32
    return %c0_i32, %c0_i32_0 : i32, i32
  }
  func.func @transform_8(%arg0: i32) -> (i32, i32, i32) {
    %c0_i32 = arith.constant 0 : i32
    %c0_i32_0 = arith.constant 0 : i32
    %c0_i32_1 = arith.constant 0 : i32
    return %arg0, %c0_i32, %c0_i32_0 : i32, i32, i32
  }
}

module attributes {stable_mosaic.version = 11 : i64} {
  func.func @_gn_silu_conv3x3_kernel(%arg0: i32, %arg1: memref<1x64x16xbf16, #tpu.memory_space<vmem>>, %arg2: memref<16x16xf32, #tpu.memory_space<vmem>>, %arg3: memref<1x16xf32, #tpu.memory_space<vmem>>, %arg4: memref<1x16xf32, #tpu.memory_space<vmem>>, %arg5: memref<152x16xbf16, #tpu.memory_space<vmem>>, %arg6: memref<1x1x16xf32, #tpu.memory_space<vmem>>, %arg7: memref<1x64x8xbf16, #tpu.memory_space<vmem>>, %arg8: memref<1x64x16xbf16, #tpu.memory_space<vmem>>, %arg9: memref<96x16xf32, #tpu.memory_space<vmem>>, %arg10: memref<64x152xbf16, #tpu.memory_space<vmem>>) attributes {dimension_semantics = [#tpu.dimension_semantics<parallel>], iteration_bounds = array<i64: 2>, scalar_prefetch = 0 : i64, scratch_operands = 2 : i64, tpu.core_type = #tpu.core_type<tc>, window_params = [{transform_indices = @transform_0, window_bounds = array<i64: 1, 64, 16>}, {pipeline_mode = #tpu.pipeline_mode<synchronous>, transform_indices = @transform_1, window_bounds = array<i64: 16, 16>}, {pipeline_mode = #tpu.pipeline_mode<synchronous>, transform_indices = @transform_2, window_bounds = array<i64: 1, 16>}, {pipeline_mode = #tpu.pipeline_mode<synchronous>, transform_indices = @transform_3, window_bounds = array<i64: 1, 16>}, {pipeline_mode = #tpu.pipeline_mode<synchronous>, transform_indices = @transform_4, window_bounds = array<i64: 152, 16>}, {pipeline_mode = #tpu.pipeline_mode<synchronous>, transform_indices = @transform_5, window_bounds = array<i64: 1, 1, 16>}, {transform_indices = @transform_6, window_bounds = array<i64: 1, 64, 8>}, {transform_indices = @transform_7, window_bounds = array<i64: 1, 64, 16>}]} {
    %c0 = arith.constant 0 : index
    %c0_0 = arith.constant 0 : index
    %c0_1 = arith.constant 0 : index
    %0 = vector.load %arg1[%c0, %c0_0, %c0_1] : memref<1x64x16xbf16, #tpu.memory_space<vmem>>, vector<1x64x16xbf16>
    %1 = vector.shape_cast %0 : vector<1x64x16xbf16> to vector<64x16xbf16>
    %2 = arith.extf %1 : vector<64x16xbf16> to vector<64x16xf32>
    %cst = arith.constant dense<0.000000e+00> : vector<16xf32>
    %3 = vector.multi_reduction <add>, %2, %cst [0] : vector<64x16xf32> to vector<16xf32>
    %4 = vector.shape_cast %3 : vector<16xf32> to vector<1x16xf32>
    %c0_2 = arith.constant 0 : index
    %c0_3 = arith.constant 0 : index
    %5 = vector.load %arg2[%c0_2, %c0_3] : memref<16x16xf32, #tpu.memory_space<vmem>>, vector<16x16xf32>
    %cst_4 = arith.constant dense<0.000000e+00> : vector<1x16xf32>
    %6 = tpu.matmul %4, %5, %cst_4 {dimension_numbers = #tpu.dot_dimension_numbers<[1], [0], [0], [1], [0, 0, 1, 1], [], []>} : vector<1x16xf32>, vector<16x16xf32>, vector<1x16xf32> -> vector<1x16xf32>
    %7 = vector.broadcast %6 : vector<1x16xf32> to vector<64x16xf32>
    %8 = arith.subf %2, %7 : vector<64x16xf32>
    %9 = arith.mulf %8, %8 : vector<64x16xf32>
    %cst_5 = arith.constant dense<0.000000e+00> : vector<16xf32>
    %10 = vector.multi_reduction <add>, %9, %cst_5 [0] : vector<64x16xf32> to vector<16xf32>
    %11 = vector.shape_cast %10 : vector<16xf32> to vector<1x16xf32>
    %c0_6 = arith.constant 0 : index
    %c0_7 = arith.constant 0 : index
    %12 = vector.load %arg2[%c0_6, %c0_7] : memref<16x16xf32, #tpu.memory_space<vmem>>, vector<16x16xf32>
    %cst_8 = arith.constant dense<0.000000e+00> : vector<1x16xf32>
    %13 = tpu.matmul %11, %12, %cst_8 {dimension_numbers = #tpu.dot_dimension_numbers<[1], [0], [0], [1], [0, 0, 1, 1], [], []>} : vector<1x16xf32>, vector<16x16xf32>, vector<1x16xf32> -> vector<1x16xf32>
    %cst_9 = arith.constant 0.000000e+00 : f32
    %14 = vector.broadcast %cst_9 : f32 to vector<1x16xf32>
    %15 = arith.maximumf %13, %14 : vector<1x16xf32>
    %cst_10 = arith.constant 9.99999974E-6 : f32
    %16 = vector.broadcast %cst_10 : f32 to vector<1x16xf32>
    %17 = arith.addf %15, %16 : vector<1x16xf32>
    %18 = math.rsqrt %17 : vector<1x16xf32>
    %19 = vector.broadcast %18 : vector<1x16xf32> to vector<64x16xf32>
    %20 = arith.mulf %8, %19 : vector<64x16xf32>
    %c0_11 = arith.constant 0 : index
    %c0_12 = arith.constant 0 : index
    %21 = vector.load %arg3[%c0_11, %c0_12] : memref<1x16xf32, #tpu.memory_space<vmem>>, vector<1x16xf32>
    %22 = vector.broadcast %21 : vector<1x16xf32> to vector<64x16xf32>
    %23 = arith.mulf %20, %22 : vector<64x16xf32>
    %c0_13 = arith.constant 0 : index
    %c0_14 = arith.constant 0 : index
    %24 = vector.load %arg4[%c0_13, %c0_14] : memref<1x16xf32, #tpu.memory_space<vmem>>, vector<1x16xf32>
    %25 = vector.broadcast %24 : vector<1x16xf32> to vector<64x16xf32>
    %26 = arith.addf %23, %25 : vector<64x16xf32>
    %27 = arith.negf %26 : vector<64x16xf32>
    %28 = math.exp %27 : vector<64x16xf32>
    %cst_15 = arith.constant 1.000000e+00 : f32
    %29 = vector.broadcast %cst_15 : f32 to vector<64x16xf32>
    %30 = arith.addf %29, %28 : vector<64x16xf32>
    %31 = arith.divf %29, %30 : vector<64x16xf32>
    %32 = arith.mulf %26, %31 : vector<64x16xf32>
    %cst_16 = arith.constant 0.000000e+00 : f32
    %33 = vector.broadcast %cst_16 : f32 to vector<16x16xf32>
    %c0_17 = arith.constant 0 : index
    %c0_18 = arith.constant 0 : index
    %34 = vector.load %arg9[%c0_17, %c0_18] : memref<96x16xf32, #tpu.memory_space<vmem>>, vector<16x16xf32>
    tpu.vector_store %arg9[%c0_17, %c0_18], %33 {strides = array<i32>} : memref<96x16xf32, #tpu.memory_space<vmem>>, vector<16x16xf32>,
    %cst_19 = arith.constant 0.000000e+00 : f32
    %35 = vector.broadcast %cst_19 : f32 to vector<16x16xf32>
    %c80 = arith.constant 80 : index
    %c0_20 = arith.constant 0 : index
    %36 = vector.load %arg9[%c80, %c0_20] : memref<96x16xf32, #tpu.memory_space<vmem>>, vector<16x16xf32>
    tpu.vector_store %arg9[%c80, %c0_20], %35 {strides = array<i32>} : memref<96x16xf32, #tpu.memory_space<vmem>>, vector<16x16xf32>,
    %c16 = arith.constant 16 : index
    %c0_21 = arith.constant 0 : index
    %37 = vector.load %arg9[%c16, %c0_21] : memref<96x16xf32, #tpu.memory_space<vmem>>, vector<64x16xf32>
    tpu.vector_store %arg9[%c16, %c0_21], %32 {strides = array<i32>} : memref<96x16xf32, #tpu.memory_space<vmem>>, vector<64x16xf32>,
    %38 = tpu.iota {dimensions = array<i32: 0>} : vector<64x1xi32>
    %c8_i32 = arith.constant 8 : i32
    %c0_i32 = arith.constant 0 : i32
    %39 = arith.cmpi eq, %c8_i32, %c0_i32 : i32
    %c1_i32 = arith.constant 1 : i32
    %40 = arith.select %39, %c1_i32, %c8_i32 : i32
    %41 = vector.broadcast %40 : i32 to vector<64x1xi32>
    %42 = arith.remsi %38, %41 : vector<64x1xi32>
    %c0_i32_22 = arith.constant 0 : i32
    %43 = vector.broadcast %c0_i32_22 : i32 to vector<64x1xi32>
    %44 = arith.cmpi ne, %42, %43 : vector<64x1xi32>
    %c0_i32_23 = arith.constant 0 : i32
    %45 = vector.broadcast %c0_i32_23 : i32 to vector<64x1xi32>
    %46 = arith.cmpi slt, %42, %45 : vector<64x1xi32>
    %c0_i32_24 = arith.constant 0 : i32
    %47 = arith.cmpi slt, %40, %c0_i32_24 : i32
    %48 = vector.broadcast %47 : i1 to vector<64x1xi1>
    %49 = vector.broadcast %48 : vector<64x1xi1> to vector<64x1xi1>
    %50 = arith.xori %46, %49 : vector<64x1xi1>
    %51 = arith.andi %50, %44 : vector<64x1xi1>
    %52 = vector.broadcast %40 : i32 to vector<64x1xi32>
    %53 = arith.addi %42, %52 : vector<64x1xi32>
    %54 = arith.select %51, %53, %42 : vector<64x1xi1>, vector<64x1xi32>
    %c0_i32_25 = arith.constant 0 : i32
    %55 = vector.broadcast %c0_i32_25 : i32 to vector<64x1xi32>
    %56 = arith.cmpi sgt, %54, %55 : vector<64x1xi32>
    %c7_i32 = arith.constant 7 : i32
    %57 = vector.broadcast %c7_i32 : i32 to vector<64x1xi32>
    %58 = arith.cmpi slt, %54, %57 : vector<64x1xi32>
    %c7 = arith.constant 7 : index
    %c0_26 = arith.constant 0 : index
    %59 = vector.load %arg9[%c7, %c0_26] : memref<96x16xf32, #tpu.memory_space<vmem>>, vector<64x16xf32>
    %60 = arith.truncf %59 : vector<64x16xf32> to vector<64x16xbf16>
    %cst_27 = arith.constant 0.000000e+00 : bf16
    %61 = vector.broadcast %cst_27 : bf16 to vector<64x16xbf16>
    %62 = vector.shape_cast %56 : vector<64x1xi1> to vector<64x1xi1>
    %63 = vector.broadcast %62 : vector<64x1xi1> to vector<64x16xi1>
    %64 = arith.select %63, %60, %61 : vector<64x16xi1>, vector<64x16xbf16>
    %c0_28 = arith.constant 0 : index
    %c0_29 = arith.constant 0 : index
    %65 = vector.load %arg10[%c0_28, %c0_29] : memref<64x152xbf16, #tpu.memory_space<vmem>>, vector<64x16xbf16>
    tpu.vector_store %arg10[%c0_28, %c0_29], %64 {strides = array<i32>} : memref<64x152xbf16, #tpu.memory_space<vmem>>, vector<64x16xbf16>,
    %c8 = arith.constant 8 : index
    %c0_30 = arith.constant 0 : index
    %66 = vector.load %arg9[%c8, %c0_30] : memref<96x16xf32, #tpu.memory_space<vmem>>, vector<64x16xf32>
    %67 = arith.truncf %66 : vector<64x16xf32> to vector<64x16xbf16>
    %c0_31 = arith.constant 0 : index
    %c16_32 = arith.constant 16 : index
    %68 = vector.load %arg10[%c0_31, %c16_32] : memref<64x152xbf16, #tpu.memory_space<vmem>>, vector<64x16xbf16>
    tpu.vector_store %arg10[%c0_31, %c16_32], %67 {strides = array<i32>} : memref<64x152xbf16, #tpu.memory_space<vmem>>, vector<64x16xbf16>,
    %c9 = arith.constant 9 : index
    %c0_33 = arith.constant 0 : index
    %69 = vector.load %arg9[%c9, %c0_33] : memref<96x16xf32, #tpu.memory_space<vmem>>, vector<64x16xf32>
    %70 = arith.truncf %69 : vector<64x16xf32> to vector<64x16xbf16>
    %cst_34 = arith.constant 0.000000e+00 : bf16
    %71 = vector.broadcast %cst_34 : bf16 to vector<64x16xbf16>
    %72 = vector.shape_cast %58 : vector<64x1xi1> to vector<64x1xi1>
    %73 = vector.broadcast %72 : vector<64x1xi1> to vector<64x16xi1>
    %74 = arith.select %73, %70, %71 : vector<64x16xi1>, vector<64x16xbf16>
    %c0_35 = arith.constant 0 : index
    %c32 = arith.constant 32 : index
    %75 = vector.load %arg10[%c0_35, %c32] : memref<64x152xbf16, #tpu.memory_space<vmem>>, vector<64x16xbf16>
    tpu.vector_store %arg10[%c0_35, %c32], %74 {strides = array<i32>} : memref<64x152xbf16, #tpu.memory_space<vmem>>, vector<64x16xbf16>,
    %c15 = arith.constant 15 : index
    %c0_36 = arith.constant 0 : index
    %76 = vector.load %arg9[%c15, %c0_36] : memref<96x16xf32, #tpu.memory_space<vmem>>, vector<64x16xf32>
    %77 = arith.truncf %76 : vector<64x16xf32> to vector<64x16xbf16>
    %cst_37 = arith.constant 0.000000e+00 : bf16
    %78 = vector.broadcast %cst_37 : bf16 to vector<64x16xbf16>
    %79 = vector.shape_cast %56 : vector<64x1xi1> to vector<64x1xi1>
    %80 = vector.broadcast %79 : vector<64x1xi1> to vector<64x16xi1>
    %81 = arith.select %80, %77, %78 : vector<64x16xi1>, vector<64x16xbf16>
    %c0_38 = arith.constant 0 : index
    %c48 = arith.constant 48 : index
    %82 = vector.load %arg10[%c0_38, %c48] : memref<64x152xbf16, #tpu.memory_space<vmem>>, vector<64x16xbf16>
    tpu.vector_store %arg10[%c0_38, %c48], %81 {strides = array<i32>} : memref<64x152xbf16, #tpu.memory_space<vmem>>, vector<64x16xbf16>,
    %c16_39 = arith.constant 16 : index
    %c0_40 = arith.constant 0 : index
    %83 = vector.load %arg9[%c16_39, %c0_40] : memref<96x16xf32, #tpu.memory_space<vmem>>, vector<64x16xf32>
    %84 = arith.truncf %83 : vector<64x16xf32> to vector<64x16xbf16>
    %c0_41 = arith.constant 0 : index
    %c64 = arith.constant 64 : index
    %85 = vector.load %arg10[%c0_41, %c64] : memref<64x152xbf16, #tpu.memory_space<vmem>>, vector<64x16xbf16>
    tpu.vector_store %arg10[%c0_41, %c64], %84 {strides = array<i32>} : memref<64x152xbf16, #tpu.memory_space<vmem>>, vector<64x16xbf16>,
    %c17 = arith.constant 17 : index
    %c0_42 = arith.constant 0 : index
    %86 = vector.load %arg9[%c17, %c0_42] : memref<96x16xf32, #tpu.memory_space<vmem>>, vector<64x16xf32>
    %87 = arith.truncf %86 : vector<64x16xf32> to vector<64x16xbf16>
    %cst_43 = arith.constant 0.000000e+00 : bf16
    %88 = vector.broadcast %cst_43 : bf16 to vector<64x16xbf16>
    %89 = vector.shape_cast %58 : vector<64x1xi1> to vector<64x1xi1>
    %90 = vector.broadcast %89 : vector<64x1xi1> to vector<64x16xi1>
    %91 = arith.select %90, %87, %88 : vector<64x16xi1>, vector<64x16xbf16>
    %c0_44 = arith.constant 0 : index
    %c80_45 = arith.constant 80 : index
    %92 = vector.load %arg10[%c0_44, %c80_45] : memref<64x152xbf16, #tpu.memory_space<vmem>>, vector<64x16xbf16>
    tpu.vector_store %arg10[%c0_44, %c80_45], %91 {strides = array<i32>} : memref<64x152xbf16, #tpu.memory_space<vmem>>, vector<64x16xbf16>,
    %c23 = arith.constant 23 : index
    %c0_46 = arith.constant 0 : index
    %93 = vector.load %arg9[%c23, %c0_46] : memref<96x16xf32, #tpu.memory_space<vmem>>, vector<64x16xf32>
    %94 = arith.truncf %93 : vector<64x16xf32> to vector<64x16xbf16>
    %cst_47 = arith.constant 0.000000e+00 : bf16
    %95 = vector.broadcast %cst_47 : bf16 to vector<64x16xbf16>
    %96 = vector.shape_cast %56 : vector<64x1xi1> to vector<64x1xi1>
    %97 = vector.broadcast %96 : vector<64x1xi1> to vector<64x16xi1>
    %98 = arith.select %97, %94, %95 : vector<64x16xi1>, vector<64x16xbf16>
    %c0_48 = arith.constant 0 : index
    %c96 = arith.constant 96 : index
    %99 = vector.load %arg10[%c0_48, %c96] : memref<64x152xbf16, #tpu.memory_space<vmem>>, vector<64x16xbf16>
    tpu.vector_store %arg10[%c0_48, %c96], %98 {strides = array<i32>} : memref<64x152xbf16, #tpu.memory_space<vmem>>, vector<64x16xbf16>,
    %c24 = arith.constant 24 : index
    %c0_49 = arith.constant 0 : index
    %100 = vector.load %arg9[%c24, %c0_49] : memref<96x16xf32, #tpu.memory_space<vmem>>, vector<64x16xf32>
    %101 = arith.truncf %100 : vector<64x16xf32> to vector<64x16xbf16>
    %c0_50 = arith.constant 0 : index
    %c112 = arith.constant 112 : index
    %102 = vector.load %arg10[%c0_50, %c112] : memref<64x152xbf16, #tpu.memory_space<vmem>>, vector<64x16xbf16>
    tpu.vector_store %arg10[%c0_50, %c112], %101 {strides = array<i32>} : memref<64x152xbf16, #tpu.memory_space<vmem>>, vector<64x16xbf16>,
    %c25 = arith.constant 25 : index
    %c0_51 = arith.constant 0 : index
    %103 = vector.load %arg9[%c25, %c0_51] : memref<96x16xf32, #tpu.memory_space<vmem>>, vector<64x16xf32>
    %104 = arith.truncf %103 : vector<64x16xf32> to vector<64x16xbf16>
    %cst_52 = arith.constant 0.000000e+00 : bf16
    %105 = vector.broadcast %cst_52 : bf16 to vector<64x16xbf16>
    %106 = vector.shape_cast %58 : vector<64x1xi1> to vector<64x1xi1>
    %107 = vector.broadcast %106 : vector<64x1xi1> to vector<64x16xi1>
    %108 = arith.select %107, %104, %105 : vector<64x16xi1>, vector<64x16xbf16>
    %c0_53 = arith.constant 0 : index
    %c128 = arith.constant 128 : index
    %109 = vector.load %arg10[%c0_53, %c128] : memref<64x152xbf16, #tpu.memory_space<vmem>>, vector<64x16xbf16>
    tpu.vector_store %arg10[%c0_53, %c128], %108 {strides = array<i32>} : memref<64x152xbf16, #tpu.memory_space<vmem>>, vector<64x16xbf16>,
    %c0_54 = arith.constant 0 : index
    %c0_55 = arith.constant 0 : index
    %c0_56 = arith.constant 0 : index
    %110 = vector.load %arg7[%c0_54, %c0_55, %c0_56] : memref<1x64x8xbf16, #tpu.memory_space<vmem>>, vector<1x64x8xbf16>
    %111 = vector.shape_cast %110 : vector<1x64x8xbf16> to vector<64x8xbf16>
    %c0_57 = arith.constant 0 : index
    %c144 = arith.constant 144 : index
    %112 = vector.load %arg10[%c0_57, %c144] : memref<64x152xbf16, #tpu.memory_space<vmem>>, vector<64x8xbf16>
    tpu.vector_store %arg10[%c0_57, %c144], %111 {strides = array<i32>} : memref<64x152xbf16, #tpu.memory_space<vmem>>, vector<64x8xbf16>,
    %c0_58 = arith.constant 0 : index
    %c0_59 = arith.constant 0 : index
    %113 = vector.load %arg10[%c0_58, %c0_59] : memref<64x152xbf16, #tpu.memory_space<vmem>>, vector<64x152xbf16>
    %c0_60 = arith.constant 0 : index
    %c0_61 = arith.constant 0 : index
    %114 = vector.load %arg5[%c0_60, %c0_61] : memref<152x16xbf16, #tpu.memory_space<vmem>>, vector<152x16xbf16>
    %cst_62 = arith.constant dense<0.000000e+00> : vector<64x16xf32>
    %115 = tpu.matmul %113, %114, %cst_62 {dimension_numbers = #tpu.dot_dimension_numbers<[1], [0], [0], [1], [0, 0, 1, 1], [], []>} : vector<64x152xbf16>, vector<152x16xbf16>, vector<64x16xf32> -> vector<64x16xf32>
    %c0_63 = arith.constant 0 : index
    %c0_64 = arith.constant 0 : index
    %c0_65 = arith.constant 0 : index
    %116 = vector.load %arg6[%c0_63, %c0_64, %c0_65] : memref<1x1x16xf32, #tpu.memory_space<vmem>>, vector<1x1x16xf32>
    %117 = vector.shape_cast %116 : vector<1x1x16xf32> to vector<1x16xf32>
    %118 = vector.broadcast %117 : vector<1x16xf32> to vector<64x16xf32>
    %119 = arith.addf %115, %118 : vector<64x16xf32>
    %120 = arith.truncf %119 : vector<64x16xf32> to vector<64x16xbf16>
    %c0_66 = arith.constant 0 : index
    %c0_67 = arith.constant 0 : index
    %c0_68 = arith.constant 0 : index
    %121 = vector.load %arg8[%c0_66, %c0_67, %c0_68] : memref<1x64x16xbf16, #tpu.memory_space<vmem>>, vector<1x64x16xbf16>
    %122 = vector.shape_cast %121 : vector<1x64x16xbf16> to vector<64x16xbf16>
    %123 = vector.shape_cast %120 : vector<64x16xbf16> to vector<1x64x16xbf16>
    tpu.vector_store %arg8[%c0_66, %c0_67, %c0_68], %123 {strides = array<i32>} : memref<1x64x16xbf16, #tpu.memory_space<vmem>>, vector<1x64x16xbf16>,
    return
  }
  func.func @transform_0(%arg0: i32) -> (i32, i32, i32) {
    %c0_i32 = arith.constant 0 : i32
    %c0_i32_0 = arith.constant 0 : i32
    %c0_i32_1 = arith.constant 0 : i32
    return %arg0, %c0_i32, %c0_i32_0 : i32, i32, i32
  }
  func.func @transform_1(%arg0: i32) -> (i32, i32) {
    %c0_i32 = arith.constant 0 : i32
    %c0_i32_0 = arith.constant 0 : i32
    %c0_i32_1 = arith.constant 0 : i32
    return %c0_i32, %c0_i32_0 : i32, i32
  }
  func.func @transform_2(%arg0: i32) -> (i32, i32) {
    %c0_i32 = arith.constant 0 : i32
    %c0_i32_0 = arith.constant 0 : i32
    %c0_i32_1 = arith.constant 0 : i32
    return %c0_i32, %c0_i32_0 : i32, i32
  }
  func.func @transform_3(%arg0: i32) -> (i32, i32) {
    %c0_i32 = arith.constant 0 : i32
    %c0_i32_0 = arith.constant 0 : i32
    %c0_i32_1 = arith.constant 0 : i32
    return %c0_i32, %c0_i32_0 : i32, i32
  }
  func.func @transform_4(%arg0: i32) -> (i32, i32) {
    %c0_i32 = arith.constant 0 : i32
    %c0_i32_0 = arith.constant 0 : i32
    %c0_i32_1 = arith.constant 0 : i32
    return %c0_i32, %c0_i32_0 : i32, i32
  }
  func.func @transform_5(%arg0: i32) -> (i32, i32, i32) {
    %c0_i32 = arith.constant 0 : i32
    %c0_i32_0 = arith.constant 0 : i32
    %c0_i32_1 = arith.constant 0 : i32
    %c0_i32_2 = arith.constant 0 : i32
    return %c0_i32, %c0_i32_0, %c0_i32_1 : i32, i32, i32
  }
  func.func @transform_6(%arg0: i32) -> (i32, i32, i32) {
    %c0_i32 = arith.constant 0 : i32
    %c0_i32_0 = arith.constant 0 : i32
    %c0_i32_1 = arith.constant 0 : i32
    return %arg0, %c0_i32, %c0_i32_0 : i32, i32, i32
  }
  func.func @transform_7(%arg0: i32) -> (i32, i32, i32) {
    %c0_i32 = arith.constant 0 : i32
    %c0_i32_0 = arith.constant 0 : i32
    %c0_i32_1 = arith.constant 0 : i32
    return %arg0, %c0_i32, %c0_i32_0 : i32, i32, i32
  }
}

module attributes {stable_mosaic.version = 11 : i64} {
  func.func @_gn_silu_conv3x3_kernel(%arg0: i32, %arg1: memref<1x64x16xbf16, #tpu.memory_space<vmem>>, %arg2: memref<16x16xf32, #tpu.memory_space<vmem>>, %arg3: memref<1x16xf32, #tpu.memory_space<vmem>>, %arg4: memref<1x16xf32, #tpu.memory_space<vmem>>, %arg5: memref<144x16xbf16, #tpu.memory_space<vmem>>, %arg6: memref<1x1x16xf32, #tpu.memory_space<vmem>>, %arg7: memref<1x64x16xbf16, #tpu.memory_space<vmem>>, %arg8: memref<96x16xf32, #tpu.memory_space<vmem>>, %arg9: memref<64x144xbf16, #tpu.memory_space<vmem>>) attributes {dimension_semantics = [#tpu.dimension_semantics<parallel>], iteration_bounds = array<i64: 2>, scalar_prefetch = 0 : i64, scratch_operands = 2 : i64, tpu.core_type = #tpu.core_type<tc>, window_params = [{transform_indices = @transform_0, window_bounds = array<i64: 1, 64, 16>}, {pipeline_mode = #tpu.pipeline_mode<synchronous>, transform_indices = @transform_1, window_bounds = array<i64: 16, 16>}, {pipeline_mode = #tpu.pipeline_mode<synchronous>, transform_indices = @transform_2, window_bounds = array<i64: 1, 16>}, {pipeline_mode = #tpu.pipeline_mode<synchronous>, transform_indices = @transform_3, window_bounds = array<i64: 1, 16>}, {pipeline_mode = #tpu.pipeline_mode<synchronous>, transform_indices = @transform_4, window_bounds = array<i64: 144, 16>}, {transform_indices = @transform_5, window_bounds = array<i64: 1, 1, 16>}, {transform_indices = @transform_6, window_bounds = array<i64: 1, 64, 16>}]} {
    %c0 = arith.constant 0 : index
    %c0_0 = arith.constant 0 : index
    %c0_1 = arith.constant 0 : index
    %0 = vector.load %arg1[%c0, %c0_0, %c0_1] : memref<1x64x16xbf16, #tpu.memory_space<vmem>>, vector<1x64x16xbf16>
    %1 = vector.shape_cast %0 : vector<1x64x16xbf16> to vector<64x16xbf16>
    %2 = arith.extf %1 : vector<64x16xbf16> to vector<64x16xf32>
    %cst = arith.constant dense<0.000000e+00> : vector<16xf32>
    %3 = vector.multi_reduction <add>, %2, %cst [0] : vector<64x16xf32> to vector<16xf32>
    %4 = vector.shape_cast %3 : vector<16xf32> to vector<1x16xf32>
    %c0_2 = arith.constant 0 : index
    %c0_3 = arith.constant 0 : index
    %5 = vector.load %arg2[%c0_2, %c0_3] : memref<16x16xf32, #tpu.memory_space<vmem>>, vector<16x16xf32>
    %cst_4 = arith.constant dense<0.000000e+00> : vector<1x16xf32>
    %6 = tpu.matmul %4, %5, %cst_4 {dimension_numbers = #tpu.dot_dimension_numbers<[1], [0], [0], [1], [0, 0, 1, 1], [], []>} : vector<1x16xf32>, vector<16x16xf32>, vector<1x16xf32> -> vector<1x16xf32>
    %7 = vector.broadcast %6 : vector<1x16xf32> to vector<64x16xf32>
    %8 = arith.subf %2, %7 : vector<64x16xf32>
    %9 = arith.mulf %8, %8 : vector<64x16xf32>
    %cst_5 = arith.constant dense<0.000000e+00> : vector<16xf32>
    %10 = vector.multi_reduction <add>, %9, %cst_5 [0] : vector<64x16xf32> to vector<16xf32>
    %11 = vector.shape_cast %10 : vector<16xf32> to vector<1x16xf32>
    %c0_6 = arith.constant 0 : index
    %c0_7 = arith.constant 0 : index
    %12 = vector.load %arg2[%c0_6, %c0_7] : memref<16x16xf32, #tpu.memory_space<vmem>>, vector<16x16xf32>
    %cst_8 = arith.constant dense<0.000000e+00> : vector<1x16xf32>
    %13 = tpu.matmul %11, %12, %cst_8 {dimension_numbers = #tpu.dot_dimension_numbers<[1], [0], [0], [1], [0, 0, 1, 1], [], []>} : vector<1x16xf32>, vector<16x16xf32>, vector<1x16xf32> -> vector<1x16xf32>
    %cst_9 = arith.constant 0.000000e+00 : f32
    %14 = vector.broadcast %cst_9 : f32 to vector<1x16xf32>
    %15 = arith.maximumf %13, %14 : vector<1x16xf32>
    %cst_10 = arith.constant 9.99999974E-6 : f32
    %16 = vector.broadcast %cst_10 : f32 to vector<1x16xf32>
    %17 = arith.addf %15, %16 : vector<1x16xf32>
    %18 = math.rsqrt %17 : vector<1x16xf32>
    %19 = vector.broadcast %18 : vector<1x16xf32> to vector<64x16xf32>
    %20 = arith.mulf %8, %19 : vector<64x16xf32>
    %c0_11 = arith.constant 0 : index
    %c0_12 = arith.constant 0 : index
    %21 = vector.load %arg3[%c0_11, %c0_12] : memref<1x16xf32, #tpu.memory_space<vmem>>, vector<1x16xf32>
    %22 = vector.broadcast %21 : vector<1x16xf32> to vector<64x16xf32>
    %23 = arith.mulf %20, %22 : vector<64x16xf32>
    %c0_13 = arith.constant 0 : index
    %c0_14 = arith.constant 0 : index
    %24 = vector.load %arg4[%c0_13, %c0_14] : memref<1x16xf32, #tpu.memory_space<vmem>>, vector<1x16xf32>
    %25 = vector.broadcast %24 : vector<1x16xf32> to vector<64x16xf32>
    %26 = arith.addf %23, %25 : vector<64x16xf32>
    %27 = arith.negf %26 : vector<64x16xf32>
    %28 = math.exp %27 : vector<64x16xf32>
    %cst_15 = arith.constant 1.000000e+00 : f32
    %29 = vector.broadcast %cst_15 : f32 to vector<64x16xf32>
    %30 = arith.addf %29, %28 : vector<64x16xf32>
    %31 = arith.divf %29, %30 : vector<64x16xf32>
    %32 = arith.mulf %26, %31 : vector<64x16xf32>
    %cst_16 = arith.constant 0.000000e+00 : f32
    %33 = vector.broadcast %cst_16 : f32 to vector<16x16xf32>
    %c0_17 = arith.constant 0 : index
    %c0_18 = arith.constant 0 : index
    %34 = vector.load %arg8[%c0_17, %c0_18] : memref<96x16xf32, #tpu.memory_space<vmem>>, vector<16x16xf32>
    tpu.vector_store %arg8[%c0_17, %c0_18], %33 {strides = array<i32>} : memref<96x16xf32, #tpu.memory_space<vmem>>, vector<16x16xf32>,
    %cst_19 = arith.constant 0.000000e+00 : f32
    %35 = vector.broadcast %cst_19 : f32 to vector<16x16xf32>
    %c80 = arith.constant 80 : index
    %c0_20 = arith.constant 0 : index
    %36 = vector.load %arg8[%c80, %c0_20] : memref<96x16xf32, #tpu.memory_space<vmem>>, vector<16x16xf32>
    tpu.vector_store %arg8[%c80, %c0_20], %35 {strides = array<i32>} : memref<96x16xf32, #tpu.memory_space<vmem>>, vector<16x16xf32>,
    %c16 = arith.constant 16 : index
    %c0_21 = arith.constant 0 : index
    %37 = vector.load %arg8[%c16, %c0_21] : memref<96x16xf32, #tpu.memory_space<vmem>>, vector<64x16xf32>
    tpu.vector_store %arg8[%c16, %c0_21], %32 {strides = array<i32>} : memref<96x16xf32, #tpu.memory_space<vmem>>, vector<64x16xf32>,
    %38 = tpu.iota {dimensions = array<i32: 0>} : vector<64x1xi32>
    %c8_i32 = arith.constant 8 : i32
    %c0_i32 = arith.constant 0 : i32
    %39 = arith.cmpi eq, %c8_i32, %c0_i32 : i32
    %c1_i32 = arith.constant 1 : i32
    %40 = arith.select %39, %c1_i32, %c8_i32 : i32
    %41 = vector.broadcast %40 : i32 to vector<64x1xi32>
    %42 = arith.remsi %38, %41 : vector<64x1xi32>
    %c0_i32_22 = arith.constant 0 : i32
    %43 = vector.broadcast %c0_i32_22 : i32 to vector<64x1xi32>
    %44 = arith.cmpi ne, %42, %43 : vector<64x1xi32>
    %c0_i32_23 = arith.constant 0 : i32
    %45 = vector.broadcast %c0_i32_23 : i32 to vector<64x1xi32>
    %46 = arith.cmpi slt, %42, %45 : vector<64x1xi32>
    %c0_i32_24 = arith.constant 0 : i32
    %47 = arith.cmpi slt, %40, %c0_i32_24 : i32
    %48 = vector.broadcast %47 : i1 to vector<64x1xi1>
    %49 = vector.broadcast %48 : vector<64x1xi1> to vector<64x1xi1>
    %50 = arith.xori %46, %49 : vector<64x1xi1>
    %51 = arith.andi %50, %44 : vector<64x1xi1>
    %52 = vector.broadcast %40 : i32 to vector<64x1xi32>
    %53 = arith.addi %42, %52 : vector<64x1xi32>
    %54 = arith.select %51, %53, %42 : vector<64x1xi1>, vector<64x1xi32>
    %c0_i32_25 = arith.constant 0 : i32
    %55 = vector.broadcast %c0_i32_25 : i32 to vector<64x1xi32>
    %56 = arith.cmpi sgt, %54, %55 : vector<64x1xi32>
    %c7_i32 = arith.constant 7 : i32
    %57 = vector.broadcast %c7_i32 : i32 to vector<64x1xi32>
    %58 = arith.cmpi slt, %54, %57 : vector<64x1xi32>
    %c7 = arith.constant 7 : index
    %c0_26 = arith.constant 0 : index
    %59 = vector.load %arg8[%c7, %c0_26] : memref<96x16xf32, #tpu.memory_space<vmem>>, vector<64x16xf32>
    %60 = arith.truncf %59 : vector<64x16xf32> to vector<64x16xbf16>
    %cst_27 = arith.constant 0.000000e+00 : bf16
    %61 = vector.broadcast %cst_27 : bf16 to vector<64x16xbf16>
    %62 = vector.shape_cast %56 : vector<64x1xi1> to vector<64x1xi1>
    %63 = vector.broadcast %62 : vector<64x1xi1> to vector<64x16xi1>
    %64 = arith.select %63, %60, %61 : vector<64x16xi1>, vector<64x16xbf16>
    %c0_28 = arith.constant 0 : index
    %c0_29 = arith.constant 0 : index
    %65 = vector.load %arg9[%c0_28, %c0_29] : memref<64x144xbf16, #tpu.memory_space<vmem>>, vector<64x16xbf16>
    tpu.vector_store %arg9[%c0_28, %c0_29], %64 {strides = array<i32>} : memref<64x144xbf16, #tpu.memory_space<vmem>>, vector<64x16xbf16>,
    %c8 = arith.constant 8 : index
    %c0_30 = arith.constant 0 : index
    %66 = vector.load %arg8[%c8, %c0_30] : memref<96x16xf32, #tpu.memory_space<vmem>>, vector<64x16xf32>
    %67 = arith.truncf %66 : vector<64x16xf32> to vector<64x16xbf16>
    %c0_31 = arith.constant 0 : index
    %c16_32 = arith.constant 16 : index
    %68 = vector.load %arg9[%c0_31, %c16_32] : memref<64x144xbf16, #tpu.memory_space<vmem>>, vector<64x16xbf16>
    tpu.vector_store %arg9[%c0_31, %c16_32], %67 {strides = array<i32>} : memref<64x144xbf16, #tpu.memory_space<vmem>>, vector<64x16xbf16>,
    %c9 = arith.constant 9 : index
    %c0_33 = arith.constant 0 : index
    %69 = vector.load %arg8[%c9, %c0_33] : memref<96x16xf32, #tpu.memory_space<vmem>>, vector<64x16xf32>
    %70 = arith.truncf %69 : vector<64x16xf32> to vector<64x16xbf16>
    %cst_34 = arith.constant 0.000000e+00 : bf16
    %71 = vector.broadcast %cst_34 : bf16 to vector<64x16xbf16>
    %72 = vector.shape_cast %58 : vector<64x1xi1> to vector<64x1xi1>
    %73 = vector.broadcast %72 : vector<64x1xi1> to vector<64x16xi1>
    %74 = arith.select %73, %70, %71 : vector<64x16xi1>, vector<64x16xbf16>
    %c0_35 = arith.constant 0 : index
    %c32 = arith.constant 32 : index
    %75 = vector.load %arg9[%c0_35, %c32] : memref<64x144xbf16, #tpu.memory_space<vmem>>, vector<64x16xbf16>
    tpu.vector_store %arg9[%c0_35, %c32], %74 {strides = array<i32>} : memref<64x144xbf16, #tpu.memory_space<vmem>>, vector<64x16xbf16>,
    %c15 = arith.constant 15 : index
    %c0_36 = arith.constant 0 : index
    %76 = vector.load %arg8[%c15, %c0_36] : memref<96x16xf32, #tpu.memory_space<vmem>>, vector<64x16xf32>
    %77 = arith.truncf %76 : vector<64x16xf32> to vector<64x16xbf16>
    %cst_37 = arith.constant 0.000000e+00 : bf16
    %78 = vector.broadcast %cst_37 : bf16 to vector<64x16xbf16>
    %79 = vector.shape_cast %56 : vector<64x1xi1> to vector<64x1xi1>
    %80 = vector.broadcast %79 : vector<64x1xi1> to vector<64x16xi1>
    %81 = arith.select %80, %77, %78 : vector<64x16xi1>, vector<64x16xbf16>
    %c0_38 = arith.constant 0 : index
    %c48 = arith.constant 48 : index
    %82 = vector.load %arg9[%c0_38, %c48] : memref<64x144xbf16, #tpu.memory_space<vmem>>, vector<64x16xbf16>
    tpu.vector_store %arg9[%c0_38, %c48], %81 {strides = array<i32>} : memref<64x144xbf16, #tpu.memory_space<vmem>>, vector<64x16xbf16>,
    %c16_39 = arith.constant 16 : index
    %c0_40 = arith.constant 0 : index
    %83 = vector.load %arg8[%c16_39, %c0_40] : memref<96x16xf32, #tpu.memory_space<vmem>>, vector<64x16xf32>
    %84 = arith.truncf %83 : vector<64x16xf32> to vector<64x16xbf16>
    %c0_41 = arith.constant 0 : index
    %c64 = arith.constant 64 : index
    %85 = vector.load %arg9[%c0_41, %c64] : memref<64x144xbf16, #tpu.memory_space<vmem>>, vector<64x16xbf16>
    tpu.vector_store %arg9[%c0_41, %c64], %84 {strides = array<i32>} : memref<64x144xbf16, #tpu.memory_space<vmem>>, vector<64x16xbf16>,
    %c17 = arith.constant 17 : index
    %c0_42 = arith.constant 0 : index
    %86 = vector.load %arg8[%c17, %c0_42] : memref<96x16xf32, #tpu.memory_space<vmem>>, vector<64x16xf32>
    %87 = arith.truncf %86 : vector<64x16xf32> to vector<64x16xbf16>
    %cst_43 = arith.constant 0.000000e+00 : bf16
    %88 = vector.broadcast %cst_43 : bf16 to vector<64x16xbf16>
    %89 = vector.shape_cast %58 : vector<64x1xi1> to vector<64x1xi1>
    %90 = vector.broadcast %89 : vector<64x1xi1> to vector<64x16xi1>
    %91 = arith.select %90, %87, %88 : vector<64x16xi1>, vector<64x16xbf16>
    %c0_44 = arith.constant 0 : index
    %c80_45 = arith.constant 80 : index
    %92 = vector.load %arg9[%c0_44, %c80_45] : memref<64x144xbf16, #tpu.memory_space<vmem>>, vector<64x16xbf16>
    tpu.vector_store %arg9[%c0_44, %c80_45], %91 {strides = array<i32>} : memref<64x144xbf16, #tpu.memory_space<vmem>>, vector<64x16xbf16>,
    %c23 = arith.constant 23 : index
    %c0_46 = arith.constant 0 : index
    %93 = vector.load %arg8[%c23, %c0_46] : memref<96x16xf32, #tpu.memory_space<vmem>>, vector<64x16xf32>
    %94 = arith.truncf %93 : vector<64x16xf32> to vector<64x16xbf16>
    %cst_47 = arith.constant 0.000000e+00 : bf16
    %95 = vector.broadcast %cst_47 : bf16 to vector<64x16xbf16>
    %96 = vector.shape_cast %56 : vector<64x1xi1> to vector<64x1xi1>
    %97 = vector.broadcast %96 : vector<64x1xi1> to vector<64x16xi1>
    %98 = arith.select %97, %94, %95 : vector<64x16xi1>, vector<64x16xbf16>
    %c0_48 = arith.constant 0 : index
    %c96 = arith.constant 96 : index
    %99 = vector.load %arg9[%c0_48, %c96] : memref<64x144xbf16, #tpu.memory_space<vmem>>, vector<64x16xbf16>
    tpu.vector_store %arg9[%c0_48, %c96], %98 {strides = array<i32>} : memref<64x144xbf16, #tpu.memory_space<vmem>>, vector<64x16xbf16>,
    %c24 = arith.constant 24 : index
    %c0_49 = arith.constant 0 : index
    %100 = vector.load %arg8[%c24, %c0_49] : memref<96x16xf32, #tpu.memory_space<vmem>>, vector<64x16xf32>
    %101 = arith.truncf %100 : vector<64x16xf32> to vector<64x16xbf16>
    %c0_50 = arith.constant 0 : index
    %c112 = arith.constant 112 : index
    %102 = vector.load %arg9[%c0_50, %c112] : memref<64x144xbf16, #tpu.memory_space<vmem>>, vector<64x16xbf16>
    tpu.vector_store %arg9[%c0_50, %c112], %101 {strides = array<i32>} : memref<64x144xbf16, #tpu.memory_space<vmem>>, vector<64x16xbf16>,
    %c25 = arith.constant 25 : index
    %c0_51 = arith.constant 0 : index
    %103 = vector.load %arg8[%c25, %c0_51] : memref<96x16xf32, #tpu.memory_space<vmem>>, vector<64x16xf32>
    %104 = arith.truncf %103 : vector<64x16xf32> to vector<64x16xbf16>
    %cst_52 = arith.constant 0.000000e+00 : bf16
    %105 = vector.broadcast %cst_52 : bf16 to vector<64x16xbf16>
    %106 = vector.shape_cast %58 : vector<64x1xi1> to vector<64x1xi1>
    %107 = vector.broadcast %106 : vector<64x1xi1> to vector<64x16xi1>
    %108 = arith.select %107, %104, %105 : vector<64x16xi1>, vector<64x16xbf16>
    %c0_53 = arith.constant 0 : index
    %c128 = arith.constant 128 : index
    %109 = vector.load %arg9[%c0_53, %c128] : memref<64x144xbf16, #tpu.memory_space<vmem>>, vector<64x16xbf16>
    tpu.vector_store %arg9[%c0_53, %c128], %108 {strides = array<i32>} : memref<64x144xbf16, #tpu.memory_space<vmem>>, vector<64x16xbf16>,
    %c0_54 = arith.constant 0 : index
    %c0_55 = arith.constant 0 : index
    %110 = vector.load %arg9[%c0_54, %c0_55] : memref<64x144xbf16, #tpu.memory_space<vmem>>, vector<64x144xbf16>
    %c0_56 = arith.constant 0 : index
    %c0_57 = arith.constant 0 : index
    %111 = vector.load %arg5[%c0_56, %c0_57] : memref<144x16xbf16, #tpu.memory_space<vmem>>, vector<144x16xbf16>
    %cst_58 = arith.constant dense<0.000000e+00> : vector<64x16xf32>
    %112 = tpu.matmul %110, %111, %cst_58 {dimension_numbers = #tpu.dot_dimension_numbers<[1], [0], [0], [1], [0, 0, 1, 1], [], []>} : vector<64x144xbf16>, vector<144x16xbf16>, vector<64x16xf32> -> vector<64x16xf32>
    %c0_59 = arith.constant 0 : index
    %c0_60 = arith.constant 0 : index
    %c0_61 = arith.constant 0 : index
    %113 = vector.load %arg6[%c0_59, %c0_60, %c0_61] : memref<1x1x16xf32, #tpu.memory_space<vmem>>, vector<1x1x16xf32>
    %114 = vector.shape_cast %113 : vector<1x1x16xf32> to vector<1x16xf32>
    %115 = vector.broadcast %114 : vector<1x16xf32> to vector<64x16xf32>
    %116 = arith.addf %112, %115 : vector<64x16xf32>
    %117 = arith.truncf %116 : vector<64x16xf32> to vector<64x16xbf16>
    %c0_62 = arith.constant 0 : index
    %c0_63 = arith.constant 0 : index
    %c0_64 = arith.constant 0 : index
    %118 = vector.load %arg7[%c0_62, %c0_63, %c0_64] : memref<1x64x16xbf16, #tpu.memory_space<vmem>>, vector<1x64x16xbf16>
    %119 = vector.shape_cast %118 : vector<1x64x16xbf16> to vector<64x16xbf16>
    %120 = vector.shape_cast %117 : vector<64x16xbf16> to vector<1x64x16xbf16>
    tpu.vector_store %arg7[%c0_62, %c0_63, %c0_64], %120 {strides = array<i32>} : memref<1x64x16xbf16, #tpu.memory_space<vmem>>, vector<1x64x16xbf16>,
    return
  }
  func.func @transform_0(%arg0: i32) -> (i32, i32, i32) {
    %c0_i32 = arith.constant 0 : i32
    %c0_i32_0 = arith.constant 0 : i32
    %c0_i32_1 = arith.constant 0 : i32
    return %arg0, %c0_i32, %c0_i32_0 : i32, i32, i32
  }
  func.func @transform_1(%arg0: i32) -> (i32, i32) {
    %c0_i32 = arith.constant 0 : i32
    %c0_i32_0 = arith.constant 0 : i32
    %c0_i32_1 = arith.constant 0 : i32
    return %c0_i32, %c0_i32_0 : i32, i32
  }
  func.func @transform_2(%arg0: i32) -> (i32, i32) {
    %c0_i32 = arith.constant 0 : i32
    %c0_i32_0 = arith.constant 0 : i32
    %c0_i32_1 = arith.constant 0 : i32
    return %c0_i32, %c0_i32_0 : i32, i32
  }
  func.func @transform_3(%arg0: i32) -> (i32, i32) {
    %c0_i32 = arith.constant 0 : i32
    %c0_i32_0 = arith.constant 0 : i32
    %c0_i32_1 = arith.constant 0 : i32
    return %c0_i32, %c0_i32_0 : i32, i32
  }
  func.func @transform_4(%arg0: i32) -> (i32, i32) {
    %c0_i32 = arith.constant 0 : i32
    %c0_i32_0 = arith.constant 0 : i32
    %c0_i32_1 = arith.constant 0 : i32
    return %c0_i32, %c0_i32_0 : i32, i32
  }
  func.func @transform_5(%arg0: i32) -> (i32, i32, i32) {
    %c0_i32 = arith.constant 0 : i32
    %c0_i32_0 = arith.constant 0 : i32
    %c0_i32_1 = arith.constant 0 : i32
    return %arg0, %c0_i32, %c0_i32_0 : i32, i32, i32
  }
  func.func @transform_6(%arg0: i32) -> (i32, i32, i32) {
    %c0_i32 = arith.constant 0 : i32
    %c0_i32_0 = arith.constant 0 : i32
    %c0_i32_1 = arith.constant 0 : i32
    return %arg0, %c0_i32, %c0_i32_0 : i32, i32, i32
  }
}

module attributes {stable_mosaic.version = 11 : i64} {
  func.func @_gn_silu_conv3x3_kernel(%arg0: i32, %arg1: memref<1x64x16xbf16, #tpu.memory_space<vmem>>, %arg2: memref<16x16xf32, #tpu.memory_space<vmem>>, %arg3: memref<1x16xf32, #tpu.memory_space<vmem>>, %arg4: memref<1x16xf32, #tpu.memory_space<vmem>>, %arg5: memref<160x16xbf16, #tpu.memory_space<vmem>>, %arg6: memref<1x1x16xf32, #tpu.memory_space<vmem>>, %arg7: memref<1x64x16xbf16, #tpu.memory_space<vmem>>, %arg8: memref<1x64x16xbf16, #tpu.memory_space<vmem>>, %arg9: memref<96x16xf32, #tpu.memory_space<vmem>>, %arg10: memref<64x160xbf16, #tpu.memory_space<vmem>>) attributes {dimension_semantics = [#tpu.dimension_semantics<parallel>], iteration_bounds = array<i64: 2>, scalar_prefetch = 0 : i64, scratch_operands = 2 : i64, tpu.core_type = #tpu.core_type<tc>, window_params = [{transform_indices = @transform_0, window_bounds = array<i64: 1, 64, 16>}, {pipeline_mode = #tpu.pipeline_mode<synchronous>, transform_indices = @transform_1, window_bounds = array<i64: 16, 16>}, {pipeline_mode = #tpu.pipeline_mode<synchronous>, transform_indices = @transform_2, window_bounds = array<i64: 1, 16>}, {pipeline_mode = #tpu.pipeline_mode<synchronous>, transform_indices = @transform_3, window_bounds = array<i64: 1, 16>}, {pipeline_mode = #tpu.pipeline_mode<synchronous>, transform_indices = @transform_4, window_bounds = array<i64: 160, 16>}, {pipeline_mode = #tpu.pipeline_mode<synchronous>, transform_indices = @transform_5, window_bounds = array<i64: 1, 1, 16>}, {transform_indices = @transform_6, window_bounds = array<i64: 1, 64, 16>}, {transform_indices = @transform_7, window_bounds = array<i64: 1, 64, 16>}]} {
    %c0 = arith.constant 0 : index
    %c0_0 = arith.constant 0 : index
    %c0_1 = arith.constant 0 : index
    %0 = vector.load %arg1[%c0, %c0_0, %c0_1] : memref<1x64x16xbf16, #tpu.memory_space<vmem>>, vector<1x64x16xbf16>
    %1 = vector.shape_cast %0 : vector<1x64x16xbf16> to vector<64x16xbf16>
    %2 = arith.extf %1 : vector<64x16xbf16> to vector<64x16xf32>
    %cst = arith.constant dense<0.000000e+00> : vector<16xf32>
    %3 = vector.multi_reduction <add>, %2, %cst [0] : vector<64x16xf32> to vector<16xf32>
    %4 = vector.shape_cast %3 : vector<16xf32> to vector<1x16xf32>
    %c0_2 = arith.constant 0 : index
    %c0_3 = arith.constant 0 : index
    %5 = vector.load %arg2[%c0_2, %c0_3] : memref<16x16xf32, #tpu.memory_space<vmem>>, vector<16x16xf32>
    %cst_4 = arith.constant dense<0.000000e+00> : vector<1x16xf32>
    %6 = tpu.matmul %4, %5, %cst_4 {dimension_numbers = #tpu.dot_dimension_numbers<[1], [0], [0], [1], [0, 0, 1, 1], [], []>} : vector<1x16xf32>, vector<16x16xf32>, vector<1x16xf32> -> vector<1x16xf32>
    %7 = vector.broadcast %6 : vector<1x16xf32> to vector<64x16xf32>
    %8 = arith.subf %2, %7 : vector<64x16xf32>
    %9 = arith.mulf %8, %8 : vector<64x16xf32>
    %cst_5 = arith.constant dense<0.000000e+00> : vector<16xf32>
    %10 = vector.multi_reduction <add>, %9, %cst_5 [0] : vector<64x16xf32> to vector<16xf32>
    %11 = vector.shape_cast %10 : vector<16xf32> to vector<1x16xf32>
    %c0_6 = arith.constant 0 : index
    %c0_7 = arith.constant 0 : index
    %12 = vector.load %arg2[%c0_6, %c0_7] : memref<16x16xf32, #tpu.memory_space<vmem>>, vector<16x16xf32>
    %cst_8 = arith.constant dense<0.000000e+00> : vector<1x16xf32>
    %13 = tpu.matmul %11, %12, %cst_8 {dimension_numbers = #tpu.dot_dimension_numbers<[1], [0], [0], [1], [0, 0, 1, 1], [], []>} : vector<1x16xf32>, vector<16x16xf32>, vector<1x16xf32> -> vector<1x16xf32>
    %cst_9 = arith.constant 0.000000e+00 : f32
    %14 = vector.broadcast %cst_9 : f32 to vector<1x16xf32>
    %15 = arith.maximumf %13, %14 : vector<1x16xf32>
    %cst_10 = arith.constant 9.99999974E-6 : f32
    %16 = vector.broadcast %cst_10 : f32 to vector<1x16xf32>
    %17 = arith.addf %15, %16 : vector<1x16xf32>
    %18 = math.rsqrt %17 : vector<1x16xf32>
    %19 = vector.broadcast %18 : vector<1x16xf32> to vector<64x16xf32>
    %20 = arith.mulf %8, %19 : vector<64x16xf32>
    %c0_11 = arith.constant 0 : index
    %c0_12 = arith.constant 0 : index
    %21 = vector.load %arg3[%c0_11, %c0_12] : memref<1x16xf32, #tpu.memory_space<vmem>>, vector<1x16xf32>
    %22 = vector.broadcast %21 : vector<1x16xf32> to vector<64x16xf32>
    %23 = arith.mulf %20, %22 : vector<64x16xf32>
    %c0_13 = arith.constant 0 : index
    %c0_14 = arith.constant 0 : index
    %24 = vector.load %arg4[%c0_13, %c0_14] : memref<1x16xf32, #tpu.memory_space<vmem>>, vector<1x16xf32>
    %25 = vector.broadcast %24 : vector<1x16xf32> to vector<64x16xf32>
    %26 = arith.addf %23, %25 : vector<64x16xf32>
    %27 = arith.negf %26 : vector<64x16xf32>
    %28 = math.exp %27 : vector<64x16xf32>
    %cst_15 = arith.constant 1.000000e+00 : f32
    %29 = vector.broadcast %cst_15 : f32 to vector<64x16xf32>
    %30 = arith.addf %29, %28 : vector<64x16xf32>
    %31 = arith.divf %29, %30 : vector<64x16xf32>
    %32 = arith.mulf %26, %31 : vector<64x16xf32>
    %cst_16 = arith.constant 0.000000e+00 : f32
    %33 = vector.broadcast %cst_16 : f32 to vector<16x16xf32>
    %c0_17 = arith.constant 0 : index
    %c0_18 = arith.constant 0 : index
    %34 = vector.load %arg9[%c0_17, %c0_18] : memref<96x16xf32, #tpu.memory_space<vmem>>, vector<16x16xf32>
    tpu.vector_store %arg9[%c0_17, %c0_18], %33 {strides = array<i32>} : memref<96x16xf32, #tpu.memory_space<vmem>>, vector<16x16xf32>,
    %cst_19 = arith.constant 0.000000e+00 : f32
    %35 = vector.broadcast %cst_19 : f32 to vector<16x16xf32>
    %c80 = arith.constant 80 : index
    %c0_20 = arith.constant 0 : index
    %36 = vector.load %arg9[%c80, %c0_20] : memref<96x16xf32, #tpu.memory_space<vmem>>, vector<16x16xf32>
    tpu.vector_store %arg9[%c80, %c0_20], %35 {strides = array<i32>} : memref<96x16xf32, #tpu.memory_space<vmem>>, vector<16x16xf32>,
    %c16 = arith.constant 16 : index
    %c0_21 = arith.constant 0 : index
    %37 = vector.load %arg9[%c16, %c0_21] : memref<96x16xf32, #tpu.memory_space<vmem>>, vector<64x16xf32>
    tpu.vector_store %arg9[%c16, %c0_21], %32 {strides = array<i32>} : memref<96x16xf32, #tpu.memory_space<vmem>>, vector<64x16xf32>,
    %38 = tpu.iota {dimensions = array<i32: 0>} : vector<64x1xi32>
    %c8_i32 = arith.constant 8 : i32
    %c0_i32 = arith.constant 0 : i32
    %39 = arith.cmpi eq, %c8_i32, %c0_i32 : i32
    %c1_i32 = arith.constant 1 : i32
    %40 = arith.select %39, %c1_i32, %c8_i32 : i32
    %41 = vector.broadcast %40 : i32 to vector<64x1xi32>
    %42 = arith.remsi %38, %41 : vector<64x1xi32>
    %c0_i32_22 = arith.constant 0 : i32
    %43 = vector.broadcast %c0_i32_22 : i32 to vector<64x1xi32>
    %44 = arith.cmpi ne, %42, %43 : vector<64x1xi32>
    %c0_i32_23 = arith.constant 0 : i32
    %45 = vector.broadcast %c0_i32_23 : i32 to vector<64x1xi32>
    %46 = arith.cmpi slt, %42, %45 : vector<64x1xi32>
    %c0_i32_24 = arith.constant 0 : i32
    %47 = arith.cmpi slt, %40, %c0_i32_24 : i32
    %48 = vector.broadcast %47 : i1 to vector<64x1xi1>
    %49 = vector.broadcast %48 : vector<64x1xi1> to vector<64x1xi1>
    %50 = arith.xori %46, %49 : vector<64x1xi1>
    %51 = arith.andi %50, %44 : vector<64x1xi1>
    %52 = vector.broadcast %40 : i32 to vector<64x1xi32>
    %53 = arith.addi %42, %52 : vector<64x1xi32>
    %54 = arith.select %51, %53, %42 : vector<64x1xi1>, vector<64x1xi32>
    %c0_i32_25 = arith.constant 0 : i32
    %55 = vector.broadcast %c0_i32_25 : i32 to vector<64x1xi32>
    %56 = arith.cmpi sgt, %54, %55 : vector<64x1xi32>
    %c7_i32 = arith.constant 7 : i32
    %57 = vector.broadcast %c7_i32 : i32 to vector<64x1xi32>
    %58 = arith.cmpi slt, %54, %57 : vector<64x1xi32>
    %c7 = arith.constant 7 : index
    %c0_26 = arith.constant 0 : index
    %59 = vector.load %arg9[%c7, %c0_26] : memref<96x16xf32, #tpu.memory_space<vmem>>, vector<64x16xf32>
    %60 = arith.truncf %59 : vector<64x16xf32> to vector<64x16xbf16>
    %cst_27 = arith.constant 0.000000e+00 : bf16
    %61 = vector.broadcast %cst_27 : bf16 to vector<64x16xbf16>
    %62 = vector.shape_cast %56 : vector<64x1xi1> to vector<64x1xi1>
    %63 = vector.broadcast %62 : vector<64x1xi1> to vector<64x16xi1>
    %64 = arith.select %63, %60, %61 : vector<64x16xi1>, vector<64x16xbf16>
    %c0_28 = arith.constant 0 : index
    %c0_29 = arith.constant 0 : index
    %65 = vector.load %arg10[%c0_28, %c0_29] : memref<64x160xbf16, #tpu.memory_space<vmem>>, vector<64x16xbf16>
    tpu.vector_store %arg10[%c0_28, %c0_29], %64 {strides = array<i32>} : memref<64x160xbf16, #tpu.memory_space<vmem>>, vector<64x16xbf16>,
    %c8 = arith.constant 8 : index
    %c0_30 = arith.constant 0 : index
    %66 = vector.load %arg9[%c8, %c0_30] : memref<96x16xf32, #tpu.memory_space<vmem>>, vector<64x16xf32>
    %67 = arith.truncf %66 : vector<64x16xf32> to vector<64x16xbf16>
    %c0_31 = arith.constant 0 : index
    %c16_32 = arith.constant 16 : index
    %68 = vector.load %arg10[%c0_31, %c16_32] : memref<64x160xbf16, #tpu.memory_space<vmem>>, vector<64x16xbf16>
    tpu.vector_store %arg10[%c0_31, %c16_32], %67 {strides = array<i32>} : memref<64x160xbf16, #tpu.memory_space<vmem>>, vector<64x16xbf16>,
    %c9 = arith.constant 9 : index
    %c0_33 = arith.constant 0 : index
    %69 = vector.load %arg9[%c9, %c0_33] : memref<96x16xf32, #tpu.memory_space<vmem>>, vector<64x16xf32>
    %70 = arith.truncf %69 : vector<64x16xf32> to vector<64x16xbf16>
    %cst_34 = arith.constant 0.000000e+00 : bf16
    %71 = vector.broadcast %cst_34 : bf16 to vector<64x16xbf16>
    %72 = vector.shape_cast %58 : vector<64x1xi1> to vector<64x1xi1>
    %73 = vector.broadcast %72 : vector<64x1xi1> to vector<64x16xi1>
    %74 = arith.select %73, %70, %71 : vector<64x16xi1>, vector<64x16xbf16>
    %c0_35 = arith.constant 0 : index
    %c32 = arith.constant 32 : index
    %75 = vector.load %arg10[%c0_35, %c32] : memref<64x160xbf16, #tpu.memory_space<vmem>>, vector<64x16xbf16>
    tpu.vector_store %arg10[%c0_35, %c32], %74 {strides = array<i32>} : memref<64x160xbf16, #tpu.memory_space<vmem>>, vector<64x16xbf16>,
    %c15 = arith.constant 15 : index
    %c0_36 = arith.constant 0 : index
    %76 = vector.load %arg9[%c15, %c0_36] : memref<96x16xf32, #tpu.memory_space<vmem>>, vector<64x16xf32>
    %77 = arith.truncf %76 : vector<64x16xf32> to vector<64x16xbf16>
    %cst_37 = arith.constant 0.000000e+00 : bf16
    %78 = vector.broadcast %cst_37 : bf16 to vector<64x16xbf16>
    %79 = vector.shape_cast %56 : vector<64x1xi1> to vector<64x1xi1>
    %80 = vector.broadcast %79 : vector<64x1xi1> to vector<64x16xi1>
    %81 = arith.select %80, %77, %78 : vector<64x16xi1>, vector<64x16xbf16>
    %c0_38 = arith.constant 0 : index
    %c48 = arith.constant 48 : index
    %82 = vector.load %arg10[%c0_38, %c48] : memref<64x160xbf16, #tpu.memory_space<vmem>>, vector<64x16xbf16>
    tpu.vector_store %arg10[%c0_38, %c48], %81 {strides = array<i32>} : memref<64x160xbf16, #tpu.memory_space<vmem>>, vector<64x16xbf16>,
    %c16_39 = arith.constant 16 : index
    %c0_40 = arith.constant 0 : index
    %83 = vector.load %arg9[%c16_39, %c0_40] : memref<96x16xf32, #tpu.memory_space<vmem>>, vector<64x16xf32>
    %84 = arith.truncf %83 : vector<64x16xf32> to vector<64x16xbf16>
    %c0_41 = arith.constant 0 : index
    %c64 = arith.constant 64 : index
    %85 = vector.load %arg10[%c0_41, %c64] : memref<64x160xbf16, #tpu.memory_space<vmem>>, vector<64x16xbf16>
    tpu.vector_store %arg10[%c0_41, %c64], %84 {strides = array<i32>} : memref<64x160xbf16, #tpu.memory_space<vmem>>, vector<64x16xbf16>,
    %c17 = arith.constant 17 : index
    %c0_42 = arith.constant 0 : index
    %86 = vector.load %arg9[%c17, %c0_42] : memref<96x16xf32, #tpu.memory_space<vmem>>, vector<64x16xf32>
    %87 = arith.truncf %86 : vector<64x16xf32> to vector<64x16xbf16>
    %cst_43 = arith.constant 0.000000e+00 : bf16
    %88 = vector.broadcast %cst_43 : bf16 to vector<64x16xbf16>
    %89 = vector.shape_cast %58 : vector<64x1xi1> to vector<64x1xi1>
    %90 = vector.broadcast %89 : vector<64x1xi1> to vector<64x16xi1>
    %91 = arith.select %90, %87, %88 : vector<64x16xi1>, vector<64x16xbf16>
    %c0_44 = arith.constant 0 : index
    %c80_45 = arith.constant 80 : index
    %92 = vector.load %arg10[%c0_44, %c80_45] : memref<64x160xbf16, #tpu.memory_space<vmem>>, vector<64x16xbf16>
    tpu.vector_store %arg10[%c0_44, %c80_45], %91 {strides = array<i32>} : memref<64x160xbf16, #tpu.memory_space<vmem>>, vector<64x16xbf16>,
    %c23 = arith.constant 23 : index
    %c0_46 = arith.constant 0 : index
    %93 = vector.load %arg9[%c23, %c0_46] : memref<96x16xf32, #tpu.memory_space<vmem>>, vector<64x16xf32>
    %94 = arith.truncf %93 : vector<64x16xf32> to vector<64x16xbf16>
    %cst_47 = arith.constant 0.000000e+00 : bf16
    %95 = vector.broadcast %cst_47 : bf16 to vector<64x16xbf16>
    %96 = vector.shape_cast %56 : vector<64x1xi1> to vector<64x1xi1>
    %97 = vector.broadcast %96 : vector<64x1xi1> to vector<64x16xi1>
    %98 = arith.select %97, %94, %95 : vector<64x16xi1>, vector<64x16xbf16>
    %c0_48 = arith.constant 0 : index
    %c96 = arith.constant 96 : index
    %99 = vector.load %arg10[%c0_48, %c96] : memref<64x160xbf16, #tpu.memory_space<vmem>>, vector<64x16xbf16>
    tpu.vector_store %arg10[%c0_48, %c96], %98 {strides = array<i32>} : memref<64x160xbf16, #tpu.memory_space<vmem>>, vector<64x16xbf16>,
    %c24 = arith.constant 24 : index
    %c0_49 = arith.constant 0 : index
    %100 = vector.load %arg9[%c24, %c0_49] : memref<96x16xf32, #tpu.memory_space<vmem>>, vector<64x16xf32>
    %101 = arith.truncf %100 : vector<64x16xf32> to vector<64x16xbf16>
    %c0_50 = arith.constant 0 : index
    %c112 = arith.constant 112 : index
    %102 = vector.load %arg10[%c0_50, %c112] : memref<64x160xbf16, #tpu.memory_space<vmem>>, vector<64x16xbf16>
    tpu.vector_store %arg10[%c0_50, %c112], %101 {strides = array<i32>} : memref<64x160xbf16, #tpu.memory_space<vmem>>, vector<64x16xbf16>,
    %c25 = arith.constant 25 : index
    %c0_51 = arith.constant 0 : index
    %103 = vector.load %arg9[%c25, %c0_51] : memref<96x16xf32, #tpu.memory_space<vmem>>, vector<64x16xf32>
    %104 = arith.truncf %103 : vector<64x16xf32> to vector<64x16xbf16>
    %cst_52 = arith.constant 0.000000e+00 : bf16
    %105 = vector.broadcast %cst_52 : bf16 to vector<64x16xbf16>
    %106 = vector.shape_cast %58 : vector<64x1xi1> to vector<64x1xi1>
    %107 = vector.broadcast %106 : vector<64x1xi1> to vector<64x16xi1>
    %108 = arith.select %107, %104, %105 : vector<64x16xi1>, vector<64x16xbf16>
    %c0_53 = arith.constant 0 : index
    %c128 = arith.constant 128 : index
    %109 = vector.load %arg10[%c0_53, %c128] : memref<64x160xbf16, #tpu.memory_space<vmem>>, vector<64x16xbf16>
    tpu.vector_store %arg10[%c0_53, %c128], %108 {strides = array<i32>} : memref<64x160xbf16, #tpu.memory_space<vmem>>, vector<64x16xbf16>,
    %c0_54 = arith.constant 0 : index
    %c0_55 = arith.constant 0 : index
    %c0_56 = arith.constant 0 : index
    %110 = vector.load %arg7[%c0_54, %c0_55, %c0_56] : memref<1x64x16xbf16, #tpu.memory_space<vmem>>, vector<1x64x16xbf16>
    %111 = vector.shape_cast %110 : vector<1x64x16xbf16> to vector<64x16xbf16>
    %c0_57 = arith.constant 0 : index
    %c144 = arith.constant 144 : index
    %112 = vector.load %arg10[%c0_57, %c144] : memref<64x160xbf16, #tpu.memory_space<vmem>>, vector<64x16xbf16>
    tpu.vector_store %arg10[%c0_57, %c144], %111 {strides = array<i32>} : memref<64x160xbf16, #tpu.memory_space<vmem>>, vector<64x16xbf16>,
    %c0_58 = arith.constant 0 : index
    %c0_59 = arith.constant 0 : index
    %113 = vector.load %arg10[%c0_58, %c0_59] : memref<64x160xbf16, #tpu.memory_space<vmem>>, vector<64x160xbf16>
    %c0_60 = arith.constant 0 : index
    %c0_61 = arith.constant 0 : index
    %114 = vector.load %arg5[%c0_60, %c0_61] : memref<160x16xbf16, #tpu.memory_space<vmem>>, vector<160x16xbf16>
    %cst_62 = arith.constant dense<0.000000e+00> : vector<64x16xf32>
    %115 = tpu.matmul %113, %114, %cst_62 {dimension_numbers = #tpu.dot_dimension_numbers<[1], [0], [0], [1], [0, 0, 1, 1], [], []>} : vector<64x160xbf16>, vector<160x16xbf16>, vector<64x16xf32> -> vector<64x16xf32>
    %c0_63 = arith.constant 0 : index
    %c0_64 = arith.constant 0 : index
    %c0_65 = arith.constant 0 : index
    %116 = vector.load %arg6[%c0_63, %c0_64, %c0_65] : memref<1x1x16xf32, #tpu.memory_space<vmem>>, vector<1x1x16xf32>
    %117 = vector.shape_cast %116 : vector<1x1x16xf32> to vector<1x16xf32>
    %118 = vector.broadcast %117 : vector<1x16xf32> to vector<64x16xf32>
    %119 = arith.addf %115, %118 : vector<64x16xf32>
    %120 = arith.truncf %119 : vector<64x16xf32> to vector<64x16xbf16>
    %c0_66 = arith.constant 0 : index
    %c0_67 = arith.constant 0 : index
    %c0_68 = arith.constant 0 : index
    %121 = vector.load %arg8[%c0_66, %c0_67, %c0_68] : memref<1x64x16xbf16, #tpu.memory_space<vmem>>, vector<1x64x16xbf16>
    %122 = vector.shape_cast %121 : vector<1x64x16xbf16> to vector<64x16xbf16>
    %123 = vector.shape_cast %120 : vector<64x16xbf16> to vector<1x64x16xbf16>
    tpu.vector_store %arg8[%c0_66, %c0_67, %c0_68], %123 {strides = array<i32>} : memref<1x64x16xbf16, #tpu.memory_space<vmem>>, vector<1x64x16xbf16>,
    return
  }
  func.func @transform_0(%arg0: i32) -> (i32, i32, i32) {
    %c0_i32 = arith.constant 0 : i32
    %c0_i32_0 = arith.constant 0 : i32
    %c0_i32_1 = arith.constant 0 : i32
    return %arg0, %c0_i32, %c0_i32_0 : i32, i32, i32
  }
  func.func @transform_1(%arg0: i32) -> (i32, i32) {
    %c0_i32 = arith.constant 0 : i32
    %c0_i32_0 = arith.constant 0 : i32
    %c0_i32_1 = arith.constant 0 : i32
    return %c0_i32, %c0_i32_0 : i32, i32
  }
  func.func @transform_2(%arg0: i32) -> (i32, i32) {
    %c0_i32 = arith.constant 0 : i32
    %c0_i32_0 = arith.constant 0 : i32
    %c0_i32_1 = arith.constant 0 : i32
    return %c0_i32, %c0_i32_0 : i32, i32
  }
  func.func @transform_3(%arg0: i32) -> (i32, i32) {
    %c0_i32 = arith.constant 0 : i32
    %c0_i32_0 = arith.constant 0 : i32
    %c0_i32_1 = arith.constant 0 : i32
    return %c0_i32, %c0_i32_0 : i32, i32
  }
  func.func @transform_4(%arg0: i32) -> (i32, i32) {
    %c0_i32 = arith.constant 0 : i32
    %c0_i32_0 = arith.constant 0 : i32
    %c0_i32_1 = arith.constant 0 : i32
    return %c0_i32, %c0_i32_0 : i32, i32
  }
  func.func @transform_5(%arg0: i32) -> (i32, i32, i32) {
    %c0_i32 = arith.constant 0 : i32
    %c0_i32_0 = arith.constant 0 : i32
    %c0_i32_1 = arith.constant 0 : i32
    %c0_i32_2 = arith.constant 0 : i32
    return %c0_i32, %c0_i32_0, %c0_i32_1 : i32, i32, i32
  }
  func.func @transform_6(%arg0: i32) -> (i32, i32, i32) {
    %c0_i32 = arith.constant 0 : i32
    %c0_i32_0 = arith.constant 0 : i32
    %c0_i32_1 = arith.constant 0 : i32
    return %arg0, %c0_i32, %c0_i32_0 : i32, i32, i32
  }
  func.func @transform_7(%arg0: i32) -> (i32, i32, i32) {
    %c0_i32 = arith.constant 0 : i32
    %c0_i32_0 = arith.constant 0 : i32
    %c0_i32_1 = arith.constant 0 : i32
    return %arg0, %c0_i32, %c0_i32_0 : i32, i32, i32
  }
}

</mosaic_0001>

<bundles_post_ra>
// kernel: midblock_forward.5
= control target key start
LH: loop header
LB: loop body
LE: loop exit
PB: predicated region body
PF: predicated region fallthrough
CT: control target
= control target key end

     0   :  { %s2922_s0 = inlined_call_operand.hbm [shape: bf16[2,64,8], index: 0, kind: input, shape index: {}]   ;;  %s2923_s1 = inlined_call_operand.hbm [shape: f32[8,8], index: 1, kind: input, shape index: {}]   ;;  %s2924_s2 = inlined_call_operand.hbm [shape: f32[1,8], index: 2, kind: input, shape index: {}]   ;;  %s2925_s3 = inlined_call_operand.hbm [shape: f32[1,8], index: 3, kind: input, shape index: {}]   ;;  %s2926_s4 = inlined_call_operand.hbm [shape: bf16[72,16], index: 4, kind: input, shape index: {}]   ;;  %s2927_s5 = inlined_call_operand.hbm [shape: f32[2,1,16], index: 5, kind: input, shape index: {}]   ;;  %s2928_s6 = inlined_call_operand.hbm [shape: bf16[2,64,16], index: 6, kind: output, shape index: {}]  }
   0x1   :  { %2934 = sst [smem:[#allocation21_spill]] %s2922_s0 }
   0x2   :  { %2935 = sst [smem:[#allocation22_spill]] %s2923_s1 }
   0x3   :  { %11 = vsyncpa [#allocation5], 0 }
   0x4   :  { %13 = vsyncpa [#allocation5 + $0x1], 0 }
   0x5   :  { %14 = vsyncpa [#allocation8], 0 }
   0x6   :  { %15 = vsyncpa [#allocation11], 0 }
   0x7   :  { %16 = vsyncpa [#allocation14], 0 }
   0x8   :  { %18 = vsyncpa [#allocation14 + $0x1], 0 }
   0x9   :  { %19 = vsyncpa [#allocation6], 0 }
   0xa   :  { %21 = vsyncpa [#allocation6 + $0x1], 0  ;;  %s2130_s21 = smov 0   ;;  %s2132_s22 = smov 0  }
   0xb   :  { %s2134_s23 = smov 0   ;;  %s2136_s24 = smov 0  }
   0xc LB: > { %s2151_s25 = sadd.s32 4294967295, %s2072_s24   ;;  %s1534_s26 = sadd.s32 4294967294, %s2072_s24   ;;  %s2072_s24 = sphi %s2136_s24, %s3008_s24   ;;  %s2068_s23 = sphi %s2134_s23, %s3007_s23   ;;  %s2064_s22 = sphi %s2132_s22, %s3006_s22   ;;  %s2060_s21 = sphi %s2130_s21, %s3005_s21  }
   0xd   : > { %p47_p0 = scmp.ne.s32.totalorder %s2064_s22, %s2060_s21  ;;  %p2929_p1 = scmp.eq.s32.totalorder %s2151_s25, 0 }
   0xe   : > { %p187_p3 = scmp.eq.s32.totalorder %s1534_s26, 1  ;;  %p1535_p5 = scmp.ge.s32.totalorder %s2072_s24, 1 }
   0xf   : > { %p2160_p4 = por %p2929_p1, %p47_p0  ;;  %p194_p7 = scmp.lt.s32.totalorder %s2072_s24, 3 }
  0x10   : > { %p2165_p6 = por %p187_p3, %p47_p0  ;;  %s2074_s30 = smov [#allocation7]  }
  0x11   : > { %s2936_s27 = scalar_select %p2160_p4, 1, 0 }
  0x12   : > { %s2937_s28 = scalar_select %p2165_p6, 1, 0 }
  0x13   : > { %p2170_p8 = pnand %p1535_p5, %p194_p7  ;;  %s207_s7 = sshll.u32 %s2074_s30, 4  ;;  %s208_s7 = int_to_ptr.vmem [resolvable:$true] %s207_s7 }
  0x14   : > { %s2075_s8 = smov [#allocation10]   ;;  %s2076_s11 = smov [#allocation9]  }
  0x15   : > { %s2938_s29 = scalar_select %p2170_p8, 1, 0 }
  0x16   : > { %p1699_p10 = pneg %p2170_p8  ;;  %s229_s9 = sshll.u32 %s2075_s8, 4  ;;  %s2183_s9 = int_to_ptr.vmem [resolvable:$true] %s229_s9 }
  0x17   : > { %s218_s12 = sshll.u32 %s2076_s11, 4  ;;  %s2940_s1 = sld [smem:[#allocation22_spill]]  ;;  %s2185_s12 = int_to_ptr.vmem [resolvable:$true] %s218_s12 }
  0x18   : > { %p2179_p11 = pnand %p1699_p10, %p2929_p1 }
  0x1a   : > { %p2195_p13 = pneg %p2179_p11 }
  0x1d   : > { %s1822_s15 = scalar_lea.hbm %s2940_s1, 128 }
  0x1e   : > { %p1823_p12 = scmp.ne.s32.totalorder %s2940_s1, %s1822_s15  ;;  %p1829_p5 = scmp.lt.u32.totalorder %s1822_s15, %s2940_s1 }
  0x20   : > { %p1825_p0 = pnand %p2195_p13, %p1823_p12 }
  0x22   : > { %p1826_p3 = pneg %p1825_p0 }
  0x24   : > { %p1831_p7 = pnand %p1829_p5, %p1826_p3 }
  0x26   : > { %1834 = shalt.err (!%p1831_p7)
}
  0x27   : > { %s1835_s26 = scalar_lea.vmem %s208_s7, 128  ;;  %p1843_p2 = scmp.lt.s32.totalorder %s208_s7, %s208_s7 }
  0x28   : > { %p1836_p10 = scmp.ne.s32.totalorder %s208_s7, %s1835_s26  ;;  %p1844_p6 = scmp.lt.s32.totalorder %s1835_s26, %s1835_s26 }
  0x2a   : > { %p1838_p9 = pnand %p1836_p10, %p2195_p13  ;;  %p1845_p4 = por %p1844_p6, %p1843_p2 }
  0x2c   : > { %p1839_p1 = pneg %p1838_p9 }
  0x2e   : > { %p1846_p8 = pnand %p1845_p4, %p1839_p1 }
  0x30   : > { %1849 = shalt.err (!%p1846_p8)
}
  0x31   : > { %1702 = dma.hbm_to_vmem [thread:$0]  (!%p2179_p11), %s2940_s1, 128, %s208_s7, [#allocation8]  }
  0x32   : > { %s1850_s14 = scalar_lea.hbm %s2925_s3, 16 }
  0x33   : > { %p1851_p9 = scmp.ne.s32.totalorder %s2925_s3, %s1850_s14  ;;  %p1857_p1 = scmp.lt.u32.totalorder %s1850_s14, %s2925_s3 }
  0x35   : > { %p1853_p12 = pnand %p1851_p9, %p2195_p13 }
  0x37   : > { %p1854_p2 = pneg %p1853_p12 }
  0x39   : > { %p1859_p4 = pnand %p1857_p1, %p1854_p2 }
  0x3b   : > { %1862 = shalt.err (!%p1859_p4)
}
  0x3c   : > { %s1863_s7 = scalar_lea.vmem %s2183_s9, 16  ;;  %s1870_s20 = scalar_lea.vmem %s2183_s9, 32 }
  0x3d   : > { %p1864_p6 = scmp.ne.s32.totalorder %s2183_s9, %s1863_s7  ;;  %p1871_p3 = scmp.lt.s32.totalorder %s2183_s9, %s2183_s9 }
  0x3e   : > { %p1872_p5 = scmp.lt.s32.totalorder %s1870_s20, %s1863_s7 }
  0x3f   : > { %p1866_p8 = pnand %p1864_p6, %p2195_p13 }
  0x40   : > { %p1873_p7 = por %p1872_p5, %p1871_p3 }
  0x41   : > { %p1867_p0 = pneg %p1866_p8 }
  0x43   : > { %p1874_p10 = pnand %p1873_p7, %p1867_p0 }
  0x45   : > { %1877 = shalt.err (!%p1874_p10)
}
  0x46   : > { %1708 = dma.hbm_to_vmem [thread:$0]  (!%p2179_p11), %s2925_s3, 16, %s2183_s9, [#allocation11]  }
  0x47   : > { %s1878_s13 = scalar_lea.hbm %s2924_s2, 16 }
  0x48   : > { %p1879_p9 = scmp.ne.s32.totalorder %s2924_s2, %s1878_s13  ;;  %p1885_p1 = scmp.lt.u32.totalorder %s1878_s13, %s2924_s2 }
  0x4a   : > { %p1881_p12 = pnand %p1879_p9, %p2195_p13 }
  0x4c   : > { %p1882_p2 = pneg %p1881_p12 }
  0x4e   : > { %p1887_p4 = pnand %p1885_p1, %p1882_p2 }
  0x50   : > { %1890 = shalt.err (!%p1887_p4)
}
  0x51   : > { %s1891_s9 = scalar_lea.vmem %s2185_s12, 16  ;;  %s1898_s19 = scalar_lea.vmem %s2185_s12, 32 }
  0x52   : > { %p1892_p6 = scmp.ne.s32.totalorder %s2185_s12, %s1891_s9  ;;  %p1899_p3 = scmp.lt.s32.totalorder %s2185_s12, %s2185_s12 }
  0x53   : > { %p1900_p5 = scmp.lt.s32.totalorder %s1898_s19, %s1891_s9 }
  0x54   : > { %p1894_p8 = pnand %p1892_p6, %p2195_p13 }
  0x55   : > { %p1901_p7 = por %p1900_p5, %p1899_p3 }
  0x56   : > { %p1895_p0 = pneg %p1894_p8 }
  0x58   : > { %p1902_p10 = pnand %p1901_p7, %p1895_p0 }
  0x5a   : > { %1905 = shalt.err (!%p1902_p10)
}
  0x5b   : > { %1705 = dma.hbm_to_vmem [thread:$0]  (!%p2179_p11), %s2924_s2, 16, %s2185_s12, [#allocation8]  }
  0x5c   : > { %s2077_s26 = smov [#allocation12]   ;;  %s1906_s13 = scalar_lea.hbm %s2926_s4, 576 }
  0x5d   : > { %s239_s30 = sshll.u32 %s2077_s26, 4  ;;  %p1907_p9 = scmp.ne.s32.totalorder %s2926_s4, %s1906_s13  ;;  %s240_s30 = int_to_ptr.vmem [resolvable:$true] %s239_s30 }
  0x5e   : > { %p1913_p1 = scmp.lt.u32.totalorder %s1906_s13, %s2926_s4 }
  0x5f   : > { %p1909_p12 = pnand %p1907_p9, %p2195_p13 }
  0x61   : > { %p1910_p2 = pneg %p1909_p12 }
  0x63   : > { %p1915_p4 = pnand %p1913_p1, %p1910_p2 }
  0x65   : > { %1918 = shalt.err (!%p1915_p4)
}
  0x66   : > { %s1919_s12 = scalar_lea.vmem %s240_s30, 576  ;;  %p1927_p3 = scmp.lt.s32.totalorder %s240_s30, %s240_s30 }
  0x67   : > { %p1920_p6 = scmp.ne.s32.totalorder %s240_s30, %s1919_s12  ;;  %p1928_p5 = scmp.lt.s32.totalorder %s1919_s12, %s1919_s12 }
  0x69   : > { %p1922_p8 = pnand %p1920_p6, %p2195_p13  ;;  %p1929_p7 = por %p1928_p5, %p1927_p3 }
  0x6b   : > { %p1923_p0 = pneg %p1922_p8 }
  0x6d   : > { %p1930_p10 = pnand %p1929_p7, %p1923_p0 }
  0x6f   : > { %1933 = shalt.err (!%p1930_p10)
}
  0x70   : > { %s2932_s9 = smov 64   ;;  %s2079_s18 = smov 4  }
  0x71   : > { %1711 = dma.hbm_to_vmem [thread:$0]  (!%p2179_p11), %s2926_s4, 576, %s240_s30, [#allocation11], %s2932_s9, %s2932_s9, %s2079_s18  }
  0x72   : > { %s2281_s20 = sadd.s32 1, %s2072_s24   ;;  %s34_s8 = sadd.s32 1, %s2068_s23 }
  0x73   : > { %s31_s26 = ssub.s32 %s2072_s24, %s2281_s20  ;;  %p41_p9 = scmp.ne.s32.totalorder %s2068_s23, %s2064_s22 }
  0x74   : > { %p32_p13 = scmp.eq.s32.totalorder %s31_s26, 0  ;;  %p42_p12 = scmp.eq.s32.totalorder %s2072_s24, 0 }
  0x75   : > { %p2942_p1 = scmp.eq.s32.totalorder %s2151_s25, 1  ;;  %p1727_p6 = scmp.lt.s32.totalorder %s2072_s24, 2 }
  0x76   : > { %s2290_s11 = scalar_select %p32_p13, %s2068_s23, %s34_s8  }
  0x77   : > { %p43_p2 = por %p42_p12, %p41_p9  ;;  %p2294_p4 = por %p2942_p1, %p41_p9 }
  0x78   : > { %s2300_s13 = sand.u32 1, %s2068_s23   ;;  %s1595_s14 = sshll.u32 %s2072_s24, 9 }
  0x79   : > { %s2943_s10 = scalar_select %p2294_p4, 1, 0 }
  0x7a   : > { %s1541_s30 = sshll.u32 %s2300_s13, 5  ;;  %s2944_s0 = sld [smem:[#allocation21_spill]] }
  0x7b   : > { %s257_s12 = scalar_lea.vmem [#allocation4], %s1541_s30  ;;  %p2311_p11 = pnand %p1727_p6, %p43_p2 }
  0x7c   : > { %s264_s19 = sshll.u32 %s257_s12, 4  ;;  %s254_s8 = scalar_lea.sflag [#allocation5], %s2300_s13  ;;  %s2309_s19 = int_to_ptr.vmem [resolvable:$true] %s264_s19 }
  0x7d   : > { %p1936_p0 = pneg %p2311_p11 }
  0x80   : > { %s2307_s17 = scalar_lea.hbm %s2944_s0, %s1595_s14  ;;  %s1939_s15 = scalar_lea.hbm %s2944_s0, 1024 }
  0x81   : > { %s1934_s9 = scalar_lea.hbm %s2307_s17, 512  ;;  %p1940_p7 = scmp.lt.u32.totalorder %s2307_s17, %s2944_s0 }
  0x82   : > { %p1935_p8 = scmp.ne.s32.totalorder %s2307_s17, %s1934_s9  ;;  %p1941_p10 = scmp.lt.u32.totalorder %s1939_s15, %s1934_s9 }
  0x83   : > { %p1943_p9 = scmp.lt.u32.totalorder %s1934_s9, %s2307_s17 }
  0x84   : > { %p1937_p3 = pnand %p1936_p0, %p1935_p8  ;;  %p1942_p13 = por %p1941_p10, %p1940_p7 }
  0x86   : > { %p1938_p5 = pneg %p1937_p3  ;;  %p1944_p12 = por %p1943_p9, %p1942_p13 }
  0x88   : > { %p1945_p2 = pnand %p1944_p12, %p1938_p5 }
  0x8a   : > { %1948 = shalt.err (!%p1945_p2)
}
  0x8b   : > { %s1949_s26 = scalar_lea.vmem %s2309_s19, 512  ;;  %s2080_s30 = smov [#allocation4]  }
  0x8c   : > { %p1950_p1 = scmp.ne.s32.totalorder %s2309_s19, %s1949_s26  ;;  %s1954_s14 = sshll.u32 %s2080_s30, 4  ;;  %s1955_s14 = int_to_ptr.vmem [resolvable:$false] %s1954_s14 }
  0x8d   : > { %s1956_s16 = scalar_lea.vmem %s1955_s14, 1024  ;;  %p1957_p3 = scmp.lt.s32.totalorder %s2309_s19, %s1955_s14 }
  0x8e   : > { %p1952_p6 = pnand %p1950_p1, %p1936_p0  ;;  %p1958_p7 = scmp.lt.s32.totalorder %s1956_s16, %s1949_s26 }
  0x90   : > { %p1953_p8 = pneg %p1952_p6  ;;  %p1959_p10 = por %p1958_p7, %p1957_p3 }
  0x92   : > { %p1960_p13 = pnand %p1959_p10, %p1953_p8 }
  0x94   : > { %1963 = shalt.err (!%p1960_p13)
}
  0x95   : > { %s2946_s9 = smov 64   ;;  %s2947_s15 = sshll.u32 %s2072_s24, 4 }
  0x96   : > { %1715 = dma.hbm_to_vmem [thread:$0]  (!%p2311_p11), %s2307_s17, 512, %s2309_s19, %s254_s8, %s2946_s9, %s2946_s9, %s2079_s18  }
  0x97   : > { %s2352_s30 = scalar_lea.hbm %s2927_s5, %s2947_s15  ;;  %s277_s14 = scalar_lea.vmem [#allocation13], %s2300_s13 }
  0x98   : > { %s284_s16 = sshll.u32 %s277_s14, 4  ;;  %s275_s0 = scalar_lea.sflag [#allocation14], %s2300_s13  ;;  %s285_s16 = int_to_ptr.vmem [resolvable:$true] %s284_s16 }
  0x99   : > { %s1964_s1 = scalar_lea.hbm %s2352_s30, 16  ;;  %s1969_s19 = scalar_lea.hbm %s2927_s5, 32 }
  0x9a   : > { %p1965_p5 = scmp.ne.s32.totalorder %s2352_s30, %s1964_s1  ;;  %p1970_p2 = scmp.lt.u32.totalorder %s2352_s30, %s2927_s5 }
  0x9b   : > { %p1971_p1 = scmp.lt.u32.totalorder %s1969_s19, %s1964_s1  ;;  %p1973_p8 = scmp.lt.u32.totalorder %s1964_s1, %s2352_s30 }
  0x9c   : > { %p1967_p9 = pnand %p1965_p5, %p1936_p0 }
  0x9d   : > { %p1972_p6 = por %p1971_p1, %p1970_p2 }
  0x9e   : > { %p1968_p12 = pneg %p1967_p9 }
  0x9f   : > { %p1974_p3 = por %p1973_p8, %p1972_p6 }
  0xa1   : > { %p1975_p7 = pnand %p1974_p3, %p1968_p12 }
  0xa3   : > { %1978 = shalt.err (!%p1975_p7)
}
  0xa4   : > { %s1979_s13 = scalar_lea.vmem %s285_s16, 16  ;;  %s2081_s15 = smov [#allocation13]  }
  0xa5   : > { %p1980_p10 = scmp.ne.s32.totalorder %s285_s16, %s1979_s13  ;;  %s1984_s12 = sshll.u32 %s2081_s15, 4  ;;  %s1985_s12 = int_to_ptr.vmem [resolvable:$false] %s1984_s12 }
  0xa6   : > { %s1986_s26 = scalar_lea.vmem %s1985_s12, 32  ;;  %p1987_p9 = scmp.lt.s32.totalorder %s285_s16, %s1985_s12 }
  0xa7   : > { %p1982_p13 = pnand %p1980_p10, %p1936_p0  ;;  %p1988_p4 = scmp.lt.s32.totalorder %s1986_s26, %s1979_s13 }
  0xa9   : > { %p1983_p5 = pneg %p1982_p13  ;;  %p1989_p1 = por %p1988_p4, %p1987_p9 }
  0xab   : > { %p1990_p2 = pnand %p1989_p1, %p1983_p5 }
  0xad   : > { %1993 = shalt.err (!%p1990_p2)
}
  0xae   : > { %1718 = dma.hbm_to_vmem [thread:$0]  (!%p2311_p11), %s2352_s30, 16, %s285_s16, %s275_s0  }
  0xaf   : > { %p2948_p12 = scmp.ne.s32.totalorder %s2938_s29, 0 }
  0xb0   : > { %s2378_s1 = sand.u32 (!%p2948_p12), 1, %s2064_s22   ;;  %p2949_p4 = scmp.ne.s32.totalorder (!%p2948_p12), %s2936_s27, 0 }
  0xb1   : > { %293 = sbr.rel (%p2948_p12) target bundleno = 1162 (0x48a), region = 44  ;;  %s1546_s14 = sshll.u32 (!%p2948_p12), %s2378_s1, 5 }
  0xb2   : > { %s296_s18 = scalar_lea.sflag (!%p2948_p12), [#allocation5], %s2378_s1  ;;  %s2384_s17 = scalar_lea.vmem (!%p2948_p12), [#allocation4], %s1546_s14 }
  0xb8   : > { %2039 = dma.done.wait (%p2949_p4), %s296_s18, 512  }
  0xb9   : > { %2041 = vsyncadd (%p2949_p4), %s296_s18, 4294966784  ;;  %p2950_p11 = scmp.eq.s32.totalorder %s2151_s25, 0 }
  0xbb   : > { %2043 = dma.done.wait (%p2950_p11), [#allocation8], 144   ;;  %p2951_p0 = pmov %p2950_p11 }
  0xbd   : > { %2045 = vsyncadd (%p2951_p0), [#allocation8], 4294967152  ;;  %p2952_p6 = pmov %p2951_p0 }
  0xbe   : > { %p2953_p8 = pmov %p2951_p0 }
  0xbf   : > { %2047 = dma.done.wait (%p2952_p6), [#allocation11], 592  }
  0xc0   : > { %2049 = vsyncadd (%p2953_p8), [#allocation11], 4294966704  ;;  %s321_s0 = scalar_lea.sflag [#allocation14], %s2378_s1  ;;  %s323_s29 = scalar_lea.vmem [#allocation13], %s2378_s1 }
  0xc1   : > { %2051 = dma.done.wait (%p2949_p4), %s321_s0, 16  }
  0xc2   : > { %2053 = vsyncadd (%p2949_p4), %s321_s0, 4294967280  ;;  %vm375_vm0 = vcmask 64512   ;;  %v2082_v0 = vmov 0.0   ;;  %vm2083_vm1 = vmmov 0   ;;  %v397_v1 = vld [vmem:[#allocation7] sm:$0xff]  ;;  %v1621_v3 = vld [vmem:[%s2384_s17 + $0x8] sm:$0xff]   ;;  %v471_v35 = vlaneseq }
  0xc3   : > { %1637 = vmatprep.subr.mxu0 %v2082_v0  ;;  %686 = vst.msk [vmem:[#allocation2] sm:$0xff] %vm375_vm0, %v2082_v0  ;;  %687 = vst.msk [vmem:[#allocation2 + $0x8] sm:$0xff] %vm375_vm0, %v2082_v0  ;;  %1639 = vmatprep.mubr.msk.f32.mxu0 %vm2083_vm1, %v2082_v0  ;;  %v1606_v2 = vld [vmem:[%s2384_s17] sm:$0xff]   ;;  %v1611_v6 = vunpack.c.l.bf16 %v1621_v3  ;;  %v1612_v7 = vunpack.c.h.bf16 %v1621_v3  ;;  %v1622_v8 = vld [vmem:[%s2384_s17 + $0x10] sm:$0xff]   ;;  %s2085_s27 = smov 8   ;;  %s2086_s7 = smov 32  }
  0xc4   : > { %688 = vst.msk [vmem:[#allocation2 + $0x50] sm:$0xff] %vm375_vm0, %v2082_v0  ;;  %689 = vst.msk [vmem:[#allocation2 + $0x58] sm:$0xff] %vm375_vm0, %v2082_v0  ;;  %1642 = vmatprep.subr.mxu1 %v2082_v0  ;;  %1644 = vmatprep.mubr.msk.f32.mxu1 %vm2083_vm1, %v2082_v0  ;;  %v1607_v4 = vunpack.c.l.bf16 %v1606_v2  ;;  %v1608_v5 = vunpack.c.h.bf16 %v1606_v2  ;;  %v1615_v9 = vunpack.c.l.bf16 %v1622_v8  ;;  %v1623_v13 = vld [vmem:[%s2384_s17 + $0x18] sm:$0xff]   ;;  %v1616_v15 = vunpack.c.h.bf16 %v1622_v8  ;;  %s2087_s30 = smov 56   ;;  %s2088_s16 = smov 16  }
  0xc5   : > { %1638 = vmatpush3.msra.mxu0 %v397_v1  ;;  %1643 = vmatpush3.msra.mxu1 %v397_v1  ;;  %v379_v12 = vsel %vm375_vm0, %v1611_v6, 0.0  ;;  %v381_v16 = vsel %vm375_vm0, %v1612_v7, 0.0  ;;  %v1619_v18 = vunpack.c.l.bf16 %v1623_v13  ;;  %v1620_v21 = vunpack.c.h.bf16 %v1623_v13  ;;  %s2089_s19 = smov 24   ;;  %s2090_s8 = smov 40  }
  0xc6   : > { %v376_v10 = vsel %vm375_vm0, %v1607_v4, 0.0  ;;  %v377_v11 = vsel %vm375_vm0, %v1608_v5, 0.0  ;;  %v383_v19 = vsel %vm375_vm0, %v1615_v9, 0.0  ;;  %v385_v22 = vsel %vm375_vm0, %v1616_v15, 0.0  ;;  %s2091_s9 = smov 48   ;;  %s2092_s13 = smov 64  }
  0xc7   : > { %v378_v14 = vadd.f32 %v377_v11, %v376_v10  ;;  %v387_v24 = vsel %vm375_vm0, %v1619_v18, 0.0  ;;  %v389_v26 = vsel %vm375_vm0, %v1620_v21, 0.0  ;;  %v2421_v36 = vshrl.u32 %v471_v35, 7  ;;  %s1604_s15 = sshll.u32 %s2151_s25, 9  ;;  %s355_s12 = scalar_lea.vmem [#allocation15], %s1546_s14 }
  0xc8   : > { %s1403_s26 = sshll.u32 %s355_s12, 4  ;;  %s2869_s17 = scalar_lea.hbm %s2928_s6, %s1604_s15  ;;  %s2873_s26 = int_to_ptr.vmem [resolvable:$true] %s1403_s26 }
  0xc9   : > { %v380_v17 = vadd.f32 %v379_v12, %v378_v14  ;;  %v473_v37 = vsub.s32 0, %v2421_v36  ;;  %s1390_s14 = scalar_lea.sflag [#allocation6], %s2378_s1  ;;  %s1994_s0 = scalar_lea.vmem %s2873_s26, 512 }
  0xca   : > { %p1995_p3 = scmp.ne.s32.totalorder %s2873_s26, %s1994_s0  ;;  %p3002_p7 = scmp.ne.s32.totalorder %s2943_s10, 0 }
  0xcb   : > { %v382_v20 = vadd.f32 %v381_v16, %v380_v17 }
  0xcc   : > { %p1996_p10 = pnand %p1995_p3, %p3002_p7 }
  0xcd   : > { %v384_v23 = vadd.f32 %v383_v19, %v382_v20  ;;  %v1554_v20 = vld [vmem:[#allocation9] ss:$0 sm:$0xff] }
  0xce   : > { %p1997_p13 = pneg %p1996_p10 }
  0xcf   : > { %v386_v25 = vadd.f32 %v385_v22, %v384_v23 }
  0xd1   : > { %v388_v27 = vadd.f32 %v387_v24, %v386_v25 }
  0xd3   : > { %v390_v28 = vadd.f32 %v389_v26, %v388_v27 }
  0xd5   : > { %v391_v29 = vrot.slane %v390_v28, 4 }
  0xd7   : > { %v392_v30 = vadd.f32 %v391_v29, %v390_v28  ;;  %v1555_v29 = vld [vmem:[#allocation10] ss:$0 sm:$0xff] }
  0xd9   : > { %v393_v31 = vrot.slane %v392_v30, 2 }
  0xdb   : > { %v394_v32 = vadd.f32 %v393_v31, %v392_v30 }
  0xdd   : > { %v395_v33 = vrot.slane %v394_v32, 1 }
  0xdf   : > { %v396_v34 = vadd.f32 %v395_v33, %v394_v32 }
  0xe1   : > { %1640 = vmatmul.mubr.msk.f32.vlgmr.msra.gmra.mrb[0].mxu0 %vm375_vm0, %v396_v34 }
 0x1b4   : > { %v467_v38 = vpop.f32.mrb[0].mxu0 }
 0x1b5   : > { %v474_v39 = vrot.slane %v467_v38, %v473_v37  ;;  %v1641_v40 = vpop.f32.mrb[1].mxu0 }
 0x1b7   : > { %v475_v41 = vsub.f32 %v1607_v4, %v474_v39  ;;  %v476_v42 = vsub.f32 %v1608_v5, %v474_v39  ;;  %v477_v43 = vsub.f32 %v1611_v6, %v474_v39  ;;  %v478_v44 = vsub.f32 %v1612_v7, %v474_v39 }
 0x1b8   : > { %v479_v45 = vsub.f32 %v1615_v9, %v474_v39  ;;  %v480_v49 = vsub.f32 %v1616_v15, %v474_v39  ;;  %v481_v54 = vsub.f32 %v1619_v18, %v474_v39  ;;  %v482_v58 = vsub.f32 %v1620_v21, %v474_v39 }
 0x1b9   : > { %v483_v46 = vmul.f32 %v475_v41, %v475_v41  ;;  %v484_v47 = vmul.f32 %v476_v42, %v476_v42  ;;  %v485_v48 = vmul.f32 %v477_v43, %v477_v43  ;;  %v486_v50 = vmul.f32 %v478_v44, %v478_v44 }
 0x1ba   : > { %v487_v55 = vmul.f32 %v479_v45, %v479_v45  ;;  %v488_v59 = vmul.f32 %v480_v49, %v480_v49  ;;  %v489_v62 = vmul.f32 %v481_v54, %v481_v54  ;;  %v490_v1 = vmul.f32 %v482_v58, %v482_v58 }
 0x1bb   : > { %v491_v51 = vsel %vm375_vm0, %v483_v46, 0.0  ;;  %v492_v52 = vsel %vm375_vm0, %v484_v47, 0.0  ;;  %v494_v56 = vsel %vm375_vm0, %v485_v48, 0.0  ;;  %v496_v60 = vsel %vm375_vm0, %v486_v50, 0.0 }
 0x1bc   : > { %v493_v53 = vadd.f32 %v492_v52, %v491_v51  ;;  %v498_v63 = vsel %vm375_vm0, %v487_v55, 0.0  ;;  %v500_v2 = vsel %vm375_vm0, %v488_v59, 0.0  ;;  %v502_v4 = vsel %vm375_vm0, %v489_v62, 0.0 }
 0x1bd   : > { %v504_v6 = vsel %vm375_vm0, %v490_v1, 0.0  ;;  %v2458_v62 = vadd.s32 32, %v2421_v36 }
 0x1be   : > { %v495_v57 = vadd.f32 %v494_v56, %v493_v53 }
 0x1c0   : > { %v497_v61 = vadd.f32 %v496_v60, %v495_v57 }
 0x1c2   : > { %v499_v0 = vadd.f32 %v498_v63, %v497_v61 }
 0x1c4   : > { %v501_v3 = vadd.f32 %v500_v2, %v499_v0 }
 0x1c6   : > { %v503_v5 = vadd.f32 %v502_v4, %v501_v3  ;;  %v2461_v3 = vadd.s32 8, %v2421_v36 }
 0x1c8   : > { %v505_v7 = vadd.f32 %v504_v6, %v503_v5  ;;  %v2464_v6 = vadd.s32 40, %v2421_v36 }
 0x1ca   : > { %v506_v8 = vrot.slane %v505_v7, 4 }
 0x1cc   : > { %v507_v9 = vadd.f32 %v506_v8, %v505_v7 }
 0x1ce   : > { %v508_v10 = vrot.slane %v507_v9, 2 }
 0x1d0   : > { %v509_v11 = vadd.f32 %v508_v10, %v507_v9  ;;  %v739_v9 = vand.u32 7, %v2458_v62  ;;  %v2468_v10 = vadd.s32 48, %v2421_v36 }
 0x1d2   : > { %v510_v12 = vrot.slane %v509_v11, 1  ;;  %vm2485_vm2 = vcmp.gt.s32.totalorder %v739_v9, 0 }
 0x1d3   : > { %vm851_vm6 = vmpackc.low %vm2485_vm2, %vm2485_vm2 }
 0x1d4   : > { %v511_v13 = vadd.f32 %v510_v12, %v509_v11  ;;  %v711_v12 = vand.u32 7, %v2421_v36 }
 0x1d6   : > { %1645 = vmatmul.mubr.msk.f32.vlgmr.msra.gmra.mrb[0].mxu1 %vm375_vm0, %v511_v13  ;;  %v2472_v13 = vadd.s32 16, %v2421_v36  ;;  %vm2492_vm3 = vcmp.gt.s32.totalorder %v711_v12, 0 }
 0x1d7   : > { %vm847_vm7 = vmpackc.low %vm2492_vm3, %vm2492_vm3 }
 0x2a9   : > { %v581_v14 = vpop.f32.mrb[0].mxu1 }
 0x2aa   : > { %v585_v15 = vmax.f32 %v581_v14, 0.0  ;;  %v1646_v16 = vpop.f32.mrb[1].mxu1  ;;  %v718_v14 = vand.u32 7, %v2461_v3 }
 0x2ab   : > { %v746_v16 = vand.u32 7, %v2464_v6 }
 0x2ac   : > { %v586_v17 = vadd.f32 1e-05, %v585_v15  ;;  %v2476_v15 = vadd.s32 24, %v2421_v36  ;;  %vm2499_vm4 = vcmp.gt.s32.totalorder %v718_v14, 0 }
 0x2ad   : > { %vm2507_vm5 = vcmp.gt.s32.totalorder %v746_v16, 0  ;;  %vm848_vm9 = vmpackc.low %vm2499_vm4, %vm2499_vm4 }
 0x2ae   : > { %1788 = vrsqrt.f32 %v586_v17  ;;  %v2480_v17 = vadd.s32 56, %v2421_v36  ;;  %vm852_vm11 = vmpackc.low %vm2507_vm5, %vm2507_vm5 }
 0x2b8   : > { %v1789_v18 = vpop.eup %1788 }
 0x2b9   : > { %v591_v19 = vrot.slane %v1789_v18, %v473_v37  ;;  %v753_v18 = vand.u32 7, %v2468_v10  ;;  %v1785_v10 = vld [vmem:[#allocation12 + $0x10] sm:$0xff]  }
 0x2bb   : > { %v592_v21 = vmul.f32 %v591_v19, %v475_v41  ;;  %v593_v22 = vmul.f32 %v591_v19, %v476_v42  ;;  %v594_v23 = vmul.f32 %v591_v19, %v477_v43  ;;  %v595_v24 = vmul.f32 %v591_v19, %v478_v44 }
 0x2bc   : > { %v596_v25 = vmul.f32 %v591_v19, %v479_v45  ;;  %v597_v26 = vmul.f32 %v591_v19, %v480_v49  ;;  %v598_v27 = vmul.f32 %v591_v19, %v481_v54  ;;  %v599_v28 = vmul.f32 %v591_v19, %v482_v58 }
 0x2bd   : > { %v608_v30 = vmul.f32 %v1554_v20, %v593_v22  ;;  %v609_v31 = vmul.f32 %v1554_v20, %v594_v23  ;;  %v607_v32 = vmul.f32 %v1554_v20, %v592_v21  ;;  %v610_v33 = vmul.f32 %v1554_v20, %v595_v24 }
 0x2be   : > { %v612_v34 = vmul.f32 %v1554_v20, %v597_v26  ;;  %v613_v35 = vmul.f32 %v1554_v20, %v598_v27  ;;  %v611_v38 = vmul.f32 %v1554_v20, %v596_v25  ;;  %v614_v39 = vmul.f32 %v1554_v20, %v599_v28 }
 0x2bf   : > { %v2433_v40 = vadd.f32 %v1555_v29, %v608_v30  ;;  %v2435_v37 = vadd.f32 %v1555_v29, %v609_v31  ;;  %v2437_v41 = vadd.f32 %v1555_v29, %v607_v32  ;;  %v2443_v44 = vadd.f32 %v1555_v29, %v610_v33 }
 0x2c0   : > { %v2439_v42 = vadd.f32 %v1555_v29, %v612_v34  ;;  %v2441_v43 = vadd.f32 %v1555_v29, %v613_v35  ;;  %v2448_v48 = vadd.f32 %v1555_v29, %v611_v38  ;;  %v2451_v50 = vadd.f32 %v1555_v29, %v614_v39 }
 0x2c1   : > { %v1557_v45 = vmul.f32 -1.442695, %v2433_v40  ;;  %v1558_v46 = vmul.f32 -1.442695, %v2435_v37  ;;  %v1556_v47 = vmul.f32 -1.442695, %v2437_v41 }
 0x2c2   : > { %v1561_v49 = vmul.f32 -1.442695, %v2439_v42  ;;  %v1562_v51 = vmul.f32 -1.442695, %v2441_v43  ;;  %v1559_v52 = vmul.f32 -1.442695, %v2443_v44 }
 0x2c3   : > { %1790 = vpow2.f32 %v1557_v45  ;;  %v1560_v53 = vmul.f32 -1.442695, %v2448_v48  ;;  %v1563_v54 = vmul.f32 -1.442695, %v2451_v50  ;;  %v725_v20 = vand.u32 7, %v2472_v13 }
 0x2c4   : > { %1792 = vpow2.f32 %v1558_v46  ;;  %v732_v23 = vand.u32 7, %v2476_v15  ;;  %v760_v27 = vand.u32 7, %v2480_v17  ;;  %vm2520_vm8 = vcmp.gt.s32.totalorder %v753_v18, 0 }
 0x2c5   : > { %1794 = vpow2.f32 %v1556_v47  ;;  %vm2531_vm10 = vcmp.gt.s32.totalorder %v725_v20, 0  ;;  %vm853_vm14 = vmpackc.low %vm2520_vm8, %vm2520_vm8  ;;  %v2084_v46 = vmov 0   ;;  %vm2670_vm8 = vcmp.lt.s32.totalorder %v746_v16, 7 }
 0x2c6   : > { %1796 = vpow2.f32 %v1561_v49  ;;  %vm2542_vm12 = vcmp.gt.s32.totalorder %v732_v23, 0  ;;  %vm2550_vm13 = vcmp.gt.s32.totalorder %v760_v27, 0  ;;  %v856_v47 = vsel %vm848_vm9, 65537, %v2084_v46  ;;  %vm849_vm15 = vmpackc.low %vm2531_vm10, %vm2531_vm10 }
 0x2c7   : > { %1798 = vpow2.f32 %v1562_v51  ;;  %vm850_vm1 = vmpackc.low %vm2542_vm12, %vm2542_vm12  ;;  %vm2679_vm9 = vcmp.lt.s32.totalorder %v711_v12, 7  ;;  %v1784_v12 = vld [vmem:[#allocation12 + $0x8] sm:$0xff]  }
 0x2c8   : > { %1800 = vpow2.f32 %v1559_v52  ;;  %vm854_vm3 = vmpackc.low %vm2550_vm13, %vm2550_vm13  ;;  %vm2706_vm13 = vcmp.lt.s32.totalorder %v753_v18, 7 }
 0x2c9   : > { %1802 = vpow2.f32 %v1560_v53  ;;  %vm953_vm12 = vmpackc.low %vm2670_vm8, %vm2670_vm8  ;;  %vm2734_vm8 = vcmp.lt.s32.totalorder %v732_v23, 7  ;;  %v1156_v23 = vld [vmem:[#allocation2 + $0x50] sm:$0xff] }
 0x2ca   : > { %1804 = vpow2.f32 %v1563_v54  ;;  %v887_v54 = vld [vmem:[#allocation2 + $0x8] sm:$0xff]  ;;  %v961_v18 = vsel %vm953_vm12, 65537, %v2084_v46 }
 0x2cd   : > { %v1791_v55 = vpop.eup %1790 }
 0x2ce   : > { %v1793_v56 = vpop.eup %1792  ;;  %v655_v57 = vadd.f32 1.0, %v1791_v55  ;;  %v858_v55 = vsel %vm850_vm1, 65537, %v2084_v46  ;;  %vm2725_vm1 = vcmp.lt.s32.totalorder %v725_v20, 7 }
 0x2cf   : > { %v1795_v58 = vpop.eup %1794  ;;  %v656_v59 = vadd.f32 1.0, %v1793_v56 }
 0x2d0   : > { %v1797_v60 = vpop.eup %1796  ;;  %1806 = vrcp.f32 %v655_v57  ;;  %v654_v61 = vadd.f32 1.0, %v1795_v58  ;;  %v860_v57 = vsel %vm852_vm11, 65537, %v2084_v46  ;;  %v819_v58 = vld [vmem:[#allocation2 + $0x7] sm:$0xff]  ;;  %vm2695_vm11 = vcmp.lt.s32.totalorder %v718_v14, 7 }
 0x2d1   : > { %v1799_v63 = vpop.eup %1798  ;;  %1808 = vrcp.f32 %v656_v59  ;;  %v659_v0 = vadd.f32 1.0, %v1797_v60  ;;  %v861_v59 = vsel %vm853_vm14, 65537, %v2084_v46  ;;  %v862_v60 = vsel %vm854_vm3, 65537, %v2084_v46  ;;  %vm948_vm14 = vmpackc.low %vm2679_vm9, %vm2679_vm9 }
 0x2d2   : > { %v1801_v1 = vpop.eup %1800  ;;  %1810 = vrcp.f32 %v654_v61  ;;  %v660_v2 = vadd.f32 1.0, %v1799_v63  ;;  %vm954_vm3 = vmpackc.low %vm2706_vm13, %vm2706_vm13  ;;  %v956_v15 = vsel %vm948_vm14, 65537, %v2084_v46 }
 0x2d3   : > { %v1803_v4 = vpop.eup %1802  ;;  %1812 = vrcp.f32 %v659_v0  ;;  %v657_v5 = vadd.f32 1.0, %v1801_v1 }
 0x2d4   : > { %v1805_v7 = vpop.eup %1804  ;;  %1814 = vrcp.f32 %v660_v2  ;;  %v658_v8 = vadd.f32 1.0, %v1803_v4 }
 0x2d5   : > { %1816 = vrcp.f32 %v657_v5  ;;  %v661_v11 = vadd.f32 1.0, %v1805_v7 }
 0x2d6   : > { %1818 = vrcp.f32 %v658_v8 }
 0x2d7   : > { %1820 = vrcp.f32 %v661_v11 }
 0x2da   : > { %v1807_v22 = vpop.eup %1806 }
 0x2db   : > { %v1809_v25 = vpop.eup %1808  ;;  %v679_v26 = vmul.f32 %v1807_v22, %v2433_v40  ;;  %v1567_v22 = vcombine.low %v861_v59, %v862_v60 }
 0x2dc   : > { %v1811_v29 = vpop.eup %1810  ;;  %v680_v30 = vmul.f32 %v1809_v25, %v2435_v37 }
 0x2dd   : > { %v1813_v32 = vpop.eup %1812  ;;  %691 = vst.msk [vmem:[#allocation2 + $0x18] sm:$0xff] %vm375_vm0, %v679_v26  ;;  %v678_v33 = vmul.f32 %v1811_v29, %v2437_v41 }
 0x2de   : > { %v1815_v35 = vpop.eup %1814  ;;  %692 = vst.msk [vmem:[#allocation2 + $0x20] sm:$0xff] %vm375_vm0, %v680_v30  ;;  %v683_v38 = vmul.f32 %v1813_v32, %v2439_v42 }
 0x2df   : > { %v1817_v40 = vpop.eup %1816  ;;  %690 = vst.msk [vmem:[#allocation2 + $0x10] sm:$0xff] %vm375_vm0, %v678_v33  ;;  %v684_v37 = vmul.f32 %v1815_v35, %v2441_v43  ;;  %v855_v43 = vsel %vm847_vm7, 65537, %v2084_v46  ;;  %vm2656_vm7 = vcmp.lt.s32.totalorder %v739_v9, 7 }
 0x2e0   : > { %v1819_v42 = vpop.eup %1818  ;;  %695 = vst.msk [vmem:[#allocation2 + $0x38] sm:$0xff] %vm375_vm0, %v683_v38  ;;  %v681_v45 = vmul.f32 %v1817_v40, %v2443_v44  ;;  %v1564_v52 = vcombine.low %v855_v43, %v856_v47  ;;  %vm952_vm10 = vmpackc.low %vm2656_vm7, %vm2656_vm7 }
 0x2e1   : > { %v1821_v44 = vpop.eup %1820  ;;  %696 = vst.msk [vmem:[#allocation2 + $0x40] sm:$0xff] %vm375_vm0, %v684_v37  ;;  %v682_v49 = vmul.f32 %v1819_v42, %v2448_v48  ;;  %v857_v48 = vsel %vm849_vm15, 65537, %v2084_v46  ;;  %vm2715_vm15 = vcmp.lt.s32.totalorder %v760_v27, 7  ;;  %v960_v13 = vsel %vm952_vm10, 65537, %v2084_v46  ;;  %vm951_vm7 = vmpackc.low %vm2734_vm8, %vm2734_vm8 }
 0x2e2   : > { %693 = vst.msk [vmem:[#allocation2 + $0x28] sm:$0xff] %vm375_vm0, %v681_v45  ;;  %v685_v51 = vmul.f32 %v1821_v44, %v2451_v50  ;;  %v859_v50 = vsel %vm851_vm6, 65537, %v2084_v46  ;;  %vm2614_vm2 = vcmp.ne.s16.totalorder %v1564_v52, 0  ;;  %v1565_v8 = vcombine.low %v857_v48, %v858_v55  ;;  %vm955_vm9 = vmpackc.low %vm2715_vm15, %vm2715_vm15 }
 0x2e3   : > { %694 = vst.msk [vmem:[#allocation2 + $0x30] sm:$0xff] %vm375_vm0, %v682_v49  ;;  %v1566_v19 = vcombine.low %v859_v50, %v860_v57  ;;  %vm2649_vm6 = vcmp.ne.s16.totalorder %v1567_v22, 0  ;;  %v962_v48 = vsel %vm954_vm3, 65537, %v2084_v46  ;;  %v963_v55 = vsel %vm955_vm9, 65537, %v2084_v46 }
 0x2e4   : > { %v889_v53 = vld [vmem:[#allocation2 + $0x18] sm:$0xff]  ;;  %697 = vst.msk [vmem:[#allocation2 + $0x48] sm:$0xff] %vm375_vm0, %v685_v51  ;;  %vm2639_vm4 = vcmp.ne.s16.totalorder %v1565_v8, 0  ;;  %v1570_v51 = vcombine.low %v960_v13, %v961_v18  ;;  %v959_v57 = vsel %vm951_vm7, 65537, %v2084_v46  ;;  %vm1279_vm15 = vcmask 1043456  }
 0x2e5   : > { %v2588_v56 = vld [vmem:[#allocation2 + $0x20] sm:$0xff]  ;;  %vm2643_vm5 = vcmp.ne.s16.totalorder %v1566_v19, 0  ;;  %vm1177_vm3 = vcmask 523712   ;;  %vm1214_vm8 = vcmask 589312   ;;  %vm1266_vm9 = vcmask 588800  }
 0x2e6   : > { %v2610_v61 = vpack.c.bf16 %v2588_v56, %v889_v53  ;;  %v888_v63 = vld [vmem:[#allocation2 + $0x10] sm:$0xff]  ;;  %v2612_v0 = vld [vmem:[#allocation2 + $0x1f] sm:$0xff]  ;;  %vm2776_vm10 = vcmp.ne.s16.totalorder %v1570_v51, 0 }
 0x2e7   : > { %v895_v1 = vpack.c.bf16 %v888_v63, %v887_v54  ;;  %v893_v2 = vld [vmem:[#allocation2 + $0x38] sm:$0xff]  ;;  %v2618_v5 = vld [vmem:[#allocation2 + $0xf] sm:$0xff]  ;;  %v1050_v9 = vpack.c.bf16 %v889_v53, %v888_v63 }
 0x2e8   : > { %v2620_v7 = vld [vmem:[#allocation2 + $0x17] sm:$0xff]  ;;  %905 = vrot.lane.b32.xlu1 %v2610_v61, %s2085_s27  ;;  %v894_v11 = vld [vmem:[#allocation2 + $0x40] sm:$0xff]  ;;  %v827_v21 = vpack.c.bf16 %v2618_v5, %v819_v58  ;;  %v920_v52 = vld [vmem:[#allocation2 + $0x9] sm:$0xff] }
 0x2e9   : > { %903 = vrot.lane.b32.xlu0 %v895_v1, %s2085_s27  ;;  %v891_v24 = vld [vmem:[#allocation2 + $0x28] sm:$0xff]  ;;  %v898_v25 = vpack.c.bf16 %v894_v11, %v893_v2  ;;  %v2628_v30 = vld [vmem:[#allocation2 + $0x3f] sm:$0xff]  ;;  %v2632_v31 = vpack.c.bf16 %v2612_v0, %v2620_v7  ;;  %v921_v53 = vld [vmem:[#allocation2 + $0x11] sm:$0xff]  ;;  %v1571_v1 = vcombine.low %v962_v48, %v963_v55 }
 0x2ea   : > { %v892_v26 = vld [vmem:[#allocation2 + $0x30] sm:$0xff]  ;;  %v2624_v28 = vld [vmem:[#allocation2 + $0x27] sm:$0xff]  ;;  %v879_v29 = vsel %vm2614_vm2, %v827_v21, 0  ;;  %v1051_v44 = vpack.c.bf16 %v891_v24, %v2588_v56  ;;  %v928_v60 = vpack.c.bf16 %v921_v53, %v920_v52  ;;  %v922_v8 = vld [vmem:[#allocation2 + $0x19] sm:$0xff] }
 0x2eb   : > { %v2634_v32 = vpack.c.bf16 %v892_v26, %v891_v24  ;;  %v2636_v33 = vld [vmem:[#allocation2 + $0x2f] sm:$0xff]  ;;  %883 = vst.msk [vmem:[#allocation3] sm:$0xff] %vm375_vm0, %v879_v29  ;;  %v2647_v38 = vld [vmem:[#allocation2 + $0x37] sm:$0xff]  ;;  %v1052_v42 = vpack.c.bf16 %v893_v2, %v892_v26  ;;  %v880_v62 = vsel %vm2639_vm4, %v2632_v31, 0  ;;  %v927_v63 = vld [vmem:[#allocation2 + $0x41] sm:$0xff]  ;;  %vm2792_vm13 = vcmp.ne.s16.totalorder %v1571_v1, 0 }
 0x2ec   : > { %909 = vrot.lane.b32.xlu1 %v898_v25, %s2085_s27  ;;  %v2662_v37 = vpack.c.bf16 %v2636_v33, %v2624_v28  ;;  %v2666_v41 = vpack.c.bf16 %v2628_v30, %v2647_v38  ;;  %v1049_v43 = vld [vmem:[#allocation2 + $0x48] sm:$0xff]  ;;  %884 = vst.msk [vmem:[#allocation3 + $0x8] sm:$0xff] %vm375_vm0, %v880_v62  ;;  %v925_v49 = vld [vmem:[#allocation2 + $0x31] sm:$0xff]  ;;  %v1083_v47 = vpack.c.bf16 %v922_v8, %v921_v53  ;;  %v1124_v18 = vsel %vm2614_vm2, %v2632_v31, 0 }
 0x2ed   : > { %907 = vrot.lane.b32.xlu0 %v2634_v32, %s2085_s27  ;;  %v1053_v3 = vpack.c.bf16 %v1049_v43, %v894_v11  ;;  %v2756_v27 = vld [vmem:[#allocation2 + $0x29] sm:$0xff]  ;;  %v1160_v56 = vpack.c.bf16 %v1156_v23, %v1049_v43 }
 0x2ee   : > { %v881_v6 = vsel %vm2643_vm5, %v2662_v37, 0  ;;  %v882_v16 = vsel %vm2649_vm6, %v2666_v41, 0  ;;  %v2774_v58 = vpack.c.bf16 %v925_v49, %v2756_v27  ;;  %v1012_v45 = vld [vmem:[#allocation2 + $0x47] sm:$0xff]  ;;  %v1126_v17 = vsel %vm2643_vm5, %v2666_v41, 0  ;;  %v1189_v41 = vld [vmem:[#allocation2 + $0x51] sm:$0xff] }
 0x2ef   : > { %885 = vst.msk [vmem:[#allocation3 + $0x10] sm:$0xff] %vm375_vm0, %v881_v6  ;;  %886 = vst.msk [vmem:[#allocation3 + $0x18] sm:$0xff] %vm375_vm0, %v882_v16  ;;  %v1082_v6 = vld [vmem:[#allocation2 + $0x49] sm:$0xff]  ;;  %v1125_v35 = vsel %vm2639_vm4, %v2662_v37, 0 }
 0x2f0   : > { %1062 = vrot.lane.b32.xlu1 %v1052_v42, %s2086_s7  ;;  %vm949_vm0 = vmpackc.low %vm2695_vm11, %vm2695_vm11  ;;  %v982_v19 = vsel %vm2776_vm10, %v2774_v58, 0  ;;  %v1013_v42 = vpack.c.bf16 %v2620_v7, %v2618_v5  ;;  %v1086_v36 = vpack.c.bf16 %v1082_v6, %v927_v63 }
 0x2f1   : > { %1058 = vrot.lane.b32.xlu0 %v1050_v9, %s2086_s7  ;;  %v957_v20 = vsel %vm949_vm0, 65537, %v2084_v46  ;;  %vm950_vm11 = vmpackc.low %vm2725_vm1, %vm2725_vm1  ;;  %v1016_v9 = vpack.c.bf16 %v1012_v45, %v2628_v30  ;;  %v1783_v30 = vld [vmem:[#allocation12] sm:$0xff]   ;;  %vm1107_vm0 = vcmask 392512   ;;  %vm1144_vm1 = vcmask 458112  }
 0x2f2   : > { %v1568_v54 = vcombine.low %v956_v15, %v957_v20  ;;  %v958_v50 = vsel %vm950_vm11, 65537, %v2084_v46  ;;  %v923_v46 = vld [vmem:[#allocation2 + $0x21] sm:$0xff]  ;;  %1647 = vmatprep.subr.bf16.mxu0 %v1783_v30  ;;  %1665 = vmatprep.subr.bf16.mxu1 %v1783_v30  ;;  %v1787_v20 = vld [vmem:[#allocation12 + $0x20] ss:$0 sps:$4 sm:$0xff]   ;;  %vm1380_vm11 = vcmask 125952  }
 0x2f3   : > { %v1569_v11 = vcombine.low %v958_v50, %v959_v57  ;;  %v1020_v43 = vsel %vm2649_vm6, %v1016_v9, 0  ;;  %1648 = vmatpush3.bf16.msra.mxu0 %v1783_v30  ;;  %1670 = vmatpush3.bf16.msra.mxu1 %v1783_v30  ;;  %v1786_v15 = vld [vmem:[#allocation12 + $0x18] sm:$0xff]   ;;  %v1281_v4 = vsel %vm1279_vm15, %v1787_v20, 0 }
 0x2f4   : > { %1064 = vrot.lane.b32.xlu1 %v1053_v3, %s2086_s7  ;;  %vm2781_vm12 = vcmp.ne.s16.totalorder %v1568_v54, 0  ;;  %1649 = vmatprep.subr.bf16.mxu0 %v1784_v12  ;;  %v1090_v3 = vsel %vm2792_vm13, %v1086_v36, 0 }
 0x2f5   : > { %1060 = vrot.lane.b32.xlu0 %v1051_v44, %s2086_s7  ;;  %v980_v22 = vsel %vm2781_vm12, %v928_v60, 0  ;;  %vm2798_vm14 = vcmp.ne.s16.totalorder %v1569_v11, 0  ;;  %1666 = vmatprep.subr.bf16.mxu1 %v1784_v12  ;;  %v1119_v44 = vld [vmem:[#allocation2 + $0x4f] sm:$0xff] }
 0x2f6   : > { %v1123_v13 = vpack.c.bf16 %v1119_v44, %v1012_v45  ;;  %v1195_v37 = vsel %vm2798_vm14, %v2774_v58, 0 }
 0x2f7   : > { %1650 = vmatpush3.bf16.msra.mxu0 %v1784_v12  ;;  %1671 = vmatpush3.bf16.msra.mxu1 %v1784_v12 }
 0x2f8   : > { %1169 = vrot.lane.b32.xlu1 %v898_v25, %s2087_s30  ;;  %v2796_v25 = vpack.c.bf16 %v923_v46, %v922_v8  ;;  %1651 = vmatprep.subr.bf16.mxu0 %v1785_v10  ;;  %v1127_v23 = vsel %vm2649_vm6, %v1123_v13, 0  ;;  %vm1070_vm6 = vcmask 326912  }
 0x2f9   : > { %1165 = vrot.lane.b32.xlu0 %v2610_v61, %s2087_s30  ;;  %v926_v61 = vld [vmem:[#allocation2 + $0x39] sm:$0xff]  ;;  %1667 = vmatprep.subr.bf16.mxu1 %v1785_v10 }
 0x2fa   : > { %v2788_v21 = vpack.c.bf16 %v927_v63, %v926_v61  ;;  %v981_v40 = vsel %vm2798_vm14, %v2796_v25, 0  ;;  %v1085_v5 = vpack.c.bf16 %v926_v61, %v925_v49  ;;  %v1194_v34 = vsel %vm2781_vm12, %v2796_v25, 0 }
 0x2fb   : > { %1652 = vmatpush3.bf16.msra.mxu0 %v1785_v10  ;;  %1672 = vmatpush3.bf16.msra.mxu1 %v1785_v10 }
 0x2fc   : > { %1171 = vrot.lane.b32.xlu1 %v1160_v56, %s2087_s30  ;;  %v983_v29 = vsel %vm2792_vm13, %v2788_v21, 0  ;;  %v1089_v16 = vsel %vm2776_vm10, %v1085_v5, 0  ;;  %1653 = vmatprep.subr.bf16.mxu0 %v1786_v15  ;;  %v1196_v31 = vsel %vm2776_vm10, %v2788_v21, 0  ;;  %v1572_v5 = vld [vmem:[%s323_s29] ss:$0 sm:$0xff]  ;;  %s2093_s29 = smov [#allocation15]  }
 0x2fd   : > { %1167 = vrot.lane.b32.xlu0 %v2634_v32, %s2087_s30  ;;  %v1015_v32 = vpack.c.bf16 %v2647_v38, %v2636_v33  ;;  %v1017_v33 = vsel %vm2614_vm2, %v1013_v42, 0  ;;  %v1014_v38 = vpack.c.bf16 %v2624_v28, %v2612_v0  ;;  %v1087_v0 = vsel %vm2781_vm12, %v1083_v47, 0  ;;  %1668 = vmatprep.subr.bf16.mxu1 %v1786_v15  ;;  %s1998_s27 = sshll.u32 %s2093_s29, 4  ;;  %s1999_s27 = int_to_ptr.vmem [resolvable:$false] %s1998_s27 }
 0x2fe   : > { %v1084_v28 = vpack.c.bf16 %v2756_v27, %v923_v46  ;;  %v1193_v27 = vpack.c.bf16 %v1189_v41, %v1082_v6  ;;  %vm915_vm2 = vcmask 130112   ;;  %s2000_s7 = scalar_lea.vmem %s1999_s27, 1024  ;;  %p2001_p5 = scmp.lt.s32.totalorder %s2873_s26, %s1999_s27 }
 0x2ff   : > { %v1019_v62 = vsel %vm2643_vm5, %v1015_v32, 0  ;;  %v1018_v7 = vsel %vm2639_vm4, %v1014_v38, 0  ;;  %1654 = vmatpush3.bf16.msra.mxu0 %v1786_v15  ;;  %1673 = vmatpush3.bf16.msra.mxu1 %v1786_v15  ;;  %vm1000_vm4 = vcmask 195712   ;;  %vm1037_vm5 = vcmask 261312   ;;  %p2002_p9 = scmp.lt.s32.totalorder %s2000_s7, %s1994_s0 }
 0x300   : > { %992 = vrot.lane.b32.xlu1 %v982_v19, %s2088_s16  ;;  %v1088_v14 = vsel %vm2798_vm14, %v1084_v28, 0  ;;  %1675 = vmatprep.subr.msk.bf16.mxu0 %vm1279_vm15, %v1787_v20  ;;  %v1197_v39 = vsel %vm2792_vm13, %v1193_v27, 0 }
 0x301   : > { %988 = vrot.lane.b32.xlu0 %v980_v22, %s2088_s16  ;;  %1676 = vmatprep.subr.msk.bf16.mxu1 %vm1279_vm15, %v1787_v20  ;;  %p2003_p1 = por %p2002_p9, %p2001_p5 }
 0x303   : > { %1656 = vmatpush3.bf16.msra.mxu0 %v1281_v4  ;;  %1674 = vmatpush3.bf16.msra.mxu1 %v1281_v4  ;;  %p2004_p2 = pnand %p2003_p1, %p1997_p13 }
 0x304   : > { %994 = vrot.lane.b32.xlu1 %v983_v29, %s2088_s16 }
 0x305   : > { %990 = vrot.lane.b32.xlu0 %v981_v40, %s2088_s16 }
 0x308   : > { %1029 = vrot.lane.b32.xlu1 %v1019_v62, %s2089_s19 }
 0x309   : > { %1025 = vrot.lane.b32.xlu0 %v1017_v33, %s2089_s19 }
 0x30c   : > { %1031 = vrot.lane.b32.xlu1 %v1020_v43, %s2089_s19 }
 0x30d   : > { %1027 = vrot.lane.b32.xlu0 %v1018_v7, %s2089_s19 }
 0x310   : > { %1099 = vrot.lane.b32.xlu1 %v1089_v16, %s2090_s8 }
 0x311   : > { %1095 = vrot.lane.b32.xlu0 %v1087_v0, %s2090_s8 }
 0x314   : > { %1101 = vrot.lane.b32.xlu1 %v1090_v3, %s2090_s8 }
 0x315   : > { %1097 = vrot.lane.b32.xlu0 %v1088_v14, %s2090_s8 }
 0x318   : > { %1136 = vrot.lane.b32.xlu1 %v1126_v17, %s2091_s9 }
 0x319   : > { %1132 = vrot.lane.b32.xlu0 %v1124_v18, %s2091_s9 }
 0x31c   : > { %1138 = vrot.lane.b32.xlu1 %v1127_v23, %s2091_s9 }
 0x31d   : > { %1134 = vrot.lane.b32.xlu0 %v1125_v35, %s2091_s9 }
 0x320   : > { %1206 = vrot.lane.b32.xlu1 %v1196_v31, %s2092_s13 }
 0x321   : > { %1202 = vrot.lane.b32.xlu0 %v1194_v34, %s2092_s13 }
 0x324   : > { %1208 = vrot.lane.b32.xlu1 %v1197_v39, %s2092_s13 }
 0x325   : > { %1204 = vrot.lane.b32.xlu0 %v1195_v37, %s2092_s13 }
 0x35a   : > { %v906_v49 = vpop.permute.xlu1 %905 }
 0x35b   : > { %917 = vst.msk [vmem:[#allocation3 + $0x8] sm:$0xff] %vm915_vm2, %v906_v49  ;;  %v904_v51 = vpop.permute.xlu0 %903 }
 0x35c   : > { %916 = vst.msk [vmem:[#allocation3] sm:$0xff] %vm915_vm2, %v904_v51 }
 0x35e   : > { %v910_v52 = vpop.permute.xlu1 %909 }
 0x35f   : > { %919 = vst.msk [vmem:[#allocation3 + $0x18] sm:$0xff] %vm915_vm2, %v910_v52  ;;  %v908_v53 = vpop.permute.xlu0 %907 }
 0x360   : > { %918 = vst.msk [vmem:[#allocation3 + $0x10] sm:$0xff] %vm915_vm2, %v908_v53 }
 0x362   : > { %v1063_v54 = vpop.permute.xlu1 %1062 }
 0x363   : > { %v1059_v48 = vpop.permute.xlu0 %1058 }
 0x366   : > { %v1065_v55 = vpop.permute.xlu1 %1064 }
 0x367   : > { %v1061_v56 = vpop.permute.xlu0 %1060 }
 0x36a   : > { %v1170_v50 = vpop.permute.xlu1 %1169 }
 0x36b   : > { %v1166_v57 = vpop.permute.xlu0 %1165 }
 0x36e   : > { %v1172_v59 = vpop.permute.xlu1 %1171 }
 0x36f   : > { %v1168_v60 = vpop.permute.xlu0 %1167 }
 0x372   : > { %v993_v58 = vpop.permute.xlu1 %992 }
 0x373   : > { %1003 = vst.msk [vmem:[#allocation3 + $0x10] sm:$0xff] %vm1000_vm4, %v993_v58  ;;  %v989_v61 = vpop.permute.xlu0 %988 }
 0x374   : > { %1001 = vst.msk [vmem:[#allocation3] sm:$0xff] %vm1000_vm4, %v989_v61 }
 0x376   : > { %v995_v63 = vpop.permute.xlu1 %994 }
 0x377   : > { %1004 = vst.msk [vmem:[#allocation3 + $0x18] sm:$0xff] %vm1000_vm4, %v995_v63  ;;  %v991_v1 = vpop.permute.xlu0 %990 }
 0x378   : > { %1002 = vst.msk [vmem:[#allocation3 + $0x8] sm:$0xff] %vm1000_vm4, %v991_v1 }
 0x37a   : > { %v1030_v2 = vpop.permute.xlu1 %1029 }
 0x37b   : > { %1040 = vst.msk [vmem:[#allocation3 + $0x10] sm:$0xff] %vm1037_vm5, %v1030_v2  ;;  %v1026_v8 = vpop.permute.xlu0 %1025 }
 0x37c   : > { %1038 = vst.msk [vmem:[#allocation3] sm:$0xff] %vm1037_vm5, %v1026_v8 }
 0x37d   : > { %1073 = vst.msk [vmem:[#allocation3 + $0x10] sm:$0xff] %vm1070_vm6, %v1063_v54  ;;  %1071 = vst.msk [vmem:[#allocation3] sm:$0xff] %vm1070_vm6, %v1059_v48 }
 0x37e   : > { %v1032_v46 = vpop.permute.xlu1 %1031 }
 0x37f   : > { %1041 = vst.msk [vmem:[#allocation3 + $0x18] sm:$0xff] %vm1037_vm5, %v1032_v46  ;;  %v1028_v11 = vpop.permute.xlu0 %1027 }
 0x380   : > { %1039 = vst.msk [vmem:[#allocation3 + $0x8] sm:$0xff] %vm1037_vm5, %v1028_v11 }
 0x381   : > { %1074 = vst.msk [vmem:[#allocation3 + $0x18] sm:$0xff] %vm1070_vm6, %v1065_v55  ;;  %1072 = vst.msk [vmem:[#allocation3 + $0x8] sm:$0xff] %vm1070_vm6, %v1061_v56 }
 0x382   : > { %v1100_v19 = vpop.permute.xlu1 %1099 }
 0x383   : > { %1110 = vst.msk [vmem:[#allocation3 + $0x10] sm:$0xff] %vm1107_vm0, %v1100_v19  ;;  %v1096_v21 = vpop.permute.xlu0 %1095 }
 0x384   : > { %1108 = vst.msk [vmem:[#allocation3] sm:$0xff] %vm1107_vm0, %v1096_v21 }
 0x386   : > { %v1102_v22 = vpop.permute.xlu1 %1101 }
 0x387   : > { %1111 = vst.msk [vmem:[#allocation3 + $0x18] sm:$0xff] %vm1107_vm0, %v1102_v22  ;;  %v1098_v24 = vpop.permute.xlu0 %1097 }
 0x388   : > { %1109 = vst.msk [vmem:[#allocation3 + $0x8] sm:$0xff] %vm1107_vm0, %v1098_v24 }
 0x38a   : > { %v1137_v25 = vpop.permute.xlu1 %1136 }
 0x38b   : > { %1147 = vst.msk [vmem:[#allocation3 + $0x10] sm:$0xff] %vm1144_vm1, %v1137_v25  ;;  %v1133_v26 = vpop.permute.xlu0 %1132 }
 0x38c   : > { %1145 = vst.msk [vmem:[#allocation3] sm:$0xff] %vm1144_vm1, %v1133_v26 }
 0x38d   : > { %1180 = vst.msk [vmem:[#allocation3 + $0x10] sm:$0xff] %vm1177_vm3, %v1170_v50  ;;  %1178 = vst.msk [vmem:[#allocation3] sm:$0xff] %vm1177_vm3, %v1166_v57 }
 0x38e   : > { %v1139_v29 = vpop.permute.xlu1 %1138 }
 0x38f   : > { %1148 = vst.msk [vmem:[#allocation3 + $0x18] sm:$0xff] %vm1144_vm1, %v1139_v29  ;;  %v1135_v32 = vpop.permute.xlu0 %1134 }
 0x390   : > { %1146 = vst.msk [vmem:[#allocation3 + $0x8] sm:$0xff] %vm1144_vm1, %v1135_v32 }
 0x391   : > { %1181 = vst.msk [vmem:[#allocation3 + $0x18] sm:$0xff] %vm1177_vm3, %v1172_v59  ;;  %1179 = vst.msk [vmem:[#allocation3 + $0x8] sm:$0xff] %vm1177_vm3, %v1168_v60 }
 0x392   : > { %v1207_v40 = vpop.permute.xlu1 %1206 }
 0x393   : > { %1217 = vst.msk [vmem:[#allocation3 + $0x10] sm:$0xff] %vm1214_vm8, %v1207_v40  ;;  %v1203_v42 = vpop.permute.xlu0 %1202 }
 0x394   : > { %1215 = vst.msk [vmem:[#allocation3] sm:$0xff] %vm1214_vm8, %v1203_v42 }
 0x396   : > { %v1209_v45 = vpop.permute.xlu1 %1208 }
 0x397   : > { %1218 = vst.msk [vmem:[#allocation3 + $0x18] sm:$0xff] %vm1214_vm8, %v1209_v45  ;;  %v1205_v62 = vpop.permute.xlu0 %1204 }
 0x398   : > { %1216 = vst.msk [vmem:[#allocation3 + $0x8] sm:$0xff] %vm1214_vm8, %v1205_v62 }
 0x39a   : > { %v1221_v9 = vld [vmem:[#allocation3 + $0x10] sm:$0xff] }
 0x39b   : > { %v1219_v33 = vld [vmem:[#allocation3] sm:$0xff]  ;;  %1661 = vmatprep.mubr.msk.bf16.mxu1 %vm1266_vm9, %v1221_v9 }
 0x39c   : > { %1657 = vmatprep.mubr.msk.bf16.mxu0 %vm1266_vm9, %v1219_v33 }
 0x39e   : > { %v1222_v38 = vld [vmem:[#allocation3 + $0x18] sm:$0xff] }
 0x39f   : > { %v1220_v43 = vld [vmem:[#allocation3 + $0x8] sm:$0xff]  ;;  %1662 = vmatmul.mubr.msk.bf16.vlgmr.msra.gmra.mrb[4].mxu1 %vm1266_vm9, %v1222_v38 }
 0x3a0   : > { %1658 = vmatmul.mubr.msk.bf16.vlgmr.msra.gmra.mrb[4].mxu0 %vm1266_vm9, %v1220_v43 }
 0x472   : > { %v1663_v7 = vpop.f32.mrb[4].mxu1 }
 0x473   : > { %v1659_v47 = vpop.f32.mrb[4].mxu0  ;;  %v1342_v6 = vadd.f32 %v1663_v7, %v1572_v5  ;;  %v1333_v30 = vpop.f32.mrb[5].mxu1 }
 0x474   : > { %v1326_v16 = vadd.f32 %v1659_v47, %v1572_v5  ;;  %v1317_v36 = vpop.f32.mrb[5].mxu0  ;;  %v1334_v0 = vadd.f32 %v1572_v5, %v1333_v30  ;;  %v1664_v28 = vpop.f32.mrb[6].mxu1 }
 0x475   : > { %v1602_v12 = vpack.c.bf16 %v1342_v6, %v1342_v6  ;;  %v1318_v3 = vadd.f32 %v1572_v5, %v1317_v36  ;;  %v1660_v14 = vpop.f32.mrb[6].mxu0  ;;  %v1345_v44 = vadd.f32 %v1664_v28, %v1572_v5  ;;  %v1336_v10 = vpop.f32.mrb[7].mxu1 }
 0x476   : > { %v1598_v17 = vpack.c.bf16 %v1326_v16, %v1326_v16  ;;  %v1600_v13 = vpack.c.bf16 %v1334_v0, %v1334_v0  ;;  %v1329_v18 = vadd.f32 %v1660_v14, %v1572_v5  ;;  %v1320_v15 = vpop.f32.mrb[7].mxu0  ;;  %v1337_v20 = vadd.f32 %v1572_v5, %v1336_v10 }
 0x477   : > { %1387 = vst.msk [vmem:[%s355_s12 + $0x18] sm:$0xf] %vm1380_vm11, %v1602_v12  ;;  %v1596_v23 = vpack.c.bf16 %v1318_v3, %v1318_v3  ;;  %v1603_v35 = vpack.c.bf16 %v1345_v44, %v1345_v44  ;;  %v1321_v41 = vadd.f32 %v1572_v5, %v1320_v15 }
 0x478   : > { %1383 = vst.msk [vmem:[%s355_s12 + $0x8] sm:$0xf] %vm1380_vm11, %v1598_v17  ;;  %1385 = vst.msk [vmem:[%s355_s12 + $0x10] sm:$0xf] %vm1380_vm11, %v1600_v13  ;;  %v1599_v4 = vpack.c.bf16 %v1329_v18, %v1329_v18  ;;  %v1601_v31 = vpack.c.bf16 %v1337_v20, %v1337_v20 }
 0x479   : > { %1381 = vst.msk [vmem:[%s355_s12] sm:$0xf] %vm1380_vm11, %v1596_v23  ;;  %1388 = vst.msk [vmem:[%s355_s12 + $0x1c] sm:$0xf] %vm1380_vm11, %v1603_v35  ;;  %v1597_v27 = vpack.c.bf16 %v1321_v41, %v1321_v41 }
 0x47a   : > { %1384 = vst.msk [vmem:[%s355_s12 + $0xc] sm:$0xf] %vm1380_vm11, %v1599_v4  ;;  %1386 = vst.msk [vmem:[%s355_s12 + $0x14] sm:$0xf] %vm1380_vm11, %v1601_v31 }
 0x47b   : > { %1382 = vst.msk [vmem:[%s355_s12 + $0x4] sm:$0xf] %vm1380_vm11, %v1597_v27 }
 0x47c   : > { %2007 = shalt.err (!%p2004_p2)
}
 0x47d   : > { %s2008_s30 = scalar_lea.hbm %s2869_s17, 512  ;;  %s2012_s8 = scalar_lea.hbm %s2928_s6, 1024 }
 0x47e   : > { %p2009_p12 = scmp.ne.s32.totalorder %s2869_s17, %s2008_s30  ;;  %p2013_p0 = scmp.lt.u32.totalorder %s2869_s17, %s2928_s6 }
 0x47f   : > { %p2014_p6 = scmp.lt.u32.totalorder %s2012_s8, %s2008_s30  ;;  %p2016_p3 = scmp.lt.u32.totalorder %s2008_s30, %s2869_s17 }
 0x480   : > { %p2010_p4 = pnand %p2009_p12, %p3002_p7 }
 0x481   : > { %p2015_p8 = por %p2014_p6, %p2013_p0 }
 0x482   : > { %p2011_p11 = pneg %p2010_p4 }
 0x483   : > { %p2017_p10 = por %p2016_p3, %p2015_p8 }
 0x485   : > { %p2018_p13 = pnand %p2017_p10, %p2011_p11 }
 0x487   : > { %2021 = shalt.err (!%p2018_p13)
}
 0x488   : > { %s2094_s12 = smov 4  }
 0x489   : > { %1697 = dma.vmem_to_hbm [thread:$0]  (%p3002_p7), %s2873_s26, 512, %s2869_s17, %s1390_s14, %s2092_s13, %s2092_s13, %s2094_s12  }
 0x48a PF: > { %s1418_s25 = sand.u32 1, %s2060_s21   ;;  %p3003_p5 = scmp.ne.s32.totalorder %s2937_s28, 0 }
 0x48b   : > { %p3004_p9 = scmp.ge.s32.totalorder %s2072_s24, 2  ;;  %s1419_s18 = scalar_lea.sflag [#allocation6], %s1418_s25 }
 0x48d   : > { %p1720_p1 = pnand %p3004_p9, %p3003_p5 }
 0x48f   : > { %2055 = dma.done.wait (!%p1720_p1), %s1419_s18, 512  }
 0x490   : > { %2057 = vsyncadd (!%p1720_p1), %s1419_s18, 4294966784  ;;  %p24_p2 = scmp.ge.s32.totalorder %s2281_s20, 4   ;;  %s3005_s21 = smov %s2064_s22 }
 0x491   : > { %s3006_s22 = smov %s2068_s23  ;;  %s3007_s23 = smov %s2290_s11 }
 0x492   : > { %s3008_s24 = smov %s2281_s20  ;;  %26 = sbr.rel (!%p24_p2) target bundleno = 12 (0xc), region = 118 }
 0x499   :  { %1424 = vsyncpa [#allocation5], 1 }
 0x49a   :  { %1426 = vsyncpa [#allocation5 + $0x1], 1 }
 0x49b   :  { %1427 = vsyncpa [#allocation8], 1 }
 0x49c   :  { %1428 = vsyncpa [#allocation11], 1 }
 0x49d   :  { %1429 = vsyncpa [#allocation14], 1 }
 0x49e   :  { %1431 = vsyncpa [#allocation14 + $0x1], 1 }
 0x49f   :  { %1432 = vsyncpa [#allocation6], 1 }
 0x4a0   :  { %1434 = vsyncpa [#allocation6 + $0x1], 1 }

// kernel: midblock_forward.8
= control target key start
LH: loop header
LB: loop body
LE: loop exit
PB: predicated region body
PF: predicated region fallthrough
CT: control target
= control target key end

     0   :  { %s3044_s0 = inlined_call_operand.hbm [shape: bf16[2,64,16], index: 0, kind: input, shape index: {}]   ;;  %s3045_s1 = inlined_call_operand.hbm [shape: f32[16,16], index: 1, kind: input, shape index: {}]   ;;  %s3046_s2 = inlined_call_operand.hbm [shape: f32[1,16], index: 2, kind: input, shape index: {}]   ;;  %s3047_s3 = inlined_call_operand.hbm [shape: f32[1,16], index: 3, kind: input, shape index: {}]   ;;  %s3048_s4 = inlined_call_operand.hbm [shape: bf16[144,16], index: 4, kind: input, shape index: {}]   ;;  %s3049_s5 = inlined_call_operand.hbm [shape: f32[2,1,16], index: 5, kind: input, shape index: {}]   ;;  %s3050_s6 = inlined_call_operand.hbm [shape: bf16[2,64,16], index: 6, kind: output, shape index: {}]  }
   0x1   :  { %3056 = sst [smem:[#allocation21_spill]] %s3044_s0 }
   0x2   :  { %3057 = sst [smem:[#allocation22_spill]] %s3045_s1 }
   0x3   :  { %11 = vsyncpa [#allocation5], 0 }
   0x4   :  { %13 = vsyncpa [#allocation5 + $0x1], 0 }
   0x5   :  { %14 = vsyncpa [#allocation8], 0 }
   0x6   :  { %15 = vsyncpa [#allocation11], 0 }
   0x7   :  { %16 = vsyncpa [#allocation14], 0 }
   0x8   :  { %18 = vsyncpa [#allocation14 + $0x1], 0 }
   0x9   :  { %19 = vsyncpa [#allocation6], 0 }
   0xa   :  { %21 = vsyncpa [#allocation6 + $0x1], 0  ;;  %s2154_s21 = smov 0   ;;  %s2156_s22 = smov 0  }
   0xb   :  { %s2158_s23 = smov 0   ;;  %s2160_s24 = smov 0  }
   0xc LB: > { %s2175_s25 = sadd.s32 4294967295, %s2094_s24   ;;  %s1555_s26 = sadd.s32 4294967294, %s2094_s24   ;;  %s2094_s24 = sphi %s2160_s24, %s3138_s24   ;;  %s2090_s23 = sphi %s2158_s23, %s3137_s23   ;;  %s2086_s22 = sphi %s2156_s22, %s3136_s22   ;;  %s2082_s21 = sphi %s2154_s21, %s3135_s21  }
   0xd   : > { %p47_p0 = scmp.ne.s32.totalorder %s2086_s22, %s2082_s21  ;;  %p3051_p1 = scmp.eq.s32.totalorder %s2175_s25, 0 }
   0xe   : > { %p187_p3 = scmp.eq.s32.totalorder %s1555_s26, 1  ;;  %p1556_p5 = scmp.ge.s32.totalorder %s2094_s24, 1 }
   0xf   : > { %p2184_p4 = por %p3051_p1, %p47_p0  ;;  %p194_p7 = scmp.lt.s32.totalorder %s2094_s24, 3 }
  0x10   : > { %p2189_p6 = por %p187_p3, %p47_p0  ;;  %s2096_s30 = smov [#allocation7]  }
  0x11   : > { %s3058_s27 = scalar_select %p2184_p4, 1, 0 }
  0x12   : > { %s3059_s28 = scalar_select %p2189_p6, 1, 0 }
  0x13   : > { %p2194_p8 = pnand %p1556_p5, %p194_p7  ;;  %s206_s7 = sshll.u32 %s2096_s30, 4  ;;  %s2198_s7 = int_to_ptr.vmem [resolvable:$true] %s206_s7 }
  0x14   : > { %s2097_s9 = smov [#allocation10]   ;;  %s2098_s11 = smov [#allocation9]  }
  0x15   : > { %s3060_s29 = scalar_select %p2194_p8, 1, 0 }
  0x16   : > { %p1715_p9 = pneg %p2194_p8  ;;  %s231_s10 = sshll.u32 %s2097_s9, 4  ;;  %s2209_s10 = int_to_ptr.vmem [resolvable:$true] %s231_s10 }
  0x17   : > { %s2211_s12 = sshll.u32 %s2098_s11, 4  ;;  %s3062_s1 = sld [smem:[#allocation22_spill]]  ;;  %s221_s12 = int_to_ptr.vmem [resolvable:$true] %s2211_s12 }
  0x18   : > { %p2205_p11 = pnand %p1715_p9, %p3051_p1 }
  0x1a   : > { %p2221_p13 = pneg %p2205_p11 }
  0x1d   : > { %s1844_s15 = scalar_lea.hbm %s3062_s1, 256 }
  0x1e   : > { %p1845_p12 = scmp.ne.s32.totalorder %s3062_s1, %s1844_s15  ;;  %p1851_p5 = scmp.lt.u32.totalorder %s1844_s15, %s3062_s1 }
  0x20   : > { %p1847_p0 = pnand %p2221_p13, %p1845_p12 }
  0x22   : > { %p1848_p3 = pneg %p1847_p0 }
  0x24   : > { %p1853_p7 = pnand %p1851_p5, %p1848_p3 }
  0x26   : > { %1856 = shalt.err (!%p1853_p7)
}
  0x27   : > { %s1857_s26 = scalar_lea.vmem %s2198_s7, 256  ;;  %p1865_p2 = scmp.lt.s32.totalorder %s2198_s7, %s2198_s7 }
  0x28   : > { %p1858_p9 = scmp.ne.s32.totalorder %s2198_s7, %s1857_s26  ;;  %p1866_p6 = scmp.lt.s32.totalorder %s1857_s26, %s1857_s26 }
  0x2a   : > { %p1860_p10 = pnand %p1858_p9, %p2221_p13  ;;  %p1867_p12 = por %p1866_p6, %p1865_p2 }
  0x2c   : > { %p1861_p1 = pneg %p1860_p10 }
  0x2e   : > { %p1868_p0 = pnand %p1867_p12, %p1861_p1 }
  0x30   : > { %1871 = shalt.err (!%p1868_p0)
}
  0x31   : > { %s2099_s30 = smov 128   ;;  %s2100_s9 = smov 8  }
  0x32   : > { %1718 = dma.hbm_to_vmem [thread:$0]  (!%p2205_p11), %s3062_s1, 256, %s2198_s7, [#allocation8], %s2099_s30, %s2099_s30, %s2100_s9  }
  0x33   : > { %s1872_s16 = scalar_lea.hbm %s3047_s3, 16 }
  0x34   : > { %p1873_p2 = scmp.ne.s32.totalorder %s3047_s3, %s1872_s16  ;;  %p1879_p10 = scmp.lt.u32.totalorder %s1872_s16, %s3047_s3 }
  0x36   : > { %p1875_p1 = pnand %p1873_p2, %p2221_p13 }
  0x38   : > { %p1876_p6 = pneg %p1875_p1 }
  0x3a   : > { %p1881_p3 = pnand %p1879_p10, %p1876_p6 }
  0x3c   : > { %1884 = shalt.err (!%p1881_p3)
}
  0x3d   : > { %s1885_s7 = scalar_lea.vmem %s2209_s10, 16  ;;  %s1892_s30 = scalar_lea.vmem %s2209_s10, 32 }
  0x3e   : > { %p1886_p5 = scmp.ne.s32.totalorder %s2209_s10, %s1885_s7  ;;  %p1893_p12 = scmp.lt.s32.totalorder %s2209_s10, %s2209_s10 }
  0x3f   : > { %p1894_p0 = scmp.lt.s32.totalorder %s1892_s30, %s1885_s7 }
  0x40   : > { %p1888_p7 = pnand %p1886_p5, %p2221_p13 }
  0x41   : > { %p1895_p2 = por %p1894_p0, %p1893_p12 }
  0x42   : > { %p1889_p9 = pneg %p1888_p7 }
  0x44   : > { %p1896_p1 = pnand %p1895_p2, %p1889_p9 }
  0x46   : > { %1899 = shalt.err (!%p1896_p1)
}
  0x47   : > { %1724 = dma.hbm_to_vmem [thread:$0]  (!%p2205_p11), %s3047_s3, 16, %s2209_s10, [#allocation11]  }
  0x48   : > { %s1900_s15 = scalar_lea.hbm %s3046_s2, 16 }
  0x49   : > { %p1901_p6 = scmp.ne.s32.totalorder %s3046_s2, %s1900_s15  ;;  %p1907_p5 = scmp.lt.u32.totalorder %s1900_s15, %s3046_s2 }
  0x4b   : > { %p1903_p10 = pnand %p1901_p6, %p2221_p13 }
  0x4d   : > { %p1904_p3 = pneg %p1903_p10 }
  0x4f   : > { %p1909_p7 = pnand %p1907_p5, %p1904_p3 }
  0x51   : > { %1912 = shalt.err (!%p1909_p7)
}
  0x52   : > { %s1913_s26 = scalar_lea.vmem %s221_s12, 16  ;;  %s1920_s10 = scalar_lea.vmem %s221_s12, 32 }
  0x53   : > { %p1914_p9 = scmp.ne.s32.totalorder %s221_s12, %s1913_s26  ;;  %p1921_p2 = scmp.lt.s32.totalorder %s221_s12, %s221_s12 }
  0x54   : > { %p1922_p1 = scmp.lt.s32.totalorder %s1920_s10, %s1913_s26 }
  0x55   : > { %p1916_p12 = pnand %p1914_p9, %p2221_p13 }
  0x56   : > { %p1923_p4 = por %p1922_p1, %p1921_p2 }
  0x57   : > { %p1917_p0 = pneg %p1916_p12 }
  0x59   : > { %p1924_p8 = pnand %p1923_p4, %p1917_p0 }
  0x5b   : > { %1927 = shalt.err (!%p1924_p8)
}
  0x5c   : > { %1721 = dma.hbm_to_vmem [thread:$0]  (!%p2205_p11), %s3046_s2, 16, %s221_s12, [#allocation8]  }
  0x5d   : > { %s2101_s9 = smov [#allocation12]   ;;  %s1928_s15 = scalar_lea.hbm %s3048_s4, 1152 }
  0x5e   : > { %s241_s11 = sshll.u32 %s2101_s9, 4  ;;  %p1929_p6 = scmp.ne.s32.totalorder %s3048_s4, %s1928_s15  ;;  %s242_s11 = int_to_ptr.vmem [resolvable:$true] %s241_s11 }
  0x5f   : > { %p1935_p10 = scmp.lt.u32.totalorder %s1928_s15, %s3048_s4 }
  0x60   : > { %p1931_p4 = pnand %p1929_p6, %p2221_p13 }
  0x62   : > { %p1932_p8 = pneg %p1931_p4 }
  0x64   : > { %p1937_p3 = pnand %p1935_p10, %p1932_p8 }
  0x66   : > { %1940 = shalt.err (!%p1937_p3)
}
  0x67   : > { %s1941_s12 = scalar_lea.vmem %s242_s11, 1152  ;;  %p1949_p12 = scmp.lt.s32.totalorder %s242_s11, %s242_s11 }
  0x68   : > { %p1942_p5 = scmp.ne.s32.totalorder %s242_s11, %s1941_s12  ;;  %p1950_p0 = scmp.lt.s32.totalorder %s1941_s12, %s1941_s12 }
  0x6a   : > { %p1944_p7 = pnand %p1942_p5, %p2221_p13  ;;  %p1951_p2 = por %p1950_p0, %p1949_p12 }
  0x6c   : > { %p1945_p9 = pneg %p1944_p7 }
  0x6e   : > { %p1952_p1 = pnand %p1951_p2, %p1945_p9 }
  0x70   : > { %1955 = shalt.err (!%p1952_p1)
}
  0x71   : > { %s3054_s26 = smov 64   ;;  %s2103_s18 = smov 4  }
  0x72   : > { %1727 = dma.hbm_to_vmem [thread:$0]  (!%p2205_p11), %s3048_s4, 1152, %s242_s11, [#allocation11], %s3054_s26, %s3054_s26, %s2103_s18  }
  0x73   : > { %s2307_s30 = sadd.s32 1, %s2094_s24   ;;  %s34_s13 = sadd.s32 1, %s2090_s23 }
  0x74   : > { %s31_s9 = ssub.s32 %s2094_s24, %s2307_s30  ;;  %p41_p6 = scmp.ne.s32.totalorder %s2090_s23, %s2086_s22 }
  0x75   : > { %p32_p13 = scmp.eq.s32.totalorder %s31_s9, 0  ;;  %p42_p4 = scmp.eq.s32.totalorder %s2094_s24, 0 }
  0x76   : > { %p3064_p10 = scmp.eq.s32.totalorder %s2175_s25, 1  ;;  %p1743_p5 = scmp.lt.s32.totalorder %s2094_s24, 2 }
  0x77   : > { %s2316_s14 = scalar_select %p32_p13, %s2090_s23, %s34_s13  }
  0x78   : > { %p43_p8 = por %p42_p4, %p41_p6  ;;  %p2320_p3 = por %p3064_p10, %p41_p6 }
  0x79   : > { %s2326_s15 = sand.u32 1, %s2090_s23   ;;  %s1620_s16 = sshll.u32 %s2094_s24, 9 }
  0x7a   : > { %s3065_s8 = scalar_select %p2320_p3, 1, 0 }
  0x7b   : > { %s1562_s11 = sshll.u32 %s2326_s15, 5  ;;  %s3066_s0 = sld [smem:[#allocation21_spill]] }
  0x7c   : > { %s259_s12 = scalar_lea.vmem [#allocation4], %s1562_s11  ;;  %p2337_p11 = pnand %p1743_p5, %p43_p8 }
  0x7d   : > { %s266_s10 = sshll.u32 %s259_s12, 4  ;;  %s256_s13 = scalar_lea.sflag [#allocation5], %s2326_s15  ;;  %s2335_s10 = int_to_ptr.vmem [resolvable:$true] %s266_s10 }
  0x7e   : > { %p1958_p9 = pneg %p2337_p11 }
  0x81   : > { %s2333_s20 = scalar_lea.hbm %s3066_s0, %s1620_s16  ;;  %s1961_s17 = scalar_lea.hbm %s3066_s0, 1024 }
  0x82   : > { %s1956_s26 = scalar_lea.hbm %s2333_s20, 512  ;;  %p1962_p2 = scmp.lt.u32.totalorder %s2333_s20, %s3066_s0 }
  0x83   : > { %p1957_p7 = scmp.ne.s32.totalorder %s2333_s20, %s1956_s26  ;;  %p1963_p1 = scmp.lt.u32.totalorder %s1961_s17, %s1956_s26 }
  0x84   : > { %p1965_p6 = scmp.lt.u32.totalorder %s1956_s26, %s2333_s20 }
  0x85   : > { %p1959_p12 = pnand %p1958_p9, %p1957_p7  ;;  %p1964_p13 = por %p1963_p1, %p1962_p2 }
  0x87   : > { %p1960_p0 = pneg %p1959_p12  ;;  %p1966_p4 = por %p1965_p6, %p1964_p13 }
  0x89   : > { %p1967_p8 = pnand %p1966_p4, %p1960_p0 }
  0x8b   : > { %1970 = shalt.err (!%p1967_p8)
}
  0x8c   : > { %s1971_s9 = scalar_lea.vmem %s2335_s10, 512  ;;  %s2104_s11 = smov [#allocation4]  }
  0x8d   : > { %p1972_p10 = scmp.ne.s32.totalorder %s2335_s10, %s1971_s9  ;;  %s1976_s16 = sshll.u32 %s2104_s11, 4  ;;  %s1977_s16 = int_to_ptr.vmem [resolvable:$false] %s1976_s16 }
  0x8e   : > { %s1978_s19 = scalar_lea.vmem %s1977_s16, 1024  ;;  %p1979_p12 = scmp.lt.s32.totalorder %s2335_s10, %s1977_s16 }
  0x8f   : > { %p1974_p5 = pnand %p1972_p10, %p1958_p9  ;;  %p1980_p2 = scmp.lt.s32.totalorder %s1978_s19, %s1971_s9 }
  0x91   : > { %p1975_p7 = pneg %p1974_p5  ;;  %p1981_p1 = por %p1980_p2, %p1979_p12 }
  0x93   : > { %p1982_p13 = pnand %p1981_p1, %p1975_p7 }
  0x95   : > { %1985 = shalt.err (!%p1982_p13)
}
  0x96   : > { %s3068_s26 = smov 64   ;;  %s3069_s17 = sshll.u32 %s2094_s24, 4 }
  0x97   : > { %1731 = dma.hbm_to_vmem [thread:$0]  (!%p2337_p11), %s2333_s20, 512, %s2335_s10, %s256_s13, %s3068_s26, %s3068_s26, %s2103_s18  }
  0x98   : > { %s2378_s11 = scalar_lea.hbm %s3049_s5, %s3069_s17  ;;  %s279_s16 = scalar_lea.vmem [#allocation13], %s2326_s15 }
  0x99   : > { %s286_s19 = sshll.u32 %s279_s16, 4  ;;  %s277_s0 = scalar_lea.sflag [#allocation14], %s2326_s15  ;;  %s287_s19 = int_to_ptr.vmem [resolvable:$true] %s286_s19 }
  0x9a   : > { %s1986_s1 = scalar_lea.hbm %s2378_s11, 16  ;;  %s1991_s10 = scalar_lea.hbm %s3049_s5, 32 }
  0x9b   : > { %p1987_p0 = scmp.ne.s32.totalorder %s2378_s11, %s1986_s1  ;;  %p1992_p8 = scmp.lt.u32.totalorder %s2378_s11, %s3049_s5 }
  0x9c   : > { %p1993_p10 = scmp.lt.u32.totalorder %s1991_s10, %s1986_s1  ;;  %p1995_p7 = scmp.lt.u32.totalorder %s1986_s1, %s2378_s11 }
  0x9d   : > { %p1989_p6 = pnand %p1987_p0, %p1958_p9 }
  0x9e   : > { %p1994_p5 = por %p1993_p10, %p1992_p8 }
  0x9f   : > { %p1990_p4 = pneg %p1989_p6 }
  0xa0   : > { %p1996_p12 = por %p1995_p7, %p1994_p5 }
  0xa2   : > { %p1997_p2 = pnand %p1996_p12, %p1990_p4 }
  0xa4   : > { %2000 = shalt.err (!%p1997_p2)
}
  0xa5   : > { %s2001_s15 = scalar_lea.vmem %s287_s19, 16  ;;  %s2105_s17 = smov [#allocation13]  }
  0xa6   : > { %p2002_p1 = scmp.ne.s32.totalorder %s287_s19, %s2001_s15  ;;  %s2006_s12 = sshll.u32 %s2105_s17, 4  ;;  %s2007_s12 = int_to_ptr.vmem [resolvable:$false] %s2006_s12 }
  0xa7   : > { %s2008_s9 = scalar_lea.vmem %s2007_s12, 32  ;;  %p2009_p6 = scmp.lt.s32.totalorder %s287_s19, %s2007_s12 }
  0xa8   : > { %p2004_p13 = pnand %p2002_p1, %p1958_p9  ;;  %p2010_p3 = scmp.lt.s32.totalorder %s2008_s9, %s2001_s15 }
  0xaa   : > { %p2005_p0 = pneg %p2004_p13  ;;  %p2011_p8 = por %p2010_p3, %p2009_p6 }
  0xac   : > { %p2012_p10 = pnand %p2011_p8, %p2005_p0 }
  0xae   : > { %2015 = shalt.err (!%p2012_p10)
}
  0xaf   : > { %1734 = dma.hbm_to_vmem [thread:$0]  (!%p2337_p11), %s2378_s11, 16, %s287_s19, %s277_s0  }
  0xb0   : > { %p3070_p4 = scmp.ne.s32.totalorder %s3060_s29, 0 }
  0xb1   : > { %s2404_s1 = sand.u32 (!%p3070_p4), 1, %s2086_s22   ;;  %p3071_p3 = scmp.ne.s32.totalorder (!%p3070_p4), %s3058_s27, 0 }
  0xb2   : > { %295 = sbr.rel (%p3070_p4) target bundleno = 1157 (0x485), region = 44  ;;  %s1567_s16 = sshll.u32 (!%p3070_p4), %s2404_s1, 5 }
  0xb3   : > { %s298_s18 = scalar_lea.sflag (!%p3070_p4), [#allocation5], %s2404_s1  ;;  %s2410_s20 = scalar_lea.vmem (!%p3070_p4), [#allocation4], %s1567_s16 }
  0xb9   : > { %2061 = dma.done.wait (%p3071_p3), %s298_s18, 512  }
  0xba   : > { %2063 = vsyncadd (%p3071_p3), %s298_s18, 4294966784  ;;  %p3072_p11 = scmp.eq.s32.totalorder %s2175_s25, 0 }
  0xbc   : > { %2065 = dma.done.wait (%p3072_p11), [#allocation8], 272   ;;  %p3073_p9 = pmov %p3072_p11 }
  0xbe   : > { %2067 = vsyncadd (%p3073_p9), [#allocation8], 4294967024  ;;  %p3074_p5 = pmov %p3073_p9 }
  0xc0   : > { %2069 = dma.done.wait (%p3074_p5), [#allocation11], 1168   ;;  %p3075_p7 = pmov %p3074_p5 }
  0xc1   : > { %s323_s0 = scalar_lea.sflag [#allocation14], %s2404_s1  ;;  %s325_s29 = scalar_lea.vmem [#allocation13], %s2404_s1 }
  0xc2   : > { %2071 = vsyncadd (%p3075_p7), [#allocation11], 4294966128 }
  0xc3   : > { %2073 = dma.done.wait (%p3071_p3), %s323_s0, 16  }
  0xc4   : > { %2075 = vsyncadd (%p3071_p3), %s323_s0, 4294967280  ;;  %vm377_vm0 = vcmask 130048   ;;  %v2106_v0 = vmov 0.0|0.0   ;;  %vm2107_vm1 = vmmov 0   ;;  %v2108_v1 = vmov 0.0   ;;  %v399_v2 = vld [vmem:[#allocation7] sm:$0xff] }
  0xc5   : > { %1669 = vmatprep.subr.bf16.mxu0 %v2106_v0  ;;  %1659 = vmatprep.mubr.msk.f32.mxu0 %vm2107_vm1, %v2108_v1  ;;  %689 = vst.msk [vmem:[#allocation2] sm:$0xff] %vm377_vm0, %v2108_v1  ;;  %690 = vst.msk [vmem:[#allocation2 + $0x8] sm:$0xff] %vm377_vm0, %v2108_v1  ;;  %v400_v3 = vld [vmem:[#allocation7 + $0x8] sm:$0xff]  ;;  %v1631_v4 = vld [vmem:[%s2410_s20] sm:$0xff]   ;;  %v474_v38 = vlaneseq  ;;  %s2110_s27 = smov 64   ;;  %s2111_s7 = smov 16  }
  0xc6   : > { %691 = vst.msk [vmem:[#allocation2 + $0x50] sm:$0xff] %vm377_vm0, %v2108_v1  ;;  %692 = vst.msk [vmem:[#allocation2 + $0x58] sm:$0xff] %vm377_vm0, %v2108_v1  ;;  %1672 = vmatprep.subr.bf16.mxu1 %v2106_v0  ;;  %1666 = vmatprep.mubr.msk.f32.mxu1 %vm2107_vm1, %v2108_v1  ;;  %v1670_v5 = vpack.c.bf16 %v400_v3, %v399_v2  ;;  %v1632_v6 = vunpack.c.l.bf16 %v1631_v4  ;;  %v1633_v7 = vunpack.c.h.bf16 %v1631_v4  ;;  %v1646_v8 = vld [vmem:[%s2410_s20 + $0x8] sm:$0xff]   ;;  %v1647_v9 = vld [vmem:[%s2410_s20 + $0x10] sm:$0xff]   ;;  %s2112_s11 = smov 112   ;;  %s2113_s19 = smov 32  }
  0xc7   : > { %v1636_v10 = vunpack.c.l.bf16 %v1646_v8  ;;  %v1637_v11 = vunpack.c.h.bf16 %v1646_v8  ;;  %v1640_v12 = vunpack.c.l.bf16 %v1647_v9  ;;  %v1648_v15 = vld [vmem:[%s2410_s20 + $0x18] sm:$0xff]   ;;  %v1641_v18 = vunpack.c.h.bf16 %v1647_v9  ;;  %s2114_s10 = smov 48   ;;  %s2115_s13 = smov 80  }
  0xc8   : > { %1671 = vmatpush3.bf16.msra.mxu0 %v1670_v5  ;;  %v378_v13 = vsel %vm377_vm0, %v1632_v6, 0.0  ;;  %v379_v14 = vsel %vm377_vm0, %v1633_v7, 0.0  ;;  %1674 = vmatpush3.bf16.msra.mxu1 %v1670_v5  ;;  %v1644_v22 = vunpack.c.l.bf16 %v1648_v15  ;;  %v1645_v24 = vunpack.c.h.bf16 %v1648_v15  ;;  %s2116_s26 = smov 96   ;;  %s357_s15 = scalar_lea.vmem [#allocation15], %s1567_s16 }
  0xc9   : > { %v380_v16 = vadd.f32 %v379_v14, %v378_v13  ;;  %v381_v17 = vsel %vm377_vm0, %v1636_v10, 0.0  ;;  %v383_v19 = vsel %vm377_vm0, %v1637_v11, 0.0  ;;  %v385_v20 = vsel %vm377_vm0, %v1640_v12, 0.0  ;;  %s1629_s17 = sshll.u32 %s2175_s25, 9  ;;  %s1424_s12 = sshll.u32 %s357_s15, 4  ;;  %s2996_s12 = int_to_ptr.vmem [resolvable:$true] %s1424_s12 }
  0xca   : > { %v387_v25 = vsel %vm377_vm0, %v1641_v18, 0.0  ;;  %v389_v27 = vsel %vm377_vm0, %v1644_v22, 0.0  ;;  %v391_v29 = vsel %vm377_vm0, %v1645_v24, 0.0  ;;  %v2447_v39 = vshrl.u32 %v474_v38, 7  ;;  %s2993_s18 = scalar_lea.hbm %s3050_s6, %s1629_s17  ;;  %s1411_s25 = scalar_lea.sflag [#allocation6], %s2404_s1 }
  0xcb   : > { %v382_v21 = vadd.f32 %v381_v17, %v380_v16  ;;  %v2109_v17 = vmov 0   ;;  %s2016_s20 = scalar_lea.vmem %s2996_s12, 512  ;;  %p3132_p2 = scmp.ne.s32.totalorder %s3065_s8, 0 }
  0xcc   : > { %v476_v40 = vsub.s32 0, %v2447_v39  ;;  %1304 = vmatprep.subr.bf16.mxu0 %v2109_v17  ;;  %1675 = vmatprep.subr.bf16.mxu1 %v2109_v17  ;;  %p2017_p12 = scmp.ne.s32.totalorder %s2996_s12, %s2016_s20  ;;  %s2117_s0 = smov [#allocation15]  }
  0xcd   : > { %v384_v23 = vadd.f32 %v383_v19, %v382_v21 }
  0xce   : > { %p2018_p1 = pnand %p2017_p12, %p3132_p2 }
  0xcf   : > { %v386_v26 = vadd.f32 %v385_v20, %v384_v23 }
  0xd0   : > { %p2019_p13 = pneg %p2018_p1 }
  0xd1   : > { %v388_v28 = vadd.f32 %v387_v25, %v386_v26 }
  0xd3   : > { %v390_v30 = vadd.f32 %v389_v27, %v388_v28 }
  0xd5   : > { %v392_v31 = vadd.f32 %v391_v29, %v390_v30 }
  0xd7   : > { %v393_v32 = vrot.slane %v392_v31, 4 }
  0xd9   : > { %v394_v33 = vadd.f32 %v393_v32, %v392_v31 }
  0xdb   : > { %v395_v34 = vrot.slane %v394_v33, 2 }
  0xdd   : > { %v396_v35 = vadd.f32 %v395_v34, %v394_v33  ;;  %v1576_v33 = vld [vmem:[#allocation10] ss:$0 sm:$0xff] }
  0xdf   : > { %v397_v36 = vrot.slane %v396_v35, 1 }
  0xe1   : > { %v398_v37 = vadd.f32 %v397_v36, %v396_v35 }
  0xe3   : > { %1660 = vmatmul.mubr.msk.f32.vlgmr.msra.gmra.mrb[0].mxu0 %vm377_vm0, %v398_v37 }
 0x1b6   : > { %v470_v41 = vpop.f32.mrb[0].mxu0 }
 0x1b7   : > { %v477_v42 = vrot.slane %v470_v41, %v476_v40  ;;  %v1661_v43 = vpop.f32.mrb[1].mxu0 }
 0x1b9   : > { %v478_v44 = vsub.f32 %v1632_v6, %v477_v42  ;;  %v479_v45 = vsub.f32 %v1633_v7, %v477_v42  ;;  %v480_v46 = vsub.f32 %v1636_v10, %v477_v42  ;;  %v481_v47 = vsub.f32 %v1637_v11, %v477_v42 }
 0x1ba   : > { %v482_v48 = vsub.f32 %v1640_v12, %v477_v42  ;;  %v483_v52 = vsub.f32 %v1641_v18, %v477_v42  ;;  %v484_v57 = vsub.f32 %v1644_v22, %v477_v42  ;;  %v485_v61 = vsub.f32 %v1645_v24, %v477_v42  ;;  %v1575_v24 = vld [vmem:[#allocation9] ss:$0 sm:$0xff] }
 0x1bb   : > { %v486_v49 = vmul.f32 %v478_v44, %v478_v44  ;;  %v487_v50 = vmul.f32 %v479_v45, %v479_v45  ;;  %v488_v51 = vmul.f32 %v480_v46, %v480_v46  ;;  %v489_v53 = vmul.f32 %v481_v47, %v481_v47 }
 0x1bc   : > { %v490_v58 = vmul.f32 %v482_v48, %v482_v48  ;;  %v491_v62 = vmul.f32 %v483_v52, %v483_v52  ;;  %v492_v1 = vmul.f32 %v484_v57, %v484_v57  ;;  %v493_v4 = vmul.f32 %v485_v61, %v485_v61 }
 0x1bd   : > { %v494_v54 = vsel %vm377_vm0, %v486_v49, 0.0  ;;  %v495_v55 = vsel %vm377_vm0, %v487_v50, 0.0  ;;  %v497_v59 = vsel %vm377_vm0, %v488_v51, 0.0  ;;  %v499_v63 = vsel %vm377_vm0, %v489_v53, 0.0 }
 0x1be   : > { %v496_v56 = vadd.f32 %v495_v55, %v494_v54  ;;  %v501_v2 = vsel %vm377_vm0, %v490_v58, 0.0  ;;  %v503_v5 = vsel %vm377_vm0, %v491_v62, 0.0  ;;  %v505_v7 = vsel %vm377_vm0, %v492_v1, 0.0 }
 0x1bf   : > { %v507_v9 = vsel %vm377_vm0, %v493_v4, 0.0 }
 0x1c0   : > { %v498_v60 = vadd.f32 %v497_v59, %v496_v56  ;;  %v703_v59 = vadd.s32 8, %v2447_v39 }
 0x1c2   : > { %v500_v0 = vadd.f32 %v499_v63, %v498_v60 }
 0x1c4   : > { %v502_v3 = vadd.f32 %v501_v2, %v500_v0  ;;  %v714_v2 = vand.u32 7, %v2447_v39 }
 0x1c6   : > { %v504_v6 = vadd.f32 %v503_v5, %v502_v3  ;;  %v2489_v3 = vadd.s32 48, %v2447_v39  ;;  %vm2495_vm2 = vcmp.lt.s32.totalorder %v714_v2, 7  ;;  %vm2510_vm5 = vcmp.gt.s32.totalorder %v714_v2, 0 }
 0x1c7   : > { %vm850_vm12 = vmpackc.low %vm2510_vm5, %vm2510_vm5 }
 0x1c8   : > { %v506_v8 = vadd.f32 %v505_v7, %v504_v6  ;;  %v721_v6 = vand.u32 7, %v703_v59  ;;  %v2492_v7 = vadd.s32 56, %v2447_v39  ;;  %vm3111_vm5 = vmpackc.low %vm2495_vm2, %vm2495_vm2 }
 0x1ca   : > { %v508_v10 = vadd.f32 %v507_v9, %v506_v8  ;;  %vm2500_vm3 = vcmp.lt.s32.totalorder %v721_v6, 7  ;;  %vm2532_vm11 = vcmp.gt.s32.totalorder %v721_v6, 0 }
 0x1cc   : > { %v509_v11 = vrot.slane %v508_v10, 4 }
 0x1ce   : > { %v510_v12 = vadd.f32 %v509_v11, %v508_v10 }
 0x1d0   : > { %v511_v13 = vrot.slane %v510_v12, 2 }
 0x1d2   : > { %v512_v14 = vadd.f32 %v511_v13, %v510_v12  ;;  %v707_v13 = vadd.s32 40, %v2447_v39 }
 0x1d4   : > { %v513_v15 = vrot.slane %v512_v14, 1 }
 0x1d6   : > { %v514_v16 = vadd.f32 %v513_v15, %v512_v14 }
 0x1d8   : > { %1667 = vmatmul.mubr.msk.f32.vlgmr.msra.gmra.mrb[0].mxu1 %vm377_vm0, %v514_v16  ;;  %v822_v16 = vld [vmem:[#allocation2 + $0x7] sm:$0xff] }
 0x2ab   : > { %v584_v18 = vpop.f32.mrb[0].mxu1 }
 0x2ac   : > { %v588_v19 = vmax.f32 %v584_v18, 0.0  ;;  %v1668_v20 = vpop.f32.mrb[1].mxu1  ;;  %v756_v18 = vand.u32 7, %v2489_v3  ;;  %v1803_v3 = vld [vmem:[#allocation12 + $0x10] sm:$0xff]  }
 0x2ae   : > { %v589_v21 = vadd.f32 1e-05, %v588_v19  ;;  %vm2515_vm6 = vcmp.lt.s32.totalorder %v756_v18, 7 }
 0x2af   : > { %vm957_vm14 = vmpackc.low %vm2515_vm6, %vm2515_vm6 }
 0x2b0   : > { %1810 = vrsqrt.f32 %v589_v21  ;;  %vm3100_vm6 = vmpackc.low %vm2532_vm11, %vm2532_vm11 }
 0x2ba   : > { %v1811_v22 = vpop.eup %1810 }
 0x2bb   : > { %v594_v23 = vrot.slane %v1811_v22, %v476_v40  ;;  %v763_v22 = vand.u32 7, %v2492_v7 }
 0x2bd   : > { %v595_v25 = vmul.f32 %v594_v23, %v478_v44  ;;  %v596_v26 = vmul.f32 %v594_v23, %v479_v45  ;;  %v597_v27 = vmul.f32 %v594_v23, %v480_v46  ;;  %v598_v28 = vmul.f32 %v594_v23, %v481_v47 }
 0x2be   : > { %v599_v29 = vmul.f32 %v594_v23, %v482_v48  ;;  %v600_v30 = vmul.f32 %v594_v23, %v483_v52  ;;  %v601_v31 = vmul.f32 %v594_v23, %v484_v57  ;;  %v602_v32 = vmul.f32 %v594_v23, %v485_v61 }
 0x2bf   : > { %v612_v34 = vmul.f32 %v1575_v24, %v597_v27  ;;  %v610_v35 = vmul.f32 %v1575_v24, %v595_v25  ;;  %v613_v36 = vmul.f32 %v1575_v24, %v598_v28  ;;  %v611_v37 = vmul.f32 %v1575_v24, %v596_v26 }
 0x2c0   : > { %v617_v38 = vmul.f32 %v1575_v24, %v602_v32  ;;  %v614_v41 = vmul.f32 %v1575_v24, %v599_v29  ;;  %v615_v42 = vmul.f32 %v1575_v24, %v600_v30  ;;  %v616_v43 = vmul.f32 %v1575_v24, %v601_v31 }
 0x2c1   : > { %v2461_v49 = vadd.f32 %v1576_v33, %v612_v34  ;;  %v2463_v40 = vadd.f32 %v1576_v33, %v610_v35  ;;  %v2474_v50 = vadd.f32 %v1576_v33, %v613_v36  ;;  %v2479_v54 = vadd.f32 %v1576_v33, %v611_v37 }
 0x2c2   : > { %v2465_v44 = vadd.f32 %v1576_v33, %v617_v38  ;;  %v2467_v45 = vadd.f32 %v1576_v33, %v614_v41  ;;  %v2469_v46 = vadd.f32 %v1576_v33, %v615_v42  ;;  %v2471_v47 = vadd.f32 %v1576_v33, %v616_v43 }
 0x2c3   : > { %v1579_v48 = vmul.f32 -1.442695, %v2461_v49  ;;  %v1577_v55 = vmul.f32 -1.442695, %v2463_v40  ;;  %v1580_v57 = vmul.f32 -1.442695, %v2474_v50 }
 0x2c4   : > { %v1584_v51 = vmul.f32 -1.442695, %v2465_v44  ;;  %v1581_v52 = vmul.f32 -1.442695, %v2467_v45  ;;  %v1582_v53 = vmul.f32 -1.442695, %v2469_v46 }
 0x2c5   : > { %1812 = vpow2.f32 %v1579_v48  ;;  %v1583_v56 = vmul.f32 -1.442695, %v2471_v47  ;;  %v1578_v58 = vmul.f32 -1.442695, %v2479_v54  ;;  %v706_v61 = vadd.s32 32, %v2447_v39 }
 0x2c6   : > { %1814 = vpow2.f32 %v1584_v51  ;;  %v704_v25 = vadd.s32 16, %v2447_v39  ;;  %v749_v26 = vand.u32 7, %v707_v13  ;;  %v705_v28 = vadd.s32 24, %v2447_v39 }
 0x2c7   : > { %1816 = vpow2.f32 %v1581_v52  ;;  %v742_v10 = vand.u32 7, %v706_v61  ;;  %vm2528_vm10 = vcmp.lt.s32.totalorder %v763_v22, 7 }
 0x2c8   : > { %1818 = vpow2.f32 %v1582_v53  ;;  %v728_v31 = vand.u32 7, %v704_v25  ;;  %vm2539_vm13 = vcmp.lt.s32.totalorder %v749_v26, 7  ;;  %v735_v34 = vand.u32 7, %v705_v28  ;;  %vm958_vm1 = vmpackc.low %vm2528_vm10, %vm2528_vm10 }
 0x2c9   : > { %1820 = vpow2.f32 %v1577_v55  ;;  %vm2505_vm4 = vcmp.lt.s32.totalorder %v742_v10, 7  ;;  %vm2547_vm15 = vcmp.gt.s32.totalorder %v742_v10, 0  ;;  %vm2555_vm8 = vcmp.gt.s32.totalorder %v749_v26, 0 }
 0x2ca   : > { %1822 = vpow2.f32 %v1583_v56  ;;  %vm2567_vm9 = vcmp.lt.s32.totalorder %v728_v31, 7  ;;  %v966_v52 = vsel %vm958_vm1, 65537, %v2109_v17  ;;  %vm2583_vm10 = vcmp.lt.s32.totalorder %v735_v34, 7  ;;  %vm855_vm7 = vmpackc.low %vm2555_vm8, %vm2555_vm8 }
 0x2cb   : > { %1824 = vpow2.f32 %v1580_v57  ;;  %v858_v56 = vsel %vm850_vm12, 65537, %v2109_v17  ;;  %v859_v57 = vsel %vm3100_vm6, 65537, %v2109_v17  ;;  %vm2613_vm12 = vcmp.gt.s32.totalorder %v763_v22, 0  ;;  %vm3105_vm11 = vmpackc.low %vm2505_vm4, %vm2505_vm4 }
 0x2cc   : > { %1826 = vpow2.f32 %v1578_v58  ;;  %vm2628_vm6 = vcmp.gt.s32.totalorder %v728_v31, 0  ;;  %vm3108_vm4 = vmpackc.low %vm2539_vm13, %vm2539_vm13  ;;  %v1585_v2 = vcombine.low %v858_v56, %v859_v57  ;;  %vm2643_vm1 = vcmp.gt.s32.totalorder %v735_v34, 0 }
 0x2cd   : > { %vm3112_vm13 = vmpackc.low %vm2500_vm3, %vm2500_vm3  ;;  %v2674_v7 = vsel %vm855_vm7, 65537, %v2109_v17 }
 0x2ce   : > { %vm857_vm2 = vmpackc.low %vm2613_vm12, %vm2613_vm12  ;;  %vm2696_vm8 = vcmp.ne.s16.totalorder %v1585_v2, 0 }
 0x2cf   : > { %v1813_v60 = vpop.eup %1812  ;;  %vm852_vm3 = vmpackc.low %vm2628_vm6, %vm2628_vm6  ;;  %v865_v25 = vsel %vm857_vm2, 65537, %v2109_v17  ;;  %vm1040_vm2 = vcmask 523648  }
 0x2d0   : > { %v1815_v62 = vpop.eup %1814  ;;  %v659_v63 = vadd.f32 1.0, %v1813_v60  ;;  %vm853_vm7 = vmpackc.low %vm2643_vm1, %vm2643_vm1  ;;  %v860_v39 = vsel %vm852_vm3, 65537, %v2109_v17  ;;  %vm1073_vm3 = vcmask 654848  }
 0x2d1   : > { %v1817_v0 = vpop.eup %1816  ;;  %v664_v1 = vadd.f32 1.0, %v1815_v62  ;;  %v861_v31 = vsel %vm853_vm7, 65537, %v2109_v17  ;;  %vm1147_vm7 = vcmask 917248  }
 0x2d2   : > { %v1819_v4 = vpop.eup %1818  ;;  %1828 = vrcp.f32 %v659_v63  ;;  %v661_v5 = vadd.f32 1.0, %v1817_v0 }
 0x2d3   : > { %v1821_v8 = vpop.eup %1820  ;;  %1830 = vrcp.f32 %v664_v1  ;;  %v662_v9 = vadd.f32 1.0, %v1819_v4  ;;  %v964_v1 = vsel %vm3108_vm4, 65537, %v2109_v17  ;;  %v1801_v4 = vld [vmem:[#allocation12] sm:$0xff]   ;;  %vm3113_vm4 = vmpackc.low %vm2547_vm15, %vm2547_vm15 }
 0x2d4   : > { %v1823_v11 = vpop.eup %1822  ;;  %1832 = vrcp.f32 %v661_v5  ;;  %v657_v12 = vadd.f32 1.0, %v1821_v8  ;;  %v960_v5 = vsel %vm3112_vm13, 65537, %v2109_v17  ;;  %v2666_v6 = vsel %vm3113_vm4, 65537, %v2109_v17  ;;  %v1192_v8 = vld [vmem:[#allocation2 + $0x51] sm:$0xff]  ;;  %1305 = vmatpush1.bf16.msra.mxu0 %v1801_v4  ;;  %1684 = vmatpush1.bf16.msra.mxu1 %v1801_v4  ;;  %vm3119_vm13 = vmpackc.low %vm2583_vm10, %vm2583_vm10 }
 0x2d5   : > { %v1825_v14 = vpop.eup %1824  ;;  %1834 = vrcp.f32 %v662_v9  ;;  %v663_v15 = vadd.f32 1.0, %v1823_v11  ;;  %v890_v9 = vld [vmem:[#allocation2 + $0x8] sm:$0xff]  ;;  %1306 = vmatprep.subr.bf16.mxu0 %v2109_v17  ;;  %1676 = vmatprep.subr.bf16.mxu1 %v2109_v17  ;;  %vm1003_vm4 = vcmask 392448  }
 0x2d6   : > { %v1827_v19 = vpop.eup %1826  ;;  %1836 = vrcp.f32 %v657_v12  ;;  %v660_v20 = vadd.f32 1.0, %v1825_v14 }
 0x2d7   : > { %1838 = vrcp.f32 %v663_v15  ;;  %v658_v23 = vadd.f32 1.0, %v1827_v19  ;;  %v1587_v15 = vcombine.low %v2666_v6, %v2674_v7  ;;  %v1804_v7 = vld [vmem:[#allocation12 + $0x18] sm:$0xff]  }
 0x2d8   : > { %1840 = vrcp.f32 %v660_v20  ;;  %v1802_v20 = vld [vmem:[#allocation12 + $0x8] sm:$0xff]  }
 0x2d9   : > { %1842 = vrcp.f32 %v658_v23  ;;  %v962_v23 = vsel %vm3119_vm13, 65537, %v2109_v17  ;;  %1307 = vmatpush1.bf16.msra.mxu0 %v1802_v20  ;;  %1685 = vmatpush1.bf16.msra.mxu1 %v1802_v20 }
 0x2da   : > { %1308 = vmatprep.subr.bf16.mxu0 %v2109_v17  ;;  %1677 = vmatprep.subr.bf16.mxu1 %v2109_v17 }
 0x2dc   : > { %v1829_v32 = vpop.eup %1828 }
 0x2dd   : > { %v1831_v35 = vpop.eup %1830  ;;  %v683_v36 = vmul.f32 %v1829_v32, %v2461_v49  ;;  %1309 = vmatpush1.bf16.msra.mxu0 %v1803_v3  ;;  %1686 = vmatpush1.bf16.msra.mxu1 %v1803_v3 }
 0x2de   : > { %v1833_v38 = vpop.eup %1832  ;;  %v688_v41 = vmul.f32 %v1831_v35, %v2465_v44  ;;  %1310 = vmatprep.subr.bf16.mxu0 %v2109_v17  ;;  %1678 = vmatprep.subr.bf16.mxu1 %v2109_v17 }
 0x2df   : > { %v1835_v43 = vpop.eup %1834  ;;  %695 = vst.msk [vmem:[#allocation2 + $0x20] sm:$0xff] %vm377_vm0, %v683_v36  ;;  %v685_v49 = vmul.f32 %v1833_v38, %v2467_v45  ;;  %v965_v45 = vsel %vm957_vm14, 65537, %v2109_v17  ;;  %vm2604_vm14 = vcmp.gt.s32.totalorder %v756_v18, 0 }
 0x2e0   : > { %v1837_v44 = vpop.eup %1836  ;;  %700 = vst.msk [vmem:[#allocation2 + $0x48] sm:$0xff] %vm377_vm0, %v688_v41  ;;  %v686_v51 = vmul.f32 %v1835_v43, %v2469_v46  ;;  %v1592_v63 = vcombine.low %v965_v45, %v966_v52  ;;  %v1586_v52 = vcombine.low %v860_v39, %v861_v31 }
 0x2e1   : > { %v1839_v55 = vpop.eup %1838  ;;  %697 = vst.msk [vmem:[#allocation2 + $0x30] sm:$0xff] %vm377_vm0, %v685_v49  ;;  %v681_v46 = vmul.f32 %v1837_v44, %v2463_v40  ;;  %1311 = vmatpush1.bf16.msra.mxu0 %v1804_v7  ;;  %1687 = vmatpush1.bf16.msra.mxu1 %v1804_v7 }
 0x2e2   : > { %v1841_v58 = vpop.eup %1840  ;;  %698 = vst.msk [vmem:[#allocation2 + $0x38] sm:$0xff] %vm377_vm0, %v686_v51  ;;  %v687_v59 = vmul.f32 %v1839_v55, %v2471_v47  ;;  %v963_v47 = vsel %vm3105_vm11, 65537, %v2109_v17  ;;  %vm856_vm11 = vmpackc.low %vm2604_vm14, %vm2604_vm14  ;;  %vm2683_vm15 = vcmp.ne.s16.totalorder %v1592_v63, 0  ;;  %vm2792_vm14 = vcmp.ne.s16.totalorder %v1587_v15, 0  ;;  %1312 = vmatprep.subr.bf16.mxu0 %v2109_v17  ;;  %1679 = vmatprep.subr.bf16.mxu1 %v2109_v17 }
 0x2e3   : > { %v1843_v61 = vpop.eup %1842  ;;  %693 = vst.msk [vmem:[#allocation2 + $0x10] sm:$0xff] %vm377_vm0, %v681_v46  ;;  %v684_v62 = vmul.f32 %v1841_v58, %v2474_v50  ;;  %v1591_v10 = vcombine.low %v963_v47, %v964_v1  ;;  %v864_v24 = vsel %vm856_vm11, 65537, %v2109_v17  ;;  %vm2839_vm6 = vcmp.ne.s16.totalorder %v1586_v52, 0 }
 0x2e4   : > { %699 = vst.msk [vmem:[#allocation2 + $0x40] sm:$0xff] %vm377_vm0, %v687_v59  ;;  %v682_v50 = vmul.f32 %v1843_v61, %v2479_v54  ;;  %v959_v54 = vsel %vm3111_vm5, 65537, %v2109_v17  ;;  %vm3118_vm5 = vmpackc.low %vm2567_vm9, %vm2567_vm9  ;;  %v1588_v48 = vcombine.low %v864_v24, %v865_v25  ;;  %vm918_vm11 = vcmask 261248  }
 0x2e5   : > { %696 = vst.msk [vmem:[#allocation2 + $0x28] sm:$0xff] %vm377_vm0, %v684_v62  ;;  %v1589_v14 = vcombine.low %v959_v54, %v960_v5  ;;  %v961_v22 = vsel %vm3118_vm5, 65537, %v2109_v17  ;;  %vm2748_vm9 = vcmp.ne.s16.totalorder %v1591_v10, 0 }
 0x2e6   : > { %694 = vst.msk [vmem:[#allocation2 + $0x18] sm:$0xff] %vm377_vm0, %v682_v50  ;;  %v1590_v49 = vcombine.low %v961_v22, %v962_v23  ;;  %vm2825_vm1 = vcmp.ne.s16.totalorder %v1588_v48, 0  ;;  %v1805_v22 = vld [vmem:[#allocation12 + $0x20] sm:$0xff]  }
 0x2e7   : > { %v2687_v12 = vld [vmem:[#allocation2 + $0x49] sm:$0xff]  ;;  %vm2772_vm10 = vcmp.ne.s16.totalorder %v1589_v14, 0  ;;  %v1153_v14 = vld [vmem:[#allocation2 + $0x20] sm:$0xff]  ;;  %1313 = vmatpush1.bf16.msra.mxu0 %v1805_v22  ;;  %1688 = vmatpush1.bf16.msra.mxu1 %v1805_v22 }
 0x2e8   : > { %v1049_v13 = vld [vmem:[#allocation2 + $0x30] sm:$0xff]  ;;  %v1196_v19 = vpack.c.bf16 %v1192_v8, %v2687_v12  ;;  %vm2821_vm12 = vcmp.ne.s16.totalorder %v1590_v49, 0  ;;  %1314 = vmatprep.subr.bf16.mxu0 %v2109_v17  ;;  %1680 = vmatprep.subr.bf16.mxu1 %v2109_v17 }
 0x2e9   : > { %v1050_v21 = vld [vmem:[#allocation2 + $0x38] sm:$0xff] }
 0x2ea   : > { %v1055_v26 = vpack.c.bf16 %v1050_v21, %v1049_v13  ;;  %v2725_v27 = vld [vmem:[#allocation2 + $0x10] sm:$0xff]  ;;  %v1200_v30 = vsel %vm2683_vm15, %v1196_v19, 0 }
 0x2eb   : > { %v2727_v28 = vld [vmem:[#allocation2 + $0x31] sm:$0xff]  ;;  %v898_v32 = vpack.c.bf16 %v2725_v27, %v890_v9  ;;  %v2746_v33 = vld [vmem:[#allocation2 + $0x40] sm:$0xff]  ;;  %1204 = vst.msk [vmem:[#allocation3 + $0x38] sm:$0xff] %vm377_vm0, %v1200_v30  ;;  %v2849_v9 = vld [vmem:[#allocation2 + $0x48] sm:$0xff] }
 0x2ec   : > { %v2729_v29 = vld [vmem:[#allocation2 + $0xf] sm:$0xff]  ;;  %v2752_v35 = vld [vmem:[#allocation2 + $0x39] sm:$0xff]  ;;  %v2754_v36 = vld [vmem:[#allocation2 + $0x41] sm:$0xff]  ;;  %1065 = vrot.lane.b32.xlu1 %v1055_v26, %s2110_s27  ;;  %v1162_v53 = vpack.c.bf16 %v2746_v33, %v1050_v21  ;;  %v1056_v21 = vpack.c.bf16 %v2849_v9, %v2746_v33 }
 0x2ed   : > { %v830_v37 = vpack.c.bf16 %v2729_v29, %v822_v16  ;;  %v2761_v38 = vld [vmem:[#allocation2 + $0x28] sm:$0xff]  ;;  %v2767_v42 = vpack.c.bf16 %v2754_v36, %v2752_v35  ;;  %906 = vrot.lane.b32.xlu0 %v898_v32, %s2111_s7  ;;  %v2776_v51 = vld [vmem:[#allocation2 + $0x19] sm:$0xff]  ;;  %v924_v16 = vld [vmem:[#allocation2 + $0x11] sm:$0xff]  ;;  %v1088_v49 = vpack.c.bf16 %v2752_v35, %v2727_v28 }
 0x2ee   : > { %v2763_v41 = vld [vmem:[#allocation2 + $0x21] sm:$0xff]  ;;  %v2769_v43 = vld [vmem:[#allocation2 + $0x29] sm:$0xff]  ;;  %v2796_v58 = vld [vmem:[#allocation2 + $0x37] sm:$0xff]  ;;  %v2800_v59 = vpack.c.bf16 %v1049_v13, %v2761_v38  ;;  %v1054_v31 = vpack.c.bf16 %v2761_v38, %v1153_v14  ;;  %v1086_v48 = vpack.c.bf16 %v2776_v51, %v924_v16 }
 0x2ef   : > { %v882_v45 = vsel %vm2696_vm8, %v830_v37, 0  ;;  %v2783_v55 = vpack.c.bf16 %v2763_v41, %v2776_v51  ;;  %v1199_v46 = vsel %vm2748_vm9, %v2767_v42, 0  ;;  %v2788_v56 = vld [vmem:[#allocation2 + $0x27] sm:$0xff]  ;;  %v2790_v57 = vld [vmem:[#allocation2 + $0x2f] sm:$0xff]  ;;  %v2805_v60 = vpack.c.bf16 %v2727_v28, %v2769_v43  ;;  %v2811_v62 = vld [vmem:[#allocation2 + $0x17] sm:$0xff] }
 0x2f0   : > { %886 = vst.msk [vmem:[#allocation3] sm:$0xff] %vm377_vm0, %v882_v45  ;;  %1203 = vst.msk [vmem:[#allocation3 + $0x28] sm:$0xff] %vm377_vm0, %v1199_v46  ;;  %v2809_v61 = vpack.c.bf16 %v2790_v57, %v2788_v56  ;;  %v2813_v47 = vld [vmem:[#allocation2 + $0x3f] sm:$0xff]  ;;  %1172 = vrot.lane.b32.xlu1 %v1162_v53, %s2112_s11  ;;  %v923_v15 = vld [vmem:[#allocation2 + $0x9] sm:$0xff]  ;;  %v1018_v32 = vpack.c.bf16 %v2796_v58, %v2790_v57  ;;  %v1016_v33 = vpack.c.bf16 %v2811_v62, %v2729_v29 }
 0x2f1   : > { %v2815_v63 = vld [vmem:[#allocation2 + $0x1f] sm:$0xff]  ;;  %v1197_v50 = vsel %vm2772_vm10, %v2783_v55, 0  ;;  %910 = vrot.lane.b32.xlu0 %v2800_v59, %s2111_s7  ;;  %v2837_v54 = vpack.c.bf16 %v2813_v47, %v2796_v58  ;;  %v1198_v10 = vsel %vm2821_vm12, %v2805_v60, 0  ;;  %v931_v24 = vpack.c.bf16 %v924_v16, %v923_v15  ;;  %v1808_v37 = vld [vmem:[#allocation12 + $0x38] sm:$0xff]   ;;  %v1809_v45 = vld [vmem:[#allocation12 + $0x40] sm:$0xff]  }
 0x2f2   : > { %v1046_v0 = vld [vmem:[#allocation2 + $0x18] sm:$0xff]  ;;  %1201 = vst.msk [vmem:[#allocation3 + $0x8] sm:$0xff] %vm377_vm0, %v1197_v50  ;;  %v884_v4 = vsel %vm2792_vm14, %v2809_v61, 0  ;;  %v2846_v6 = vpack.c.bf16 %v2815_v63, %v2811_v62  ;;  %1202 = vst.msk [vmem:[#allocation3 + $0x18] sm:$0xff] %vm377_vm0, %v1198_v10  ;;  %v1807_v30 = vld [vmem:[#allocation12 + $0x30] sm:$0xff]   ;;  %v985_v39 = vsel %vm2748_vm9, %v2805_v60, 0  ;;  %v1017_v46 = vpack.c.bf16 %v2788_v56, %v2815_v63 }
 0x2f3   : > { %888 = vst.msk [vmem:[#allocation3 + $0x20] sm:$0xff] %vm377_vm0, %v884_v4  ;;  %v1053_v8 = vpack.c.bf16 %v1046_v0, %v2725_v27  ;;  %v885_v13 = vsel %vm2825_vm1, %v2837_v54, 0  ;;  %v1160_v23 = vpack.c.bf16 %v1153_v14, %v1046_v0  ;;  %v1806_v26 = vld [vmem:[#allocation12 + $0x28] sm:$0xff]   ;;  %v983_v27 = vsel %vm2772_vm10, %v931_v24, 0  ;;  %v1015_v52 = vld [vmem:[#allocation2 + $0x47] sm:$0xff] }
 0x2f4   : > { %912 = vrot.lane.b32.xlu1 %v1162_v53, %s2111_s7  ;;  %889 = vst.msk [vmem:[#allocation3 + $0x30] sm:$0xff] %vm377_vm0, %v885_v13  ;;  %v883_v19 = vsel %vm2839_vm6, %v2846_v6, 0  ;;  %1315 = vmatpush1.bf16.msra.mxu0 %v1806_v26  ;;  %v1022_v38 = vsel %vm2792_vm14, %v1018_v32, 0  ;;  %v1020_v29 = vsel %vm2696_vm8, %v1016_v33, 0  ;;  %v1092_v28 = vsel %vm2748_vm9, %v1088_v49, 0 }
 0x2f5   : > { %1061 = vrot.lane.b32.xlu0 %v1053_v8, %s2110_s27  ;;  %887 = vst.msk [vmem:[#allocation3 + $0x10] sm:$0xff] %vm377_vm0, %v883_v19  ;;  %1689 = vmatpush1.bf16.msra.mxu1 %v1806_v26  ;;  %v1090_v35 = vsel %vm2772_vm10, %v1086_v48, 0  ;;  %v1129_v51 = vsel %vm2792_vm14, %v2837_v54, 0  ;;  %v1127_v34 = vsel %vm2696_vm8, %v2846_v6, 0  ;;  %v1019_v44 = vpack.c.bf16 %v1015_v52, %v2813_v47 }
 0x2f6   : > { %1316 = vmatprep.subr.bf16.mxu0 %v2109_v17  ;;  %1681 = vmatprep.subr.bf16.mxu1 %v2109_v17  ;;  %v984_v53 = vsel %vm2821_vm12, %v2783_v55, 0  ;;  %v1089_v57 = vpack.c.bf16 %v2687_v12, %v2754_v36  ;;  %v1087_v40 = vpack.c.bf16 %v2769_v43, %v2763_v41  ;;  %v1122_v55 = vld [vmem:[#allocation2 + $0x4f] sm:$0xff]  ;;  %v1128_v41 = vsel %vm2839_vm6, %v2809_v61, 0 }
 0x2f7   : > { %v1210_v20 = vld [vmem:[#allocation3 + $0x28] sm:$0xff]  ;;  %v1023_v18 = vsel %vm2825_vm1, %v1019_v44, 0  ;;  %v1126_v58 = vpack.c.bf16 %v1122_v55, %v1015_v52  ;;  %v1159_v36 = vld [vmem:[#allocation2 + $0x50] sm:$0xff]  ;;  %vm1180_vm8 = vcmask 1048448  }
 0x2f8   : > { %1605 = vmatprep.mubr.msk.bf16.mxu1 %vm377_vm0, %v1210_v20  ;;  %1067 = vrot.lane.b32.xlu1 %v1056_v21, %s2110_s27  ;;  %v1093_v56 = vsel %vm2683_vm15, %v1089_v57, 0  ;;  %v1091_v60 = vsel %vm2821_vm12, %v1087_v40, 0  ;;  %v1163_v43 = vpack.c.bf16 %v1159_v36, %v2849_v9  ;;  %v1212_v20 = vld [vmem:[#allocation3 + $0x38] sm:$0xff] }
 0x2f9   : > { %v1206_v25 = vld [vmem:[#allocation3 + $0x8] sm:$0xff]  ;;  %1168 = vrot.lane.b32.xlu0 %v1160_v23, %s2112_s11  ;;  %1317 = vmatpush1.bf16.msra.mxu0 %v1807_v30  ;;  %v1130_v12 = vsel %vm2825_vm1, %v1126_v58, 0  ;;  %v1208_v21 = vld [vmem:[#allocation3 + $0x18] sm:$0xff] }
 0x2fa   : > { %1603 = vmatprep.mubr.msk.bf16.mxu0 %vm377_vm0, %v1206_v25  ;;  %1690 = vmatpush1.bf16.msra.mxu1 %v1807_v30 }
 0x2fb   : > { %1318 = vmatprep.subr.bf16.mxu0 %v2109_v17  ;;  %1682 = vmatprep.subr.bf16.mxu1 %v2109_v17 }
 0x2fc   : > { %991 = vrot.lane.b32.xlu1 %v983_v27, %s2113_s19 }
 0x2fd   : > { %908 = vrot.lane.b32.xlu0 %v1160_v23, %s2111_s7  ;;  %1319 = vmatpush1.bf16.msra.mxu0 %v1808_v37 }
 0x2fe   : > { %1691 = vmatpush1.bf16.msra.mxu1 %v1808_v37  ;;  %1320 = vmatprep.subr.bf16.mxu0 %v2109_v17 }
 0x2ff   : > { %1683 = vmatprep.subr.bf16.mxu1 %v2109_v17  ;;  %v986_v17 = vsel %vm2683_vm15, %v2767_v42, 0  ;;  %v1021_v42 = vsel %vm2839_vm6, %v1017_v46, 0  ;;  %vm1110_vm15 = vcmask 786048  }
 0x300   : > { %995 = vrot.lane.b32.xlu1 %v985_v39, %s2113_s19 }
 0x301   : > { %1063 = vrot.lane.b32.xlu0 %v1054_v31, %s2110_s27  ;;  %1321 = vmatpush1.bf16.msra.mxu0 %v1809_v45  ;;  %v1593_v31 = vld [vmem:[%s325_s29] ss:$0 sm:$0xff]  ;;  %s2020_s29 = sshll.u32 %s2117_s0, 4  ;;  %s2021_s29 = int_to_ptr.vmem [resolvable:$false] %s2020_s29 }
 0x302   : > { %1692 = vmatpush1.bf16.msra.mxu1 %v1809_v45  ;;  %s2022_s7 = scalar_lea.vmem %s2021_s29, 1024  ;;  %p2023_p0 = scmp.lt.s32.totalorder %s2996_s12, %s2021_s29 }
 0x303   : > { %p2024_p6 = scmp.lt.s32.totalorder %s2022_s7, %s2016_s20 }
 0x304   : > { %1032 = vrot.lane.b32.xlu1 %v1022_v38, %s2114_s10 }
 0x305   : > { %1028 = vrot.lane.b32.xlu0 %v1020_v29, %s2114_s10  ;;  %p2025_p8 = por %p2024_p6, %p2023_p0 }
 0x307   : > { %p2026_p10 = pnand %p2025_p8, %p2019_p13 }
 0x308   : > { %1102 = vrot.lane.b32.xlu1 %v1092_v28, %s2115_s13 }
 0x309   : > { %1098 = vrot.lane.b32.xlu0 %v1090_v35, %s2115_s13 }
 0x30c   : > { %1139 = vrot.lane.b32.xlu1 %v1129_v51, %s2116_s26 }
 0x30d   : > { %1135 = vrot.lane.b32.xlu0 %v1127_v34, %s2116_s26 }
 0x310   : > { %997 = vrot.lane.b32.xlu1 %v986_v17, %s2113_s19 }
 0x311   : > { %993 = vrot.lane.b32.xlu0 %v984_v53, %s2113_s19 }
 0x314   : > { %1034 = vrot.lane.b32.xlu1 %v1023_v18, %s2114_s10 }
 0x315   : > { %1030 = vrot.lane.b32.xlu0 %v1021_v42, %s2114_s10 }
 0x318   : > { %1104 = vrot.lane.b32.xlu1 %v1093_v56, %s2115_s13 }
 0x319   : > { %1100 = vrot.lane.b32.xlu0 %v1091_v60, %s2115_s13 }
 0x31c   : > { %1141 = vrot.lane.b32.xlu1 %v1130_v12, %s2116_s26 }
 0x31d   : > { %1137 = vrot.lane.b32.xlu0 %v1128_v41, %s2116_s26 }
 0x320   : > { %1174 = vrot.lane.b32.xlu1 %v1163_v43, %s2112_s11 }
 0x321   : > { %1170 = vrot.lane.b32.xlu0 %v2800_v59, %s2112_s11 }
 0x35e   : > { %v1066_v11 = vpop.permute.xlu1 %1065 }
 0x35f   : > { %v907_v62 = vpop.permute.xlu0 %906 }
 0x360   : > { %919 = vst.msk [vmem:[#allocation3] sm:$0xff] %vm918_vm11, %v907_v62 }
 0x362   : > { %v1173_v47 = vpop.permute.xlu1 %1172 }
 0x363   : > { %v911_v63 = vpop.permute.xlu0 %910 }
 0x364   : > { %921 = vst.msk [vmem:[#allocation3 + $0x20] sm:$0xff] %vm918_vm11, %v911_v63 }
 0x366   : > { %v913_v0 = vpop.permute.xlu1 %912 }
 0x367   : > { %922 = vst.msk [vmem:[#allocation3 + $0x30] sm:$0xff] %vm918_vm11, %v913_v0  ;;  %v1062_v61 = vpop.permute.xlu0 %1061 }
 0x36a   : > { %v1068_v50 = vpop.permute.xlu1 %1067 }
 0x36b   : > { %v1169_v1 = vpop.permute.xlu0 %1168 }
 0x36e   : > { %v992_v2 = vpop.permute.xlu1 %991 }
 0x36f   : > { %1004 = vst.msk [vmem:[#allocation3] sm:$0xff] %vm1003_vm4, %v992_v2  ;;  %v909_v59 = vpop.permute.xlu0 %908 }
 0x370   : > { %920 = vst.msk [vmem:[#allocation3 + $0x10] sm:$0xff] %vm918_vm11, %v909_v59 }
 0x372   : > { %v996_v3 = vpop.permute.xlu1 %995 }
 0x373   : > { %1006 = vst.msk [vmem:[#allocation3 + $0x20] sm:$0xff] %vm1003_vm4, %v996_v3  ;;  %v1064_v4 = vpop.permute.xlu0 %1063 }
 0x376   : > { %v1033_v54 = vpop.permute.xlu1 %1032 }
 0x377   : > { %1043 = vst.msk [vmem:[#allocation3 + $0x20] sm:$0xff] %vm1040_vm2, %v1033_v54  ;;  %v1029_v5 = vpop.permute.xlu0 %1028 }
 0x378   : > { %1041 = vst.msk [vmem:[#allocation3] sm:$0xff] %vm1040_vm2, %v1029_v5 }
 0x379   : > { %1076 = vst.msk [vmem:[#allocation3 + $0x20] sm:$0xff] %vm1073_vm3, %v1066_v11  ;;  %1074 = vst.msk [vmem:[#allocation3] sm:$0xff] %vm1073_vm3, %v1062_v61 }
 0x37a   : > { %v1103_v6 = vpop.permute.xlu1 %1102 }
 0x37b   : > { %1113 = vst.msk [vmem:[#allocation3 + $0x20] sm:$0xff] %vm1110_vm15, %v1103_v6  ;;  %v1099_v7 = vpop.permute.xlu0 %1098 }
 0x37c   : > { %1111 = vst.msk [vmem:[#allocation3] sm:$0xff] %vm1110_vm15, %v1099_v7 }
 0x37e   : > { %v1140_v8 = vpop.permute.xlu1 %1139 }
 0x37f   : > { %1150 = vst.msk [vmem:[#allocation3 + $0x20] sm:$0xff] %vm1147_vm7, %v1140_v8  ;;  %v1136_v9 = vpop.permute.xlu0 %1135 }
 0x380   : > { %1183 = vst.msk [vmem:[#allocation3 + $0x20] sm:$0xff] %vm1180_vm8, %v1173_v47 }
 0x381   : > { %1148 = vst.msk [vmem:[#allocation3] sm:$0xff] %vm1147_vm7, %v1136_v9 }
 0x382   : > { %1181 = vst.msk [vmem:[#allocation3] sm:$0xff] %vm1180_vm8, %v1169_v1  ;;  %v998_v10 = vpop.permute.xlu1 %997 }
 0x383   : > { %1007 = vst.msk [vmem:[#allocation3 + $0x30] sm:$0xff] %vm1003_vm4, %v998_v10  ;;  %v994_v13 = vpop.permute.xlu0 %993 }
 0x384   : > { %1005 = vst.msk [vmem:[#allocation3 + $0x10] sm:$0xff] %vm1003_vm4, %v994_v13 }
 0x386   : > { %v1035_v14 = vpop.permute.xlu1 %1034 }
 0x387   : > { %1044 = vst.msk [vmem:[#allocation3 + $0x30] sm:$0xff] %vm1040_vm2, %v1035_v14  ;;  %v1031_v15 = vpop.permute.xlu0 %1030  ;;  %v1209_v16 = vld [vmem:[#allocation3 + $0x20] sm:$0xff] }
 0x388   : > { %1077 = vst.msk [vmem:[#allocation3 + $0x30] sm:$0xff] %vm1073_vm3, %v1068_v50  ;;  %1353 = vmatmul.mubr.bf16.vlgmr.msra.gmra.mrb[4].mxu1 %v1209_v16 }
 0x389   : > { %1042 = vst.msk [vmem:[#allocation3 + $0x10] sm:$0xff] %vm1040_vm2, %v1031_v15  ;;  %v1205_v19 = vld [vmem:[#allocation3] sm:$0xff]  ;;  %1606 = vmatprep.mubr.msk.bf16.mxu1 %vm377_vm0, %v1212_v20 }
 0x38a   : > { %1075 = vst.msk [vmem:[#allocation3 + $0x10] sm:$0xff] %vm1073_vm3, %v1064_v4  ;;  %1337 = vmatmul.mubr.bf16.vlgmr.msra.gmra.mrb[4].mxu0 %v1205_v19  ;;  %v1105_v22 = vpop.permute.xlu1 %1104 }
 0x38b   : > { %1604 = vmatprep.mubr.msk.bf16.mxu0 %vm377_vm0, %v1208_v21  ;;  %1114 = vst.msk [vmem:[#allocation3 + $0x30] sm:$0xff] %vm1110_vm15, %v1105_v22  ;;  %v1101_v23 = vpop.permute.xlu0 %1100  ;;  %vm1401_vm0 = vcmask 125952  }
 0x38c   : > { %1112 = vst.msk [vmem:[#allocation3 + $0x10] sm:$0xff] %vm1110_vm15, %v1101_v23 }
 0x38e   : > { %v1142_v24 = vpop.permute.xlu1 %1141 }
 0x38f   : > { %1151 = vst.msk [vmem:[#allocation3 + $0x30] sm:$0xff] %vm1147_vm7, %v1142_v24  ;;  %v1138_v25 = vpop.permute.xlu0 %1137 }
 0x390   : > { %1149 = vst.msk [vmem:[#allocation3 + $0x10] sm:$0xff] %vm1147_vm7, %v1138_v25 }
 0x392   : > { %v1175_v26 = vpop.permute.xlu1 %1174 }
 0x393   : > { %1184 = vst.msk [vmem:[#allocation3 + $0x30] sm:$0xff] %vm1180_vm8, %v1175_v26  ;;  %v1171_v27 = vpop.permute.xlu0 %1170 }
 0x394   : > { %1182 = vst.msk [vmem:[#allocation3 + $0x10] sm:$0xff] %vm1180_vm8, %v1171_v27 }
 0x39a   : > { %v1211_v30 = vld [vmem:[#allocation3 + $0x30] sm:$0xff] }
 0x39b   : > { %v1207_v39 = vld [vmem:[#allocation3 + $0x10] sm:$0xff]  ;;  %1361 = vmatmul.mubr.bf16.gmra.mrb[8].mxu1 %v1211_v30 }
 0x39c   : > { %1345 = vmatmul.mubr.bf16.gmra.mrb[8].mxu0 %v1207_v39 }
 0x45b   : > { %v1354_v32 = vpop.f32.mrb[4].mxu1 }
 0x45c   : > { %v1355_v37 = vadd.f32 %v1593_v31, %v1354_v32  ;;  %v1356_v38 = vpop.f32.mrb[5].mxu1 }
 0x45d   : > { %v1338_v33 = vpop.f32.mrb[4].mxu0  ;;  %v1357_v48 = vpop.f32.mrb[6].mxu1 }
 0x45e   : > { %v1339_v49 = vadd.f32 %v1593_v31, %v1338_v33  ;;  %v1340_v29 = vpop.f32.mrb[5].mxu0  ;;  %v1625_v45 = vpack.c.bf16 %v1355_v37, %v1355_v37  ;;  %v1358_v35 = vadd.f32 %v1593_v31, %v1357_v48  ;;  %v1359_v51 = vpop.f32.mrb[7].mxu1 }
 0x45f   : > { %v1341_v28 = vpop.f32.mrb[6].mxu0 }
 0x460   : > { %v1621_v34 = vpack.c.bf16 %v1339_v49, %v1339_v49  ;;  %v1342_v52 = vadd.f32 %v1593_v31, %v1341_v28  ;;  %v1343_v17 = vpop.f32.mrb[7].mxu0  ;;  %1406 = vst.msk [vmem:[%s357_s15 + $0x10] sm:$0xf] %vm1401_vm0, %v1625_v45  ;;  %v1626_v44 = vpack.c.bf16 %v1358_v35, %v1358_v35 }
 0x462   : > { %1402 = vst.msk [vmem:[%s357_s15] sm:$0xf] %vm1401_vm0, %v1621_v34  ;;  %v1622_v53 = vpack.c.bf16 %v1342_v52, %v1342_v52  ;;  %1407 = vst.msk [vmem:[%s357_s15 + $0x14] sm:$0xf] %vm1401_vm0, %v1626_v44 }
 0x464   : > { %1403 = vst.msk [vmem:[%s357_s15 + $0x4] sm:$0xf] %vm1401_vm0, %v1622_v53 }
 0x46e   : > { %v1362_v46 = vpop.f32.mrb[8].mxu1 }
 0x46f   : > { %v1346_v18 = vpop.f32.mrb[8].mxu0  ;;  %v1363_v57 = vadd.f32 %v1593_v31, %v1362_v46  ;;  %v1364_v42 = vpop.f32.mrb[9].mxu1 }
 0x470   : > { %v1347_v40 = vadd.f32 %v1593_v31, %v1346_v18  ;;  %v1348_v55 = vpop.f32.mrb[9].mxu0  ;;  %v1365_v56 = vpop.f32.mrb[10].mxu1 }
 0x471   : > { %v1627_v58 = vpack.c.bf16 %v1363_v57, %v1363_v57  ;;  %v1349_v60 = vpop.f32.mrb[10].mxu0  ;;  %v1366_v12 = vadd.f32 %v1593_v31, %v1365_v56  ;;  %v1367_v36 = vpop.f32.mrb[11].mxu1 }
 0x472   : > { %v1623_v41 = vpack.c.bf16 %v1347_v40, %v1347_v40  ;;  %v1350_v43 = vadd.f32 %v1593_v31, %v1349_v60  ;;  %v1351_v11 = vpop.f32.mrb[11].mxu0 }
 0x473   : > { %1408 = vst.msk [vmem:[%s357_s15 + $0x18] sm:$0xf] %vm1401_vm0, %v1627_v58  ;;  %v1628_v62 = vpack.c.bf16 %v1366_v12, %v1366_v12 }
 0x474   : > { %1404 = vst.msk [vmem:[%s357_s15 + $0x8] sm:$0xf] %vm1401_vm0, %v1623_v41  ;;  %v1624_v47 = vpack.c.bf16 %v1350_v43, %v1350_v43 }
 0x475   : > { %1409 = vst.msk [vmem:[%s357_s15 + $0x1c] sm:$0xf] %vm1401_vm0, %v1628_v62 }
 0x476   : > { %1405 = vst.msk [vmem:[%s357_s15 + $0xc] sm:$0xf] %vm1401_vm0, %v1624_v47 }
 0x477   : > { %2029 = shalt.err (!%p2026_p10)
}
 0x478   : > { %s2030_s11 = scalar_lea.hbm %s2993_s18, 512  ;;  %s2034_s13 = scalar_lea.hbm %s3050_s6, 1024 }
 0x479   : > { %p2031_p4 = scmp.ne.s32.totalorder %s2993_s18, %s2030_s11  ;;  %p2035_p9 = scmp.lt.u32.totalorder %s2993_s18, %s3050_s6 }
 0x47a   : > { %p2036_p5 = scmp.lt.u32.totalorder %s2034_s13, %s2030_s11  ;;  %p2038_p12 = scmp.lt.u32.totalorder %s2030_s11, %s2993_s18 }
 0x47b   : > { %p2032_p3 = pnand %p2031_p4, %p3132_p2 }
 0x47c   : > { %p2037_p7 = por %p2036_p5, %p2035_p9 }
 0x47d   : > { %p2033_p11 = pneg %p2032_p3 }
 0x47e   : > { %p2039_p1 = por %p2038_p12, %p2037_p7 }
 0x480   : > { %p2040_p13 = pnand %p2039_p1, %p2033_p11 }
 0x482   : > { %2043 = shalt.err (!%p2040_p13)
}
 0x483   : > { %s2118_s17 = smov 4  }
 0x484   : > { %1713 = dma.vmem_to_hbm [thread:$0]  (%p3132_p2), %s2996_s12, 512, %s2993_s18, %s1411_s25, %s2110_s27, %s2110_s27, %s2118_s17  }
 0x485 PF: > { %s1439_s9 = sand.u32 1, %s2082_s21   ;;  %p3133_p0 = scmp.ne.s32.totalorder %s3059_s28, 0 }
 0x486   : > { %p3134_p6 = scmp.ge.s32.totalorder %s2094_s24, 2  ;;  %s1440_s16 = scalar_lea.sflag [#allocation6], %s1439_s9 }
 0x488   : > { %p1736_p8 = pnand %p3134_p6, %p3133_p0 }
 0x48a   : > { %2077 = dma.done.wait (!%p1736_p8), %s1440_s16, 512  }
 0x48b   : > { %2079 = vsyncadd (!%p1736_p8), %s1440_s16, 4294966784  ;;  %p24_p10 = scmp.ge.s32.totalorder %s2307_s30, 4   ;;  %s3135_s21 = smov %s2086_s22 }
 0x48c   : > { %s3136_s22 = smov %s2090_s23  ;;  %s3137_s23 = smov %s2316_s14 }
 0x48d   : > { %s3138_s24 = smov %s2307_s30  ;;  %26 = sbr.rel (!%p24_p10) target bundleno = 12 (0xc), region = 118 }
 0x494   :  { %1445 = vsyncpa [#allocation5], 1 }
 0x495   :  { %1447 = vsyncpa [#allocation5 + $0x1], 1 }
 0x496   :  { %1448 = vsyncpa [#allocation8], 1 }
 0x497   :  { %1449 = vsyncpa [#allocation11], 1 }
 0x498   :  { %1450 = vsyncpa [#allocation14], 1 }
 0x499   :  { %1452 = vsyncpa [#allocation14 + $0x1], 1 }
 0x49a   :  { %1453 = vsyncpa [#allocation6], 1 }
 0x49b   :  { %1455 = vsyncpa [#allocation6 + $0x1], 1 }

// kernel: midblock_forward.6
= control target key start
LH: loop header
LB: loop body
LE: loop exit
PB: predicated region body
PF: predicated region fallthrough
CT: control target
= control target key end

     0   :  { %s3278_s0 = inlined_call_operand.hbm [shape: bf16[2,64,16], index: 0, kind: input, shape index: {}]   ;;  %s3279_s1 = inlined_call_operand.hbm [shape: f32[16,16], index: 1, kind: input, shape index: {}]   ;;  %s3280_s2 = inlined_call_operand.hbm [shape: f32[1,16], index: 2, kind: input, shape index: {}]   ;;  %s3281_s3 = inlined_call_operand.hbm [shape: f32[1,16], index: 3, kind: input, shape index: {}]   ;;  %s3282_s4 = inlined_call_operand.hbm [shape: bf16[152,16], index: 4, kind: input, shape index: {}]   ;;  %s3283_s5 = inlined_call_operand.hbm [shape: f32[1,1,16], index: 5, kind: input, shape index: {}]   ;;  %s3284_s6 = inlined_call_operand.hbm [shape: bf16[2,64,8], index: 6, kind: input, shape index: {}]   ;;  %s3285_s7 = inlined_call_operand.hbm [shape: bf16[2,64,16], index: 7, kind: output, shape index: {}]  }
   0x1   :  { %3302 = sst [smem:[#allocation28_spill]] %s3278_s0 }
   0x2   :  { %3303 = sst [smem:[#allocation29_spill]] %s3279_s1 }
   0x3   :  { %3304 = sst [smem:[#allocation30_spill]] %s3281_s3 }
   0x4   :  { %12 = vsyncpa [#allocation5], 0 }
   0x5   :  { %14 = vsyncpa [#allocation5 + $0x1], 0 }
   0x6   :  { %15 = vsyncpa [#allocation8], 0 }
   0x7   :  { %16 = vsyncpa [#allocation11], 0 }
   0x8   :  { %17 = vsyncpa [#allocation14], 0 }
   0x9   :  { %18 = vsyncpa [#allocation6], 0 }
   0xa   :  { %20 = vsyncpa [#allocation6 + $0x1], 0  ;;  %s2327_s24 = smov 0   ;;  %s2329_s25 = smov 0  }
   0xb   :  { %s2331_s26 = smov 0   ;;  %s2333_s27 = smov 0  }
   0xc LB: > { %3305 = sst [smem:[#allocation23_spill]] %s2257_s26  ;;  %s2263_s28 = smov [#allocation7]   ;;  %s2261_s27 = sphi %s2333_s27, %s3396_s27   ;;  %s2257_s26 = sphi %s2331_s26, %s3398_s26   ;;  %s2253_s25 = sphi %s2329_s25, %s3400_s25   ;;  %s2249_s24 = sphi %s2327_s24, %s3399_s24  }
   0xd   : > { %3306 = sst [smem:[#allocation24_spill]] %s2261_s27  ;;  %s226_s29 = sshll.u32 %s2263_s28, 4  ;;  %s2353_s29 = int_to_ptr.vmem [resolvable:$true] %s226_s29 }
   0xe   : > { %s2348_s30 = sadd.s32 4294967295, %s2261_s27   ;;  %p1663_p0 = scmp.ge.s32.totalorder %s2261_s27, 1 }
   0xf   : > { %p3290_p1 = scmp.eq.s32.totalorder %s2348_s30, 0  ;;  %p214_p2 = scmp.lt.s32.totalorder %s2261_s27, 3 }
  0x10   : > { %s2264_s9 = smov [#allocation10]   ;;  %s3309_s1 = sld [smem:[#allocation29_spill]] }
  0x11   : > { %p2355_p3 = pnand %p1663_p0, %p214_p2  ;;  %s251_s10 = sshll.u32 %s2264_s9, 4  ;;  %s2368_s10 = int_to_ptr.vmem [resolvable:$true] %s251_s10 }
  0x13   : > { %s3307_s8 = scalar_select %p2355_p3, 1, 0 }
  0x14   : > { %p1839_p5 = pneg %p2355_p3 }
  0x16   : > { %p2364_p6 = pnand %p1839_p5, %p3290_p1  ;;  %s1979_s14 = scalar_lea.hbm %s3309_s1, 256 }
  0x17   : > { %p1980_p7 = scmp.ne.s32.totalorder %s3309_s1, %s1979_s14  ;;  %p1986_p11 = scmp.lt.u32.totalorder %s1979_s14, %s3309_s1 }
  0x18   : > { %s3308_s11 = scalar_select %p2364_p6, 1, 0 }
  0x19   : > { %p2378_p8 = pneg %p2364_p6 }
  0x1b   : > { %p1982_p9 = pnand %p2378_p8, %p1980_p7 }
  0x1d   : > { %p1983_p10 = pneg %p1982_p9 }
  0x1f   : > { %p1988_p12 = pnand %p1986_p11, %p1983_p10 }
  0x21   : > { %1991 = shalt.err (!%p1988_p12)
}
  0x22   : > { %s1992_s20 = scalar_lea.vmem %s2353_s29, 256  ;;  %p2000_p5 = scmp.lt.s32.totalorder %s2353_s29, %s2353_s29 }
  0x23   : > { %p1993_p13 = scmp.ne.s32.totalorder %s2353_s29, %s1992_s20  ;;  %p2001_p4 = scmp.lt.s32.totalorder %s1992_s20, %s1992_s20 }
  0x25   : > { %p1995_p0 = pnand %p1993_p13, %p2378_p8  ;;  %p2002_p7 = por %p2001_p4, %p2000_p5 }
  0x27   : > { %p1996_p2 = pneg %p1995_p0 }
  0x29   : > { %p2003_p9 = pnand %p2002_p7, %p1996_p2 }
  0x2b   : > { %2006 = shalt.err (!%p2003_p9)
}
  0x2c   : > { %s2265_s21 = smov 128   ;;  %s2266_s22 = smov 8  }
  0x2d   : > { %1842 = dma.hbm_to_vmem [thread:$0]  (!%p2364_p6), %s3309_s1, 256, %s2353_s29, [#allocation8], %s2265_s21, %s2265_s21, %s2266_s22  }
  0x2e   : > { %s3311_s3 = sld [smem:[#allocation30_spill]] }
  0x34   : > { %s2007_s13 = scalar_lea.hbm %s3311_s3, 16 }
  0x35   : > { %p2008_p4 = scmp.ne.s32.totalorder %s3311_s3, %s2007_s13  ;;  %p2014_p12 = scmp.lt.u32.totalorder %s2007_s13, %s3311_s3 }
  0x37   : > { %p2010_p10 = pnand %p2008_p4, %p2378_p8 }
  0x39   : > { %p2011_p11 = pneg %p2010_p10 }
  0x3b   : > { %p2016_p13 = pnand %p2014_p12, %p2011_p11 }
  0x3d   : > { %2019 = shalt.err (!%p2016_p13)
}
  0x3e   : > { %s2020_s29 = scalar_lea.vmem %s2368_s10, 16  ;;  %s2027_s19 = scalar_lea.vmem %s2368_s10, 32 }
  0x3f   : > { %p2021_p0 = scmp.ne.s32.totalorder %s2368_s10, %s2020_s29  ;;  %p2028_p7 = scmp.lt.s32.totalorder %s2368_s10, %s2368_s10 }
  0x40   : > { %p2029_p9 = scmp.lt.s32.totalorder %s2027_s19, %s2020_s29 }
  0x41   : > { %p2023_p2 = pnand %p2021_p0, %p2378_p8 }
  0x42   : > { %p2030_p4 = por %p2029_p9, %p2028_p7 }
  0x43   : > { %p2024_p5 = pneg %p2023_p2 }
  0x45   : > { %p2031_p10 = pnand %p2030_p4, %p2024_p5 }
  0x47   : > { %2034 = shalt.err (!%p2031_p10)
}
  0x48   : > { %1848 = dma.hbm_to_vmem [thread:$0]  (!%p2364_p6), %s3311_s3, 16, %s2368_s10, [#allocation11]  }
  0x49   : > { %s1662_s22 = sadd.s32 4294967294, %s2261_s27   ;;  %s2425_s23 = sadd.s32 1, %s2261_s27  }
  0x4a   : > { %3312 = sst [smem:[#allocation25_spill]] %s2425_s23  ;;  %s30_s28 = ssub.s32 %s2261_s27, %s2425_s23 }
  0x4b   : > { %s33_s9 = sadd.s32 1, %s2257_s26  ;;  %p31_p11 = scmp.eq.s32.totalorder %s30_s28, 0 }
  0x4c   : > { %p40_p12 = scmp.ne.s32.totalorder %s2257_s26, %s2253_s25  ;;  %p41_p13 = scmp.eq.s32.totalorder %s2261_s27, 0 }
  0x4d   : > { %p46_p0 = scmp.ne.s32.totalorder %s2253_s25, %s2249_s24  ;;  %p201_p7 = scmp.eq.s32.totalorder %s2348_s30, 1 }
  0x4e   : > { %s2436_s12 = scalar_select %p31_p11, %s2257_s26, %s33_s9  }
  0x4f   : > { %p2438_p2 = por %p41_p13, %p40_p12  ;;  %p2444_p5 = por %p3290_p1, %p46_p0 }
  0x50   : > { %3313 = sst [smem:[#allocation26_spill]] %s2436_s12  ;;  %p207_p9 = scmp.eq.s32.totalorder %s1662_s22, 1 }
  0x51   : > { %s3315_s10 = scalar_select %p2444_p5, 1, 0 }
  0x52   : > { %p2449_p4 = por %p201_p7, %p40_p12  ;;  %p2453_p10 = por %p207_p9, %p46_p0 }
  0x53   : > { %p1871_p11 = scmp.lt.s32.totalorder %s2261_s27, 2  ;;  %s286_s16 = sand.u32 1, %s2261_s27  }
  0x54   : > { %s3316_s14 = scalar_select %p2449_p4, 1, 0 }
  0x55   : > { %s3317_s15 = scalar_select %p2453_p10, 1, 0 }
  0x56   : > { %s288_s18 = sand.u32 1, %s2257_s26   ;;  %s1737_s19 = sshll.u32 %s2261_s27, 9 }
  0x57   : > { %3318 = sst [smem:[#allocation27_spill]] %s3317_s15  ;;  %s2460_s29 = sshll.u32 %s288_s18, 5 }
  0x58   : > { %s3319_s0 = sld [smem:[#allocation28_spill]]  ;;  %s290_s22 = scalar_lea.vmem [#allocation4], %s2460_s29 }
  0x59   : > { %s297_s9 = sshll.u32 %s290_s22, 4  ;;  %p2471_p12 = pnand %p1871_p11, %p2438_p2  ;;  %s2475_s9 = int_to_ptr.vmem [resolvable:$true] %s297_s9 }
  0x5a   : > { %s2480_s20 = scalar_lea.hbm %s3284_s6, %s1737_s19  ;;  %s2482_s21 = scalar_lea.sflag [#allocation5], %s286_s16 }
  0x5b   : > { %s3320_s1 = scalar_select %p2471_p12, 1, 0 }
  0x5c   : > { %p3297_p0 = pneg %p2471_p12 }
  0x5e   : > { %s2466_s28 = scalar_lea.hbm %s3319_s0, %s1737_s19  ;;  %s2040_s26 = scalar_lea.hbm %s3319_s0, 1024 }
  0x5f   : > { %s2035_s12 = scalar_lea.hbm %s2466_s28, 512  ;;  %p2041_p9 = scmp.lt.u32.totalorder %s2466_s28, %s3319_s0 }
  0x60   : > { %p2036_p13 = scmp.ne.s32.totalorder %s2466_s28, %s2035_s12  ;;  %p2042_p11 = scmp.lt.u32.totalorder %s2040_s26, %s2035_s12 }
  0x61   : > { %p2044_p10 = scmp.lt.u32.totalorder %s2035_s12, %s2466_s28 }
  0x62   : > { %p2038_p2 = pnand %p3297_p0, %p2036_p13  ;;  %p2043_p1 = por %p2042_p11, %p2041_p9 }
  0x64   : > { %p2039_p7 = pneg %p2038_p2  ;;  %p2045_p4 = por %p2044_p10, %p2043_p1 }
  0x66   : > { %p2046_p5 = pnand %p2045_p4, %p2039_p7 }
  0x68   : > { %2049 = shalt.err (!%p2046_p5)
}
  0x69   : > { %s2050_s3 = scalar_lea.vmem %s2475_s9, 512  ;;  %s2267_s16 = smov [#allocation4]  }
  0x6a   : > { %p2051_p13 = scmp.ne.s32.totalorder %s2475_s9, %s2050_s3  ;;  %s2055_s19 = sshll.u32 %s2267_s16, 4  ;;  %s2056_s19 = int_to_ptr.vmem [resolvable:$false] %s2055_s19 }
  0x6b   : > { %s2057_s27 = scalar_lea.vmem %s2056_s19, 1024  ;;  %p2058_p6 = scmp.lt.s32.totalorder %s2475_s9, %s2056_s19 }
  0x6c   : > { %p2053_p2 = pnand %p2051_p13, %p3297_p0  ;;  %p2059_p9 = scmp.lt.s32.totalorder %s2057_s27, %s2050_s3 }
  0x6e   : > { %p2054_p3 = pneg %p2053_p2  ;;  %p2060_p11 = por %p2059_p9, %p2058_p6 }
  0x70   : > { %p2061_p1 = pnand %p2060_p11, %p2054_p3 }
  0x72   : > { %2064 = shalt.err (!%p2061_p1)
}
  0x73   : > { %s3298_s26 = smov 64   ;;  %s2269_s23 = smov 4  }
  0x74   : > { %1858 = dma.hbm_to_vmem [thread:$0]  (!%p2471_p12), %s2466_s28, 512, %s2475_s9, %s2482_s21, %s3298_s26, %s3298_s26, %s2269_s23  }
  0x75   : > { %s311_s12 = scalar_lea.vmem [#allocation15], %s2460_s29  ;;  %s2270_s13 = smov [#allocation9]  }
  0x76   : > { %s318_s18 = sshll.u32 %s311_s12, 4  ;;  %s240_s22 = sshll.u32 %s2270_s13, 4  ;;  %s2514_s18 = int_to_ptr.vmem [resolvable:$true] %s318_s18  ;;  %s241_s22 = int_to_ptr.vmem [resolvable:$true] %s240_s22 }
  0x77   : > { %s2065_s19 = scalar_lea.hbm %s3280_s2, 16 }
  0x78   : > { %p2066_p3 = scmp.ne.s32.totalorder %s3280_s2, %s2065_s19  ;;  %p2072_p4 = scmp.lt.u32.totalorder %s2065_s19, %s3280_s2 }
  0x7a   : > { %p2068_p6 = pnand %p2066_p3, %p2378_p8 }
  0x7c   : > { %p2069_p5 = pneg %p2068_p6 }
  0x7e   : > { %p2074_p10 = pnand %p2072_p4, %p2069_p5 }
  0x80   : > { %2077 = shalt.err (!%p2074_p10)
}
  0x81   : > { %s2078_s29 = scalar_lea.vmem %s241_s22, 16  ;;  %s2085_s9 = scalar_lea.vmem %s241_s22, 32 }
  0x82   : > { %p2079_p7 = scmp.ne.s32.totalorder %s241_s22, %s2078_s29  ;;  %p2086_p9 = scmp.lt.s32.totalorder %s241_s22, %s241_s22 }
  0x83   : > { %p2087_p11 = scmp.lt.s32.totalorder %s2085_s9, %s2078_s29 }
  0x84   : > { %p2081_p13 = pnand %p2079_p7, %p2378_p8 }
  0x85   : > { %p2088_p1 = por %p2087_p11, %p2086_p9 }
  0x86   : > { %p2082_p2 = pneg %p2081_p13 }
  0x88   : > { %p2089_p0 = pnand %p2088_p1, %p2082_p2 }
  0x8a   : > { %2092 = shalt.err (!%p2089_p0)
}
  0x8b   : > { %p3321_p3 = scmp.ne.s32.totalorder %s3308_s11, 0  ;;  %s2271_s15 = smov [#allocation12]  }
  0x8c   : > { %s261_s13 = sshll.u32 %s2271_s15, 4  ;;  %s2272_s3 = smov [#allocation13]   ;;  %s262_s13 = int_to_ptr.vmem [resolvable:$true] %s261_s13 }
  0x8d   : > { %1845 = dma.hbm_to_vmem [thread:$0]  (!%p3321_p3), %s3280_s2, 16, %s241_s22, [#allocation8]  }
  0x8e   : > { %s275_s16 = sshll.u32 %s2272_s3, 4  ;;  %s2093_s28 = scalar_lea.hbm %s3282_s4, 1216  ;;  %s276_s16 = int_to_ptr.vmem [resolvable:$true] %s275_s16 }
  0x8f   : > { %p2094_p0 = scmp.ne.s32.totalorder %s3282_s4, %s2093_s28  ;;  %p2100_p4 = scmp.lt.u32.totalorder %s2093_s28, %s3282_s4 }
  0x91   : > { %p2096_p6 = pnand %p2094_p0, %p2378_p8 }
  0x93   : > { %p2097_p5 = pneg %p2096_p6 }
  0x95   : > { %p2102_p10 = pnand %p2100_p4, %p2097_p5 }
  0x97   : > { %2105 = shalt.err (!%p2102_p10)
}
  0x98   : > { %s2106_s22 = scalar_lea.vmem %s262_s13, 1216  ;;  %p2114_p9 = scmp.lt.s32.totalorder %s262_s13, %s262_s13 }
  0x99   : > { %p2107_p7 = scmp.ne.s32.totalorder %s262_s13, %s2106_s22  ;;  %p2115_p11 = scmp.lt.s32.totalorder %s2106_s22, %s2106_s22 }
  0x9b   : > { %p2109_p13 = pnand %p2107_p7, %p2378_p8  ;;  %p2116_p1 = por %p2115_p11, %p2114_p9 }
  0x9d   : > { %p2110_p2 = pneg %p2109_p13 }
  0x9f   : > { %p2117_p12 = pnand %p2116_p1, %p2110_p2 }
  0xa1   : > { %2120 = shalt.err (!%p2117_p12)
}
  0xa2   : > { %s3322_s12 = smov 64   ;;  %s2121_s27 = scalar_lea.hbm %s3283_s5, 16 }
  0xa3   : > { %1851 = dma.hbm_to_vmem [thread:$0]  (!%p3321_p3), %s3282_s4, 1216, %s262_s13, [#allocation11], %s3322_s12, %s3322_s12, %s2269_s23  }
  0xa4   : > { %p2122_p0 = scmp.ne.s32.totalorder %s3283_s5, %s2121_s27  ;;  %p2128_p5 = scmp.lt.u32.totalorder %s2121_s27, %s3283_s5 }
  0xa6   : > { %p2124_p12 = pnand %p2122_p0, %p2378_p8 }
  0xa8   : > { %p2125_p6 = pneg %p2124_p12 }
  0xaa   : > { %p2130_p4 = pnand %p2128_p5, %p2125_p6 }
  0xac   : > { %2133 = shalt.err (!%p2130_p4)
}
  0xad   : > { %s2134_s22 = scalar_lea.vmem %s276_s16, 16  ;;  %s2141_s13 = scalar_lea.vmem %s276_s16, 32 }
  0xae   : > { %p2135_p10 = scmp.ne.s32.totalorder %s276_s16, %s2134_s22  ;;  %p2142_p2 = scmp.lt.s32.totalorder %s276_s16, %s276_s16 }
  0xaf   : > { %p2143_p9 = scmp.lt.s32.totalorder %s2141_s13, %s2134_s22 }
  0xb0   : > { %p2137_p7 = pnand %p2135_p10, %p2378_p8 }
  0xb1   : > { %p2144_p11 = por %p2143_p9, %p2142_p2 }
  0xb2   : > { %p2138_p13 = pneg %p2137_p7 }
  0xb4   : > { %p2145_p1 = pnand %p2144_p11, %p2138_p13 }
  0xb6   : > { %2148 = shalt.err (!%p2145_p1)
}
  0xb7   : > { %1854 = dma.hbm_to_vmem [thread:$0]  (!%p3321_p3), %s3283_s5, 16, %s276_s16, [#allocation14]  }
  0xb8   : > { %s2149_s17 = scalar_lea.hbm %s2480_s20, 512  ;;  %p3323_p0 = scmp.ne.s32.totalorder %s3320_s1, 0 }
  0xb9   : > { %p2150_p8 = scmp.ne.s32.totalorder %s2480_s20, %s2149_s17  ;;  %s2154_s27 = scalar_lea.hbm %s3284_s6, 1024 }
  0xba   : > { %p3324_p12 = pneg %p3323_p0  ;;  %p2155_p4 = scmp.lt.u32.totalorder %s2480_s20, %s3284_s6 }
  0xbb   : > { %p2156_p10 = scmp.lt.u32.totalorder %s2154_s27, %s2149_s17  ;;  %p2158_p13 = scmp.lt.u32.totalorder %s2149_s17, %s2480_s20 }
  0xbc   : > { %p2152_p6 = pnand %p2150_p8, %p3324_p12 }
  0xbd   : > { %p2157_p7 = por %p2156_p10, %p2155_p4 }
  0xbe   : > { %p2153_p5 = pneg %p2152_p6 }
  0xbf   : > { %p2159_p2 = por %p2158_p13, %p2157_p7 }
  0xc1   : > { %p2160_p9 = pnand %p2159_p2, %p2153_p5 }
  0xc3   : > { %2163 = shalt.err (!%p2160_p9)
}
  0xc4   : > { %s2164_s16 = scalar_lea.vmem %s2514_s18, 512  ;;  %p3325_p11 = pmov %p3324_p12 }
  0xc5   : > { %p2165_p3 = scmp.ne.s32.totalorder %s2514_s18, %s2164_s16  ;;  %s2273_s29 = smov [#allocation15]  }
  0xc6   : > { %s2169_s9 = sshll.u32 %s2273_s29, 4  ;;  %s2170_s9 = int_to_ptr.vmem [resolvable:$false] %s2169_s9 }
  0xc7   : > { %p2167_p1 = pnand %p2165_p3, %p3325_p11  ;;  %s2171_s0 = scalar_lea.vmem %s2170_s9, 1024 }
  0xc8   : > { %p2172_p12 = scmp.lt.s32.totalorder %s2514_s18, %s2170_s9  ;;  %p2173_p6 = scmp.lt.s32.totalorder %s2171_s0, %s2164_s16 }
  0xc9   : > { %p2168_p8 = pneg %p2167_p1 }
  0xca   : > { %p2174_p4 = por %p2173_p6, %p2172_p12 }
  0xcc   : > { %p2175_p10 = pnand %p2174_p4, %p2168_p8 }
  0xce   : > { %2178 = shalt.err (!%p2175_p10)
}
  0xcf   : > { %1861 = dma.hbm_to_vmem [thread:$0]  (!%p3323_p0), %s2480_s20, 512, %s2514_s18, %s2482_s21, %s3322_s12, %s3322_s12, %s2269_s23  }
  0xd0   : > { %p3326_p5 = scmp.ne.s32.totalorder %s3307_s8, 0 }
  0xd1   : > { %s332_s22 = sand.u32 (!%p3326_p5), 1, %s2348_s30   ;;  %s334_s13 = sand.u32 (!%p3326_p5), 1, %s2253_s25  }
  0xd2   : > { %330 = sbr.rel (%p3326_p5) target bundleno = 1189 (0x4a5), region = 48  ;;  %s2606_s26 = sshll.u32 (!%p3326_p5), %s334_s13, 5 }
  0xd3   : > { %s333_s1 = scalar_lea.sflag (!%p3326_p5), [#allocation5], %s332_s22  ;;  %s2609_s15 = scalar_lea.vmem (!%p3326_p5), [#allocation4], %s2606_s26 }
  0xd4   : > { %p3327_p7 = scmp.ne.s32.totalorder (!%p3326_p5), %s3315_s10, 0 }
  0xd9   : > { %2224 = dma.done.wait (%p3327_p7), %s333_s1, 512  }
  0xda   : > { %2226 = vsyncadd (%p3327_p7), %s333_s1, 4294966784  ;;  %p3328_p0 = scmp.eq.s32.totalorder %s2348_s30, 0 }
  0xdc   : > { %2228 = dma.done.wait (%p3328_p0), [#allocation8], 272   ;;  %p3329_p13 = pmov %p3328_p0 }
  0xdd   : > { %p3330_p2 = pmov %p3328_p0 }
  0xde   : > { %2230 = vsyncadd (%p3329_p13), [#allocation8], 4294967024 }
  0xdf   : > { %2232 = dma.done.wait (%p3330_p2), [#allocation11], 1232   ;;  %p3331_p9 = pmov %p3328_p0 }
  0xe0   : > { %p3332_p3 = pmov %p3328_p0 }
  0xe1   : > { %2234 = vsyncadd (%p3331_p9), [#allocation11], 4294966064 }
  0xe2   : > { %2236 = dma.done.wait (%p3332_p3), [#allocation14], 16   ;;  %p3333_p11 = pmov %p3328_p0 }
  0xe3   : > { %s2628_s8 = scalar_lea.vmem [#allocation15], %s2606_s26 }
  0xe4   : > { %2238 = vsyncadd (%p3333_p11), [#allocation14], 4294967280 }
  0xe5   : > { %2240 = dma.done.wait (%p3327_p7), %s333_s1, 512  }
  0xe6   : > { %2242 = vsyncadd (%p3327_p7), %s333_s1, 4294966784  ;;  %vm420_vm0 = vcmask 130048   ;;  %v2274_v0 = vmov 0.0|0.0   ;;  %vm2275_vm1 = vmmov 0   ;;  %v2276_v1 = vmov 0.0   ;;  %v442_v2 = vld [vmem:[#allocation7] sm:$0xff] }
  0xe7   : > { %1787 = vmatprep.subr.bf16.mxu0 %v2274_v0  ;;  %1777 = vmatprep.mubr.msk.f32.mxu0 %vm2275_vm1, %v2276_v1  ;;  %732 = vst.msk [vmem:[#allocation2] sm:$0xff] %vm420_vm0, %v2276_v1  ;;  %733 = vst.msk [vmem:[#allocation2 + $0x8] sm:$0xff] %vm420_vm0, %v2276_v1  ;;  %v443_v3 = vld [vmem:[#allocation7 + $0x8] sm:$0xff]  ;;  %v1749_v4 = vld [vmem:[%s2609_s15] sm:$0xff]   ;;  %v517_v38 = vlaneseq  ;;  %s2277_s10 = smov 16   ;;  %s2279_s20 = smov 64  }
  0xe8   : > { %734 = vst.msk [vmem:[#allocation2 + $0x50] sm:$0xff] %vm420_vm0, %v2276_v1  ;;  %735 = vst.msk [vmem:[#allocation2 + $0x58] sm:$0xff] %vm420_vm0, %v2276_v1  ;;  %1790 = vmatprep.subr.bf16.mxu1 %v2274_v0  ;;  %1784 = vmatprep.mubr.msk.f32.mxu1 %vm2275_vm1, %v2276_v1  ;;  %v1788_v5 = vpack.c.bf16 %v443_v3, %v442_v2  ;;  %v1750_v6 = vunpack.c.l.bf16 %v1749_v4  ;;  %v1751_v7 = vunpack.c.h.bf16 %v1749_v4  ;;  %v1764_v8 = vld [vmem:[%s2609_s15 + $0x8] sm:$0xff]   ;;  %v1765_v9 = vld [vmem:[%s2609_s15 + $0x10] sm:$0xff]   ;;  %s2280_s21 = smov 112   ;;  %s2281_s23 = smov 32  }
  0xe9   : > { %v1766_v10 = vld [vmem:[%s2609_s15 + $0x18] sm:$0xff]   ;;  %v1754_v11 = vunpack.c.l.bf16 %v1764_v8  ;;  %v1755_v12 = vunpack.c.h.bf16 %v1764_v8  ;;  %v1758_v13 = vunpack.c.l.bf16 %v1765_v9  ;;  %v1759_v14 = vunpack.c.h.bf16 %v1765_v9  ;;  %s2282_s18 = smov 48   ;;  %s2283_s12 = smov 80  }
  0xea   : > { %1789 = vmatpush3.bf16.msra.mxu0 %v1788_v5  ;;  %v1762_v15 = vunpack.c.l.bf16 %v1766_v10  ;;  %v421_v16 = vsel %vm420_vm0, %v1750_v6, 0.0  ;;  %v422_v17 = vsel %vm420_vm0, %v1751_v7, 0.0  ;;  %1792 = vmatpush3.bf16.msra.mxu1 %v1788_v5  ;;  %v1763_v26 = vunpack.c.h.bf16 %v1766_v10  ;;  %s2284_s17 = smov 96   ;;  %s3205_s3 = scalar_lea.vmem [#allocation16], %s2606_s26 }
  0xeb   : > { %v423_v18 = vadd.f32 %v422_v17, %v421_v16  ;;  %v424_v19 = vsel %vm420_vm0, %v1754_v11, 0.0  ;;  %v426_v20 = vsel %vm420_vm0, %v1755_v12, 0.0  ;;  %v428_v21 = vsel %vm420_vm0, %v1758_v13, 0.0  ;;  %v1931_v17 = vld [vmem:[%s2628_s8 + $0x10] sm:$0xff]   ;;  %s1747_s19 = sshll.u32 %s2348_s30, 9  ;;  %s1521_s27 = sshll.u32 %s3205_s3, 4  ;;  %s3228_s27 = int_to_ptr.vmem [resolvable:$true] %s1521_s27 }
  0xec   : > { %v430_v22 = vsel %vm420_vm0, %v1759_v14, 0.0  ;;  %v432_v23 = vsel %vm420_vm0, %v1762_v15, 0.0  ;;  %v434_v29 = vsel %vm420_vm0, %v1763_v26, 0.0  ;;  %v2651_v39 = vshrl.u32 %v517_v38, 7  ;;  %1280 = vrot.lane.b32.xlu1 %v1931_v17, %s2277_s10  ;;  %s3222_s16 = scalar_lea.hbm %s3285_s7, %s1747_s19  ;;  %s3234_s30 = scalar_lea.sflag [#allocation6], %s334_s13 }
  0xed   : > { %v425_v24 = vadd.f32 %v424_v19, %v423_v18  ;;  %v1932_v18 = vld [vmem:[%s2628_s8] sm:$0xff]   ;;  %v1933_v19 = vld [vmem:[%s2628_s8 + $0x18] sm:$0xff]   ;;  %s2179_s29 = scalar_lea.vmem %s3228_s27, 512  ;;  %p3391_p8 = scmp.ne.s32.totalorder %s3316_s14, 0 }
  0xee   : > { %v519_v40 = vsub.s32 0, %v2651_v39  ;;  %1276 = vrot.lane.b32.xlu0 %v1932_v18, %s2277_s10  ;;  %v751_v18 = vadd.s32 48, %v2651_v39  ;;  %p2180_p1 = scmp.ne.s32.totalorder %s3228_s27, %s2179_s29  ;;  %s2285_s9 = smov [#allocation16]  }
  0xef   : > { %v427_v25 = vadd.f32 %v426_v20, %v425_v24  ;;  %v1934_v20 = vld [vmem:[%s2628_s8 + $0x8] sm:$0xff]   ;;  %s2183_s0 = sshll.u32 %s2285_s9, 4  ;;  %s2184_s0 = int_to_ptr.vmem [resolvable:$false] %s2183_s0 }
  0xf0   : > { %1282 = vrot.lane.b32.xlu1 %v1933_v19, %s2277_s10  ;;  %p2181_p12 = pnand %p2180_p1, %p3391_p8  ;;  %s2185_s22 = scalar_lea.vmem %s2184_s0, 1024 }
  0xf1   : > { %v429_v27 = vadd.f32 %v428_v21, %v427_v25  ;;  %v2278_v21 = vmov 0   ;;  %p2186_p4 = scmp.lt.s32.totalorder %s3228_s27, %s2184_s0  ;;  %p2187_p10 = scmp.lt.s32.totalorder %s2185_s22, %s2179_s29 }
  0xf2   : > { %1278 = vrot.lane.b32.xlu0 %v1934_v20, %s2277_s10  ;;  %1401 = vmatprep.subr.bf16.mxu0 %v2278_v21  ;;  %p2182_p6 = pneg %p2181_p12 }
  0xf3   : > { %v431_v28 = vadd.f32 %v430_v22, %v429_v27  ;;  %1793 = vmatprep.subr.bf16.mxu1 %v2278_v21  ;;  %p2188_p5 = por %p2187_p10, %p2186_p4 }
  0xf5   : > { %v433_v30 = vadd.f32 %v432_v23, %v431_v28  ;;  %v1687_v28 = vld [vmem:[#allocation9] ss:$0 sm:$0xff]  ;;  %p2189_p7 = pnand %p2188_p5, %p2182_p6 }
  0xf7   : > { %v435_v31 = vadd.f32 %v434_v29, %v433_v30 }
  0xf9   : > { %v436_v32 = vrot.slane %v435_v31, 4 }
  0xfb   : > { %v437_v33 = vadd.f32 %v436_v32, %v435_v31 }
  0xfd   : > { %v438_v34 = vrot.slane %v437_v33, 2 }
  0xff   : > { %v439_v35 = vadd.f32 %v438_v34, %v437_v33 }
 0x101   : > { %v440_v36 = vrot.slane %v439_v35, 1 }
 0x103   : > { %v441_v37 = vadd.f32 %v440_v36, %v439_v35 }
 0x105   : > { %1778 = vmatmul.mubr.msk.f32.vlgmr.msra.gmra.mrb[0].mxu0 %vm420_vm0, %v441_v37  ;;  %v1688_v37 = vld [vmem:[#allocation10] ss:$0 sm:$0xff] }
 0x1d8   : > { %v513_v41 = vpop.f32.mrb[0].mxu0 }
 0x1d9   : > { %v520_v42 = vrot.slane %v513_v41, %v519_v40  ;;  %v1779_v43 = vpop.f32.mrb[1].mxu0 }
 0x1db   : > { %v521_v44 = vsub.f32 %v1750_v6, %v520_v42  ;;  %v522_v45 = vsub.f32 %v1751_v7, %v520_v42  ;;  %v523_v46 = vsub.f32 %v1754_v11, %v520_v42  ;;  %v524_v47 = vsub.f32 %v1755_v12, %v520_v42 }
 0x1dc   : > { %v525_v48 = vsub.f32 %v1758_v13, %v520_v42  ;;  %v526_v52 = vsub.f32 %v1759_v14, %v520_v42  ;;  %v527_v57 = vsub.f32 %v1762_v15, %v520_v42  ;;  %v528_v61 = vsub.f32 %v1763_v26, %v520_v42 }
 0x1dd   : > { %v529_v49 = vmul.f32 %v521_v44, %v521_v44  ;;  %v530_v50 = vmul.f32 %v522_v45, %v522_v45  ;;  %v531_v51 = vmul.f32 %v523_v46, %v523_v46  ;;  %v532_v53 = vmul.f32 %v524_v47, %v524_v47 }
 0x1de   : > { %v533_v58 = vmul.f32 %v525_v48, %v525_v48  ;;  %v534_v62 = vmul.f32 %v526_v52, %v526_v52  ;;  %v535_v1 = vmul.f32 %v527_v57, %v527_v57  ;;  %v536_v4 = vmul.f32 %v528_v61, %v528_v61 }
 0x1df   : > { %v537_v54 = vsel %vm420_vm0, %v529_v49, 0.0  ;;  %v538_v55 = vsel %vm420_vm0, %v530_v50, 0.0  ;;  %v540_v59 = vsel %vm420_vm0, %v531_v51, 0.0  ;;  %v542_v63 = vsel %vm420_vm0, %v532_v53, 0.0 }
 0x1e0   : > { %v539_v56 = vadd.f32 %v538_v55, %v537_v54  ;;  %v544_v2 = vsel %vm420_vm0, %v533_v58, 0.0  ;;  %v546_v5 = vsel %vm420_vm0, %v534_v62, 0.0  ;;  %v548_v7 = vsel %vm420_vm0, %v535_v1, 0.0 }
 0x1e1   : > { %v550_v9 = vsel %vm420_vm0, %v536_v4, 0.0 }
 0x1e2   : > { %v541_v60 = vadd.f32 %v540_v59, %v539_v56 }
 0x1e4   : > { %v543_v0 = vadd.f32 %v542_v63, %v541_v60  ;;  %v746_v63 = vadd.s32 8, %v2651_v39 }
 0x1e6   : > { %v545_v3 = vadd.f32 %v544_v2, %v543_v0  ;;  %v749_v0 = vadd.s32 32, %v2651_v39  ;;  %v750_v2 = vadd.s32 40, %v2651_v39 }
 0x1e8   : > { %v547_v6 = vadd.f32 %v546_v5, %v545_v3  ;;  %v757_v5 = vand.u32 7, %v2651_v39 }
 0x1ea   : > { %v549_v8 = vadd.f32 %v548_v7, %v547_v6  ;;  %vm2701_vm2 = vcmp.lt.s32.totalorder %v757_v5, 7  ;;  %vm2729_vm8 = vcmp.gt.s32.totalorder %v757_v5, 0 }
 0x1eb   : > { %vm994_vm5 = vmpackc.low %vm2701_vm2, %vm2701_vm2 }
 0x1ec   : > { %v551_v10 = vadd.f32 %v550_v9, %v549_v8  ;;  %v764_v8 = vand.u32 7, %v746_v63  ;;  %vm893_vm14 = vmpackc.low %vm2729_vm8, %vm2729_vm8 }
 0x1ee   : > { %v552_v11 = vrot.slane %v551_v10, 4  ;;  %vm2706_vm3 = vcmp.lt.s32.totalorder %v764_v8, 7  ;;  %vm2736_vm10 = vcmp.gt.s32.totalorder %v764_v8, 0  ;;  %v933_v8 = vld [vmem:[#allocation2 + $0x8] sm:$0xff] }
 0x1ef   : > { %vm894_vm15 = vmpackc.low %vm2736_vm10, %vm2736_vm10 }
 0x1f0   : > { %v553_v12 = vadd.f32 %v552_v11, %v551_v10  ;;  %v785_v11 = vand.u32 7, %v749_v0  ;;  %v1936_v0 = vld [vmem:[#allocation12 + $0x8] sm:$0xff]   ;;  %vm3362_vm2 = vmpackc.low %vm2706_vm3, %vm2706_vm3 }
 0x1f2   : > { %v554_v13 = vrot.slane %v553_v12, 2  ;;  %vm2711_vm4 = vcmp.lt.s32.totalorder %v785_v11, 7  ;;  %vm2743_vm12 = vcmp.gt.s32.totalorder %v785_v11, 0 }
 0x1f3   : > { %vm3365_vm3 = vmpackc.low %vm2711_vm4, %vm2711_vm4 }
 0x1f4   : > { %v555_v14 = vadd.f32 %v554_v13, %v553_v12  ;;  %vm3369_vm4 = vmpackc.low %vm2743_vm12, %vm2743_vm12 }
 0x1f6   : > { %v556_v15 = vrot.slane %v555_v14, 1 }
 0x1f8   : > { %v557_v16 = vadd.f32 %v556_v15, %v555_v14  ;;  %v792_v14 = vand.u32 7, %v750_v2  ;;  %v2830_v2 = vsel %vm3362_vm2, 65537, %v2278_v21 }
 0x1fa   : > { %1785 = vmatmul.mubr.msk.f32.vlgmr.msra.gmra.mrb[0].mxu1 %vm420_vm0, %v557_v16  ;;  %vm2719_vm6 = vcmp.lt.s32.totalorder %v792_v14, 7  ;;  %vm2747_vm13 = vcmp.gt.s32.totalorder %v792_v14, 0 }
 0x1fb   : > { %vm3366_vm2 = vmpackc.low %vm2719_vm6, %vm2719_vm6 }
 0x1fc   : > { %vm3370_vm6 = vmpackc.low %vm2747_vm13, %vm2747_vm13 }
 0x1fd   : > { %v2876_v11 = vsel %vm3370_vm6, 65537, %v2278_v21 }
 0x2cd   : > { %v627_v22 = vpop.f32.mrb[0].mxu1 }
 0x2ce   : > { %v631_v23 = vmax.f32 %v627_v22, 0.0  ;;  %v1786_v24 = vpop.f32.mrb[1].mxu1 }
 0x2d0   : > { %v632_v25 = vadd.f32 1e-05, %v631_v23  ;;  %v752_v23 = vadd.s32 56, %v2651_v39 }
 0x2d2   : > { %1945 = vrsqrt.f32 %v632_v25 }
 0x2dc   : > { %v1946_v26 = vpop.eup %1945 }
 0x2dd   : > { %v637_v27 = vrot.slane %v1946_v26, %v519_v40 }
 0x2df   : > { %v638_v29 = vmul.f32 %v637_v27, %v521_v44  ;;  %v639_v30 = vmul.f32 %v637_v27, %v522_v45  ;;  %v640_v31 = vmul.f32 %v637_v27, %v523_v46  ;;  %v641_v32 = vmul.f32 %v637_v27, %v524_v47 }
 0x2e0   : > { %v642_v33 = vmul.f32 %v637_v27, %v525_v48  ;;  %v643_v34 = vmul.f32 %v637_v27, %v526_v52  ;;  %v644_v35 = vmul.f32 %v637_v27, %v527_v57  ;;  %v645_v36 = vmul.f32 %v637_v27, %v528_v61 }
 0x2e1   : > { %v653_v38 = vmul.f32 %v1687_v28, %v638_v29  ;;  %v656_v41 = vmul.f32 %v1687_v28, %v641_v32  ;;  %v654_v42 = vmul.f32 %v1687_v28, %v639_v30  ;;  %v655_v43 = vmul.f32 %v1687_v28, %v640_v31 }
 0x2e2   : > { %v657_v49 = vmul.f32 %v1687_v28, %v642_v33  ;;  %v658_v50 = vmul.f32 %v1687_v28, %v643_v34  ;;  %v659_v51 = vmul.f32 %v1687_v28, %v644_v35  ;;  %v660_v53 = vmul.f32 %v1687_v28, %v645_v36 }
 0x2e3   : > { %v2673_v54 = vadd.f32 %v1688_v37, %v653_v38  ;;  %v2675_v40 = vadd.f32 %v1688_v37, %v656_v41  ;;  %v2683_v47 = vadd.f32 %v1688_v37, %v654_v42  ;;  %v2691_v58 = vadd.f32 %v1688_v37, %v655_v43 }
 0x2e4   : > { %v2677_v44 = vadd.f32 %v1688_v37, %v657_v49  ;;  %v2679_v45 = vadd.f32 %v1688_v37, %v658_v50  ;;  %v2681_v46 = vadd.f32 %v1688_v37, %v659_v51  ;;  %v2686_v52 = vadd.f32 %v1688_v37, %v660_v53  ;;  %v1935_v50 = vld [vmem:[#allocation12] sm:$0xff]  }
 0x2e5   : > { %v1689_v48 = vmul.f32 -1.442695, %v2673_v54  ;;  %v1692_v59 = vmul.f32 -1.442695, %v2675_v40  ;;  %v1690_v60 = vmul.f32 -1.442695, %v2683_v47  ;;  %1402 = vmatpush1.bf16.msra.mxu0 %v1935_v50  ;;  %1803 = vmatpush1.bf16.msra.mxu1 %v1935_v50  ;;  %v1277_v50 = vpop.permute.xlu0 %1276 }
 0x2e6   : > { %v1693_v55 = vmul.f32 -1.442695, %v2677_v44  ;;  %v1694_v56 = vmul.f32 -1.442695, %v2679_v45  ;;  %v1695_v57 = vmul.f32 -1.442695, %v2681_v46  ;;  %1403 = vmatprep.subr.bf16.mxu0 %v2278_v21  ;;  %1794 = vmatprep.subr.bf16.mxu1 %v2278_v21 }
 0x2e7   : > { %1947 = vpow2.f32 %v1689_v48  ;;  %v1696_v61 = vmul.f32 -1.442695, %v2686_v52  ;;  %v1691_v62 = vmul.f32 -1.442695, %v2691_v58  ;;  %v747_v27 = vadd.s32 16, %v2651_v39 }
 0x2e8   : > { %1949 = vpow2.f32 %v1693_v55  ;;  %v2724_v30 = vadd.s32 24, %v2651_v39  ;;  %v799_v32 = vand.u32 7, %v751_v18  ;;  %v806_v39 = vand.u32 7, %v752_v23 }
 0x2e9   : > { %1951 = vpow2.f32 %v1694_v56  ;;  %v771_v35 = vand.u32 7, %v747_v27  ;;  %v902_v56 = vsel %vm894_vm15, 65537, %v2278_v21  ;;  %1404 = vmatpush1.bf16.msra.mxu0 %v1936_v0  ;;  %1804 = vmatpush1.bf16.msra.mxu1 %v1936_v0 }
 0x2ea   : > { %1953 = vpow2.f32 %v1695_v57  ;;  %v778_v37 = vand.u32 7, %v2724_v30  ;;  %vm2758_vm1 = vcmp.lt.s32.totalorder %v799_v32, 7  ;;  %vm2766_vm9 = vcmp.lt.s32.totalorder %v806_v39, 7  ;;  %1405 = vmatprep.subr.bf16.mxu0 %v2278_v21  ;;  %1795 = vmatprep.subr.bf16.mxu1 %v2278_v21 }
 0x2eb   : > { %1955 = vpow2.f32 %v1692_v59  ;;  %vm2774_vm7 = vcmp.lt.s32.totalorder %v771_v35, 7  ;;  %vm2818_vm8 = vcmp.gt.s32.totalorder %v806_v39, 0  ;;  %vm2835_vm10 = vcmp.gt.s32.totalorder %v771_v35, 0  ;;  %vm3376_vm6 = vmpackc.low %vm2766_vm9, %vm2766_vm9 }
 0x2ec   : > { %1957 = vpow2.f32 %v1690_v60  ;;  %vm2790_vm11 = vcmp.lt.s32.totalorder %v778_v37, 7  ;;  %vm2856_vm15 = vcmp.gt.s32.totalorder %v778_v37, 0  ;;  %vm3371_vm12 = vmpackc.low %vm2774_vm7, %vm2774_vm7  ;;  %v1009_v27 = vsel %vm3376_vm6, 65537, %v2278_v21 }
 0x2ed   : > { %1959 = vpow2.f32 %v1696_v61  ;;  %vm3372_vm13 = vmpackc.low %vm2790_vm11, %vm2790_vm11  ;;  %vm1190_vm6 = vcmask 917248  }
 0x2ee   : > { %1961 = vpow2.f32 %v1691_v62  ;;  %vm896_vm11 = vmpackc.low %vm2856_vm15, %vm2856_vm15 }
 0x2ef   : > { %v904_v34 = vsel %vm896_vm11, 65537, %v2278_v21  ;;  %vm1116_vm11 = vcmask 654848  }
 0x2f1   : > { %v1948_v1 = vpop.eup %1947 }
 0x2f2   : > { %v1950_v3 = vpop.eup %1949  ;;  %v700_v4 = vadd.f32 1.0, %v1948_v1 }
 0x2f3   : > { %v1952_v6 = vpop.eup %1951  ;;  %v704_v7 = vadd.f32 1.0, %v1950_v3 }
 0x2f4   : > { %v1954_v9 = vpop.eup %1953  ;;  %v705_v10 = vadd.f32 1.0, %v1952_v6  ;;  %1963 = vrcp.f32 %v700_v4  ;;  %v1006_v6 = vsel %vm3365_vm3, 65537, %v2278_v21  ;;  %vm900_vm3 = vmpackc.low %vm2818_vm8, %vm2818_vm8 }
 0x2f5   : > { %v1956_v12 = vpop.eup %1955  ;;  %1965 = vrcp.f32 %v704_v7  ;;  %v706_v13 = vadd.f32 1.0, %v1954_v9  ;;  %v1007_v7 = vsel %vm3366_vm2, 65537, %v2278_v21  ;;  %vm895_vm2 = vmpackc.low %vm2835_vm10, %vm2835_vm10  ;;  %v908_v30 = vsel %vm900_vm3, 65537, %v2278_v21 }
 0x2f6   : > { %v1958_v15 = vpop.eup %1957  ;;  %1967 = vrcp.f32 %v705_v10  ;;  %v703_v16 = vadd.f32 1.0, %v1956_v12  ;;  %v2868_v10 = vsel %vm3369_vm4, 65537, %v2278_v21  ;;  %v865_v12 = vld [vmem:[#allocation2 + $0x7] sm:$0xff]  ;;  %vm3375_vm4 = vmpackc.low %vm2758_vm1, %vm2758_vm1  ;;  %v903_v39 = vsel %vm895_vm2, 65537, %v2278_v21 }
 0x2f7   : > { %v1960_v19 = vpop.eup %1959  ;;  %1969 = vrcp.f32 %v706_v13  ;;  %v701_v20 = vadd.f32 1.0, %v1958_v15  ;;  %v1005_v13 = vsel %vm3372_vm13, 65537, %v2278_v21  ;;  %v1699_v22 = vcombine.low %v2868_v10, %v2876_v11 }
 0x2f8   : > { %v1962_v24 = vpop.eup %1961  ;;  %1971 = vrcp.f32 %v703_v16  ;;  %v707_v25 = vadd.f32 1.0, %v1960_v19  ;;  %v1703_v16 = vcombine.low %v1006_v6, %v1007_v7  ;;  %v1698_v57 = vcombine.low %v903_v39, %v904_v34 }
 0x2f9   : > { %1973 = vrcp.f32 %v701_v20  ;;  %v702_v28 = vadd.f32 1.0, %v1962_v24  ;;  %v2923_v24 = vsel %vm3375_vm4, 65537, %v2278_v21  ;;  %vm3003_vm10 = vcmp.ne.s16.totalorder %v1699_v22, 0 }
 0x2fa   : > { %1975 = vrcp.f32 %v707_v25  ;;  %v1937_v25 = vld [vmem:[#allocation12 + $0x10] sm:$0xff]   ;;  %vm2983_vm1 = vcmp.ne.s16.totalorder %v1703_v16, 0  ;;  %vm3056_vm3 = vcmp.ne.s16.totalorder %v1698_v57, 0  ;;  %v1939_v16 = vld [vmem:[#allocation12 + $0x20] sm:$0xff]   ;;  %vm961_vm13 = vcmask 261248  }
 0x2fb   : > { %1977 = vrcp.f32 %v702_v28  ;;  %1406 = vmatpush1.bf16.msra.mxu0 %v1937_v25  ;;  %1805 = vmatpush1.bf16.msra.mxu1 %v1937_v25  ;;  %v1943_v57 = vld [vmem:[#allocation12 + $0x40] sm:$0xff]   ;;  %vm1046_vm2 = vcmask 392448   ;;  %vm1153_vm4 = vcmask 786048  }
 0x2fc   : > { %1407 = vmatprep.subr.bf16.mxu0 %v2278_v21  ;;  %1796 = vmatprep.subr.bf16.mxu1 %v2278_v21 }
 0x2fe   : > { %v1964_v38 = vpop.eup %1963 }
 0x2ff   : > { %v1966_v42 = vpop.eup %1965  ;;  %v724_v43 = vmul.f32 %v1964_v38, %v2673_v54 }
 0x300   : > { %v1968_v51 = vpop.eup %1967  ;;  %v728_v53 = vmul.f32 %v1966_v42, %v2677_v44  ;;  %v901_v44 = vsel %vm893_vm14, 65537, %v2278_v21  ;;  %vm2799_vm14 = vcmp.gt.s32.totalorder %v799_v32, 0 }
 0x301   : > { %v1970_v54 = vpop.eup %1969  ;;  %v729_v55 = vmul.f32 %v1968_v51, %v2679_v45  ;;  %736 = vst.msk [vmem:[#allocation2 + $0x10] sm:$0xff] %vm420_vm0, %v724_v43  ;;  %v1697_v3 = vcombine.low %v901_v44, %v902_v56  ;;  %v1704_v44 = vcombine.low %v2923_v24, %v1009_v27  ;;  %v1235_v56 = vld [vmem:[#allocation2 + $0x51] sm:$0xff] }
 0x302   : > { %v1972_v45 = vpop.eup %1971  ;;  %740 = vst.msk [vmem:[#allocation2 + $0x30] sm:$0xff] %vm420_vm0, %v728_v53  ;;  %v730_v59 = vmul.f32 %v1970_v54, %v2681_v46  ;;  %v2813_v46 = vsel %vm994_vm5, 65537, %v2278_v21  ;;  %vm899_vm5 = vmpackc.low %vm2799_vm14, %vm2799_vm14  ;;  %vm1288_vm14 = vcmask 195712  }
 0x303   : > { %v1974_v61 = vpop.eup %1973  ;;  %741 = vst.msk [vmem:[#allocation2 + $0x38] sm:$0xff] %vm420_vm0, %v729_v55  ;;  %v727_v62 = vmul.f32 %v1972_v45, %v2675_v40  ;;  %v1701_v15 = vcombine.low %v2813_v46, %v2830_v2  ;;  %vm2904_vm7 = vcmp.ne.s16.totalorder %v1697_v3, 0  ;;  %v907_v29 = vsel %vm899_vm5, 65537, %v2278_v21  ;;  %v1281_v45 = vpop.permute.xlu1 %1280 }
 0x304   : > { %v1976_v1 = vpop.eup %1975  ;;  %742 = vst.msk [vmem:[#allocation2 + $0x40] sm:$0xff] %vm420_vm0, %v730_v59  ;;  %v725_v40 = vmul.f32 %v1974_v61, %v2683_v47  ;;  %v1700_v49 = vcombine.low %v907_v29, %v908_v30  ;;  %vm3052_vm5 = vcmp.ne.s16.totalorder %v1704_v44, 0 }
 0x305   : > { %v1978_v5 = vpop.eup %1977  ;;  %739 = vst.msk [vmem:[#allocation2 + $0x28] sm:$0xff] %vm420_vm0, %v727_v62  ;;  %v731_v47 = vmul.f32 %v1976_v1, %v2686_v52  ;;  %vm2979_vm9 = vcmp.ne.s16.totalorder %v1701_v15, 0  ;;  %v1279_v15 = vpop.permute.xlu0 %1278 }
 0x306   : > { %737 = vst.msk [vmem:[#allocation2 + $0x18] sm:$0xff] %vm420_vm0, %v725_v40  ;;  %v726_v9 = vmul.f32 %v1978_v5, %v2691_v58  ;;  %v1004_v58 = vsel %vm3371_vm12, 65537, %v2278_v21  ;;  %vm3040_vm15 = vcmp.ne.s16.totalorder %v1700_v49, 0  ;;  %vm1384_vm12 = vcmask 195584  }
 0x307   : > { %743 = vst.msk [vmem:[#allocation2 + $0x48] sm:$0xff] %vm420_vm0, %v731_v47  ;;  %v1702_v28 = vcombine.low %v1004_v58, %v1005_v13 }
 0x308   : > { %v2899_v14 = vld [vmem:[#allocation2 + $0x10] sm:$0xff]  ;;  %738 = vst.msk [vmem:[#allocation2 + $0x20] sm:$0xff] %vm420_vm0, %v726_v9 }
 0x309   : > { %v2908_v18 = vld [vmem:[#allocation2 + $0xf] sm:$0xff]  ;;  %v941_v20 = vpack.c.bf16 %v2899_v14, %v933_v8  ;;  %vm3009_vm8 = vcmp.ne.s16.totalorder %v1702_v28, 0 }
 0x30a   : > { %v1092_v19 = vld [vmem:[#allocation2 + $0x30] sm:$0xff]  ;;  %v873_v23 = vpack.c.bf16 %v2908_v18, %v865_v12  ;;  %v1093_v26 = vld [vmem:[#allocation2 + $0x38] sm:$0xff] }
 0x30b   : > { %v1098_v31 = vpack.c.bf16 %v1093_v26, %v1092_v19  ;;  %949 = vrot.lane.b32.xlu0 %v941_v20, %s2277_s10  ;;  %v2944_v32 = vld [vmem:[#allocation2 + $0x31] sm:$0xff]  ;;  %v2960_v35 = vld [vmem:[#allocation2 + $0x40] sm:$0xff]  ;;  %v966_v25 = vld [vmem:[#allocation2 + $0x9] sm:$0xff] }
 0x30c   : > { %v925_v33 = vsel %vm2904_vm7, %v873_v23, 0  ;;  %v2962_v36 = vld [vmem:[#allocation2 + $0x28] sm:$0xff]  ;;  %v2964_v37 = vld [vmem:[#allocation2 + $0x39] sm:$0xff]  ;;  %v1205_v59 = vpack.c.bf16 %v2960_v35, %v1093_v26  ;;  %v1283_v23 = vpop.permute.xlu1 %1282 }
 0x30d   : > { %929 = vst.msk [vmem:[#allocation3] sm:$0xff] %vm420_vm0, %v925_v33  ;;  %1108 = vrot.lane.b32.xlu1 %v1098_v31, %s2279_s20  ;;  %v2970_v38 = vpack.c.bf16 %v1092_v19, %v2962_v36  ;;  %v2972_v41 = vld [vmem:[#allocation2 + $0x29] sm:$0xff]  ;;  %v2974_v42 = vld [vmem:[#allocation2 + $0x37] sm:$0xff]  ;;  %v2976_v43 = vld [vmem:[#allocation2 + $0x3f] sm:$0xff] }
 0x30e   : > { %v1089_v51 = vld [vmem:[#allocation2 + $0x18] sm:$0xff]  ;;  %v2987_v54 = vld [vmem:[#allocation2 + $0x41] sm:$0xff]  ;;  %v2989_v55 = vld [vmem:[#allocation2 + $0x2f] sm:$0xff]  ;;  %v3019_v40 = vpack.c.bf16 %v2944_v32, %v2972_v41  ;;  %v3025_v3 = vpack.c.bf16 %v2976_v43, %v2974_v42 }
 0x30f   : > { %953 = vrot.lane.b32.xlu0 %v2970_v38, %s2277_s10  ;;  %v2995_v60 = vld [vmem:[#allocation2 + $0x19] sm:$0xff]  ;;  %v2997_v61 = vld [vmem:[#allocation2 + $0x21] sm:$0xff]  ;;  %v3001_v62 = vpack.c.bf16 %v2987_v54, %v2964_v37  ;;  %v3029_v5 = vld [vmem:[#allocation2 + $0x49] sm:$0xff]  ;;  %v1096_v47 = vpack.c.bf16 %v1089_v51, %v2899_v14  ;;  %v1061_v44 = vpack.c.bf16 %v2974_v42, %v2989_v55 }
 0x310   : > { %v3007_v63 = vld [vmem:[#allocation2 + $0x17] sm:$0xff]  ;;  %v3015_v1 = vpack.c.bf16 %v2997_v61, %v2995_v60  ;;  %v3021_v2 = vld [vmem:[#allocation2 + $0x27] sm:$0xff]  ;;  %v3027_v4 = vld [vmem:[#allocation2 + $0x1f] sm:$0xff]  ;;  %v1239_v14 = vpack.c.bf16 %v1235_v56, %v3029_v5  ;;  %v1241_v20 = vsel %vm3009_vm8, %v3019_v40, 0  ;;  %v928_v22 = vsel %vm3040_vm15, %v3025_v3, 0 }
 0x311   : > { %1215 = vrot.lane.b32.xlu1 %v1205_v59, %s2280_s21  ;;  %v1242_v6 = vsel %vm2983_vm1, %v3001_v62, 0  ;;  %v3038_v7 = vpack.c.bf16 %v2989_v55, %v3021_v2  ;;  %v1938_v8 = vld [vmem:[#allocation12 + $0x18] sm:$0xff]   ;;  %v1196_v9 = vld [vmem:[#allocation2 + $0x20] sm:$0xff]  ;;  %v3050_v11 = vpack.c.bf16 %v3027_v4, %v3007_v63  ;;  %1245 = vst.msk [vmem:[#allocation3 + $0x18] sm:$0xff] %vm420_vm0, %v1241_v20  ;;  %932 = vst.msk [vmem:[#allocation3 + $0x30] sm:$0xff] %vm420_vm0, %v928_v22  ;;  %v1065_v42 = vsel %vm3003_vm10, %v1061_v44, 0 }
 0x312   : > { %v1240_v10 = vsel %vm2979_vm9, %v3015_v1, 0  ;;  %1246 = vst.msk [vmem:[#allocation3 + $0x28] sm:$0xff] %vm420_vm0, %v1242_v6  ;;  %1408 = vmatpush1.bf16.msra.mxu0 %v1938_v8  ;;  %v3067_v19 = vld [vmem:[#allocation2 + $0x48] sm:$0xff]  ;;  %1806 = vmatpush1.bf16.msra.mxu1 %v1938_v8  ;;  %v1203_v24 = vpack.c.bf16 %v1196_v9, %v1089_v51  ;;  %v967_v26 = vld [vmem:[#allocation2 + $0x11] sm:$0xff]  ;;  %v1243_v27 = vsel %vm3052_vm5, %v1239_v14, 0  ;;  %v1940_v31 = vld [vmem:[#allocation12 + $0x28] sm:$0xff]   ;;  %v1097_v49 = vpack.c.bf16 %v2962_v36, %v1196_v9 }
 0x313   : > { %1104 = vrot.lane.b32.xlu0 %v1096_v47, %s2279_s20  ;;  %1244 = vst.msk [vmem:[#allocation3 + $0x8] sm:$0xff] %vm420_vm0, %v1240_v10  ;;  %v927_v13 = vsel %vm3003_vm10, %v3038_v7, 0  ;;  %1409 = vmatprep.subr.bf16.mxu0 %v2278_v21  ;;  %v926_v28 = vsel %vm3056_vm3, %v3050_v11, 0  ;;  %1247 = vst.msk [vmem:[#allocation3 + $0x38] sm:$0xff] %vm420_vm0, %v1243_v27  ;;  %v1099_v29 = vpack.c.bf16 %v3067_v19, %v2960_v35  ;;  %v1941_v35 = vld [vmem:[#allocation12 + $0x30] sm:$0xff]   ;;  %v1028_v51 = vsel %vm2983_vm1, %v3019_v40, 0 }
 0x314   : > { %1291 = vst.msk [vmem:[#allocation3 + $0x28] sm:$0xff] %vm1288_vm14, %v1281_v45  ;;  %1289 = vst.msk [vmem:[#allocation3 + $0x8] sm:$0xff] %vm1288_vm14, %v1277_v50  ;;  %1797 = vmatprep.subr.bf16.mxu1 %v2278_v21  ;;  %v974_v30 = vpack.c.bf16 %v967_v26, %v966_v25  ;;  %v1059_v50 = vpack.c.bf16 %v3007_v63, %v2908_v18  ;;  %v1942_v56 = vld [vmem:[#allocation12 + $0x38] sm:$0xff]   ;;  %v1129_v36 = vpack.c.bf16 %v2995_v60, %v967_v26  ;;  %v1944_v45 = vld [vmem:[#allocation12 + $0x48] ss:$0 sps:$4 sm:$0xff]  }
 0x315   : > { %931 = vst.msk [vmem:[#allocation3 + $0x20] sm:$0xff] %vm420_vm0, %v927_v13  ;;  %955 = vrot.lane.b32.xlu1 %v1205_v59, %s2277_s10  ;;  %930 = vst.msk [vmem:[#allocation3 + $0x10] sm:$0xff] %vm420_vm0, %v926_v28  ;;  %v1131_v55 = vpack.c.bf16 %v2964_v37, %v2944_v32  ;;  %vm1397_vm0 = vcmask 1043456   ;;  %v1170_v53 = vsel %vm2904_vm7, %v3050_v11, 0  ;;  %v1172_v48 = vsel %vm3003_vm10, %v3025_v3, 0  ;;  %v1058_v60 = vld [vmem:[#allocation2 + $0x47] sm:$0xff] }
 0x316   : > { %1290 = vst.msk [vmem:[#allocation3 + $0x18] sm:$0xff] %vm1288_vm14, %v1279_v15  ;;  %1292 = vst.msk [vmem:[#allocation3 + $0x38] sm:$0xff] %vm1288_vm14, %v1283_v23  ;;  %1410 = vmatpush1.bf16.msra.mxu0 %v1939_v16  ;;  %1807 = vmatpush1.bf16.msra.mxu1 %v1939_v16  ;;  %v1026_v34 = vsel %vm2979_vm9, %v974_v30, 0  ;;  %v1063_v18 = vsel %vm2904_vm7, %v1059_v50, 0  ;;  %v1133_v59 = vsel %vm2979_vm9, %v1129_v36, 0  ;;  %v1399_v37 = vsel %vm1397_vm0, %v1944_v45, 0 }
 0x317   : > { %1211 = vrot.lane.b32.xlu0 %v1203_v24, %s2280_s21  ;;  %1411 = vmatprep.subr.bf16.mxu0 %v2278_v21  ;;  %v1135_v32 = vsel %vm2983_vm1, %v1131_v55, 0  ;;  %v1027_v63 = vsel %vm3009_vm8, %v3015_v1, 0  ;;  %v1060_v17 = vpack.c.bf16 %v3021_v2, %v3027_v4  ;;  %v1062_v46 = vpack.c.bf16 %v1058_v60, %v2976_v43  ;;  %v1709_v44 = vld [vmem:[#allocation13] ss:$0 sm:$0xff] }
 0x318   : > { %1798 = vmatprep.subr.bf16.mxu1 %v2278_v21  ;;  %v1130_v3 = vpack.c.bf16 %v2972_v41, %v2997_v61  ;;  %v1132_v2 = vpack.c.bf16 %v3029_v5, %v2987_v54  ;;  %v1171_v61 = vsel %vm3056_vm3, %v3038_v7, 0  ;;  %v1202_v5 = vld [vmem:[#allocation2 + $0x50] sm:$0xff]  ;;  %vm1083_vm7 = vcmask 523648  }
 0x319   : > { %1110 = vrot.lane.b32.xlu1 %v1099_v29, %s2279_s20  ;;  %v1064_v40 = vsel %vm3056_vm3, %v1060_v17, 0  ;;  %v1066_v1 = vsel %vm3040_vm15, %v1062_v46, 0  ;;  %v1206_v0 = vpack.c.bf16 %v1202_v5, %v3067_v19  ;;  %vm1223_vm9 = vcmask 1048448  }
 0x31a   : > { %1412 = vmatpush1.bf16.msra.mxu0 %v1940_v31  ;;  %1808 = vmatpush1.bf16.msra.mxu1 %v1940_v31  ;;  %v1134_v43 = vsel %vm3009_vm8, %v1130_v3, 0  ;;  %v1136_v4 = vsel %vm3052_vm5, %v1132_v2, 0  ;;  %vm1498_vm1 = vcmask 125952  }
 0x31b   : > { %v1298_v33 = vld [vmem:[#allocation3 + $0x28] sm:$0xff]  ;;  %951 = vrot.lane.b32.xlu0 %v1203_v24, %s2277_s10  ;;  %1413 = vmatprep.subr.bf16.mxu0 %v2278_v21 }
 0x31c   : > { %v1294_v39 = vld [vmem:[#allocation3 + $0x8] sm:$0xff]  ;;  %1722 = vmatprep.mubr.msk.bf16.mxu1 %vm1384_vm12, %v1298_v33  ;;  %1799 = vmatprep.subr.bf16.mxu1 %v2278_v21 }
 0x31d   : > { %1720 = vmatprep.mubr.msk.bf16.mxu0 %vm1384_vm12, %v1294_v39  ;;  %1034 = vrot.lane.b32.xlu1 %v1026_v34, %s2281_s23  ;;  %v1296_v28 = vld [vmem:[#allocation3 + $0x18] sm:$0xff] }
 0x31e   : > { %1414 = vmatpush1.bf16.msra.mxu0 %v1941_v35  ;;  %1809 = vmatpush1.bf16.msra.mxu1 %v1941_v35  ;;  %v1300_v30 = vld [vmem:[#allocation3 + $0x38] sm:$0xff] }
 0x31f   : > { %1106 = vrot.lane.b32.xlu0 %v1097_v49, %s2279_s20  ;;  %1415 = vmatprep.subr.bf16.mxu0 %v2278_v21 }
 0x320   : > { %1800 = vmatprep.subr.bf16.mxu1 %v2278_v21 }
 0x321   : > { %1038 = vrot.lane.b32.xlu1 %v1028_v51, %s2281_s23 }
 0x322   : > { %1416 = vmatpush1.bf16.msra.mxu0 %v1942_v56  ;;  %1810 = vmatpush1.bf16.msra.mxu1 %v1942_v56 }
 0x323   : > { %1071 = vrot.lane.b32.xlu0 %v1063_v18, %s2282_s18  ;;  %1417 = vmatprep.subr.bf16.mxu0 %v2278_v21 }
 0x324   : > { %1801 = vmatprep.subr.bf16.mxu1 %v2278_v21 }
 0x325   : > { %1075 = vrot.lane.b32.xlu1 %v1065_v42, %s2282_s18 }
 0x326   : > { %1418 = vmatpush1.bf16.msra.mxu0 %v1943_v57  ;;  %1811 = vmatpush1.bf16.msra.mxu1 %v1943_v57 }
 0x327   : > { %1141 = vrot.lane.b32.xlu0 %v1133_v59, %s2283_s12  ;;  %1419 = vmatprep.subr.bf16.mxu0 %v2278_v21 }
 0x328   : > { %1802 = vmatprep.subr.bf16.mxu1 %v2278_v21  ;;  %v1029_v21 = vsel %vm3052_vm5, %v3001_v62, 0  ;;  %v1165_v62 = vld [vmem:[#allocation2 + $0x4f] sm:$0xff] }
 0x329   : > { %1145 = vrot.lane.b32.xlu1 %v1135_v32, %s2283_s12  ;;  %v1169_v41 = vpack.c.bf16 %v1165_v62, %v1058_v60 }
 0x32a   : > { %1420 = vmatpush1.bf16.msra.mxu0 %v1399_v37  ;;  %1812 = vmatpush1.bf16.msra.mxu1 %v1399_v37 }
 0x32b   : > { %1178 = vrot.lane.b32.xlu0 %v1170_v53, %s2284_s17  ;;  %v1173_v54 = vsel %vm3040_vm15, %v1169_v41, 0 }
 0x32d   : > { %1182 = vrot.lane.b32.xlu1 %v1172_v48, %s2284_s17 }
 0x32f   : > { %1036 = vrot.lane.b32.xlu0 %v1027_v63, %s2281_s23 }
 0x331   : > { %1040 = vrot.lane.b32.xlu1 %v1029_v21, %s2281_s23 }
 0x333   : > { %1073 = vrot.lane.b32.xlu0 %v1064_v40, %s2282_s18 }
 0x335   : > { %1077 = vrot.lane.b32.xlu1 %v1066_v1, %s2282_s18 }
 0x337   : > { %1143 = vrot.lane.b32.xlu0 %v1134_v43, %s2283_s12 }
 0x339   : > { %1147 = vrot.lane.b32.xlu1 %v1136_v4, %s2283_s12 }
 0x33b   : > { %1180 = vrot.lane.b32.xlu0 %v1171_v61, %s2284_s17 }
 0x33d   : > { %1184 = vrot.lane.b32.xlu1 %v1173_v54, %s2284_s17 }
 0x33f   : > { %1213 = vrot.lane.b32.xlu0 %v2970_v38, %s2280_s21 }
 0x341   : > { %1217 = vrot.lane.b32.xlu1 %v1206_v0, %s2280_s21 }
 0x37d   : > { %v950_v47 = vpop.permute.xlu0 %949 }
 0x37e   : > { %962 = vst.msk [vmem:[#allocation3] sm:$0xff] %vm961_vm13, %v950_v47 }
 0x37f   : > { %v1109_v6 = vpop.permute.xlu1 %1108 }
 0x381   : > { %v954_v8 = vpop.permute.xlu0 %953 }
 0x382   : > { %964 = vst.msk [vmem:[#allocation3 + $0x20] sm:$0xff] %vm961_vm13, %v954_v8 }
 0x383   : > { %v1216_v7 = vpop.permute.xlu1 %1215 }
 0x385   : > { %v1105_v9 = vpop.permute.xlu0 %1104 }
 0x387   : > { %v956_v10 = vpop.permute.xlu1 %955 }
 0x388   : > { %965 = vst.msk [vmem:[#allocation3 + $0x30] sm:$0xff] %vm961_vm13, %v956_v10 }
 0x389   : > { %v1212_v52 = vpop.permute.xlu0 %1211 }
 0x38b   : > { %v1111_v11 = vpop.permute.xlu1 %1110 }
 0x38d   : > { %v952_v12 = vpop.permute.xlu0 %951 }
 0x38e   : > { %963 = vst.msk [vmem:[#allocation3 + $0x10] sm:$0xff] %vm961_vm13, %v952_v12 }
 0x38f   : > { %v1035_v58 = vpop.permute.xlu1 %1034 }
 0x390   : > { %1047 = vst.msk [vmem:[#allocation3] sm:$0xff] %vm1046_vm2, %v1035_v58 }
 0x391   : > { %v1107_v38 = vpop.permute.xlu0 %1106 }
 0x393   : > { %v1039_v13 = vpop.permute.xlu1 %1038 }
 0x394   : > { %1049 = vst.msk [vmem:[#allocation3 + $0x20] sm:$0xff] %vm1046_vm2, %v1039_v13 }
 0x395   : > { %v1072_v14 = vpop.permute.xlu0 %1071 }
 0x396   : > { %1084 = vst.msk [vmem:[#allocation3] sm:$0xff] %vm1083_vm7, %v1072_v14 }
 0x397   : > { %v1076_v15 = vpop.permute.xlu1 %1075  ;;  %1117 = vst.msk [vmem:[#allocation3] sm:$0xff] %vm1116_vm11, %v1105_v9 }
 0x398   : > { %1086 = vst.msk [vmem:[#allocation3 + $0x20] sm:$0xff] %vm1083_vm7, %v1076_v15 }
 0x399   : > { %1119 = vst.msk [vmem:[#allocation3 + $0x20] sm:$0xff] %vm1116_vm11, %v1109_v6  ;;  %v1142_v16 = vpop.permute.xlu0 %1141 }
 0x39a   : > { %1154 = vst.msk [vmem:[#allocation3] sm:$0xff] %vm1153_vm4, %v1142_v16 }
 0x39b   : > { %v1146_v19 = vpop.permute.xlu1 %1145 }
 0x39c   : > { %1156 = vst.msk [vmem:[#allocation3 + $0x20] sm:$0xff] %vm1153_vm4, %v1146_v19 }
 0x39d   : > { %v1179_v20 = vpop.permute.xlu0 %1178 }
 0x39e   : > { %1191 = vst.msk [vmem:[#allocation3] sm:$0xff] %vm1190_vm6, %v1179_v20 }
 0x39f   : > { %v1183_v22 = vpop.permute.xlu1 %1182  ;;  %1224 = vst.msk [vmem:[#allocation3] sm:$0xff] %vm1223_vm9, %v1212_v52 }
 0x3a0   : > { %1193 = vst.msk [vmem:[#allocation3 + $0x20] sm:$0xff] %vm1190_vm6, %v1183_v22 }
 0x3a1   : > { %1226 = vst.msk [vmem:[#allocation3 + $0x20] sm:$0xff] %vm1223_vm9, %v1216_v7  ;;  %v1037_v23 = vpop.permute.xlu0 %1036 }
 0x3a2   : > { %1048 = vst.msk [vmem:[#allocation3 + $0x10] sm:$0xff] %vm1046_vm2, %v1037_v23 }
 0x3a3   : > { %v1041_v24 = vpop.permute.xlu1 %1040 }
 0x3a4   : > { %1050 = vst.msk [vmem:[#allocation3 + $0x30] sm:$0xff] %vm1046_vm2, %v1041_v24 }
 0x3a5   : > { %v1074_v25 = vpop.permute.xlu0 %1073 }
 0x3a6   : > { %1085 = vst.msk [vmem:[#allocation3 + $0x10] sm:$0xff] %vm1083_vm7, %v1074_v25  ;;  %v1293_v26 = vld [vmem:[#allocation3] sm:$0xff] }
 0x3a7   : > { %v1078_v27 = vpop.permute.xlu1 %1077  ;;  %1118 = vst.msk [vmem:[#allocation3 + $0x10] sm:$0xff] %vm1116_vm11, %v1107_v38  ;;  %1434 = vmatmul.mubr.bf16.vlgmr.msra.gmra.mrb[4].mxu0 %v1293_v26 }
 0x3a8   : > { %1087 = vst.msk [vmem:[#allocation3 + $0x30] sm:$0xff] %vm1083_vm7, %v1078_v27  ;;  %v1297_v29 = vld [vmem:[#allocation3 + $0x20] sm:$0xff]  ;;  %1721 = vmatprep.mubr.msk.bf16.mxu0 %vm1384_vm12, %v1296_v28 }
 0x3a9   : > { %1120 = vst.msk [vmem:[#allocation3 + $0x30] sm:$0xff] %vm1116_vm11, %v1111_v11  ;;  %1450 = vmatmul.mubr.bf16.vlgmr.msra.gmra.mrb[4].mxu1 %v1297_v29  ;;  %v1144_v31 = vpop.permute.xlu0 %1143 }
 0x3aa   : > { %1723 = vmatprep.mubr.msk.bf16.mxu1 %vm1384_vm12, %v1300_v30  ;;  %1155 = vst.msk [vmem:[#allocation3 + $0x10] sm:$0xff] %vm1153_vm4, %v1144_v31 }
 0x3ab   : > { %v1148_v33 = vpop.permute.xlu1 %1147 }
 0x3ac   : > { %1157 = vst.msk [vmem:[#allocation3 + $0x30] sm:$0xff] %vm1153_vm4, %v1148_v33 }
 0x3ad   : > { %v1181_v39 = vpop.permute.xlu0 %1180 }
 0x3ae   : > { %1192 = vst.msk [vmem:[#allocation3 + $0x10] sm:$0xff] %vm1190_vm6, %v1181_v39 }
 0x3af   : > { %v1185_v34 = vpop.permute.xlu1 %1184 }
 0x3b0   : > { %1194 = vst.msk [vmem:[#allocation3 + $0x30] sm:$0xff] %vm1190_vm6, %v1185_v34 }
 0x3b1   : > { %v1214_v35 = vpop.permute.xlu0 %1213 }
 0x3b2   : > { %1225 = vst.msk [vmem:[#allocation3 + $0x10] sm:$0xff] %vm1223_vm9, %v1214_v35 }
 0x3b3   : > { %v1218_v49 = vpop.permute.xlu1 %1217 }
 0x3b4   : > { %1227 = vst.msk [vmem:[#allocation3 + $0x30] sm:$0xff] %vm1223_vm9, %v1218_v49 }
 0x3b9   : > { %v1295_v50 = vld [vmem:[#allocation3 + $0x10] sm:$0xff] }
 0x3ba   : > { %1442 = vmatmul.mubr.bf16.gmra.mrb[8].mxu0 %v1295_v50 }
 0x3bb   : > { %v1299_v51 = vld [vmem:[#allocation3 + $0x30] sm:$0xff] }
 0x3bc   : > { %1458 = vmatmul.mubr.bf16.gmra.mrb[8].mxu1 %v1299_v51 }
 0x47a   : > { %v1435_v56 = vpop.f32.mrb[4].mxu0 }
 0x47b   : > { %v1436_v18 = vadd.f32 %v1709_v44, %v1435_v56  ;;  %v1437_v36 = vpop.f32.mrb[5].mxu0 }
 0x47c   : > { %v1451_v42 = vpop.f32.mrb[4].mxu1  ;;  %v1438_v55 = vpop.f32.mrb[6].mxu0 }
 0x47d   : > { %v1739_v57 = vpack.c.bf16 %v1436_v18, %v1436_v18  ;;  %v1452_v45 = vadd.f32 %v1709_v44, %v1451_v42  ;;  %v1453_v59 = vpop.f32.mrb[5].mxu1  ;;  %v1439_v32 = vadd.f32 %v1709_v44, %v1438_v55  ;;  %v1440_v37 = vpop.f32.mrb[7].mxu0 }
 0x47e   : > { %v1454_v53 = vpop.f32.mrb[6].mxu1 }
 0x47f   : > { %1499 = vst.msk [vmem:[%s3205_s3] sm:$0xf] %vm1498_vm1, %v1739_v57  ;;  %v1743_v48 = vpack.c.bf16 %v1452_v45, %v1452_v45  ;;  %v1740_v60 = vpack.c.bf16 %v1439_v32, %v1439_v32  ;;  %v1455_v63 = vadd.f32 %v1709_v44, %v1454_v53  ;;  %v1456_v17 = vpop.f32.mrb[7].mxu1 }
 0x481   : > { %1503 = vst.msk [vmem:[%s3205_s3 + $0x10] sm:$0xf] %vm1498_vm1, %v1743_v48  ;;  %1500 = vst.msk [vmem:[%s3205_s3 + $0x4] sm:$0xf] %vm1498_vm1, %v1740_v60  ;;  %v1744_v21 = vpack.c.bf16 %v1455_v63, %v1455_v63 }
 0x483   : > { %1504 = vst.msk [vmem:[%s3205_s3 + $0x14] sm:$0xf] %vm1498_vm1, %v1744_v21 }
 0x48d   : > { %v1443_v46 = vpop.f32.mrb[8].mxu0 }
 0x48e   : > { %v1444_v40 = vadd.f32 %v1709_v44, %v1443_v46  ;;  %v1445_v3 = vpop.f32.mrb[9].mxu0 }
 0x48f   : > { %v1459_v1 = vpop.f32.mrb[8].mxu1  ;;  %v1446_v2 = vpop.f32.mrb[10].mxu0 }
 0x490   : > { %v1741_v62 = vpack.c.bf16 %v1444_v40, %v1444_v40  ;;  %v1460_v43 = vadd.f32 %v1709_v44, %v1459_v1  ;;  %v1461_v4 = vpop.f32.mrb[9].mxu1  ;;  %v1447_v41 = vadd.f32 %v1709_v44, %v1446_v2  ;;  %v1448_v61 = vpop.f32.mrb[11].mxu0 }
 0x491   : > { %v1462_v54 = vpop.f32.mrb[10].mxu1 }
 0x492   : > { %1501 = vst.msk [vmem:[%s3205_s3 + $0x8] sm:$0xf] %vm1498_vm1, %v1741_v62  ;;  %v1745_v5 = vpack.c.bf16 %v1460_v43, %v1460_v43  ;;  %v1742_v0 = vpack.c.bf16 %v1447_v41, %v1447_v41  ;;  %v1463_v47 = vadd.f32 %v1709_v44, %v1462_v54  ;;  %v1464_v6 = vpop.f32.mrb[11].mxu1 }
 0x494   : > { %1505 = vst.msk [vmem:[%s3205_s3 + $0x18] sm:$0xf] %vm1498_vm1, %v1745_v5  ;;  %1502 = vst.msk [vmem:[%s3205_s3 + $0xc] sm:$0xf] %vm1498_vm1, %v1742_v0  ;;  %v1746_v8 = vpack.c.bf16 %v1463_v47, %v1463_v47 }
 0x496   : > { %1506 = vst.msk [vmem:[%s3205_s3 + $0x1c] sm:$0xf] %vm1498_vm1, %v1746_v8 }
 0x497   : > { %2192 = shalt.err (!%p2189_p7)
}
 0x498   : > { %s2193_s13 = scalar_lea.hbm %s3222_s16, 512  ;;  %s2197_s15 = scalar_lea.hbm %s3285_s7, 1024 }
 0x499   : > { %p2194_p0 = scmp.ne.s32.totalorder %s3222_s16, %s2193_s13  ;;  %p2198_p9 = scmp.lt.u32.totalorder %s3222_s16, %s3285_s7 }
 0x49a   : > { %p2199_p3 = scmp.lt.u32.totalorder %s2197_s15, %s2193_s13  ;;  %p2201_p1 = scmp.lt.u32.totalorder %s2193_s13, %s3222_s16 }
 0x49b   : > { %p2195_p13 = pnand %p2194_p0, %p3391_p8 }
 0x49c   : > { %p2200_p11 = por %p2199_p3, %p2198_p9 }
 0x49d   : > { %p2196_p2 = pneg %p2195_p13 }
 0x49e   : > { %p2202_p12 = por %p2201_p1, %p2200_p11 }
 0x4a0   : > { %p2203_p6 = pnand %p2202_p12, %p2196_p2 }
 0x4a2   : > { %2206 = shalt.err (!%p2203_p6)
}
 0x4a3   : > { %s2286_s21 = smov 4  }
 0x4a4   : > { %1837 = dma.vmem_to_hbm [thread:$0]  (%p3391_p8), %s3228_s27, 512, %s3222_s16, %s3234_s30, %s2279_s20, %s2279_s20, %s2286_s21  }
 0x4a5 PF: > { %s3392_s23 = sld [smem:[#allocation27_spill]]  ;;  %s3393_s18 = sld [smem:[#allocation24_spill]] }
 0x4a6   : > { %s1536_s12 = sand.u32 1, %s2249_s24  }
 0x4a7   : > { %s1537_s17 = scalar_lea.sflag [#allocation6], %s1536_s12 }
 0x4ab   : > { %p3394_p4 = scmp.ne.s32.totalorder %s3392_s23, 0  ;;  %p3395_p10 = scmp.ge.s32.totalorder %s3393_s18, 2 }
 0x4ad   : > { %p1863_p5 = pnand %p3395_p10, %p3394_p4 }
 0x4af   : > { %2244 = dma.done.wait (!%p1863_p5), %s1537_s17, 512  }
 0x4b0   : > { %2246 = vsyncadd (!%p1863_p5), %s1537_s17, 4294966784  ;;  %s3396_s27 = sld [smem:[#allocation25_spill]]  ;;  %s3397_s14 = sld [smem:[#allocation23_spill]] }
 0x4b1   : > { %s3398_s26 = sld [smem:[#allocation26_spill]]  ;;  %s3399_s24 = smov %s2253_s25 }
 0x4b6   : > { %p23_p7 = scmp.ge.s32.totalorder %s3396_s27, 4   ;;  %s3400_s25 = smov %s3397_s14 }
 0x4b8   :  { %25 = sbr.rel (!%p23_p7) target bundleno = 12 (0xc), region = 124 }
 0x4bf   :  { %1542 = vsyncpa [#allocation5], 1 }
 0x4c0   :  { %1544 = vsyncpa [#allocation5 + $0x1], 1 }
 0x4c1   :  { %1545 = vsyncpa [#allocation8], 1 }
 0x4c2   :  { %1546 = vsyncpa [#allocation11], 1 }
 0x4c3   :  { %1547 = vsyncpa [#allocation14], 1 }
 0x4c4   :  { %1548 = vsyncpa [#allocation6], 1 }
 0x4c5   :  { %1550 = vsyncpa [#allocation6 + $0x1], 1 }

// kernel: midblock_forward.7
= control target key start
LH: loop header
LB: loop body
LE: loop exit
PB: predicated region body
PF: predicated region fallthrough
CT: control target
= control target key end

     0   :  { %s4274_s0 = inlined_call_operand.hbm [shape: bf16[2,64,16], index: 0, kind: input, shape index: {}]   ;;  %s4275_s1 = inlined_call_operand.hbm [shape: f32[16,16], index: 1, kind: input, shape index: {}]   ;;  %s4276_s2 = inlined_call_operand.hbm [shape: f32[1,16], index: 2, kind: input, shape index: {}]   ;;  %s4277_s3 = inlined_call_operand.hbm [shape: f32[1,16], index: 3, kind: input, shape index: {}]   ;;  %s4278_s4 = inlined_call_operand.hbm [shape: bf16[16,48], index: 4, kind: input, shape index: {}]   ;;  %s4279_s5 = inlined_call_operand.hbm [shape: f32[1,48], index: 5, kind: input, shape index: {}]   ;;  %s4280_s6 = inlined_call_operand.hbm [shape: bf16[16,16], index: 6, kind: input, shape index: {}]   ;;  %s4281_s7 = inlined_call_operand.hbm [shape: f32[1,16], index: 7, kind: input, shape index: {}]   ;;  %s4282_s8 = inlined_call_operand.hbm [shape: bf16[2,64,16], index: 8, kind: output, shape index: {}]  }
   0x1   :  { %4294 = sst [smem:[#allocation32_spill]] %s4275_s1 }
   0x2   :  { %4295 = sst [smem:[#allocation33_spill]] %s4276_s2 }
   0x3   :  { %13 = vsyncpa [#allocation4], 0 }
   0x4   :  { %15 = vsyncpa [#allocation4 + $0x1], 0 }
   0x5   :  { %16 = vsyncpa [#allocation7], 0 }
   0x6   :  { %17 = vsyncpa [#allocation10], 0 }
   0x7   :  { %18 = vsyncpa [#allocation13], 0 }
   0x8   :  { %19 = vsyncpa [#allocation16], 0 }
   0x9   :  { %20 = vsyncpa [#allocation5], 0 }
   0xa   :  { %22 = vsyncpa [#allocation5 + $0x1], 0  ;;  %s3349_s27 = smov 0   ;;  %s3351_s28 = smov 0  }
   0xb   :  { %s3353_s29 = smov 0   ;;  %s3355_s30 = smov 0  }
   0xc LB: > { %s3273_s9 = smov [#allocation6]   ;;  %s3370_s11 = sadd.s32 4294967295, %s3271_s30   ;;  %s3271_s30 = sphi %s3355_s30, %s4337_s30   ;;  %s3267_s29 = sphi %s3353_s29, %s4336_s29   ;;  %s3263_s28 = sphi %s3351_s28, %s4335_s28   ;;  %s3259_s27 = sphi %s3349_s27, %s4334_s27  }
   0xd   : > { %s244_s10 = sshll.u32 %s3273_s9, 4  ;;  %p2316_p0 = scmp.ge.s32.totalorder %s3271_s30, 1  ;;  %s3375_s10 = int_to_ptr.vmem [resolvable:$true] %s244_s10 }
   0xe   : > { %p4283_p1 = scmp.eq.s32.totalorder %s3370_s11, 0  ;;  %p232_p2 = scmp.lt.s32.totalorder %s3271_s30, 3 }
   0xf   : > { %s3274_s13 = smov [#allocation9]   ;;  %s3275_s16 = smov [#allocation12]  }
  0x10   : > { %p3377_p3 = pnand %p2316_p0, %p232_p2  ;;  %s269_s14 = sshll.u32 %s3274_s13, 4  ;;  %s3390_s14 = int_to_ptr.vmem [resolvable:$true] %s269_s14 }
  0x11   : > { %s293_s17 = sshll.u32 %s3275_s16, 4  ;;  %s4298_s1 = sld [smem:[#allocation32_spill]]  ;;  %s3392_s17 = int_to_ptr.vmem [resolvable:$true] %s293_s17 }
  0x12   : > { %s4296_s12 = scalar_select %p3377_p3, 1, 0 }
  0x13   : > { %p2724_p5 = pneg %p3377_p3 }
  0x15   : > { %p3386_p6 = pnand %p2724_p5, %p4283_p1 }
  0x17   : > { %s2963_s20 = scalar_lea.hbm %s4298_s1, 256  ;;  %p3402_p8 = pneg %p3386_p6 }
  0x18   : > { %p2964_p7 = scmp.ne.s32.totalorder %s4298_s1, %s2963_s20  ;;  %p2970_p11 = scmp.lt.u32.totalorder %s2963_s20, %s4298_s1 }
  0x1a   : > { %p2966_p9 = pnand %p3402_p8, %p2964_p7 }
  0x1c   : > { %p2967_p10 = pneg %p2966_p9 }
  0x1e   : > { %p2972_p12 = pnand %p2970_p11, %p2967_p10 }
  0x20   : > { %2975 = shalt.err (!%p2972_p12)
}
  0x21   : > { %s2976_s26 = scalar_lea.vmem %s3375_s10, 256  ;;  %p2984_p5 = scmp.lt.s32.totalorder %s3375_s10, %s3375_s10 }
  0x22   : > { %p2977_p13 = scmp.ne.s32.totalorder %s3375_s10, %s2976_s26  ;;  %p2985_p4 = scmp.lt.s32.totalorder %s2976_s26, %s2976_s26 }
  0x24   : > { %p2979_p0 = pnand %p2977_p13, %p3402_p8  ;;  %p2986_p7 = por %p2985_p4, %p2984_p5 }
  0x26   : > { %p2980_p2 = pneg %p2979_p0 }
  0x28   : > { %p2987_p9 = pnand %p2986_p7, %p2980_p2 }
  0x2a   : > { %2990 = shalt.err (!%p2987_p9)
}
  0x2b   : > { %s3276_s9 = smov 128   ;;  %s3277_s13 = smov 8  }
  0x2c   : > { %2727 = dma.hbm_to_vmem [thread:$0]  (!%p3386_p6), %s4298_s1, 256, %s3375_s10, [#allocation7], %s3276_s9, %s3276_s9, %s3277_s13  }
  0x2d   : > { %s2991_s21 = scalar_lea.hbm %s4277_s3, 16 }
  0x2e   : > { %p2992_p4 = scmp.ne.s32.totalorder %s4277_s3, %s2991_s21  ;;  %p2998_p12 = scmp.lt.u32.totalorder %s2991_s21, %s4277_s3 }
  0x30   : > { %p2994_p10 = pnand %p2992_p4, %p3402_p8 }
  0x32   : > { %p2995_p11 = pneg %p2994_p10 }
  0x34   : > { %p3000_p13 = pnand %p2998_p12, %p2995_p11 }
  0x36   : > { %3003 = shalt.err (!%p3000_p13)
}
  0x37   : > { %s3004_s10 = scalar_lea.vmem %s3390_s14, 16  ;;  %s3011_s9 = scalar_lea.vmem %s3390_s14, 32 }
  0x38   : > { %p3005_p0 = scmp.ne.s32.totalorder %s3390_s14, %s3004_s10  ;;  %p3012_p7 = scmp.lt.s32.totalorder %s3390_s14, %s3390_s14 }
  0x39   : > { %p3013_p9 = scmp.lt.s32.totalorder %s3011_s9, %s3004_s10 }
  0x3a   : > { %p3007_p2 = pnand %p3005_p0, %p3402_p8 }
  0x3b   : > { %p3014_p4 = por %p3013_p9, %p3012_p7 }
  0x3c   : > { %p3008_p5 = pneg %p3007_p2 }
  0x3e   : > { %p3015_p10 = pnand %p3014_p4, %p3008_p5 }
  0x40   : > { %3018 = shalt.err (!%p3015_p10)
}
  0x41   : > { %2733 = dma.hbm_to_vmem [thread:$0]  (!%p3386_p6), %s4277_s3, 16, %s3390_s14, [#allocation10]  }
  0x42   : > { %s3019_s20 = scalar_lea.hbm %s4279_s5, 16 }
  0x43   : > { %p3020_p11 = scmp.ne.s32.totalorder %s4279_s5, %s3019_s20  ;;  %p3026_p0 = scmp.lt.u32.totalorder %s3019_s20, %s4279_s5 }
  0x45   : > { %p3022_p12 = pnand %p3020_p11, %p3402_p8 }
  0x47   : > { %p3023_p13 = pneg %p3022_p12 }
  0x49   : > { %p3028_p2 = pnand %p3026_p0, %p3023_p13 }
  0x4b   : > { %3031 = shalt.err (!%p3028_p2)
}
  0x4c   : > { %s3032_s14 = scalar_lea.vmem %s3392_s17, 16  ;;  %s3039_s26 = scalar_lea.vmem %s3392_s17, 32 }
  0x4d   : > { %p3033_p5 = scmp.ne.s32.totalorder %s3392_s17, %s3032_s14  ;;  %p3040_p4 = scmp.lt.s32.totalorder %s3392_s17, %s3392_s17 }
  0x4e   : > { %p3041_p10 = scmp.lt.s32.totalorder %s3039_s26, %s3032_s14 }
  0x4f   : > { %p3035_p7 = pnand %p3033_p5, %p3402_p8 }
  0x50   : > { %p3042_p11 = por %p3041_p10, %p3040_p4 }
  0x51   : > { %p3036_p9 = pneg %p3035_p7 }
  0x53   : > { %p3043_p12 = pnand %p3042_p11, %p3036_p9 }
  0x55   : > { %3046 = shalt.err (!%p3043_p12)
}
  0x56   : > { %2739 = dma.hbm_to_vmem [thread:$0]  (!%p3386_p6), %s4279_s5, 16, %s3392_s17, [#allocation13]  }
  0x57   : > { %s3278_s13 = smov [#allocation8]   ;;  %s3279_s18 = smov [#allocation11]  }
  0x58   : > { %s258_s16 = sshll.u32 %s3278_s13, 4  ;;  %s279_s19 = sshll.u32 %s3279_s18, 4  ;;  %s259_s16 = int_to_ptr.vmem [resolvable:$true] %s258_s16  ;;  %s280_s19 = int_to_ptr.vmem [resolvable:$true] %s279_s19 }
  0x59   : > { %s4300_s2 = sld [smem:[#allocation33_spill]] }
  0x5f   : > { %s3047_s22 = scalar_lea.hbm %s4300_s2, 16 }
  0x60   : > { %p3048_p13 = scmp.ne.s32.totalorder %s4300_s2, %s3047_s22  ;;  %p3054_p5 = scmp.lt.u32.totalorder %s3047_s22, %s4300_s2 }
  0x62   : > { %p3050_p0 = pnand %p3048_p13, %p3402_p8 }
  0x64   : > { %p3051_p2 = pneg %p3050_p0 }
  0x66   : > { %p3056_p7 = pnand %p3054_p5, %p3051_p2 }
  0x68   : > { %3059 = shalt.err (!%p3056_p7)
}
  0x69   : > { %s3060_s17 = scalar_lea.vmem %s259_s16, 16  ;;  %s3067_s10 = scalar_lea.vmem %s259_s16, 32 }
  0x6a   : > { %p3061_p9 = scmp.ne.s32.totalorder %s259_s16, %s3060_s17  ;;  %p3068_p11 = scmp.lt.s32.totalorder %s259_s16, %s259_s16 }
  0x6b   : > { %p3069_p12 = scmp.lt.s32.totalorder %s3067_s10, %s3060_s17 }
  0x6c   : > { %p3063_p4 = pnand %p3061_p9, %p3402_p8 }
  0x6d   : > { %p3070_p1 = por %p3069_p12, %p3068_p11 }
  0x6e   : > { %p3064_p10 = pneg %p3063_p4 }
  0x70   : > { %p3071_p3 = pnand %p3070_p1, %p3064_p10 }
  0x72   : > { %3074 = shalt.err (!%p3071_p3)
}
  0x73   : > { %2730 = dma.hbm_to_vmem [thread:$0]  (!%p3386_p6), %s4300_s2, 16, %s259_s16, [#allocation7]  }
  0x74   : > { %s3075_s21 = scalar_lea.hbm %s4278_s4, 128 }
  0x75   : > { %p3076_p13 = scmp.ne.s32.totalorder %s4278_s4, %s3075_s21  ;;  %p3082_p3 = scmp.lt.u32.totalorder %s3075_s21, %s4278_s4 }
  0x77   : > { %p3078_p0 = pnand %p3076_p13, %p3402_p8 }
  0x79   : > { %p3079_p1 = pneg %p3078_p0 }
  0x7b   : > { %p3084_p2 = pnand %p3082_p3, %p3079_p1 }
  0x7d   : > { %3087 = shalt.err (!%p3084_p2)
}
  0x7e   : > { %s3088_s26 = scalar_lea.vmem %s280_s19, 128  ;;  %p3096_p4 = scmp.lt.s32.totalorder %s280_s19, %s280_s19 }
  0x7f   : > { %p3089_p5 = scmp.ne.s32.totalorder %s280_s19, %s3088_s26  ;;  %p3097_p10 = scmp.lt.s32.totalorder %s3088_s26, %s3088_s26 }
  0x81   : > { %p3091_p7 = pnand %p3089_p5, %p3402_p8  ;;  %p3098_p11 = por %p3097_p10, %p3096_p4 }
  0x83   : > { %p3092_p9 = pneg %p3091_p7 }
  0x85   : > { %p3099_p12 = pnand %p3098_p11, %p3092_p9 }
  0x87   : > { %3102 = shalt.err (!%p3099_p12)
}
  0x88   : > { %s3280_s16 = smov 64   ;;  %s3281_s17 = smov 4  }
  0x89   : > { %2736 = dma.hbm_to_vmem [thread:$0]  (!%p3386_p6), %s4278_s4, 128, %s280_s19, [#allocation10], %s3280_s16, %s3280_s16, %s3281_s17  }
  0x8a   : > { %s3282_s13 = smov [#allocation14]   ;;  %s3283_s20 = smov [#allocation15]  }
  0x8b   : > { %s303_s18 = sshll.u32 %s3282_s13, 4  ;;  %s317_s21 = sshll.u32 %s3283_s20, 4  ;;  %s304_s18 = int_to_ptr.vmem [resolvable:$true] %s303_s18  ;;  %s318_s21 = int_to_ptr.vmem [resolvable:$true] %s317_s21 }
  0x8c   : > { %s3103_s25 = scalar_lea.hbm %s4280_s6, 128 }
  0x8d   : > { %p3104_p13 = scmp.ne.s32.totalorder %s4280_s6, %s3103_s25  ;;  %p3110_p3 = scmp.lt.u32.totalorder %s3103_s25, %s4280_s6 }
  0x8f   : > { %p3106_p0 = pnand %p3104_p13, %p3402_p8 }
  0x91   : > { %p3107_p1 = pneg %p3106_p0 }
  0x93   : > { %p3112_p2 = pnand %p3110_p3, %p3107_p1 }
  0x95   : > { %3115 = shalt.err (!%p3112_p2)
}
  0x96   : > { %s3116_s19 = scalar_lea.vmem %s304_s18, 128  ;;  %p3124_p4 = scmp.lt.s32.totalorder %s304_s18, %s304_s18 }
  0x97   : > { %p3117_p5 = scmp.ne.s32.totalorder %s304_s18, %s3116_s19  ;;  %p3125_p10 = scmp.lt.s32.totalorder %s3116_s19, %s3116_s19 }
  0x99   : > { %p3119_p7 = pnand %p3117_p5, %p3402_p8  ;;  %p3126_p11 = por %p3125_p10, %p3124_p4 }
  0x9b   : > { %p3120_p9 = pneg %p3119_p7 }
  0x9d   : > { %p3127_p12 = pnand %p3126_p11, %p3120_p9 }
  0x9f   : > { %3130 = shalt.err (!%p3127_p12)
}
  0xa0   : > { %2742 = dma.hbm_to_vmem [thread:$0]  (!%p3386_p6), %s4280_s6, 128, %s304_s18, [#allocation13], %s3280_s16, %s3280_s16, %s3281_s17  }
  0xa1   : > { %s3131_s13 = scalar_lea.hbm %s4281_s7, 16 }
  0xa2   : > { %p3132_p13 = scmp.ne.s32.totalorder %s4281_s7, %s3131_s13  ;;  %p3138_p3 = scmp.lt.u32.totalorder %s3131_s13, %s4281_s7 }
  0xa4   : > { %p3134_p0 = pnand %p3132_p13, %p3402_p8 }
  0xa6   : > { %p3135_p1 = pneg %p3134_p0 }
  0xa8   : > { %p3140_p2 = pnand %p3138_p3, %p3135_p1 }
  0xaa   : > { %3143 = shalt.err (!%p3140_p2)
}
  0xab   : > { %s3144_s14 = scalar_lea.vmem %s318_s21, 16  ;;  %s3151_s18 = scalar_lea.vmem %s318_s21, 32 }
  0xac   : > { %p3145_p5 = scmp.ne.s32.totalorder %s318_s21, %s3144_s14  ;;  %p3152_p4 = scmp.lt.s32.totalorder %s318_s21, %s318_s21 }
  0xad   : > { %p3153_p10 = scmp.lt.s32.totalorder %s3151_s18, %s3144_s14 }
  0xae   : > { %p3147_p7 = pnand %p3145_p5, %p3402_p8 }
  0xaf   : > { %p3154_p11 = por %p3153_p10, %p3152_p4 }
  0xb0   : > { %p3148_p9 = pneg %p3147_p7 }
  0xb2   : > { %p3155_p12 = pnand %p3154_p11, %p3148_p9 }
  0xb4   : > { %3158 = shalt.err (!%p3155_p12)
}
  0xb5   : > { %2745 = dma.hbm_to_vmem [thread:$0]  (!%p3386_p6), %s4281_s7, 16, %s318_s21, [#allocation16]  }
  0xb6   : > { %s2315_s23 = sadd.s32 4294967294, %s3271_s30   ;;  %s3551_s15 = sadd.s32 1, %s3271_s30  }
  0xb7   : > { %s35_s1 = sadd.s32 1, %s3267_s29  ;;  %s32_s2 = ssub.s32 %s3271_s30, %s3551_s15 }
  0xb8   : > { %p42_p8 = scmp.ne.s32.totalorder %s3267_s29, %s3263_s28  ;;  %p33_p13 = scmp.eq.s32.totalorder %s32_s2, 0 }
  0xb9   : > { %p43_p0 = scmp.eq.s32.totalorder %s3271_s30, 0  ;;  %p48_p1 = scmp.ne.s32.totalorder %s3263_s28, %s3259_s27 }
  0xba   : > { %p219_p3 = scmp.eq.s32.totalorder %s3370_s11, 1  ;;  %p4301_p5 = scmp.eq.s32.totalorder %s3370_s11, 0 }
  0xbb   : > { %s3563_s10 = scalar_select %p33_p13, %s3267_s29, %s35_s1  }
  0xbc   : > { %p44_p2 = por %p43_p0, %p42_p8  ;;  %p3567_p7 = por %p4301_p5, %p48_p1 }
  0xbd   : > { %p3571_p6 = por %p219_p3, %p42_p8  ;;  %p225_p9 = scmp.eq.s32.totalorder %s2315_s23, 1 }
  0xbe   : > { %p2761_p4 = scmp.lt.s32.totalorder %s3271_s30, 2  ;;  %s328_s13 = sand.u32 1, %s3267_s29  }
  0xbf   : > { %s4303_s21 = scalar_select %p3571_p6, 1, 0 }
  0xc0   : > { %p3577_p10 = por %p225_p9, %p48_p1  ;;  %s2325_s22 = sshll.u32 %s328_s13, 5 }
  0xc1   : > { %s2399_s24 = sshll.u32 %s3271_s30, 9  ;;  %s332_s26 = scalar_lea.vmem [#allocation3], %s2325_s22 }
  0xc2   : > { %s4304_s20 = scalar_select %p3577_p10, 1, 0 }
  0xc3   : > { %s3585_s18 = scalar_lea.hbm %s4274_s0, %s2399_s24  ;;  %s339_s19 = sshll.u32 %s332_s26, 4  ;;  %s3591_s19 = int_to_ptr.vmem [resolvable:$true] %s339_s19 }
  0xc4   : > { %p3587_p11 = pnand %p2761_p4, %p44_p2  ;;  %s3593_s1 = scalar_lea.sflag [#allocation4], %s328_s13 }
  0xc5   : > { %s3159_s2 = scalar_lea.hbm %s3585_s18, 512  ;;  %s3164_s25 = scalar_lea.hbm %s4274_s0, 1024 }
  0xc6   : > { %p3160_p12 = scmp.ne.s32.totalorder %s3585_s18, %s3159_s2  ;;  %p3161_p8 = pneg %p3587_p11 }
  0xc7   : > { %p3165_p1 = scmp.lt.u32.totalorder %s3585_s18, %s4274_s0  ;;  %p3166_p3 = scmp.lt.u32.totalorder %s3164_s25, %s3159_s2 }
  0xc8   : > { %p3162_p13 = pnand %p3161_p8, %p3160_p12  ;;  %p3168_p5 = scmp.lt.u32.totalorder %s3159_s2, %s3585_s18 }
  0xc9   : > { %p3167_p2 = por %p3166_p3, %p3165_p1 }
  0xca   : > { %p3163_p0 = pneg %p3162_p13 }
  0xcb   : > { %p3169_p9 = por %p3168_p5, %p3167_p2 }
  0xcd   : > { %p3170_p4 = pnand %p3169_p9, %p3163_p0 }
  0xcf   : > { %3173 = shalt.err (!%p3170_p4)
}
  0xd0   : > { %s3174_s13 = scalar_lea.vmem %s3591_s19, 512  ;;  %s3284_s22 = smov [#allocation3]  }
  0xd1   : > { %p3175_p12 = scmp.ne.s32.totalorder %s3591_s19, %s3174_s13  ;;  %s3179_s24 = sshll.u32 %s3284_s22, 4  ;;  %s3180_s24 = int_to_ptr.vmem [resolvable:$false] %s3179_s24 }
  0xd2   : > { %s3181_s14 = scalar_lea.vmem %s3180_s24, 1024  ;;  %p3182_p6 = scmp.lt.s32.totalorder %s3591_s19, %s3180_s24 }
  0xd3   : > { %p3177_p13 = pnand %p3175_p12, %p3161_p8  ;;  %p3183_p1 = scmp.lt.s32.totalorder %s3181_s14, %s3174_s13 }
  0xd5   : > { %p3178_p10 = pneg %p3177_p13  ;;  %p3184_p3 = por %p3183_p1, %p3182_p6 }
  0xd7   : > { %p3185_p2 = pnand %p3184_p3, %p3178_p10 }
  0xd9   : > { %3188 = shalt.err (!%p3185_p2)
}
  0xda   : > { %2749 = dma.hbm_to_vmem [thread:$0]  (!%p3587_p11), %s3585_s18, 512, %s3591_s19, %s3593_s1, %s3280_s16, %s3280_s16, %s3281_s17  }
  0xdb   : > { %p4306_p8 = scmp.ne.s32.totalorder %s4296_s12, 0 }
  0xdd   : > { %351 = sbr.rel (%p4306_p8) target bundleno = 3410 (0xd52), region = 52 }
  0xe4   : > { %s3627_s2 = sand.u32 1, %s3263_s28  }
  0xe5   : > { %s2329_s25 = sshll.u32 %s3627_s2, 5  ;;  %s354_s26 = scalar_lea.sflag [#allocation4], %s3627_s2 }
  0xe6   : > { %s3633_s23 = scalar_lea.vmem [#allocation3], %s2329_s25 }
  0xe7   : > { %3234 = dma.done.wait (%p3567_p7), %s354_s26, 512  }
  0xe8   : > { %3236 = vsyncadd (%p3567_p7), %s354_s26, 4294966784  ;;  %p4307_p6 = scmp.eq.s32.totalorder %s3370_s11, 0 }
  0xea   : > { %3238 = dma.done.wait (%p4307_p6), [#allocation7], 272   ;;  %p4308_p10 = pmov %p4307_p6 }
  0xeb   : > { %p4309_p11 = pmov %p4307_p6 }
  0xec   : > { %3240 = vsyncadd (%p4308_p10), [#allocation7], 4294967024 }
  0xed   : > { %3242 = dma.done.wait (%p4309_p11), [#allocation10], 144   ;;  %p4310_p0 = pmov %p4307_p6 }
  0xef   : > { %3244 = vsyncadd (%p4310_p0), [#allocation10], 4294967152  ;;  %p4311_p5 = pmov %p4310_p0 }
  0xf0   : > { %p4312_p9 = pmov %p4310_p0 }
  0xf1   : > { %3246 = dma.done.wait (%p4311_p5), [#allocation13], 144  }
  0xf2   : > { %3248 = vsyncadd (%p4312_p9), [#allocation13], 4294967152  ;;  %p4313_p7 = pmov %p4310_p0 }
  0xf3   : > { %p4314_p4 = pmov %p4310_p0 }
  0xf4   : > { %3250 = dma.done.wait (%p4313_p7), [#allocation16], 16  }
  0xf5   : > { %3252 = vsyncadd (%p4314_p4), [#allocation16], 4294967280  ;;  %v3285_v0 = vmov 0.0|0.0   ;;  %vm3286_vm0 = vmmov 0   ;;  %v3287_v1 = vmov 0.0   ;;  %v457_v2 = vld [vmem:[#allocation6] sm:$0xff]  ;;  %v532_v38 = vlaneseq }
  0xf6   : > { %2670 = vmatprep.subr.bf16.mxu0 %v3285_v0  ;;  %2512 = vmatprep.mubr.msk.f32.mxu0 %vm3286_vm0, %v3287_v1  ;;  %v458_v3 = vld [vmem:[#allocation6 + $0x8] sm:$0xff]  ;;  %v2410_v4 = vld [vmem:[%s3633_s23] sm:$0xff]   ;;  %vm435_vm1 = vcmask 130048   ;;  %v2426_v9 = vld [vmem:[%s3633_s23 + $0x10] sm:$0xff]   ;;  %vm803_vm2 = vcmask 31744   ;;  %s3288_s12 = smov 112  }
  0xf7   : > { %v2671_v5 = vpack.c.bf16 %v458_v3, %v457_v2  ;;  %v3657_v6 = vunpack.c.l.bf16 %v2410_v4  ;;  %v3659_v7 = vunpack.c.h.bf16 %v2410_v4  ;;  %v2425_v8 = vld [vmem:[%s3633_s23 + $0x8] sm:$0xff]   ;;  %v3667_v12 = vunpack.c.l.bf16 %v2426_v9  ;;  %v2427_v15 = vld [vmem:[%s3633_s23 + $0x18] sm:$0xff]   ;;  %s3289_s16 = smov 96   ;;  %s3290_s17 = smov 108  }
  0xf8   : > { %v3663_v10 = vunpack.c.l.bf16 %v2425_v8  ;;  %v3665_v11 = vunpack.c.h.bf16 %v2425_v8  ;;  %v3676_v18 = vunpack.c.h.bf16 %v2426_v9  ;;  %v3680_v21 = vunpack.c.l.bf16 %v2427_v15  ;;  %s3291_s9 = smov 124   ;;  %s3292_s18 = smov 92  }
  0xf9   : > { %4315 = vst [vmem:[#allocation24_spill] sm:$0xff] %v3657_v6  ;;  %4316 = vst [vmem:[#allocation25_spill] sm:$0xff] %v3659_v7  ;;  %2672 = vmatpush3.bf16.msra.mxu0 %v2671_v5  ;;  %v436_v13 = vsel %vm435_vm1, %v3657_v6, 0.0  ;;  %v437_v14 = vsel %vm435_vm1, %v3659_v7, 0.0  ;;  %v443_v22 = vsel %vm435_vm1, %v3667_v12, 0.0  ;;  %v3684_v24 = vunpack.c.h.bf16 %v2427_v15  ;;  %s3293_s19 = smov 104  }
  0xfa   : > { %4317 = vst [vmem:[#allocation26_spill] sm:$0xff] %v3663_v10  ;;  %4318 = vst [vmem:[#allocation27_spill] sm:$0xff] %v3665_v11  ;;  %v438_v16 = vadd.f32 %v437_v14, %v436_v13  ;;  %v439_v17 = vsel %vm435_vm1, %v3663_v10, 0.0  ;;  %2673 = vmatprep.subr.bf16.mxu0 %v3285_v0  ;;  %v441_v19 = vsel %vm435_vm1, %v3665_v11, 0.0  ;;  %v445_v25 = vsel %vm435_vm1, %v3676_v18, 0.0  ;;  %s3294_s1 = smov 120  }
  0xfb   : > { %4319 = vst [vmem:[#allocation28_spill] sm:$0xff] %v3667_v12  ;;  %4320 = vst [vmem:[#allocation29_spill] sm:$0xff] %v3676_v18  ;;  %v447_v27 = vsel %vm435_vm1, %v3680_v21, 0.0  ;;  %v449_v29 = vsel %vm435_vm1, %v3684_v24, 0.0  ;;  %v533_v39 = vshrl.u32 %v532_v38, 7  ;;  %vm893_vm3 = vcmask 523264  }
  0xfc   : > { %v440_v20 = vadd.f32 %v439_v17, %v438_v16  ;;  %4321 = vst [vmem:[#allocation30_spill] sm:$0xff] %v3680_v21  ;;  %4322 = vst [vmem:[#allocation31_spill] sm:$0xff] %v3684_v24  ;;  %s3295_s13 = smov 88   ;;  %s3296_s22 = smov 100   ;;  %vm1389_vm4 = vcmask 64544   ;;  %vm1700_vm5 = vcmask 97344  }
  0xfd   : > { %v534_v40 = vsub.s32 0, %v533_v39  ;;  %s3297_s24 = smov 116   ;;  %s3298_s14 = smov 84   ;;  %vm2011_vm6 = vcmask 130144   ;;  %vm2152_vm7 = vcmask 125952  }
  0xfe   : > { %v442_v23 = vadd.f32 %v441_v19, %v440_v20  ;;  %s3299_s26 = smov 4   ;;  %s3300_s23 = smov 8  }
  0xff   : > { %p4331_p13 = scmp.ne.s32.totalorder %s4303_s21, 0 }
 0x100   : > { %v444_v26 = vadd.f32 %v443_v22, %v442_v23 }
 0x102   : > { %v446_v28 = vadd.f32 %v445_v25, %v444_v26  ;;  %v2831_v25 = vld [vmem:[#allocation11] sm:$0xff]  }
 0x104   : > { %v448_v30 = vadd.f32 %v447_v27, %v446_v28 }
 0x106   : > { %v450_v31 = vadd.f32 %v449_v29, %v448_v30 }
 0x108   : > { %v451_v32 = vrot.slane %v450_v31, 4 }
 0x10a   : > { %v452_v33 = vadd.f32 %v451_v32, %v450_v31  ;;  %v2340_v32 = vld [vmem:[#allocation8] ss:$0 sm:$0xff] }
 0x10c   : > { %v453_v34 = vrot.slane %v452_v33, 2 }
 0x10e   : > { %v454_v35 = vadd.f32 %v453_v34, %v452_v33 }
 0x110   : > { %v455_v36 = vrot.slane %v454_v35, 1 }
 0x112   : > { %v456_v37 = vadd.f32 %v455_v36, %v454_v35 }
 0x114   : > { %2513 = vmatmul.mubr.msk.f32.vlgmr.msra.gmra.mrb[0].mxu0 %vm435_vm1, %v456_v37  ;;  %v2341_v37 = vld [vmem:[#allocation9] ss:$0 sm:$0xff] }
 0x115   : > { %2675 = vmatpush3.bf16.msra.mxu0 %v2671_v5  ;;  %2519 = vmatprep.mubr.msk.f32.mxu0 %vm3286_vm0, %v3287_v1 }
 0x116   : > { %2522 = vmatprep.subr.bf16.mxu0 %v2831_v25 }
 0x1e7   : > { %v528_v41 = vpop.f32.mrb[0].mxu0 }
 0x1e8   : > { %v535_v42 = vrot.slane %v528_v41, %v534_v40  ;;  %v2514_v43 = vpop.f32.mrb[1].mxu0 }
 0x1ea   : > { %v536_v44 = vsub.f32 %v3657_v6, %v535_v42  ;;  %v537_v45 = vsub.f32 %v3659_v7, %v535_v42  ;;  %v538_v46 = vsub.f32 %v3663_v10, %v535_v42  ;;  %v539_v47 = vsub.f32 %v3665_v11, %v535_v42 }
 0x1eb   : > { %v540_v48 = vsub.f32 %v3667_v12, %v535_v42  ;;  %v541_v52 = vsub.f32 %v3676_v18, %v535_v42  ;;  %v542_v57 = vsub.f32 %v3680_v21, %v535_v42  ;;  %v543_v61 = vsub.f32 %v3684_v24, %v535_v42 }
 0x1ec   : > { %v544_v49 = vmul.f32 %v536_v44, %v536_v44  ;;  %v545_v50 = vmul.f32 %v537_v45, %v537_v45  ;;  %v546_v51 = vmul.f32 %v538_v46, %v538_v46  ;;  %v547_v53 = vmul.f32 %v539_v47, %v539_v47 }
 0x1ed   : > { %v548_v58 = vmul.f32 %v540_v48, %v540_v48  ;;  %v549_v62 = vmul.f32 %v541_v52, %v541_v52  ;;  %v550_v1 = vmul.f32 %v542_v57, %v542_v57  ;;  %v551_v4 = vmul.f32 %v543_v61, %v543_v61 }
 0x1ee   : > { %v552_v54 = vsel %vm435_vm1, %v544_v49, 0.0  ;;  %v553_v55 = vsel %vm435_vm1, %v545_v50, 0.0  ;;  %v555_v59 = vsel %vm435_vm1, %v546_v51, 0.0  ;;  %v557_v63 = vsel %vm435_vm1, %v547_v53, 0.0 }
 0x1ef   : > { %v554_v56 = vadd.f32 %v553_v55, %v552_v54  ;;  %v559_v2 = vsel %vm435_vm1, %v548_v58, 0.0  ;;  %v561_v5 = vsel %vm435_vm1, %v549_v62, 0.0  ;;  %v563_v9 = vsel %vm435_vm1, %v550_v1, 0.0 }
 0x1f0   : > { %v565_v14 = vsel %vm435_vm1, %v551_v4, 0.0 }
 0x1f1   : > { %v556_v60 = vadd.f32 %v555_v59, %v554_v56 }
 0x1f3   : > { %v558_v0 = vadd.f32 %v557_v63, %v556_v60  ;;  %v2342_v63 = vld [vmem:[#allocation12] ss:$0 sm:$0xff] }
 0x1f5   : > { %v560_v3 = vadd.f32 %v559_v2, %v558_v0 }
 0x1f7   : > { %v562_v8 = vadd.f32 %v561_v5, %v560_v3 }
 0x1f9   : > { %v564_v13 = vadd.f32 %v563_v9, %v562_v8 }
 0x1fb   : > { %v566_v15 = vadd.f32 %v565_v14, %v564_v13 }
 0x1fd   : > { %v567_v16 = vrot.slane %v566_v15, 4 }
 0x1ff   : > { %v568_v17 = vadd.f32 %v567_v16, %v566_v15 }
 0x201   : > { %v569_v19 = vrot.slane %v568_v17, 2 }
 0x203   : > { %v570_v20 = vadd.f32 %v569_v19, %v568_v17 }
 0x205   : > { %v571_v22 = vrot.slane %v570_v20, 1 }
 0x207   : > { %v572_v23 = vadd.f32 %v571_v22, %v570_v20 }
 0x209   : > { %2520 = vmatmul.mubr.msk.f32.vlgmr.msra.gmra.mrb[2].mxu0 %vm435_vm1, %v572_v23 }
 0x20a   : > { %2523 = vmatpush3.bf16.msra.mxu0 %v2831_v25 }
 0x2dc   : > { %v642_v26 = vpop.f32.mrb[2].mxu0 }
 0x2dd   : > { %v646_v27 = vmax.f32 %v642_v26, 0.0  ;;  %v2521_v28 = vpop.f32.mrb[3].mxu0 }
 0x2df   : > { %v647_v29 = vadd.f32 1e-05, %v646_v27 }
 0x2e1   : > { %2833 = vrsqrt.f32 %v647_v29 }
 0x2eb   : > { %v2834_v30 = vpop.eup %2833 }
 0x2ec   : > { %v652_v31 = vrot.slane %v2834_v30, %v534_v40 }
 0x2ee   : > { %v653_v33 = vmul.f32 %v652_v31, %v536_v44  ;;  %v654_v34 = vmul.f32 %v652_v31, %v537_v45  ;;  %v655_v35 = vmul.f32 %v652_v31, %v538_v46  ;;  %v656_v36 = vmul.f32 %v652_v31, %v539_v47 }
 0x2ef   : > { %v657_v38 = vmul.f32 %v652_v31, %v540_v48  ;;  %v658_v39 = vmul.f32 %v652_v31, %v541_v52  ;;  %v659_v53 = vmul.f32 %v652_v31, %v542_v57  ;;  %v660_v54 = vmul.f32 %v652_v31, %v543_v61 }
 0x2f0   : > { %v668_v41 = vmul.f32 %v2340_v32, %v653_v33  ;;  %v669_v42 = vmul.f32 %v2340_v32, %v654_v34  ;;  %v670_v43 = vmul.f32 %v2340_v32, %v655_v35  ;;  %v671_v49 = vmul.f32 %v2340_v32, %v656_v36 }
 0x2f1   : > { %v672_v50 = vmul.f32 %v2340_v32, %v657_v38  ;;  %v673_v51 = vmul.f32 %v2340_v32, %v658_v39  ;;  %v674_v47 = vmul.f32 %v2340_v32, %v659_v53  ;;  %v675_v60 = vmul.f32 %v2340_v32, %v660_v54 }
 0x2f2   : > { %v683_v55 = vadd.f32 %v2341_v37, %v668_v41  ;;  %v684_v56 = vadd.f32 %v2341_v37, %v669_v42  ;;  %v685_v58 = vadd.f32 %v2341_v37, %v670_v43  ;;  %v686_v40 = vadd.f32 %v2341_v37, %v671_v49 }
 0x2f3   : > { %v687_v59 = vadd.f32 %v2341_v37, %v672_v50  ;;  %v688_v44 = vadd.f32 %v2341_v37, %v673_v51  ;;  %v689_v52 = vadd.f32 %v2341_v37, %v674_v47  ;;  %v690_v57 = vadd.f32 %v2341_v37, %v675_v60 }
 0x2f4   : > { %v691_v45 = vpack.c.bf16 %v684_v56, %v683_v55  ;;  %v692_v46 = vpack.c.bf16 %v686_v40, %v685_v58 }
 0x2f5   : > { %v693_v48 = vpack.c.bf16 %v688_v44, %v687_v59  ;;  %v694_v61 = vpack.c.bf16 %v690_v57, %v689_v52 }
 0x2f6   : > { %2524 = vmatprep.mubr.msk.bf16.mxu0 %vm435_vm1, %v691_v45 }
 0x2f7   : > { %2525 = vmatmul.mubr.msk.bf16.vlgmr.msra.gmra.mrb[4].mxu0 %vm435_vm1, %v692_v46 }
 0x2f8   : > { %2528 = vmatprep.mubr.msk.bf16.mxu0 %vm435_vm1, %v693_v48 }
 0x2ff   : > { %2529 = vmatmul.mubr.msk.bf16.gmra.mrb[8].mxu0 %vm435_vm1, %v694_v61 }
 0x3ca   : > { %v2526_v62 = vpop.f32.mrb[4].mxu0 }
 0x3cb   : > { %v756_v0 = vpop.f32.mrb[5].mxu0  ;;  %v765_v2 = vadd.f32 %v2526_v62, %v2342_v63 }
 0x3cc   : > { %v2527_v1 = vpop.f32.mrb[6].mxu0  ;;  %v757_v5 = vadd.f32 %v2342_v63, %v756_v0 }
 0x3cd   : > { %v768_v3 = vadd.f32 %v2527_v1, %v2342_v63  ;;  %v759_v4 = vpop.f32.mrb[7].mxu0 }
 0x3ce   : > { %v760_v8 = vadd.f32 %v2342_v63, %v759_v4 }
 0x3cf   : > { %v3715_v9 = vpack.c.bf16 %v768_v3, %v765_v2 }
 0x3d0   : > { %v3717_v13 = vpack.c.bf16 %v760_v8, %v757_v5 }
 0x3d2   : > { %v2530_v14 = vpop.f32.mrb[8].mxu0  ;;  %795 = vrot.lane.b32.xlu0 %v3717_v13, %s3288_s12  ;;  %2540 = vmatprep.mubr.msk.bf16.mxu1 %vm803_vm2, %v3717_v13 }
 0x3d3   : > { %v772_v15 = vpop.f32.mrb[9].mxu0  ;;  %v781_v17 = vadd.f32 %v2530_v14, %v2342_v63 }
 0x3d4   : > { %v2531_v16 = vpop.f32.mrb[10].mxu0  ;;  %v773_v22 = vadd.f32 %v2342_v63, %v772_v15 }
 0x3d5   : > { %v784_v19 = vadd.f32 %v2531_v16, %v2342_v63  ;;  %v775_v20 = vpop.f32.mrb[11].mxu0 }
 0x3d6   : > { %v776_v23 = vadd.f32 %v2342_v63, %v775_v20  ;;  %797 = vrot.lane.b32.xlu0 %v3715_v9, %s3288_s12 }
 0x3d7   : > { %v3723_v25 = vpack.c.bf16 %v784_v19, %v781_v17 }
 0x3d8   : > { %v3725_v26 = vpack.c.bf16 %v776_v23, %v773_v22 }
 0x3da   : > { %799 = vrot.lane.b32.xlu1 %v3725_v26, %s3288_s12  ;;  %972 = vrot.lane.b32.xlu0 %v3715_v9, %s3289_s16 }
 0x3de   : > { %801 = vrot.lane.b32.xlu1 %v3723_v25, %s3288_s12  ;;  %s3301_s12 = smov 12  }
 0x3e2   : > { %970 = vrot.lane.b32.xlu1 %v3717_v13, %s3289_s16 }
 0x3e6   : > { %976 = vrot.lane.b32.xlu1 %v3723_v25, %s3289_s16 }
 0x3ea   : > { %1091 = vrot.lane.b32.xlu1 %v3717_v13, %s3290_s17 }
 0x3ee   : > { %974 = vrot.lane.b32.xlu1 %v3725_v26, %s3289_s16  ;;  %s417_s16 = scalar_lea.vmem [#allocation17], %s2329_s25  ;;  %s2408_s25 = sshll.u32 %s3370_s11, 9 }
 0x3ef   : > { %s2162_s11 = scalar_lea.sflag [#allocation5], %s3627_s2 }
 0x444   : > { %v796_v27 = vpop.permute.xlu0 %795 }
 0x445   : > { %2676 = vmatprep.subr.msk.bf16.mxu1 %vm803_vm2, %v796_v27  ;;  %v817_v28 = vsel %vm803_vm2, %v796_v27, 0 }
 0x446   : > { %2533 = vmatpush3.bf16.xpose.msra.mxu1 %v817_v28 }
 0x448   : > { %v798_v29 = vpop.permute.xlu0 %797 }
 0x449   : > { %2677 = vmatprep.subr.msk.bf16.mxu1 %vm803_vm2, %v798_v29  ;;  %v820_v31 = vsel %vm803_vm2, %v798_v29, 0 }
 0x44c   : > { %v800_v30 = vpop.permute.xlu1 %799  ;;  %v973_v35 = vpop.permute.xlu0 %972 }
 0x44d   : > { %v823_v34 = vsel %vm803_vm2, %v800_v30, 0 }
 0x44e   : > { %2535 = vmatpush3.bf16.xpose.msra.mxu1 %v820_v31 }
 0x44f   : > { %2678 = vmatprep.subr.msk.bf16.mxu1 %vm803_vm2, %v800_v30 }
 0x450   : > { %v802_v32 = vpop.permute.xlu1 %801 }
 0x451   : > { %v826_v38 = vsel %vm803_vm2, %v802_v32, 0 }
 0x454   : > { %v971_v33 = vpop.permute.xlu1 %970 }
 0x455   : > { %2548 = vmatprep.subr.bf16.mxu0 %v971_v33 }
 0x456   : > { %2537 = vmatpush3.bf16.xpose.msra.mxu1 %v823_v34  ;;  %2549 = vmatpush3.bf16.msra.mxu0 %v971_v33 }
 0x457   : > { %2679 = vmatprep.subr.msk.bf16.mxu1 %vm803_vm2, %v802_v32  ;;  %2550 = vmatprep.subr.bf16.mxu0 %v973_v35 }
 0x458   : > { %v977_v36 = vpop.permute.xlu1 %976 }
 0x45a   : > { %2551 = vmatpush3.bf16.msra.mxu0 %v973_v35 }
 0x45c   : > { %v3742_v37 = vpop.permute.xlu1 %1091 }
 0x45d   : > { %v1112_v29 = vsel %vm803_vm2, %v3742_v37, 0 }
 0x45e   : > { %2539 = vmatpush3.bf16.xpose.msra.mxu1 %v826_v38 }
 0x460   : > { %v975_v39 = vpop.permute.xlu1 %974 }
 0x461   : > { %2552 = vmatprep.subr.bf16.mxu0 %v975_v39 }
 0x462   : > { %2553 = vmatpush3.bf16.msra.mxu0 %v975_v39 }
 0x463   : > { %2554 = vmatprep.subr.bf16.mxu0 %v977_v36 }
 0x465   : > { %2541 = vmatmul.mubr.msk.bf16.vlgmr.msra.gmra.mrb[0].mxu1 %vm803_vm2, %v3715_v9 }
 0x466   : > { %2544 = vmatprep.mubr.msk.bf16.mxu1 %vm803_vm2, %v3725_v26  ;;  %2555 = vmatpush3.bf16.msra.mxu0 %v977_v36 }
 0x467   : > { %2680 = vmatprep.subr.msk.bf16.mxu0 %vm803_vm2, %v3742_v37 }
 0x46d   : > { %2545 = vmatmul.mubr.msk.bf16.gmra.mrb[4].mxu1 %vm803_vm2, %v3723_v25 }
 0x538   : > { %v2542_v41 = vpop.f32.mrb[0].mxu1 }
 0x539   : > { %v862_v42 = vpop.f32.mrb[1].mxu1  ;;  %v900_v43 = vsel %vm893_vm3, %v2542_v41, -inf }
 0x53a   : > { %901 = vmax.xlane.f32.xlu0 %v900_v43  ;;  %v2543_v49 = vpop.f32.mrb[2].mxu1  ;;  %v894_v53 = vsel %vm893_vm3, %v862_v42, -inf }
 0x53b   : > { %v865_v50 = vpop.f32.mrb[3].mxu1  ;;  %v903_v56 = vsel %vm893_vm3, %v2543_v49, -inf }
 0x53c   : > { %v897_v51 = vsel %vm893_vm3, %v865_v50, -inf }
 0x53d   : > { %898 = vmax.xlane.f32.xlu1 %v897_v51 }
 0x53e   : > { %895 = vmax.xlane.f32.xlu0 %v894_v53 }
 0x540   : > { %v2546_v54 = vpop.f32.mrb[4].mxu1 }
 0x541   : > { %v3756_v55 = vpop.f32.mrb[5].mxu1  ;;  %v912_v59 = vsel %vm893_vm3, %v2546_v54, -inf }
 0x542   : > { %904 = vmax.xlane.f32.xlu0 %v903_v56  ;;  %v2547_v58 = vpop.f32.mrb[6].mxu1  ;;  %v906_v44 = vsel %vm893_vm3, %v3756_v55, -inf }
 0x543   : > { %v3759_v40 = vpop.f32.mrb[7].mxu1  ;;  %v915_v45 = vsel %vm893_vm3, %v2547_v58, -inf }
 0x544   : > { %v909_v46 = vsel %vm893_vm3, %v3759_v40, -inf }
 0x546   : > { %913 = vmax.xlane.f32.xlu0 %v912_v59 }
 0x54a   : > { %907 = vmax.xlane.f32.xlu0 %v906_v44 }
 0x54e   : > { %1095 = vrot.lane.b32.xlu1 %v3725_v26, %s3290_s17  ;;  %916 = vmax.xlane.f32.xlu0 %v915_v45 }
 0x564   : > { %1093 = vrot.lane.b32.xlu0 %v3715_v9, %s3290_s17 }
 0x568   : > { %1083 = vrot.lane.b32.xlu0 %v3717_v13, %s3291_s9 }
 0x56c   : > { %1087 = vrot.lane.b32.xlu0 %v3725_v26, %s3291_s9 }
 0x570   : > { %1266 = vrot.lane.b32.xlu0 %v3715_v9, %s3292_s18 }
 0x572   : > { %910 = vmax.xlane.f32.xlu1 %v909_v46 }
 0x583   : > { %1097 = vrot.lane.b32.xlu1 %v3723_v25, %s3290_s17  ;;  %s2175_s17 = sshll.u32 %s417_s16, 4  ;;  %s4227_s17 = int_to_ptr.vmem [resolvable:$true] %s2175_s17 }
 0x587   : > { %1085 = vrot.lane.b32.xlu1 %v3715_v9, %s3291_s9 }
 0x58b   : > { %1089 = vrot.lane.b32.xlu1 %v3723_v25, %s3291_s9 }
 0x58f   : > { %1264 = vrot.lane.b32.xlu1 %v3717_v13, %s3292_s18 }
 0x593   : > { %1268 = vrot.lane.b32.xlu1 %v3725_v26, %s3292_s18 }
 0x597   : > { %1270 = vrot.lane.b32.xlu1 %v3723_v25, %s3292_s18 }
 0x59b   : > { %1402 = vrot.lane.b32.xlu1 %v3717_v13, %s3293_s19 }
 0x5c7   : > { %v902_v47 = vpop.xlane.xlu0 %901 }
 0x5c8   : > { %v920_v48 = vsub.f32 %v2542_v41, %v902_v47 }
 0x5ca   : > { %v899_v60 = vpop.xlane.xlu1 %898  ;;  %v930_v0 = vmul.f32 1.442695, %v920_v48 }
 0x5cb   : > { %v919_v52 = vsub.f32 %v865_v50, %v899_v60  ;;  %v896_v57 = vpop.xlane.xlu0 %895 }
 0x5cc   : > { %v918_v61 = vsub.f32 %v862_v42, %v896_v57 }
 0x5cd   : > { %v928_v62 = vmul.f32 1.442695, %v919_v52 }
 0x5ce   : > { %v926_v63 = vmul.f32 1.442695, %v918_v61  ;;  %v1096_v34 = vpop.permute.xlu1 %1095 }
 0x5cf   : > { %2835 = vpow2.f32 %v928_v62  ;;  %v905_v1 = vpop.xlane.xlu0 %904  ;;  %v1118_v36 = vsel %vm803_vm2, %v1096_v34, 0 }
 0x5d0   : > { %2837 = vpow2.f32 %v926_v63  ;;  %v921_v2 = vsub.f32 %v2543_v49, %v905_v1 }
 0x5d1   : > { %2839 = vpow2.f32 %v930_v0 }
 0x5d2   : > { %v932_v3 = vmul.f32 1.442695, %v921_v2 }
 0x5d3   : > { %v914_v4 = vpop.xlane.xlu0 %913 }
 0x5d4   : > { %2841 = vpow2.f32 %v932_v3  ;;  %v924_v5 = vsub.f32 %v2546_v54, %v914_v4 }
 0x5d6   : > { %v938_v16 = vmul.f32 1.442695, %v924_v5 }
 0x5d7   : > { %v908_v8 = vpop.xlane.xlu0 %907 }
 0x5d8   : > { %2843 = vpow2.f32 %v938_v16  ;;  %v922_v37 = vsub.f32 %v3756_v55, %v908_v8 }
 0x5d9   : > { %v3783_v14 = vpop.eup %2835 }
 0x5da   : > { %v3785_v15 = vpop.eup %2837  ;;  %v934_v38 = vmul.f32 1.442695, %v922_v37 }
 0x5db   : > { %v917_v17 = vpop.xlane.xlu0 %916  ;;  %v966_v19 = vpack.c.bf16 %v3783_v14, %v3785_v15  ;;  %v3789_v22 = vpop.eup %2839 }
 0x5dc   : > { %v925_v20 = vsub.f32 %v2547_v58, %v917_v17 }
 0x5dd   : > { %2556 = vmatprep.mubr.msk.bf16.mxu0 %vm893_vm3, %v966_v19 }
 0x5de   : > { %v3792_v23 = vpop.eup %2841  ;;  %v940_v27 = vmul.f32 1.442695, %v925_v20 }
 0x5df   : > { %v967_v28 = vpack.c.bf16 %v3792_v23, %v3789_v22  ;;  %v1094_v30 = vpop.permute.xlu0 %1093 }
 0x5e0   : > { %2845 = vpow2.f32 %v940_v27  ;;  %v1115_v32 = vsel %vm803_vm2, %v1094_v30, 0 }
 0x5e1   : > { %2557 = vmatmul.mubr.msk.bf16.vlgmr.msra.gmra.mrb[12].mxu0 %vm893_vm3, %v967_v28  ;;  %2847 = vpow2.f32 %v934_v38 }
 0x5e2   : > { %2565 = vmatpush3.bf16.xpose.msra.mxu0 %v1112_v29  ;;  %v3800_v31 = vpop.eup %2843 }
 0x5e3   : > { %2681 = vmatprep.subr.msk.bf16.mxu0 %vm803_vm2, %v1094_v30  ;;  %v1084_v50 = vpop.permute.xlu0 %1083 }
 0x5e7   : > { %v1088_v53 = vpop.permute.xlu0 %1087 }
 0x5ea   : > { %v3803_v33 = vpop.eup %2845  ;;  %2567 = vmatpush3.bf16.xpose.msra.mxu0 %v1115_v32 }
 0x5eb   : > { %2682 = vmatprep.subr.msk.bf16.mxu0 %vm803_vm2, %v1096_v34  ;;  %v969_v35 = vpack.c.bf16 %v3803_v33, %v3800_v31  ;;  %v3813_v56 = vpop.eup %2847  ;;  %v1267_v59 = vpop.permute.xlu0 %1266 }
 0x5f2   : > { %2569 = vmatpush3.bf16.xpose.msra.mxu0 %v1118_v36 }
 0x5ff   : > { %v911_v39 = vpop.xlane.xlu1 %910 }
 0x600   : > { %v923_v41 = vsub.f32 %v3759_v40, %v911_v39 }
 0x602   : > { %v936_v42 = vmul.f32 1.442695, %v923_v41 }
 0x603   : > { %v1098_v43 = vpop.permute.xlu1 %1097 }
 0x604   : > { %2849 = vpow2.f32 %v936_v42  ;;  %2683 = vmatprep.subr.msk.bf16.mxu0 %vm803_vm2, %v1098_v43  ;;  %v1121_v49 = vsel %vm803_vm2, %v1098_v43, 0 }
 0x605   : > { %2571 = vmatpush3.bf16.xpose.msra.mxu0 %v1121_v49 }
 0x607   : > { %v1086_v51 = vpop.permute.xlu1 %1085 }
 0x60b   : > { %v1090_v54 = vpop.permute.xlu1 %1089 }
 0x60e   : > { %v3815_v55 = vpop.eup %2849 }
 0x60f   : > { %v1265_v58 = vpop.permute.xlu1 %1264  ;;  %v968_v40 = vpack.c.bf16 %v3815_v55, %v3813_v56 }
 0x610   : > { %2580 = vmatprep.subr.bf16.mxu1 %v1265_v58 }
 0x611   : > { %2560 = vmatprep.mubr.msk.bf16.mxu0 %vm893_vm3, %v968_v40  ;;  %2581 = vmatpush3.bf16.msra.mxu1 %v1265_v58 }
 0x612   : > { %2561 = vmatmul.mubr.msk.bf16.gmra.mrb[16].mxu0 %vm893_vm3, %v969_v35  ;;  %2582 = vmatprep.subr.bf16.mxu1 %v1267_v59 }
 0x613   : > { %2572 = vmatprep.mubr.msk.bf16.mxu0 %vm803_vm2, %v1084_v50  ;;  %v1269_v44 = vpop.permute.xlu1 %1268 }
 0x615   : > { %2583 = vmatpush3.bf16.msra.mxu1 %v1267_v59 }
 0x616   : > { %2584 = vmatprep.subr.bf16.mxu1 %v1269_v44 }
 0x617   : > { %v1271_v45 = vpop.permute.xlu1 %1270 }
 0x619   : > { %2585 = vmatpush3.bf16.msra.mxu1 %v1269_v44 }
 0x61a   : > { %2573 = vmatmul.mubr.msk.bf16.vlgmr.msra.gmra.mrb[20].mxu0 %vm803_vm2, %v1086_v51  ;;  %2586 = vmatprep.subr.bf16.mxu1 %v1271_v45 }
 0x61b   : > { %2576 = vmatprep.mubr.msk.bf16.mxu0 %vm803_vm2, %v1088_v53  ;;  %v3824_v46 = vpop.permute.xlu1 %1402 }
 0x61d   : > { %2587 = vmatpush3.bf16.msra.mxu1 %v1271_v45 }
 0x61e   : > { %2684 = vmatprep.subr.msk.bf16.mxu1 %vm803_vm2, %v3824_v46 }
 0x622   : > { %2577 = vmatmul.mubr.msk.bf16.gmra.mrb[24].mxu0 %vm803_vm2, %v1090_v54 }
 0x6b4   : > { %v3829_v47 = vpop.f32.mrb[12].mxu0 }
 0x6b5   : > { %v3831_v60 = vpop.f32.mrb[13].mxu0 }
 0x6b6   : > { %v3833_v48 = vpop.f32.mrb[14].mxu0 }
 0x6b7   : > { %v3835_v52 = vpop.f32.mrb[15].mxu0 }
 0x6e5   : > { %v3837_v57 = vpop.f32.mrb[16].mxu0 }
 0x6e6   : > { %v3839_v61 = vpop.f32.mrb[17].mxu0 }
 0x6e7   : > { %v3841_v62 = vpop.f32.mrb[18].mxu0 }
 0x6e8   : > { %v3843_v63 = vpop.f32.mrb[19].mxu0 }
 0x6ed   : > { %v2574_v0 = vpop.f32.mrb[20].mxu0 }
 0x6ee   : > { %v1157_v1 = vpop.f32.mrb[21].mxu0  ;;  %v1194_v2 = vsel %vm893_vm3, %v2574_v0, -inf }
 0x6ef   : > { %1195 = vmax.xlane.f32.xlu0 %v1194_v2  ;;  %v2575_v3 = vpop.f32.mrb[22].mxu0  ;;  %v1188_v8 = vsel %vm893_vm3, %v1157_v1, -inf }
 0x6f0   : > { %v1160_v4 = vpop.f32.mrb[23].mxu0  ;;  %v1197_v19 = vsel %vm893_vm3, %v2575_v3, -inf }
 0x6f1   : > { %v1191_v5 = vsel %vm893_vm3, %v1160_v4, -inf }
 0x6f2   : > { %1192 = vmax.xlane.f32.xlu1 %v1191_v5 }
 0x6f3   : > { %1189 = vmax.xlane.f32.xlu0 %v1188_v8  ;;  %v1423_v8 = vsel %vm803_vm2, %v3824_v46, 0 }
 0x6f5   : > { %v2578_v16 = vpop.f32.mrb[24].mxu0 }
 0x6f6   : > { %v3848_v17 = vpop.f32.mrb[25].mxu0  ;;  %v1206_v28 = vsel %vm893_vm3, %v2578_v16, -inf }
 0x6f7   : > { %1198 = vmax.xlane.f32.xlu0 %v1197_v19  ;;  %v2579_v20 = vpop.f32.mrb[26].mxu0  ;;  %v1200_v29 = vsel %vm893_vm3, %v3848_v17, -inf }
 0x6f8   : > { %v3851_v27 = vpop.f32.mrb[27].mxu0  ;;  %v1209_v30 = vsel %vm893_vm3, %v2579_v20, -inf }
 0x6f9   : > { %v1203_v32 = vsel %vm893_vm3, %v3851_v27, -inf }
 0x6fb   : > { %1207 = vmax.xlane.f32.xlu0 %v1206_v28 }
 0x6ff   : > { %1201 = vmax.xlane.f32.xlu0 %v1200_v29 }
 0x703   : > { %1406 = vrot.lane.b32.xlu1 %v3725_v26, %s3293_s19  ;;  %1210 = vmax.xlane.f32.xlu0 %v1209_v30 }
 0x719   : > { %1404 = vrot.lane.b32.xlu0 %v3715_v9, %s3293_s19 }
 0x71d   : > { %1394 = vrot.lane.b32.xlu0 %v3717_v13, %s3294_s1 }
 0x721   : > { %1398 = vrot.lane.b32.xlu0 %v3725_v26, %s3294_s1 }
 0x725   : > { %1577 = vrot.lane.b32.xlu0 %v3715_v9, %s3295_s13 }
 0x727   : > { %1204 = vmax.xlane.f32.xlu1 %v1203_v32 }
 0x738   : > { %1408 = vrot.lane.b32.xlu1 %v3723_v25, %s3293_s19  ;;  %s4224_s19 = scalar_lea.hbm %s4282_s8, %s2408_s25 }
 0x73c   : > { %1396 = vrot.lane.b32.xlu1 %v3715_v9, %s3294_s1 }
 0x740   : > { %1400 = vrot.lane.b32.xlu1 %v3723_v25, %s3294_s1  ;;  %s3189_s1 = scalar_lea.vmem %s4227_s17, 512 }
 0x741   : > { %p3190_p12 = scmp.ne.s32.totalorder %s4227_s17, %s3189_s1 }
 0x743   : > { %p3191_p1 = pnand %p3190_p12, %p4331_p13 }
 0x744   : > { %1575 = vrot.lane.b32.xlu1 %v3717_v13, %s3295_s13 }
 0x745   : > { %p3192_p3 = pneg %p3191_p1 }
 0x748   : > { %1579 = vrot.lane.b32.xlu1 %v3725_v26, %s3295_s13 }
 0x74c   : > { %1581 = vrot.lane.b32.xlu1 %v3723_v25, %s3295_s13  ;;  %s3302_s13 = smov [#allocation17]  }
 0x750   : > { %1713 = vrot.lane.b32.xlu1 %v3717_v13, %s3296_s22 }
 0x77c   : > { %v1196_v34 = vpop.xlane.xlu0 %1195 }
 0x77d   : > { %v1214_v36 = vsub.f32 %v2574_v0, %v1196_v34 }
 0x77f   : > { %v1193_v35 = vpop.xlane.xlu1 %1192  ;;  %v1224_v43 = vmul.f32 1.442695, %v1214_v36 }
 0x780   : > { %v1213_v37 = vsub.f32 %v1160_v4, %v1193_v35  ;;  %v1190_v38 = vpop.xlane.xlu0 %1189 }
 0x781   : > { %v1212_v39 = vsub.f32 %v1157_v1, %v1190_v38 }
 0x782   : > { %v1222_v41 = vmul.f32 1.442695, %v1213_v37 }
 0x783   : > { %v1220_v42 = vmul.f32 1.442695, %v1212_v39  ;;  %v1407_v29 = vpop.permute.xlu1 %1406 }
 0x784   : > { %2851 = vpow2.f32 %v1222_v41  ;;  %v1199_v49 = vpop.xlane.xlu0 %1198  ;;  %v1429_v46 = vsel %vm803_vm2, %v1407_v29, 0 }
 0x785   : > { %2853 = vpow2.f32 %v1220_v42  ;;  %v1215_v50 = vsub.f32 %v2575_v3, %v1199_v49 }
 0x786   : > { %2855 = vpow2.f32 %v1224_v43 }
 0x787   : > { %v1226_v51 = vmul.f32 1.442695, %v1215_v50 }
 0x788   : > { %v1208_v53 = vpop.xlane.xlu0 %1207 }
 0x789   : > { %2857 = vpow2.f32 %v1226_v51  ;;  %v1218_v54 = vsub.f32 %v2578_v16, %v1208_v53 }
 0x78b   : > { %v1232_v44 = vmul.f32 1.442695, %v1218_v54 }
 0x78c   : > { %v1202_v58 = vpop.xlane.xlu0 %1201 }
 0x78d   : > { %2859 = vpow2.f32 %v1232_v44  ;;  %v1216_v32 = vsub.f32 %v3848_v17, %v1202_v58 }
 0x78e   : > { %v3875_v40 = vpop.eup %2851 }
 0x78f   : > { %v3877_v59 = vpop.eup %2853  ;;  %v1228_v34 = vmul.f32 1.442695, %v1216_v32 }
 0x790   : > { %v1211_v45 = vpop.xlane.xlu0 %1210  ;;  %v1260_v0 = vpack.c.bf16 %v3875_v40, %v3877_v59  ;;  %v3881_v2 = vpop.eup %2855 }
 0x791   : > { %v1219_v1 = vsub.f32 %v2579_v20, %v1211_v45 }
 0x792   : > { %2588 = vmatprep.mubr.msk.bf16.mxu1 %vm893_vm3, %v1260_v0 }
 0x793   : > { %v3884_v3 = vpop.eup %2857  ;;  %v1234_v4 = vmul.f32 1.442695, %v1219_v1 }
 0x794   : > { %v1261_v5 = vpack.c.bf16 %v3884_v3, %v3881_v2  ;;  %v1405_v16 = vpop.permute.xlu0 %1404 }
 0x795   : > { %2861 = vpow2.f32 %v1234_v4  ;;  %v1426_v20 = vsel %vm803_vm2, %v1405_v16, 0 }
 0x796   : > { %2589 = vmatmul.mubr.msk.bf16.vlgmr.msra.gmra.mrb[8].mxu1 %vm893_vm3, %v1261_v5  ;;  %2863 = vpow2.f32 %v1228_v34 }
 0x797   : > { %2597 = vmatpush3.bf16.xpose.msra.mxu1 %v1423_v8  ;;  %v3892_v19 = vpop.eup %2859 }
 0x798   : > { %2685 = vmatprep.subr.msk.bf16.mxu1 %vm803_vm2, %v1405_v16  ;;  %v1395_v41 = vpop.permute.xlu0 %1394 }
 0x79c   : > { %v1399_v43 = vpop.permute.xlu0 %1398 }
 0x79f   : > { %v3895_v28 = vpop.eup %2861  ;;  %2599 = vmatpush3.bf16.xpose.msra.mxu1 %v1426_v20 }
 0x7a0   : > { %2686 = vmatprep.subr.msk.bf16.mxu1 %vm803_vm2, %v1407_v29  ;;  %v1263_v30 = vpack.c.bf16 %v3895_v28, %v3892_v19  ;;  %v3905_v50 = vpop.eup %2863  ;;  %v1578_v53 = vpop.permute.xlu0 %1577 }
 0x7a7   : > { %2601 = vmatpush3.bf16.xpose.msra.mxu1 %v1429_v46 }
 0x7b4   : > { %v1205_v35 = vpop.xlane.xlu1 %1204 }
 0x7b5   : > { %v1217_v36 = vsub.f32 %v3851_v27, %v1205_v35 }
 0x7b7   : > { %v1230_v37 = vmul.f32 1.442695, %v1217_v36 }
 0x7b8   : > { %v1409_v38 = vpop.permute.xlu1 %1408 }
 0x7b9   : > { %2865 = vpow2.f32 %v1230_v37  ;;  %v1432_v39 = vsel %vm803_vm2, %v1409_v38, 0  ;;  %2687 = vmatprep.subr.msk.bf16.mxu1 %vm803_vm2, %v1409_v38 }
 0x7ba   : > { %2603 = vmatpush3.bf16.xpose.msra.mxu1 %v1432_v39 }
 0x7bc   : > { %v1397_v42 = vpop.permute.xlu1 %1396 }
 0x7c0   : > { %v1401_v49 = vpop.permute.xlu1 %1400 }
 0x7c3   : > { %v3907_v17 = vpop.eup %2865 }
 0x7c4   : > { %v1576_v51 = vpop.permute.xlu1 %1575  ;;  %v1262_v27 = vpack.c.bf16 %v3907_v17, %v3905_v50 }
 0x7c5   : > { %2612 = vmatprep.subr.bf16.mxu0 %v1576_v51 }
 0x7c6   : > { %2592 = vmatprep.mubr.msk.bf16.mxu1 %vm893_vm3, %v1262_v27  ;;  %2613 = vmatpush3.bf16.msra.mxu0 %v1576_v51 }
 0x7c7   : > { %2593 = vmatmul.mubr.msk.bf16.gmra.mrb[12].mxu1 %vm893_vm3, %v1263_v30  ;;  %2614 = vmatprep.subr.bf16.mxu0 %v1578_v53 }
 0x7c8   : > { %2604 = vmatprep.mubr.msk.bf16.mxu1 %vm803_vm2, %v1395_v41  ;;  %v1580_v54 = vpop.permute.xlu1 %1579 }
 0x7ca   : > { %2615 = vmatpush3.bf16.msra.mxu0 %v1578_v53 }
 0x7cb   : > { %2616 = vmatprep.subr.bf16.mxu0 %v1580_v54 }
 0x7cc   : > { %v1582_v58 = vpop.permute.xlu1 %1581 }
 0x7ce   : > { %2617 = vmatpush3.bf16.msra.mxu0 %v1580_v54 }
 0x7cf   : > { %2605 = vmatmul.mubr.msk.bf16.vlgmr.msra.gmra.mrb[16].mxu1 %vm803_vm2, %v1397_v42  ;;  %2618 = vmatprep.subr.bf16.mxu0 %v1582_v58 }
 0x7d0   : > { %2608 = vmatprep.mubr.msk.bf16.mxu1 %vm803_vm2, %v1399_v43  ;;  %v3916_v44 = vpop.permute.xlu1 %1713 }
 0x7d2   : > { %2619 = vmatpush3.bf16.msra.mxu0 %v1582_v58 }
 0x7d3   : > { %2688 = vmatprep.subr.msk.bf16.mxu0 %vm803_vm2, %v3916_v44 }
 0x7d7   : > { %2609 = vmatmul.mubr.msk.bf16.gmra.mrb[20].mxu1 %vm803_vm2, %v1401_v49 }
 0x869   : > { %v3921_v45 = vpop.f32.mrb[8].mxu1 }
 0x86a   : > { %v3923_v0 = vpop.f32.mrb[9].mxu1 }
 0x86b   : > { %v3925_v1 = vpop.f32.mrb[10].mxu1 }
 0x86c   : > { %v3927_v4 = vpop.f32.mrb[11].mxu1 }
 0x89a   : > { %v3929_v5 = vpop.f32.mrb[12].mxu1 }
 0x89b   : > { %v3931_v8 = vpop.f32.mrb[13].mxu1 }
 0x89c   : > { %v3933_v16 = vpop.f32.mrb[14].mxu1 }
 0x89d   : > { %v3935_v20 = vpop.f32.mrb[15].mxu1 }
 0x8a2   : > { %v2606_v29 = vpop.f32.mrb[16].mxu1 }
 0x8a3   : > { %v1468_v30 = vpop.f32.mrb[17].mxu1  ;;  %v1505_v46 = vsel %vm893_vm3, %v2606_v29, -inf }
 0x8a4   : > { %1506 = vmax.xlane.f32.xlu0 %v1505_v46  ;;  %v2607_v32 = vpop.f32.mrb[18].mxu1  ;;  %v1499_v36 = vsel %vm893_vm3, %v1468_v30, -inf }
 0x8a5   : > { %v1471_v34 = vpop.f32.mrb[19].mxu1  ;;  %v1508_v39 = vsel %vm893_vm3, %v2607_v32, -inf }
 0x8a6   : > { %v1502_v35 = vsel %vm893_vm3, %v1471_v34, -inf }
 0x8a7   : > { %1503 = vmax.xlane.f32.xlu1 %v1502_v35 }
 0x8a8   : > { %1500 = vmax.xlane.f32.xlu0 %v1499_v36 }
 0x8aa   : > { %v2610_v37 = vpop.f32.mrb[20].mxu1 }
 0x8ab   : > { %v3940_v38 = vpop.f32.mrb[21].mxu1  ;;  %v1517_v43 = vsel %vm893_vm3, %v2610_v37, -inf }
 0x8ac   : > { %1509 = vmax.xlane.f32.xlu0 %v1508_v39  ;;  %v2611_v41 = vpop.f32.mrb[22].mxu1  ;;  %v1511_v49 = vsel %vm893_vm3, %v3940_v38, -inf }
 0x8ad   : > { %v3943_v42 = vpop.f32.mrb[23].mxu1  ;;  %v1520_v51 = vsel %vm893_vm3, %v2611_v41, -inf }
 0x8ae   : > { %v1514_v27 = vsel %vm893_vm3, %v3943_v42, -inf }
 0x8b0   : > { %1518 = vmax.xlane.f32.xlu0 %v1517_v43 }
 0x8b4   : > { %1512 = vmax.xlane.f32.xlu0 %v1511_v49 }
 0x8b8   : > { %1717 = vrot.lane.b32.xlu1 %v3725_v26, %s3296_s22  ;;  %1521 = vmax.xlane.f32.xlu0 %v1520_v51 }
 0x8ce   : > { %1715 = vrot.lane.b32.xlu0 %v3715_v9, %s3296_s22 }
 0x8d2   : > { %1705 = vrot.lane.b32.xlu0 %v3717_v13, %s3297_s24 }
 0x8d6   : > { %1709 = vrot.lane.b32.xlu0 %v3725_v26, %s3297_s24 }
 0x8dc   : > { %1515 = vmax.xlane.f32.xlu1 %v1514_v27 }
 0x8ed   : > { %1719 = vrot.lane.b32.xlu1 %v3723_v25, %s3296_s22  ;;  %s3193_s22 = sshll.u32 %s3302_s13, 4  ;;  %s3194_s22 = int_to_ptr.vmem [resolvable:$false] %s3193_s22 }
 0x8ee   : > { %p3196_p2 = scmp.lt.s32.totalorder %s4227_s17, %s3194_s22 }
 0x8f1   : > { %1707 = vrot.lane.b32.xlu1 %v3715_v9, %s3297_s24 }
 0x8f5   : > { %1711 = vrot.lane.b32.xlu1 %v3723_v25, %s3297_s24  ;;  %s3195_s24 = scalar_lea.vmem %s3194_s22, 1024 }
 0x8f6   : > { %p3197_p8 = scmp.lt.s32.totalorder %s3195_s24, %s3189_s1 }
 0x8f8   : > { %p3198_p6 = por %p3197_p8, %p3196_p2 }
 0x8f9   : > { %1886 = vrot.lane.b32.xlu1 %v3717_v13, %s3298_s14 }
 0x8fa   : > { %p3199_p10 = pnand %p3198_p6, %p3192_p3 }
 0x931   : > { %v1507_v53 = vpop.xlane.xlu0 %1506 }
 0x932   : > { %v1525_v58 = vsub.f32 %v2606_v29, %v1507_v53 }
 0x934   : > { %v1504_v54 = vpop.xlane.xlu1 %1503  ;;  %v1535_v49 = vmul.f32 1.442695, %v1525_v58 }
 0x935   : > { %v1524_v46 = vsub.f32 %v1471_v34, %v1504_v54  ;;  %v1501_v35 = vpop.xlane.xlu0 %1500 }
 0x936   : > { %v1523_v36 = vsub.f32 %v1468_v30, %v1501_v35 }
 0x937   : > { %v1533_v39 = vmul.f32 1.442695, %v1524_v46 }
 0x938   : > { %v1531_v43 = vmul.f32 1.442695, %v1523_v36  ;;  %v1718_v35 = vpop.permute.xlu1 %1717 }
 0x939   : > { %2867 = vpow2.f32 %v1533_v39  ;;  %v1510_v51 = vpop.xlane.xlu0 %1509 }
 0x93a   : > { %2869 = vpow2.f32 %v1531_v43  ;;  %v1526_v27 = vsub.f32 %v2607_v32, %v1510_v51 }
 0x93b   : > { %2871 = vpow2.f32 %v1535_v49 }
 0x93c   : > { %v1537_v18 = vmul.f32 1.442695, %v1526_v27 }
 0x93d   : > { %v1519_v24 = vpop.xlane.xlu0 %1518 }
 0x93e   : > { %2873 = vpow2.f32 %v1537_v18  ;;  %v1529_v12 = vsub.f32 %v2610_v37, %v1519_v24 }
 0x940   : > { %v1543_v29 = vmul.f32 1.442695, %v1529_v12  ;;  %v1734_v12 = vsel %vm803_vm2, %v3916_v44, 0  ;;  %v1740_v44 = vsel %vm803_vm2, %v1718_v35, 0 }
 0x941   : > { %v1513_v21 = vpop.xlane.xlu0 %1512 }
 0x942   : > { %2875 = vpow2.f32 %v1543_v29  ;;  %v1527_v39 = vsub.f32 %v3940_v38, %v1513_v21 }
 0x943   : > { %v3963_v13 = vpop.eup %2867 }
 0x944   : > { %v3965_v7 = vpop.eup %2869  ;;  %v1539_v43 = vmul.f32 1.442695, %v1527_v39 }
 0x945   : > { %v1522_v34 = vpop.xlane.xlu0 %1521  ;;  %v1571_v30 = vpack.c.bf16 %v3963_v13, %v3965_v7  ;;  %v3969_v54 = vpop.eup %2871 }
 0x946   : > { %v1530_v53 = vsub.f32 %v2611_v41, %v1522_v34 }
 0x947   : > { %2620 = vmatprep.mubr.msk.bf16.mxu0 %vm893_vm3, %v1571_v30 }
 0x948   : > { %v3972_v32 = vpop.eup %2873  ;;  %v1545_v58 = vmul.f32 1.442695, %v1530_v53 }
 0x949   : > { %v1572_v18 = vpack.c.bf16 %v3972_v32, %v3969_v54  ;;  %v1716_v24 = vpop.permute.xlu0 %1715 }
 0x94a   : > { %2877 = vpow2.f32 %v1545_v58  ;;  %v1737_v41 = vsel %vm803_vm2, %v1716_v24, 0 }
 0x94b   : > { %2621 = vmatmul.mubr.msk.bf16.vlgmr.msra.gmra.mrb[28].mxu0 %vm893_vm3, %v1572_v18  ;;  %2879 = vpow2.f32 %v1539_v43 }
 0x94c   : > { %2629 = vmatpush3.bf16.xpose.msra.mxu0 %v1734_v12  ;;  %v3980_v37 = vpop.eup %2875 }
 0x94d   : > { %2689 = vmatprep.subr.msk.bf16.mxu0 %vm803_vm2, %v1716_v24 }
 0x954   : > { %v3983_v46 = vpop.eup %2877  ;;  %2631 = vmatpush3.bf16.xpose.msra.mxu0 %v1737_v41 }
 0x955   : > { %2690 = vmatprep.subr.msk.bf16.mxu0 %vm803_vm2, %v1718_v35  ;;  %v1574_v36 = vpack.c.bf16 %v3983_v46, %v3980_v37  ;;  %v3993_v58 = vpop.eup %2879 }
 0x95c   : > { %2633 = vmatpush3.bf16.xpose.msra.mxu0 %v1740_v44 }
 0x969   : > { %v1516_v49 = vpop.xlane.xlu1 %1515 }
 0x96a   : > { %v1528_v51 = vsub.f32 %v3943_v42, %v1516_v49  ;;  %v1706_v42 = vpop.permute.xlu0 %1705 }
 0x96c   : > { %v1541_v27 = vmul.f32 1.442695, %v1528_v51 }
 0x96d   : > { %v1720_v29 = vpop.permute.xlu1 %1719 }
 0x96e   : > { %2881 = vpow2.f32 %v1541_v27  ;;  %v1743_v34 = vsel %vm803_vm2, %v1720_v29, 0  ;;  %2691 = vmatprep.subr.msk.bf16.mxu0 %vm803_vm2, %v1720_v29  ;;  %v1710_v12 = vpop.permute.xlu0 %1709 }
 0x96f   : > { %2635 = vmatpush3.bf16.xpose.msra.mxu0 %v1743_v34 }
 0x971   : > { %v1708_v30 = vpop.permute.xlu1 %1707 }
 0x975   : > { %v1712_v53 = vpop.permute.xlu1 %1711 }
 0x978   : > { %v3995_v18 = vpop.eup %2881 }
 0x979   : > { %v1887_v21 = vpop.permute.xlu1 %1886  ;;  %v1573_v38 = vpack.c.bf16 %v3995_v18, %v3993_v58 }
 0x97a   : > { %2644 = vmatprep.subr.bf16.mxu1 %v1887_v21 }
 0x97b   : > { %2624 = vmatprep.mubr.msk.bf16.mxu0 %vm893_vm3, %v1573_v38  ;;  %2645 = vmatpush3.bf16.msra.mxu1 %v1887_v21 }
 0x97c   : > { %2625 = vmatmul.mubr.msk.bf16.gmra.mrb[32].mxu0 %vm893_vm3, %v1574_v36 }
 0x97d   : > { %2636 = vmatprep.mubr.msk.bf16.mxu0 %vm803_vm2, %v1706_v42 }
 0x984   : > { %2637 = vmatmul.mubr.msk.bf16.vlgmr.msra.gmra.mrb[36].mxu0 %vm803_vm2, %v1708_v30 }
 0x985   : > { %2640 = vmatprep.mubr.msk.bf16.mxu0 %vm803_vm2, %v1710_v12 }
 0x98c   : > { %2641 = vmatmul.mubr.msk.bf16.gmra.mrb[40].mxu0 %vm803_vm2, %v1712_v53 }
 0xa1e   : > { %v4005_v24 = vpop.f32.mrb[28].mxu0 }
 0xa1f   : > { %v4007_v41 = vpop.f32.mrb[29].mxu0 }
 0xa20   : > { %v4009_v35 = vpop.f32.mrb[30].mxu0 }
 0xa21   : > { %v4011_v44 = vpop.f32.mrb[31].mxu0 }
 0xa4f   : > { %v4013_v39 = vpop.f32.mrb[32].mxu0 }
 0xa50   : > { %v4015_v36 = vpop.f32.mrb[33].mxu0 }
 0xa51   : > { %v4017_v43 = vpop.f32.mrb[34].mxu0 }
 0xa52   : > { %v4019_v49 = vpop.f32.mrb[35].mxu0 }
 0xa57   : > { %v2638_v51 = vpop.f32.mrb[36].mxu0 }
 0xa58   : > { %v4021_v27 = vpop.f32.mrb[37].mxu0  ;;  %v1816_v29 = vsel %vm893_vm3, %v2638_v51, -inf }
 0xa59   : > { %1817 = vmax.xlane.f32.xlu0 %v1816_v29  ;;  %v4024_v34 = vpop.f32.mrb[38].mxu0  ;;  %v1810_v21 = vsel %vm893_vm3, %v4021_v27, -inf }
 0xa5a   : > { %v1782_v30 = vpop.f32.mrb[39].mxu0  ;;  %v1819_v12 = vsel %vm893_vm3, %v4024_v34, -inf }
 0xa5b   : > { %v1813_v53 = vsel %vm893_vm3, %v1782_v30, -inf }
 0xa5c   : > { %1814 = vmax.xlane.f32.xlu1 %v1813_v53 }
 0xa5d   : > { %1811 = vmax.xlane.f32.xlu0 %v1810_v21 }
 0xa5f   : > { %v2642_v38 = vpop.f32.mrb[40].mxu0 }
 0xa60   : > { %v4029_v42 = vpop.f32.mrb[41].mxu0  ;;  %v1828_v11 = vsel %vm893_vm3, %v2642_v38, -inf }
 0xa61   : > { %1820 = vmax.xlane.f32.xlu0 %v1819_v12  ;;  %1829 = vmax.xlane.f32.xlu1 %v1828_v11  ;;  %v4034_v29 = vpop.f32.mrb[42].mxu0  ;;  %v1822_v53 = vsel %vm893_vm3, %v4029_v42, -inf  ;;  %v1239_v11 = vsel %vm893_vm3, %v3875_v40, 0.0  ;;  %v1236_v12 = vsel %vm893_vm3, %v3877_v59, 0.0  ;;  %v1248_v40 = vsel %vm893_vm3, %v3905_v50, 0.0 }
 0xa62   : > { %v4036_v6 = vpop.f32.mrb[43].mxu0  ;;  %v1831_v21 = vsel %vm893_vm3, %v4034_v29, -inf  ;;  %v1550_v59 = vsel %vm893_vm3, %v3963_v13, 0.0  ;;  %v1257_v50 = vsel %vm893_vm3, %v3895_v28, 0.0 }
 0xa63   : > { %v1825_v10 = vsel %vm893_vm3, %v4036_v6, -inf }
 0xa65   : > { %1823 = vmax.xlane.f32.xlu1 %v1822_v53  ;;  %1832 = vmax.xlane.f32.xlu0 %v1831_v21 }
 0xa69   : > { %1826 = vmax.xlane.f32.xlu0 %v1825_v10  ;;  %v1547_v10 = vsel %vm893_vm3, %v3965_v7, 0.0  ;;  %v1254_v7 = vsel %vm893_vm3, %v3892_v19, 0.0  ;;  %v1562_v19 = vsel %vm893_vm3, %v3995_v18, 0.0 }
 0xa76   : > { %1890 = vrot.lane.b32.xlu1 %v3725_v26, %s3298_s14  ;;  %v1242_v26 = vsel %vm893_vm3, %v3881_v2, 0.0  ;;  %v1556_v2 = vsel %vm893_vm3, %v3972_v32, 0.0 }
 0xa7a   : > { %1892 = vrot.lane.b32.xlu1 %v3723_v25, %s3298_s14  ;;  %v1553_v25 = vsel %vm893_vm3, %v3969_v54, 0.0  ;;  %v1251_v54 = vsel %vm893_vm3, %v3907_v17, 0.0 }
 0xa7f   : > { %1888 = vrot.lane.b32.xlu0 %v3715_v9, %s3298_s14  ;;  %v1245_v9 = vsel %vm893_vm3, %v3884_v3, 0.0  ;;  %v1559_v3 = vsel %vm893_vm3, %v3993_v58, 0.0 }
 0xa9e   : > { %1240 = vadd.xlane.f32.xlu1 %v1239_v11  ;;  %1237 = vadd.xlane.f32.xlu0 %v1236_v12 }
 0xaa2   : > { %1548 = vadd.xlane.f32.xlu1 %v1547_v10  ;;  %1243 = vadd.xlane.f32.xlu0 %v1242_v26 }
 0xaa6   : > { %1554 = vadd.xlane.f32.xlu1 %v1553_v25  ;;  %1246 = vadd.xlane.f32.xlu0 %v1245_v9 }
 0xaaa   : > { %1249 = vadd.xlane.f32.xlu1 %v1248_v40  ;;  %1551 = vadd.xlane.f32.xlu0 %v1550_v59 }
 0xaae   : > { %1255 = vadd.xlane.f32.xlu1 %v1254_v7  ;;  %1557 = vadd.xlane.f32.xlu0 %v1556_v2 }
 0xab2   : > { %1560 = vadd.xlane.f32.xlu1 %v1559_v3  ;;  %1252 = vadd.xlane.f32.xlu0 %v1251_v54 }
 0xab6   : > { %1258 = vadd.xlane.f32.xlu0 %v1257_v50 }
 0xaba   : > { %1563 = vadd.xlane.f32.xlu0 %v1562_v19 }
 0xae6   : > { %v1818_v13 = vpop.xlane.xlu0 %1817 }
 0xae7   : > { %v1836_v32 = vsub.f32 %v2638_v51, %v1818_v13 }
 0xae9   : > { %v1846_v53 = vmul.f32 1.442695, %v1836_v32  ;;  %v1815_v21 = vpop.xlane.xlu1 %1814 }
 0xaea   : > { %v1835_v11 = vsub.f32 %v1782_v30, %v1815_v21  ;;  %v1812_v12 = vpop.xlane.xlu0 %1811 }
 0xaeb   : > { %2883 = vpow2.f32 %v1846_v53  ;;  %v1834_v58 = vsub.f32 %v4021_v27, %v1812_v12 }
 0xaec   : > { %v1844_v17 = vmul.f32 1.442695, %v1835_v11 }
 0xaed   : > { %v1842_v10 = vmul.f32 1.442695, %v1834_v58 }
 0xaee   : > { %2885 = vpow2.f32 %v1844_v17  ;;  %v1821_v26 = vpop.xlane.xlu0 %1820  ;;  %v1830_v25 = vpop.xlane.xlu1 %1829 }
 0xaef   : > { %2887 = vpow2.f32 %v1842_v10  ;;  %v1837_v28 = vsub.f32 %v4024_v34, %v1821_v26  ;;  %v1840_v9 = vsub.f32 %v2642_v38, %v1830_v25 }
 0xaf1   : > { %v1848_v18 = vmul.f32 1.442695, %v1837_v28  ;;  %v1854_v40 = vmul.f32 1.442695, %v1840_v9 }
 0xaf2   : > { %v1833_v59 = vpop.xlane.xlu0 %1832  ;;  %v1824_v51 = vpop.xlane.xlu1 %1823 }
 0xaf3   : > { %2889 = vpow2.f32 %v1848_v18  ;;  %v1841_v30 = vsub.f32 %v4034_v29, %v1833_v59  ;;  %v1838_v7 = vsub.f32 %v4029_v42, %v1824_v51 }
 0xaf4   : > { %2891 = vpow2.f32 %v1854_v40 }
 0xaf5   : > { %v2884_v2 = vpop.eup %2883  ;;  %v1856_v27 = vmul.f32 1.442695, %v1841_v30  ;;  %v1850_v3 = vmul.f32 1.442695, %v1838_v7  ;;  %v942_v30 = vsel %vm893_vm3, %v3785_v15, 0.0  ;;  %v951_v15 = vsel %vm893_vm3, %v3792_v23, 0.0 }
 0xaf6   : > { %v1827_v54 = vpop.xlane.xlu0 %1826  ;;  %v1864_v50 = vsel %vm893_vm3, %v2884_v2, 0.0  ;;  %v1891_v32 = vpop.permute.xlu1 %1890 }
 0xaf7   : > { %2893 = vpow2.f32 %v1856_v27  ;;  %v1839_v34 = vsub.f32 %v4036_v6, %v1827_v54  ;;  %1865 = vadd.xlane.f32.xlu1 %v1864_v50  ;;  %v1565_v6 = vsel %vm893_vm3, %v3980_v37, 0.0  ;;  %v1568_v37 = vsel %vm893_vm3, %v3983_v46, 0.0 }
 0xaf8   : > { %v2886_v38 = vpop.eup %2885  ;;  %2895 = vpow2.f32 %v1850_v3  ;;  %v948_v46 = vsel %vm893_vm3, %v3789_v22, 0.0  ;;  %v954_v27 = vsel %vm893_vm3, %v3813_v56, 0.0  ;;  %v960_v3 = vsel %vm893_vm3, %v3800_v31, 0.0 }
 0xaf9   : > { %v2888_v19 = vpop.eup %2887  ;;  %v1852_v13 = vmul.f32 1.442695, %v1839_v34  ;;  %v1861_v25 = vsel %vm893_vm3, %v2886_v38, 0.0  ;;  %v957_v22 = vsel %vm893_vm3, %v3815_v55, 0.0 }
 0xafa   : > { %v1889_v53 = vpop.permute.xlu0 %1888  ;;  %v1858_v29 = vsel %vm893_vm3, %v2888_v19, 0.0  ;;  %v1882_v42 = vpack.c.bf16 %v2886_v38, %v2888_v19  ;;  %v1893_v17 = vpop.permute.xlu1 %1892 }
 0xafb   : > { %2897 = vpow2.f32 %v1852_v13  ;;  %1859 = vadd.xlane.f32.xlu1 %v1858_v29  ;;  %2646 = vmatprep.subr.bf16.mxu1 %v1889_v53 }
 0xafc   : > { %2647 = vmatpush3.bf16.msra.mxu1 %v1889_v53  ;;  %2652 = vmatprep.mubr.msk.bf16.mxu1 %vm893_vm3, %v1882_v42 }
 0xafd   : > { %v2890_v21 = vpop.eup %2889  ;;  %2648 = vmatprep.subr.bf16.mxu1 %v1891_v32 }
 0xafe   : > { %v1883_v11 = vpack.c.bf16 %v2890_v21, %v2884_v2  ;;  %v1867_v12 = vsel %vm893_vm3, %v2890_v21, 0.0  ;;  %v2892_v58 = vpop.eup %2891  ;;  %v945_v2 = vsel %vm893_vm3, %v3783_v14, 0.0  ;;  %v963_v14 = vsel %vm893_vm3, %v3803_v33, 0.0 }
 0xaff   : > { %1566 = vadd.xlane.f32.xlu1 %v1565_v6  ;;  %1868 = vadd.xlane.f32.xlu0 %v1867_v12  ;;  %v1876_v59 = vsel %vm893_vm3, %v2892_v58, 0.0 }
 0xb00   : > { %2649 = vmatpush3.bf16.msra.mxu1 %v1891_v32 }
 0xb01   : > { %v2894_v10 = vpop.eup %2893  ;;  %2650 = vmatprep.subr.bf16.mxu1 %v1893_v17 }
 0xb02   : > { %v2896_v26 = vpop.eup %2895  ;;  %v1885_v28 = vpack.c.bf16 %v2894_v10, %v2892_v58  ;;  %v1879_v7 = vsel %vm893_vm3, %v2894_v10, 0.0 }
 0xb03   : > { %1862 = vadd.xlane.f32.xlu0 %v1861_v25  ;;  %v1870_v9 = vsel %vm893_vm3, %v2896_v26, 0.0 }
 0xb04   : > { %1871 = vadd.xlane.f32.xlu1 %v1870_v9  ;;  %2651 = vmatpush3.bf16.msra.mxu1 %v1893_v17 }
 0xb05   : > { %v2898_v18 = vpop.eup %2897 }
 0xb06   : > { %v1884_v40 = vpack.c.bf16 %v2898_v18, %v2896_v26  ;;  %v1873_v51 = vsel %vm893_vm3, %v2898_v18, 0.0 }
 0xb07   : > { %1569 = vadd.xlane.f32.xlu0 %v1568_v37  ;;  %2653 = vmatmul.mubr.msk.bf16.vlgmr.msra.gmra.mrb[24].mxu1 %vm893_vm3, %v1883_v11 }
 0xb08   : > { %1877 = vadd.xlane.f32.xlu1 %v1876_v59  ;;  %2656 = vmatprep.mubr.msk.bf16.mxu1 %vm893_vm3, %v1884_v40 }
 0xb0b   : > { %1874 = vadd.xlane.f32.xlu0 %v1873_v51 }
 0xb0c   : > { %943 = vadd.xlane.f32.xlu1 %v942_v30 }
 0xb0f   : > { %1880 = vadd.xlane.f32.xlu0 %v1879_v7  ;;  %2657 = vmatmul.mubr.msk.bf16.gmra.mrb[28].mxu1 %vm893_vm3, %v1885_v28 }
 0xb10   : > { %949 = vadd.xlane.f32.xlu1 %v948_v46 }
 0xb13   : > { %946 = vadd.xlane.f32.xlu0 %v945_v2 }
 0xb14   : > { %955 = vadd.xlane.f32.xlu1 %v954_v27 }
 0xb17   : > { %952 = vadd.xlane.f32.xlu0 %v951_v15 }
 0xb18   : > { %961 = vadd.xlane.f32.xlu1 %v960_v3 }
 0xb1b   : > { %958 = vadd.xlane.f32.xlu0 %v957_v22 }
 0xb1f   : > { %964 = vadd.xlane.f32.xlu0 %v963_v14  ;;  %v2832_v14 = vld [vmem:[#allocation14] sm:$0xff]  }
 0xb20   : > { %2660 = vmatprep.subr.bf16.mxu1 %v2832_v14 }
 0xb21   : > { %2661 = vmatpush3.bf16.msra.mxu1 %v2832_v14 }
 0xb2b   : > { %v1238_v54 = vpop.xlane.xlu0 %1237  ;;  %v1241_v50 = vpop.xlane.xlu1 %1240 }
 0xb2c   : > { %2899 = vrcp.f32 %v1238_v54 }
 0xb2d   : > { %2901 = vrcp.f32 %v1241_v50 }
 0xb2f   : > { %v1244_v56 = vpop.xlane.xlu0 %1243  ;;  %v1549_v34 = vpop.xlane.xlu1 %1548 }
 0xb30   : > { %2903 = vrcp.f32 %v1244_v56 }
 0xb33   : > { %v1247_v23 = vpop.xlane.xlu0 %1246  ;;  %v1555_v38 = vpop.xlane.xlu1 %1554 }
 0xb34   : > { %2905 = vrcp.f32 %v1247_v23 }
 0xb35   : > { %2907 = vrcp.f32 %v1549_v34 }
 0xb36   : > { %v2900_v31 = vpop.eup %2899 }
 0xb37   : > { %v2902_v19 = vpop.eup %2901  ;;  %v1552_v13 = vpop.xlane.xlu0 %1551  ;;  %v1361_v32 = vmul.f32 %v2900_v31, %v3923_v0 }
 0xb38   : > { %v1250_v55 = vpop.xlane.xlu1 %1249  ;;  %2909 = vrcp.f32 %v1552_v13  ;;  %v1362_v33 = vmul.f32 %v2902_v19, %v3927_v4 }
 0xb39   : > { %2911 = vrcp.f32 %v1555_v38 }
 0xb3a   : > { %v1369_v53 = vpack.c.bf16 %v1362_v33, %v1361_v32  ;;  %v2904_v42 = vpop.eup %2903 }
 0xb3b   : > { %v1558_v29 = vpop.xlane.xlu0 %1557  ;;  %v1363_v12 = vmul.f32 %v2904_v42, %v3921_v45 }
 0xb3c   : > { %2913 = vrcp.f32 %v1558_v29  ;;  %1377 = vrot.lane.b32.xlu1 %v1369_v53, %s3299_s26  ;;  %v1256_v21 = vpop.xlane.xlu1 %1255 }
 0xb3d   : > { %2915 = vrcp.f32 %v1250_v55 }
 0xb3e   : > { %v2906_v11 = vpop.eup %2905 }
 0xb3f   : > { %v1253_v6 = vpop.xlane.xlu0 %1252  ;;  %v1364_v58 = vmul.f32 %v2906_v11, %v3925_v1  ;;  %v2908_v0 = vpop.eup %2907 }
 0xb40   : > { %2917 = vrcp.f32 %v1253_v6  ;;  %v1561_v10 = vpop.xlane.xlu1 %1560  ;;  %v1672_v25 = vmul.f32 %v2908_v0, %v4007_v41 }
 0xb41   : > { %v1370_v17 = vpack.c.bf16 %v1364_v58, %v1363_v12  ;;  %2919 = vrcp.f32 %v1256_v21 }
 0xb42   : > { %v2910_v4 = vpop.eup %2909 }
 0xb43   : > { %v1259_v26 = vpop.xlane.xlu0 %1258  ;;  %1379 = vrot.lane.b32.xlu0 %v1370_v17, %s3299_s26  ;;  %v1673_v28 = vmul.f32 %v2910_v4, %v4011_v44  ;;  %v2912_v9 = vpop.eup %2911 }
 0xb44   : > { %2921 = vrcp.f32 %v1259_v26  ;;  %v1674_v1 = vmul.f32 %v2912_v9, %v4005_v24 }
 0xb45   : > { %v1680_v18 = vpack.c.bf16 %v1673_v28, %v1672_v25  ;;  %2923 = vrcp.f32 %v1561_v10 }
 0xb46   : > { %v2914_v37 = vpop.eup %2913 }
 0xb47   : > { %v1564_v45 = vpop.xlane.xlu0 %1563  ;;  %1688 = vrot.lane.b32.xlu1 %v1680_v18, %s3300_s23  ;;  %v1675_v40 = vmul.f32 %v2914_v37, %v4009_v35  ;;  %v2916_v59 = vpop.eup %2915 }
 0xb48   : > { %2925 = vrcp.f32 %v1564_v45  ;;  %v1365_v41 = vmul.f32 %v2916_v59, %v3931_v8 }
 0xb49   : > { %v1681_v51 = vpack.c.bf16 %v1675_v40, %v1674_v1 }
 0xb4a   : > { %v2918_v30 = vpop.eup %2917 }
 0xb4b   : > { %1690 = vrot.lane.b32.xlu1 %v1681_v51, %s3300_s23  ;;  %v1366_v44 = vmul.f32 %v2918_v30, %v3935_v20  ;;  %v2920_v7 = vpop.eup %2919 }
 0xb4c   : > { %v1367_v27 = vmul.f32 %v2920_v7, %v3929_v5 }
 0xb4d   : > { %v1371_v46 = vpack.c.bf16 %v1366_v44, %v1365_v41 }
 0xb4e   : > { %v2922_v2 = vpop.eup %2921 }
 0xb4f   : > { %1381 = vrot.lane.b32.xlu0 %v1371_v46, %s3299_s26  ;;  %v1368_v24 = vmul.f32 %v2922_v2, %v3933_v16  ;;  %v2924_v35 = vpop.eup %2923 }
 0xb50   : > { %v4134_v22 = vmul.f32 %v2924_v35, %v4015_v36 }
 0xb51   : > { %v1372_v15 = vpack.c.bf16 %v1368_v24, %v1367_v27 }
 0xb52   : > { %v2926_v3 = vpop.eup %2925 }
 0xb53   : > { %1383 = vrot.lane.b32.xlu1 %v1372_v15, %s3299_s26  ;;  %v4137_v8 = vmul.f32 %v2926_v3, %v4019_v49 }
 0xb55   : > { %v1682_v20 = vpack.c.bf16 %v4137_v8, %v4134_v22 }
 0xb84   : > { %v4141_v5 = vpop.xlane.xlu1 %1865 }
 0xb88   : > { %v4143_v16 = vpop.xlane.xlu1 %1859 }
 0xb8c   : > { %v4145_v54 = vpop.xlane.xlu0 %1868  ;;  %v1567_v50 = vpop.xlane.xlu1 %1566 }
 0xb8d   : > { %2927 = vrcp.f32 %v1567_v50 }
 0xb90   : > { %v4147_v56 = vpop.xlane.xlu0 %1862 }
 0xb91   : > { %v4149_v36 = vpop.xlane.xlu1 %1871 }
 0xb94   : > { %v1570_v49 = vpop.xlane.xlu0 %1569 }
 0xb95   : > { %2929 = vrcp.f32 %v1570_v49  ;;  %v4151_v34 = vpop.xlane.xlu1 %1877 }
 0xb97   : > { %v2928_v23 = vpop.eup %2927 }
 0xb98   : > { %v4153_v38 = vpop.xlane.xlu0 %1874  ;;  %v4156_v19 = vmul.f32 %v2928_v23, %v4013_v39 }
 0xb99   : > { %v944_v31 = vpop.xlane.xlu1 %943 }
 0xb9a   : > { %2931 = vrcp.f32 %v944_v31 }
 0xb9c   : > { %v4158_v13 = vpop.xlane.xlu0 %1880 }
 0xb9d   : > { %v950_v55 = vpop.xlane.xlu1 %949 }
 0xb9f   : > { %v2930_v32 = vpop.eup %2929 }
 0xba0   : > { %v947_v33 = vpop.xlane.xlu0 %946  ;;  %v4161_v53 = vmul.f32 %v2930_v32, %v4017_v43 }
 0xba1   : > { %2933 = vrcp.f32 %v947_v33  ;;  %v956_v29 = vpop.xlane.xlu1 %955 }
 0xba2   : > { %v1683_v42 = vpack.c.bf16 %v4161_v53, %v4156_v19  ;;  %2935 = vrcp.f32 %v950_v55 }
 0xba4   : > { %v953_v21 = vpop.xlane.xlu0 %952  ;;  %v2932_v6 = vpop.eup %2931 }
 0xba5   : > { %2937 = vrcp.f32 %v953_v21  ;;  %v962_v39 = vpop.xlane.xlu1 %961  ;;  %v1067_v58 = vmul.f32 %v2932_v6, %v3831_v60 }
 0xba6   : > { %2939 = vrcp.f32 %v956_v29 }
 0xba8   : > { %v959_v11 = vpop.xlane.xlu0 %958 }
 0xba9   : > { %2941 = vrcp.f32 %v959_v11 }
 0xbaa   : > { %2943 = vrcp.f32 %v962_v39 }
 0xbab   : > { %v2934_v12 = vpop.eup %2933 }
 0xbac   : > { %v1068_v43 = vmul.f32 %v2934_v12, %v3835_v52  ;;  %v965_v0 = vpop.xlane.xlu0 %964  ;;  %v2936_v17 = vpop.eup %2935  ;;  %v2380_v12 = vld [vmem:[#allocation15] ss:$0 sm:$0xff] }
 0xbad   : > { %2945 = vrcp.f32 %v965_v0  ;;  %v1069_v26 = vmul.f32 %v2936_v17, %v3829_v47 }
 0xbae   : > { %v1075_v4 = vpack.c.bf16 %v1068_v43, %v1067_v58  ;;  %v1378_v28 = vpop.permute.xlu1 %1377  ;;  %2947 = vrcp.f32 %v4141_v5 }
 0xbaf   : > { %v2938_v10 = vpop.eup %2937  ;;  %2949 = vrcp.f32 %v4143_v16 }
 0xbb0   : > { %v1070_v25 = vmul.f32 %v2938_v10, %v3833_v48  ;;  %1079 = vst.msk [vmem:[#allocation2] sm:$0xff] %vm803_vm2, %v1075_v4  ;;  %v2940_v9 = vpop.eup %2939  ;;  %2951 = vrcp.f32 %v4145_v54  ;;  %v4323_v10 = vld [vmem:[#allocation26_spill] sm:$0xff] }
 0xbb1   : > { %1390 = vst.msk [vmem:[#allocation2] sm:$0xff] %vm1389_vm4, %v1378_v28  ;;  %v1071_v52 = vmul.f32 %v2940_v9, %v3839_v61  ;;  %2953 = vrcp.f32 %v4147_v56  ;;  %v4324_v9 = vld [vmem:[#allocation24_spill] sm:$0xff] }
 0xbb2   : > { %v1076_v18 = vpack.c.bf16 %v1070_v25, %v1069_v26  ;;  %2955 = vrcp.f32 %v4149_v36 }
 0xbb3   : > { %v2942_v60 = vpop.eup %2941  ;;  %2957 = vrcp.f32 %v4151_v34 }
 0xbb4   : > { %v1072_v37 = vmul.f32 %v2942_v60, %v3843_v63  ;;  %1080 = vst.msk [vmem:[#allocation2 + $0x8] sm:$0xff] %vm803_vm2, %v1076_v18  ;;  %v2944_v45 = vpop.eup %2943  ;;  %2959 = vrcp.f32 %v4158_v13 }
 0xbb5   : > { %v1380_v1 = vpop.permute.xlu0 %1379  ;;  %v1073_v40 = vmul.f32 %v2944_v45, %v3837_v57  ;;  %2961 = vrcp.f32 %v4153_v38 }
 0xbb6   : > { %1391 = vst.msk [vmem:[#allocation2 + $0x8] sm:$0xff] %vm1389_vm4, %v1380_v1  ;;  %v1077_v47 = vpack.c.bf16 %v1072_v37, %v1071_v52  ;;  %v4325_v37 = vld [vmem:[#allocation27_spill] sm:$0xff] }
 0xbb7   : > { %v2946_v48 = vpop.eup %2945 }
 0xbb8   : > { %v1074_v59 = vmul.f32 %v2946_v48, %v3841_v62  ;;  %1081 = vst.msk [vmem:[#allocation2 + $0x10] sm:$0xff] %vm803_vm2, %v1077_v47  ;;  %v2948_v57 = vpop.eup %2947  ;;  %v4326_v47 = vld [vmem:[#allocation25_spill] sm:$0xff] }
 0xbb9   : > { %v1689_v51 = vpop.permute.xlu1 %1688  ;;  %v2950_v44 = vpop.eup %2949 }
 0xbba   : > { %1701 = vst.msk [vmem:[#allocation2] sm:$0xff] %vm1700_vm5, %v1689_v51  ;;  %v1078_v61 = vpack.c.bf16 %v1074_v59, %v1073_v40  ;;  %v2952_v2 = vpop.eup %2951 }
 0xbbb   : > { %v2954_v35 = vpop.eup %2953 }
 0xbbc   : > { %1082 = vst.msk [vmem:[#allocation2 + $0x18] sm:$0xff] %vm803_vm2, %v1078_v61  ;;  %v2956_v54 = vpop.eup %2955 }
 0xbbd   : > { %v1691_v63 = vpop.permute.xlu1 %1690  ;;  %v2958_v56 = vpop.eup %2957 }
 0xbbe   : > { %1702 = vst.msk [vmem:[#allocation2 + $0x8] sm:$0xff] %vm1700_vm5, %v1691_v63  ;;  %v2960_v49 = vpop.eup %2959 }
 0xbbf   : > { %v2962_v38 = vpop.eup %2961 }
 0xbc1   : > { %v1382_v30 = vpop.permute.xlu0 %1381 }
 0xbc2   : > { %1392 = vst.msk [vmem:[#allocation2 + $0x10] sm:$0xff] %vm1389_vm4, %v1382_v30 }
 0xbc5   : > { %v1384_v41 = vpop.permute.xlu1 %1383 }
 0xbc6   : > { %1393 = vst.msk [vmem:[#allocation2 + $0x18] sm:$0xff] %vm1389_vm4, %v1384_v41 }
 0xbda   : > { %v2654_v62 = vpop.f32.mrb[24].mxu1 }
 0xbdb   : > { %v1985_v7 = vmul.f32 %v2948_v57, %v2654_v62  ;;  %v1944_v46 = vpop.f32.mrb[25].mxu1  ;;  %v4327_v57 = vld [vmem:[#allocation30_spill] sm:$0xff] }
 0xbdc   : > { %v1983_v27 = vmul.f32 %v2950_v44, %v1944_v46  ;;  %v2655_v24 = vpop.f32.mrb[26].mxu1  ;;  %v4328_v46 = vld [vmem:[#allocation28_spill] sm:$0xff] }
 0xbdd   : > { %v1986_v15 = vmul.f32 %v2952_v2, %v2655_v24  ;;  %v1947_v3 = vpop.f32.mrb[27].mxu1 }
 0xbde   : > { %v1984_v14 = vmul.f32 %v2954_v35, %v1947_v3  ;;  %v4329_v35 = vld [vmem:[#allocation31_spill] sm:$0xff] }
 0xbdf   : > { %v1992_v5 = vpack.c.bf16 %v1986_v15, %v1985_v7 }
 0xbe0   : > { %v1991_v16 = vpack.c.bf16 %v1984_v14, %v1983_v27  ;;  %v4330_v14 = vld [vmem:[#allocation29_spill] sm:$0xff] }
 0xbe1   : > { %2001 = vrot.lane.b32.xlu1 %v1992_v5, %s3301_s12 }
 0xbe2   : > { %v2658_v50 = vpop.f32.mrb[28].mxu1  ;;  %1999 = vrot.lane.b32.xlu0 %v1991_v16, %s3301_s12 }
 0xbe3   : > { %v1960_v36 = vpop.f32.mrb[29].mxu1  ;;  %v1989_v31 = vmul.f32 %v2958_v56, %v2658_v50 }
 0xbe4   : > { %v1987_v34 = vmul.f32 %v2956_v54, %v1960_v36  ;;  %v2659_v23 = vpop.f32.mrb[30].mxu1 }
 0xbe5   : > { %v1990_v13 = vmul.f32 %v2960_v49, %v2659_v23  ;;  %v1963_v55 = vpop.f32.mrb[31].mxu1  ;;  %1694 = vrot.lane.b32.xlu1 %v1683_v42, %s3300_s23 }
 0xbe6   : > { %v1988_v32 = vmul.f32 %v2962_v38, %v1963_v55  ;;  %1692 = vrot.lane.b32.xlu0 %v1682_v20, %s3300_s23 }
 0xbe7   : > { %v1994_v33 = vpack.c.bf16 %v1990_v13, %v1989_v31 }
 0xbe8   : > { %v1993_v29 = vpack.c.bf16 %v1988_v32, %v1987_v34 }
 0xbe9   : > { %2005 = vrot.lane.b32.xlu1 %v1994_v33, %s3301_s12 }
 0xbea   : > { %2003 = vrot.lane.b32.xlu0 %v1993_v29, %s3301_s12 }
 0xc53   : > { %v2002_v21 = vpop.permute.xlu1 %2001 }
 0xc54   : > { %2013 = vst.msk [vmem:[#allocation2 + $0x8] sm:$0xff] %vm2011_vm6, %v2002_v21  ;;  %v2000_v39 = vpop.permute.xlu0 %1999 }
 0xc55   : > { %2012 = vst.msk [vmem:[#allocation2] sm:$0xff] %vm2011_vm6, %v2000_v39 }
 0xc57   : > { %v1695_v11 = vpop.permute.xlu1 %1694 }
 0xc58   : > { %1704 = vst.msk [vmem:[#allocation2 + $0x18] sm:$0xff] %vm1700_vm5, %v1695_v11  ;;  %v1693_v19 = vpop.permute.xlu0 %1692 }
 0xc59   : > { %1703 = vst.msk [vmem:[#allocation2 + $0x10] sm:$0xff] %vm1700_vm5, %v1693_v19 }
 0xc5b   : > { %v2006_v53 = vpop.permute.xlu1 %2005  ;;  %v2017_v8 = vld [vmem:[#allocation2 + $0x8] sm:$0xff] }
 0xc5c   : > { %2015 = vst.msk [vmem:[#allocation2 + $0x18] sm:$0xff] %vm2011_vm6, %v2006_v53  ;;  %v2004_v42 = vpop.permute.xlu0 %2003  ;;  %v2016_v22 = vld [vmem:[#allocation2] sm:$0xff] }
 0xc5d   : > { %2014 = vst.msk [vmem:[#allocation2 + $0x10] sm:$0xff] %vm2011_vm6, %v2004_v42  ;;  %2662 = vmatprep.mubr.msk.bf16.mxu1 %vm435_vm1, %v2016_v22 }
 0xc5e   : > { %2663 = vmatmul.mubr.msk.bf16.vlgmr.msra.gmra.mrb[32].mxu1 %vm435_vm1, %v2017_v8 }
 0xc63   : > { %v2019_v6 = vld [vmem:[#allocation2 + $0x18] sm:$0xff] }
 0xc64   : > { %v2018_v20 = vld [vmem:[#allocation2 + $0x10] sm:$0xff] }
 0xc65   : > { %2666 = vmatprep.mubr.msk.bf16.mxu1 %vm435_vm1, %v2018_v20 }
 0xc66   : > { %2667 = vmatmul.mubr.msk.bf16.gmra.mrb[36].mxu1 %vm435_vm1, %v2019_v6 }
 0xd31   : > { %v2664_v58 = vpop.f32.mrb[32].mxu1 }
 0xd32   : > { %v2090_v43 = vadd.f32 %v2664_v58, %v2380_v12  ;;  %v2081_v0 = vpop.f32.mrb[33].mxu1 }
 0xd33   : > { %v2082_v17 = vadd.f32 %v2380_v12, %v2081_v0  ;;  %v2665_v4 = vpop.f32.mrb[34].mxu1 }
 0xd34   : > { %v2114_v26 = vadd.f32 %v4323_v10, %v2090_v43  ;;  %v2093_v25 = vadd.f32 %v2665_v4, %v2380_v12  ;;  %v2084_v28 = vpop.f32.mrb[35].mxu1 }
 0xd35   : > { %v2112_v18 = vadd.f32 %v4324_v9, %v2082_v17  ;;  %v2085_v60 = vadd.f32 %v2380_v12, %v2084_v28 }
 0xd36   : > { %v2402_v52 = vpack.c.bf16 %v2114_v26, %v2114_v26  ;;  %v2115_v45 = vadd.f32 %v4325_v37, %v2093_v25 }
 0xd37   : > { %v2400_v1 = vpack.c.bf16 %v2112_v18, %v2112_v18  ;;  %v2113_v48 = vadd.f32 %v4326_v47, %v2085_v60 }
 0xd38   : > { %2155 = vst.msk [vmem:[%s417_s16 + $0x8] sm:$0xf] %vm2152_vm7, %v2402_v52  ;;  %v2403_v40 = vpack.c.bf16 %v2115_v45, %v2115_v45 }
 0xd39   : > { %2153 = vst.msk [vmem:[%s417_s16] sm:$0xf] %vm2152_vm7, %v2400_v1  ;;  %v2401_v59 = vpack.c.bf16 %v2113_v48, %v2113_v48  ;;  %v2668_v51 = vpop.f32.mrb[36].mxu1 }
 0xd3a   : > { %2156 = vst.msk [vmem:[%s417_s16 + $0xc] sm:$0xf] %vm2152_vm7, %v2403_v40  ;;  %v2106_v61 = vadd.f32 %v2668_v51, %v2380_v12  ;;  %v2097_v63 = vpop.f32.mrb[37].mxu1 }
 0xd3b   : > { %2154 = vst.msk [vmem:[%s417_s16 + $0x4] sm:$0xf] %vm2152_vm7, %v2401_v59  ;;  %v2098_v30 = vadd.f32 %v2380_v12, %v2097_v63  ;;  %v2669_v41 = vpop.f32.mrb[38].mxu1 }
 0xd3c   : > { %v2118_v62 = vadd.f32 %v4327_v57, %v2106_v61  ;;  %v2109_v44 = vadd.f32 %v2669_v41, %v2380_v12  ;;  %v2100_v7 = vpop.f32.mrb[39].mxu1 }
 0xd3d   : > { %v2116_v2 = vadd.f32 %v4328_v46, %v2098_v30  ;;  %v2101_v27 = vadd.f32 %v2380_v12, %v2100_v7 }
 0xd3e   : > { %v2406_v24 = vpack.c.bf16 %v2118_v62, %v2118_v62  ;;  %v2119_v15 = vadd.f32 %v4329_v35, %v2109_v44 }
 0xd3f   : > { %v2404_v3 = vpack.c.bf16 %v2116_v2, %v2116_v2  ;;  %v2117_v5 = vadd.f32 %v4330_v14, %v2101_v27 }
 0xd40   : > { %2159 = vst.msk [vmem:[%s417_s16 + $0x18] sm:$0xf] %vm2152_vm7, %v2406_v24  ;;  %v2407_v16 = vpack.c.bf16 %v2119_v15, %v2119_v15 }
 0xd41   : > { %2157 = vst.msk [vmem:[%s417_s16 + $0x10] sm:$0xf] %vm2152_vm7, %v2404_v3  ;;  %v2405_v54 = vpack.c.bf16 %v2117_v5, %v2117_v5 }
 0xd42   : > { %2160 = vst.msk [vmem:[%s417_s16 + $0x1c] sm:$0xf] %vm2152_vm7, %v2407_v16 }
 0xd43   : > { %2158 = vst.msk [vmem:[%s417_s16 + $0x14] sm:$0xf] %vm2152_vm7, %v2405_v54 }
 0xd44   : > { %3202 = shalt.err (!%p3199_p10)
}
 0xd45   : > { %s3203_s14 = scalar_lea.hbm %s4224_s19, 512  ;;  %s3207_s16 = scalar_lea.hbm %s4282_s8, 1024 }
 0xd46   : > { %p3204_p11 = scmp.ne.s32.totalorder %s4224_s19, %s3203_s14  ;;  %p3208_p9 = scmp.lt.u32.totalorder %s4224_s19, %s4282_s8 }
 0xd47   : > { %p3209_p7 = scmp.lt.u32.totalorder %s3207_s16, %s3203_s14  ;;  %p3211_p12 = scmp.lt.u32.totalorder %s3203_s14, %s4224_s19 }
 0xd48   : > { %p3205_p0 = pnand %p3204_p11, %p4331_p13 }
 0xd49   : > { %p3210_p4 = por %p3209_p7, %p3208_p9 }
 0xd4a   : > { %p3206_p5 = pneg %p3205_p0 }
 0xd4b   : > { %p3212_p1 = por %p3211_p12, %p3210_p4 }
 0xd4d   : > { %p3213_p3 = pnand %p3212_p1, %p3206_p5 }
 0xd4f   : > { %3216 = shalt.err (!%p3213_p3)
}
 0xd50   : > { %s3303_s18 = smov 64  }
 0xd51   : > { %2722 = dma.vmem_to_hbm [thread:$0]  (%p4331_p13), %s4227_s17, 512, %s4224_s19, %s2162_s11, %s3303_s18, %s3303_s18, %s3299_s26  }
 0xd52 PF: > { %s2190_s1 = sand.u32 1, %s3259_s27   ;;  %p4332_p2 = scmp.ne.s32.totalorder %s4304_s20, 0 }
 0xd53   : > { %p4333_p8 = scmp.ge.s32.totalorder %s3271_s30, 2  ;;  %s2191_s13 = scalar_lea.sflag [#allocation5], %s2190_s1 }
 0xd55   : > { %p2751_p6 = pnand %p4333_p8, %p4332_p2 }
 0xd57   : > { %3254 = dma.done.wait (!%p2751_p6), %s2191_s13, 512  }
 0xd58   : > { %3256 = vsyncadd (!%p2751_p6), %s2191_s13, 4294966784  ;;  %p25_p10 = scmp.ge.s32.totalorder %s3551_s15, 4   ;;  %s4334_s27 = smov %s3263_s28 }
 0xd59   : > { %s4335_s28 = smov %s3267_s29  ;;  %s4336_s29 = smov %s3563_s10 }
 0xd5a   : > { %s4337_s30 = smov %s3551_s15  ;;  %27 = sbr.rel (!%p25_p10) target bundleno = 12 (0xc), region = 125 }
 0xd61   :  { %2196 = vsyncpa [#allocation4], 1 }
 0xd62   :  { %2198 = vsyncpa [#allocation4 + $0x1], 1 }
 0xd63   :  { %2199 = vsyncpa [#allocation7], 1 }
 0xd64   :  { %2200 = vsyncpa [#allocation10], 1 }
 0xd65   :  { %2201 = vsyncpa [#allocation13], 1 }
 0xd66   :  { %2202 = vsyncpa [#allocation16], 1 }
 0xd67   :  { %2203 = vsyncpa [#allocation5], 1 }
 0xd68   :  { %2205 = vsyncpa [#allocation5 + $0x1], 1 }

// kernel: midblock_forward.9
= control target key start
LH: loop header
LB: loop body
LE: loop exit
PB: predicated region body
PF: predicated region fallthrough
CT: control target
= control target key end

     0   :  { %s3281_s0 = inlined_call_operand.hbm [shape: bf16[2,64,16], index: 0, kind: input, shape index: {}]   ;;  %s3282_s1 = inlined_call_operand.hbm [shape: f32[16,16], index: 1, kind: input, shape index: {}]   ;;  %s3283_s2 = inlined_call_operand.hbm [shape: f32[1,16], index: 2, kind: input, shape index: {}]   ;;  %s3284_s3 = inlined_call_operand.hbm [shape: f32[1,16], index: 3, kind: input, shape index: {}]   ;;  %s3285_s4 = inlined_call_operand.hbm [shape: bf16[160,16], index: 4, kind: input, shape index: {}]   ;;  %s3286_s5 = inlined_call_operand.hbm [shape: f32[1,1,16], index: 5, kind: input, shape index: {}]   ;;  %s3287_s6 = inlined_call_operand.hbm [shape: bf16[2,64,16], index: 6, kind: input, shape index: {}]   ;;  %s3288_s7 = inlined_call_operand.hbm [shape: bf16[2,64,16], index: 7, kind: output, shape index: {}]  }
   0x1   :  { %3305 = sst [smem:[#allocation28_spill]] %s3281_s0 }
   0x2   :  { %3306 = sst [smem:[#allocation29_spill]] %s3282_s1 }
   0x3   :  { %3307 = sst [smem:[#allocation30_spill]] %s3284_s3 }
   0x4   :  { %12 = vsyncpa [#allocation5], 0 }
   0x5   :  { %14 = vsyncpa [#allocation5 + $0x1], 0 }
   0x6   :  { %15 = vsyncpa [#allocation8], 0 }
   0x7   :  { %16 = vsyncpa [#allocation11], 0 }
   0x8   :  { %17 = vsyncpa [#allocation14], 0 }
   0x9   :  { %18 = vsyncpa [#allocation6], 0 }
   0xa   :  { %20 = vsyncpa [#allocation6 + $0x1], 0  ;;  %s2326_s24 = smov 0   ;;  %s2328_s25 = smov 0  }
   0xb   :  { %s2330_s26 = smov 0   ;;  %s2332_s27 = smov 0  }
   0xc LB: > { %3308 = sst [smem:[#allocation23_spill]] %s2256_s26  ;;  %s2262_s28 = smov [#allocation7]   ;;  %s2260_s27 = sphi %s2332_s27, %s3399_s27   ;;  %s2256_s26 = sphi %s2330_s26, %s3401_s26   ;;  %s2252_s25 = sphi %s2328_s25, %s3403_s25   ;;  %s2248_s24 = sphi %s2326_s24, %s3402_s24  }
   0xd   : > { %3309 = sst [smem:[#allocation24_spill]] %s2260_s27  ;;  %s226_s29 = sshll.u32 %s2262_s28, 4  ;;  %s2352_s29 = int_to_ptr.vmem [resolvable:$true] %s226_s29 }
   0xe   : > { %s2347_s30 = sadd.s32 4294967295, %s2260_s27   ;;  %p1662_p0 = scmp.ge.s32.totalorder %s2260_s27, 1 }
   0xf   : > { %p3293_p1 = scmp.eq.s32.totalorder %s2347_s30, 0  ;;  %p214_p2 = scmp.lt.s32.totalorder %s2260_s27, 3 }
  0x10   : > { %s2263_s9 = smov [#allocation10]   ;;  %s3312_s1 = sld [smem:[#allocation29_spill]] }
  0x11   : > { %p2354_p3 = pnand %p1662_p0, %p214_p2  ;;  %s251_s10 = sshll.u32 %s2263_s9, 4  ;;  %s2367_s10 = int_to_ptr.vmem [resolvable:$true] %s251_s10 }
  0x13   : > { %s3310_s8 = scalar_select %p2354_p3, 1, 0 }
  0x14   : > { %p1838_p5 = pneg %p2354_p3 }
  0x16   : > { %p2363_p6 = pnand %p1838_p5, %p3293_p1  ;;  %s1978_s14 = scalar_lea.hbm %s3312_s1, 256 }
  0x17   : > { %p1979_p7 = scmp.ne.s32.totalorder %s3312_s1, %s1978_s14  ;;  %p1985_p11 = scmp.lt.u32.totalorder %s1978_s14, %s3312_s1 }
  0x18   : > { %s3311_s11 = scalar_select %p2363_p6, 1, 0 }
  0x19   : > { %p2377_p8 = pneg %p2363_p6 }
  0x1b   : > { %p1981_p9 = pnand %p2377_p8, %p1979_p7 }
  0x1d   : > { %p1982_p10 = pneg %p1981_p9 }
  0x1f   : > { %p1987_p12 = pnand %p1985_p11, %p1982_p10 }
  0x21   : > { %1990 = shalt.err (!%p1987_p12)
}
  0x22   : > { %s1991_s20 = scalar_lea.vmem %s2352_s29, 256  ;;  %p1999_p5 = scmp.lt.s32.totalorder %s2352_s29, %s2352_s29 }
  0x23   : > { %p1992_p13 = scmp.ne.s32.totalorder %s2352_s29, %s1991_s20  ;;  %p2000_p4 = scmp.lt.s32.totalorder %s1991_s20, %s1991_s20 }
  0x25   : > { %p1994_p0 = pnand %p1992_p13, %p2377_p8  ;;  %p2001_p7 = por %p2000_p4, %p1999_p5 }
  0x27   : > { %p1995_p2 = pneg %p1994_p0 }
  0x29   : > { %p2002_p9 = pnand %p2001_p7, %p1995_p2 }
  0x2b   : > { %2005 = shalt.err (!%p2002_p9)
}
  0x2c   : > { %s2264_s21 = smov 128   ;;  %s2265_s22 = smov 8  }
  0x2d   : > { %1841 = dma.hbm_to_vmem [thread:$0]  (!%p2363_p6), %s3312_s1, 256, %s2352_s29, [#allocation8], %s2264_s21, %s2264_s21, %s2265_s22  }
  0x2e   : > { %s3314_s3 = sld [smem:[#allocation30_spill]] }
  0x34   : > { %s2006_s13 = scalar_lea.hbm %s3314_s3, 16 }
  0x35   : > { %p2007_p4 = scmp.ne.s32.totalorder %s3314_s3, %s2006_s13  ;;  %p2013_p12 = scmp.lt.u32.totalorder %s2006_s13, %s3314_s3 }
  0x37   : > { %p2009_p10 = pnand %p2007_p4, %p2377_p8 }
  0x39   : > { %p2010_p11 = pneg %p2009_p10 }
  0x3b   : > { %p2015_p13 = pnand %p2013_p12, %p2010_p11 }
  0x3d   : > { %2018 = shalt.err (!%p2015_p13)
}
  0x3e   : > { %s2019_s29 = scalar_lea.vmem %s2367_s10, 16  ;;  %s2026_s19 = scalar_lea.vmem %s2367_s10, 32 }
  0x3f   : > { %p2020_p0 = scmp.ne.s32.totalorder %s2367_s10, %s2019_s29  ;;  %p2027_p7 = scmp.lt.s32.totalorder %s2367_s10, %s2367_s10 }
  0x40   : > { %p2028_p9 = scmp.lt.s32.totalorder %s2026_s19, %s2019_s29 }
  0x41   : > { %p2022_p2 = pnand %p2020_p0, %p2377_p8 }
  0x42   : > { %p2029_p4 = por %p2028_p9, %p2027_p7 }
  0x43   : > { %p2023_p5 = pneg %p2022_p2 }
  0x45   : > { %p2030_p10 = pnand %p2029_p4, %p2023_p5 }
  0x47   : > { %2033 = shalt.err (!%p2030_p10)
}
  0x48   : > { %1847 = dma.hbm_to_vmem [thread:$0]  (!%p2363_p6), %s3314_s3, 16, %s2367_s10, [#allocation11]  }
  0x49   : > { %s1661_s22 = sadd.s32 4294967294, %s2260_s27   ;;  %s2424_s23 = sadd.s32 1, %s2260_s27  }
  0x4a   : > { %3315 = sst [smem:[#allocation25_spill]] %s2424_s23  ;;  %s30_s28 = ssub.s32 %s2260_s27, %s2424_s23 }
  0x4b   : > { %s33_s9 = sadd.s32 1, %s2256_s26  ;;  %p31_p11 = scmp.eq.s32.totalorder %s30_s28, 0 }
  0x4c   : > { %p40_p12 = scmp.ne.s32.totalorder %s2256_s26, %s2252_s25  ;;  %p41_p13 = scmp.eq.s32.totalorder %s2260_s27, 0 }
  0x4d   : > { %p46_p0 = scmp.ne.s32.totalorder %s2252_s25, %s2248_s24  ;;  %p201_p7 = scmp.eq.s32.totalorder %s2347_s30, 1 }
  0x4e   : > { %s2435_s12 = scalar_select %p31_p11, %s2256_s26, %s33_s9  }
  0x4f   : > { %p2437_p2 = por %p41_p13, %p40_p12  ;;  %p2443_p5 = por %p3293_p1, %p46_p0 }
  0x50   : > { %3316 = sst [smem:[#allocation26_spill]] %s2435_s12  ;;  %p207_p9 = scmp.eq.s32.totalorder %s1661_s22, 1 }
  0x51   : > { %s3318_s10 = scalar_select %p2443_p5, 1, 0 }
  0x52   : > { %p2448_p4 = por %p201_p7, %p40_p12  ;;  %p2452_p10 = por %p207_p9, %p46_p0 }
  0x53   : > { %p1870_p11 = scmp.lt.s32.totalorder %s2260_s27, 2  ;;  %s286_s16 = sand.u32 1, %s2260_s27  }
  0x54   : > { %s3319_s14 = scalar_select %p2448_p4, 1, 0 }
  0x55   : > { %s3320_s15 = scalar_select %p2452_p10, 1, 0 }
  0x56   : > { %s288_s18 = sand.u32 1, %s2256_s26   ;;  %s1736_s19 = sshll.u32 %s2260_s27, 9 }
  0x57   : > { %3321 = sst [smem:[#allocation27_spill]] %s3320_s15  ;;  %s2459_s29 = sshll.u32 %s288_s18, 5 }
  0x58   : > { %s3322_s0 = sld [smem:[#allocation28_spill]]  ;;  %s290_s22 = scalar_lea.vmem [#allocation4], %s2459_s29 }
  0x59   : > { %s297_s9 = sshll.u32 %s290_s22, 4  ;;  %p2470_p12 = pnand %p1870_p11, %p2437_p2  ;;  %s2474_s9 = int_to_ptr.vmem [resolvable:$true] %s297_s9 }
  0x5a   : > { %s2479_s20 = scalar_lea.hbm %s3287_s6, %s1736_s19  ;;  %s2481_s21 = scalar_lea.sflag [#allocation5], %s286_s16 }
  0x5b   : > { %s3323_s1 = scalar_select %p2470_p12, 1, 0 }
  0x5c   : > { %p3300_p0 = pneg %p2470_p12 }
  0x5e   : > { %s2465_s28 = scalar_lea.hbm %s3322_s0, %s1736_s19  ;;  %s2039_s26 = scalar_lea.hbm %s3322_s0, 1024 }
  0x5f   : > { %s2034_s12 = scalar_lea.hbm %s2465_s28, 512  ;;  %p2040_p9 = scmp.lt.u32.totalorder %s2465_s28, %s3322_s0 }
  0x60   : > { %p2035_p13 = scmp.ne.s32.totalorder %s2465_s28, %s2034_s12  ;;  %p2041_p11 = scmp.lt.u32.totalorder %s2039_s26, %s2034_s12 }
  0x61   : > { %p2043_p10 = scmp.lt.u32.totalorder %s2034_s12, %s2465_s28 }
  0x62   : > { %p2037_p2 = pnand %p3300_p0, %p2035_p13  ;;  %p2042_p1 = por %p2041_p11, %p2040_p9 }
  0x64   : > { %p2038_p7 = pneg %p2037_p2  ;;  %p2044_p4 = por %p2043_p10, %p2042_p1 }
  0x66   : > { %p2045_p5 = pnand %p2044_p4, %p2038_p7 }
  0x68   : > { %2048 = shalt.err (!%p2045_p5)
}
  0x69   : > { %s2049_s3 = scalar_lea.vmem %s2474_s9, 512  ;;  %s2266_s16 = smov [#allocation4]  }
  0x6a   : > { %p2050_p13 = scmp.ne.s32.totalorder %s2474_s9, %s2049_s3  ;;  %s2054_s19 = sshll.u32 %s2266_s16, 4  ;;  %s2055_s19 = int_to_ptr.vmem [resolvable:$false] %s2054_s19 }
  0x6b   : > { %s2056_s27 = scalar_lea.vmem %s2055_s19, 1024  ;;  %p2057_p6 = scmp.lt.s32.totalorder %s2474_s9, %s2055_s19 }
  0x6c   : > { %p2052_p2 = pnand %p2050_p13, %p3300_p0  ;;  %p2058_p9 = scmp.lt.s32.totalorder %s2056_s27, %s2049_s3 }
  0x6e   : > { %p2053_p3 = pneg %p2052_p2  ;;  %p2059_p11 = por %p2058_p9, %p2057_p6 }
  0x70   : > { %p2060_p1 = pnand %p2059_p11, %p2053_p3 }
  0x72   : > { %2063 = shalt.err (!%p2060_p1)
}
  0x73   : > { %s3301_s26 = smov 64   ;;  %s2268_s23 = smov 4  }
  0x74   : > { %1857 = dma.hbm_to_vmem [thread:$0]  (!%p2470_p12), %s2465_s28, 512, %s2474_s9, %s2481_s21, %s3301_s26, %s3301_s26, %s2268_s23  }
  0x75   : > { %s311_s12 = scalar_lea.vmem [#allocation15], %s2459_s29  ;;  %s2269_s13 = smov [#allocation9]  }
  0x76   : > { %s318_s18 = sshll.u32 %s311_s12, 4  ;;  %s240_s22 = sshll.u32 %s2269_s13, 4  ;;  %s2513_s18 = int_to_ptr.vmem [resolvable:$true] %s318_s18  ;;  %s241_s22 = int_to_ptr.vmem [resolvable:$true] %s240_s22 }
  0x77   : > { %s2064_s19 = scalar_lea.hbm %s3283_s2, 16 }
  0x78   : > { %p2065_p3 = scmp.ne.s32.totalorder %s3283_s2, %s2064_s19  ;;  %p2071_p4 = scmp.lt.u32.totalorder %s2064_s19, %s3283_s2 }
  0x7a   : > { %p2067_p6 = pnand %p2065_p3, %p2377_p8 }
  0x7c   : > { %p2068_p5 = pneg %p2067_p6 }
  0x7e   : > { %p2073_p10 = pnand %p2071_p4, %p2068_p5 }
  0x80   : > { %2076 = shalt.err (!%p2073_p10)
}
  0x81   : > { %s2077_s29 = scalar_lea.vmem %s241_s22, 16  ;;  %s2084_s9 = scalar_lea.vmem %s241_s22, 32 }
  0x82   : > { %p2078_p7 = scmp.ne.s32.totalorder %s241_s22, %s2077_s29  ;;  %p2085_p9 = scmp.lt.s32.totalorder %s241_s22, %s241_s22 }
  0x83   : > { %p2086_p11 = scmp.lt.s32.totalorder %s2084_s9, %s2077_s29 }
  0x84   : > { %p2080_p13 = pnand %p2078_p7, %p2377_p8 }
  0x85   : > { %p2087_p1 = por %p2086_p11, %p2085_p9 }
  0x86   : > { %p2081_p2 = pneg %p2080_p13 }
  0x88   : > { %p2088_p0 = pnand %p2087_p1, %p2081_p2 }
  0x8a   : > { %2091 = shalt.err (!%p2088_p0)
}
  0x8b   : > { %p3324_p3 = scmp.ne.s32.totalorder %s3311_s11, 0  ;;  %s2270_s15 = smov [#allocation12]  }
  0x8c   : > { %s261_s13 = sshll.u32 %s2270_s15, 4  ;;  %s2271_s3 = smov [#allocation13]   ;;  %s262_s13 = int_to_ptr.vmem [resolvable:$true] %s261_s13 }
  0x8d   : > { %1844 = dma.hbm_to_vmem [thread:$0]  (!%p3324_p3), %s3283_s2, 16, %s241_s22, [#allocation8]  }
  0x8e   : > { %s275_s16 = sshll.u32 %s2271_s3, 4  ;;  %s2092_s28 = scalar_lea.hbm %s3285_s4, 1280  ;;  %s276_s16 = int_to_ptr.vmem [resolvable:$true] %s275_s16 }
  0x8f   : > { %p2093_p0 = scmp.ne.s32.totalorder %s3285_s4, %s2092_s28  ;;  %p2099_p4 = scmp.lt.u32.totalorder %s2092_s28, %s3285_s4 }
  0x91   : > { %p2095_p6 = pnand %p2093_p0, %p2377_p8 }
  0x93   : > { %p2096_p5 = pneg %p2095_p6 }
  0x95   : > { %p2101_p10 = pnand %p2099_p4, %p2096_p5 }
  0x97   : > { %2104 = shalt.err (!%p2101_p10)
}
  0x98   : > { %s2105_s22 = scalar_lea.vmem %s262_s13, 1280  ;;  %p2113_p9 = scmp.lt.s32.totalorder %s262_s13, %s262_s13 }
  0x99   : > { %p2106_p7 = scmp.ne.s32.totalorder %s262_s13, %s2105_s22  ;;  %p2114_p11 = scmp.lt.s32.totalorder %s2105_s22, %s2105_s22 }
  0x9b   : > { %p2108_p13 = pnand %p2106_p7, %p2377_p8  ;;  %p2115_p1 = por %p2114_p11, %p2113_p9 }
  0x9d   : > { %p2109_p2 = pneg %p2108_p13 }
  0x9f   : > { %p2116_p12 = pnand %p2115_p1, %p2109_p2 }
  0xa1   : > { %2119 = shalt.err (!%p2116_p12)
}
  0xa2   : > { %s3325_s12 = smov 64   ;;  %s2120_s27 = scalar_lea.hbm %s3286_s5, 16 }
  0xa3   : > { %1850 = dma.hbm_to_vmem [thread:$0]  (!%p3324_p3), %s3285_s4, 1280, %s262_s13, [#allocation11], %s3325_s12, %s3325_s12, %s2268_s23  }
  0xa4   : > { %p2121_p0 = scmp.ne.s32.totalorder %s3286_s5, %s2120_s27  ;;  %p2127_p5 = scmp.lt.u32.totalorder %s2120_s27, %s3286_s5 }
  0xa6   : > { %p2123_p12 = pnand %p2121_p0, %p2377_p8 }
  0xa8   : > { %p2124_p6 = pneg %p2123_p12 }
  0xaa   : > { %p2129_p4 = pnand %p2127_p5, %p2124_p6 }
  0xac   : > { %2132 = shalt.err (!%p2129_p4)
}
  0xad   : > { %s2133_s22 = scalar_lea.vmem %s276_s16, 16  ;;  %s2140_s13 = scalar_lea.vmem %s276_s16, 32 }
  0xae   : > { %p2134_p10 = scmp.ne.s32.totalorder %s276_s16, %s2133_s22  ;;  %p2141_p2 = scmp.lt.s32.totalorder %s276_s16, %s276_s16 }
  0xaf   : > { %p2142_p9 = scmp.lt.s32.totalorder %s2140_s13, %s2133_s22 }
  0xb0   : > { %p2136_p7 = pnand %p2134_p10, %p2377_p8 }
  0xb1   : > { %p2143_p11 = por %p2142_p9, %p2141_p2 }
  0xb2   : > { %p2137_p13 = pneg %p2136_p7 }
  0xb4   : > { %p2144_p1 = pnand %p2143_p11, %p2137_p13 }
  0xb6   : > { %2147 = shalt.err (!%p2144_p1)
}
  0xb7   : > { %1853 = dma.hbm_to_vmem [thread:$0]  (!%p3324_p3), %s3286_s5, 16, %s276_s16, [#allocation14]  }
  0xb8   : > { %s2148_s17 = scalar_lea.hbm %s2479_s20, 512  ;;  %p3326_p0 = scmp.ne.s32.totalorder %s3323_s1, 0 }
  0xb9   : > { %p2149_p8 = scmp.ne.s32.totalorder %s2479_s20, %s2148_s17  ;;  %s2153_s27 = scalar_lea.hbm %s3287_s6, 1024 }
  0xba   : > { %p3327_p12 = pneg %p3326_p0  ;;  %p2154_p4 = scmp.lt.u32.totalorder %s2479_s20, %s3287_s6 }
  0xbb   : > { %p2155_p10 = scmp.lt.u32.totalorder %s2153_s27, %s2148_s17  ;;  %p2157_p13 = scmp.lt.u32.totalorder %s2148_s17, %s2479_s20 }
  0xbc   : > { %p2151_p6 = pnand %p2149_p8, %p3327_p12 }
  0xbd   : > { %p2156_p7 = por %p2155_p10, %p2154_p4 }
  0xbe   : > { %p2152_p5 = pneg %p2151_p6 }
  0xbf   : > { %p2158_p2 = por %p2157_p13, %p2156_p7 }
  0xc1   : > { %p2159_p9 = pnand %p2158_p2, %p2152_p5 }
  0xc3   : > { %2162 = shalt.err (!%p2159_p9)
}
  0xc4   : > { %s2163_s16 = scalar_lea.vmem %s2513_s18, 512  ;;  %p3328_p11 = pmov %p3327_p12 }
  0xc5   : > { %p2164_p3 = scmp.ne.s32.totalorder %s2513_s18, %s2163_s16  ;;  %s2272_s29 = smov [#allocation15]  }
  0xc6   : > { %s2168_s9 = sshll.u32 %s2272_s29, 4  ;;  %s2169_s9 = int_to_ptr.vmem [resolvable:$false] %s2168_s9 }
  0xc7   : > { %p2166_p1 = pnand %p2164_p3, %p3328_p11  ;;  %s2170_s0 = scalar_lea.vmem %s2169_s9, 1024 }
  0xc8   : > { %p2171_p12 = scmp.lt.s32.totalorder %s2513_s18, %s2169_s9  ;;  %p2172_p6 = scmp.lt.s32.totalorder %s2170_s0, %s2163_s16 }
  0xc9   : > { %p2167_p8 = pneg %p2166_p1 }
  0xca   : > { %p2173_p4 = por %p2172_p6, %p2171_p12 }
  0xcc   : > { %p2174_p10 = pnand %p2173_p4, %p2167_p8 }
  0xce   : > { %2177 = shalt.err (!%p2174_p10)
}
  0xcf   : > { %1860 = dma.hbm_to_vmem [thread:$0]  (!%p3326_p0), %s2479_s20, 512, %s2513_s18, %s2481_s21, %s3325_s12, %s3325_s12, %s2268_s23  }
  0xd0   : > { %p3329_p5 = scmp.ne.s32.totalorder %s3310_s8, 0 }
  0xd1   : > { %s332_s22 = sand.u32 (!%p3329_p5), 1, %s2347_s30   ;;  %s334_s13 = sand.u32 (!%p3329_p5), 1, %s2252_s25  }
  0xd2   : > { %330 = sbr.rel (%p3329_p5) target bundleno = 1189 (0x4a5), region = 48  ;;  %s2605_s26 = sshll.u32 (!%p3329_p5), %s334_s13, 5 }
  0xd3   : > { %s333_s1 = scalar_lea.sflag (!%p3329_p5), [#allocation5], %s332_s22  ;;  %s2608_s15 = scalar_lea.vmem (!%p3329_p5), [#allocation4], %s2605_s26 }
  0xd4   : > { %p3330_p7 = scmp.ne.s32.totalorder (!%p3329_p5), %s3318_s10, 0 }
  0xd9   : > { %2223 = dma.done.wait (%p3330_p7), %s333_s1, 512  }
  0xda   : > { %2225 = vsyncadd (%p3330_p7), %s333_s1, 4294966784  ;;  %p3331_p0 = scmp.eq.s32.totalorder %s2347_s30, 0 }
  0xdc   : > { %2227 = dma.done.wait (%p3331_p0), [#allocation8], 272   ;;  %p3332_p13 = pmov %p3331_p0 }
  0xdd   : > { %p3333_p2 = pmov %p3331_p0 }
  0xde   : > { %2229 = vsyncadd (%p3332_p13), [#allocation8], 4294967024 }
  0xdf   : > { %2231 = dma.done.wait (%p3333_p2), [#allocation11], 1296   ;;  %p3334_p9 = pmov %p3331_p0 }
  0xe0   : > { %p3335_p3 = pmov %p3331_p0 }
  0xe1   : > { %2233 = vsyncadd (%p3334_p9), [#allocation11], 4294966000 }
  0xe2   : > { %2235 = dma.done.wait (%p3335_p3), [#allocation14], 16   ;;  %p3336_p11 = pmov %p3331_p0 }
  0xe3   : > { %s2627_s8 = scalar_lea.vmem [#allocation15], %s2605_s26 }
  0xe4   : > { %2237 = vsyncadd (%p3336_p11), [#allocation14], 4294967280 }
  0xe5   : > { %2239 = dma.done.wait (%p3330_p7), %s333_s1, 512  }
  0xe6   : > { %2241 = vsyncadd (%p3330_p7), %s333_s1, 4294966784  ;;  %vm420_vm0 = vcmask 130048   ;;  %v2273_v0 = vmov 0.0|0.0   ;;  %vm2274_vm1 = vmmov 0   ;;  %v2275_v1 = vmov 0.0   ;;  %v442_v2 = vld [vmem:[#allocation7] sm:$0xff] }
  0xe7   : > { %1786 = vmatprep.subr.bf16.mxu0 %v2273_v0  ;;  %1776 = vmatprep.mubr.msk.f32.mxu0 %vm2274_vm1, %v2275_v1  ;;  %732 = vst.msk [vmem:[#allocation2] sm:$0xff] %vm420_vm0, %v2275_v1  ;;  %733 = vst.msk [vmem:[#allocation2 + $0x8] sm:$0xff] %vm420_vm0, %v2275_v1  ;;  %v443_v3 = vld [vmem:[#allocation7 + $0x8] sm:$0xff]  ;;  %v1748_v4 = vld [vmem:[%s2608_s15] sm:$0xff]   ;;  %v517_v38 = vlaneseq  ;;  %s2276_s10 = smov 16   ;;  %s2278_s20 = smov 64  }
  0xe8   : > { %734 = vst.msk [vmem:[#allocation2 + $0x50] sm:$0xff] %vm420_vm0, %v2275_v1  ;;  %735 = vst.msk [vmem:[#allocation2 + $0x58] sm:$0xff] %vm420_vm0, %v2275_v1  ;;  %1789 = vmatprep.subr.bf16.mxu1 %v2273_v0  ;;  %1783 = vmatprep.mubr.msk.f32.mxu1 %vm2274_vm1, %v2275_v1  ;;  %v1787_v5 = vpack.c.bf16 %v443_v3, %v442_v2  ;;  %v1749_v6 = vunpack.c.l.bf16 %v1748_v4  ;;  %v1750_v7 = vunpack.c.h.bf16 %v1748_v4  ;;  %v1763_v8 = vld [vmem:[%s2608_s15 + $0x8] sm:$0xff]   ;;  %v1764_v9 = vld [vmem:[%s2608_s15 + $0x10] sm:$0xff]   ;;  %s2279_s21 = smov 112   ;;  %s2280_s23 = smov 32  }
  0xe9   : > { %v1765_v10 = vld [vmem:[%s2608_s15 + $0x18] sm:$0xff]   ;;  %v1753_v11 = vunpack.c.l.bf16 %v1763_v8  ;;  %v1754_v12 = vunpack.c.h.bf16 %v1763_v8  ;;  %v1757_v13 = vunpack.c.l.bf16 %v1764_v9  ;;  %v1758_v14 = vunpack.c.h.bf16 %v1764_v9  ;;  %s2281_s18 = smov 48   ;;  %s2282_s12 = smov 80  }
  0xea   : > { %1788 = vmatpush3.bf16.msra.mxu0 %v1787_v5  ;;  %v1761_v15 = vunpack.c.l.bf16 %v1765_v10  ;;  %v421_v16 = vsel %vm420_vm0, %v1749_v6, 0.0  ;;  %v422_v17 = vsel %vm420_vm0, %v1750_v7, 0.0  ;;  %1791 = vmatpush3.bf16.msra.mxu1 %v1787_v5  ;;  %v1762_v26 = vunpack.c.h.bf16 %v1765_v10  ;;  %s2283_s17 = smov 96   ;;  %s3208_s3 = scalar_lea.vmem [#allocation16], %s2605_s26 }
  0xeb   : > { %v423_v18 = vadd.f32 %v422_v17, %v421_v16  ;;  %v424_v19 = vsel %vm420_vm0, %v1753_v11, 0.0  ;;  %v426_v20 = vsel %vm420_vm0, %v1754_v12, 0.0  ;;  %v428_v21 = vsel %vm420_vm0, %v1757_v13, 0.0  ;;  %v1930_v17 = vld [vmem:[%s2627_s8 + $0x10] sm:$0xff]   ;;  %s1746_s19 = sshll.u32 %s2347_s30, 9  ;;  %s1520_s27 = sshll.u32 %s3208_s3, 4  ;;  %s3231_s27 = int_to_ptr.vmem [resolvable:$true] %s1520_s27 }
  0xec   : > { %v430_v22 = vsel %vm420_vm0, %v1758_v14, 0.0  ;;  %v432_v23 = vsel %vm420_vm0, %v1761_v15, 0.0  ;;  %v434_v29 = vsel %vm420_vm0, %v1762_v26, 0.0  ;;  %v2650_v39 = vshrl.u32 %v517_v38, 7  ;;  %1280 = vrot.lane.b32.xlu1 %v1930_v17, %s2276_s10  ;;  %s3225_s16 = scalar_lea.hbm %s3288_s7, %s1746_s19  ;;  %s3237_s30 = scalar_lea.sflag [#allocation6], %s334_s13 }
  0xed   : > { %v425_v24 = vadd.f32 %v424_v19, %v423_v18  ;;  %v1931_v18 = vld [vmem:[%s2627_s8] sm:$0xff]   ;;  %v1932_v19 = vld [vmem:[%s2627_s8 + $0x18] sm:$0xff]   ;;  %s2178_s29 = scalar_lea.vmem %s3231_s27, 512  ;;  %p3394_p8 = scmp.ne.s32.totalorder %s3319_s14, 0 }
  0xee   : > { %v519_v40 = vsub.s32 0, %v2650_v39  ;;  %1276 = vrot.lane.b32.xlu0 %v1931_v18, %s2276_s10  ;;  %v751_v18 = vadd.s32 48, %v2650_v39  ;;  %p2179_p1 = scmp.ne.s32.totalorder %s3231_s27, %s2178_s29  ;;  %s2284_s9 = smov [#allocation16]  }
  0xef   : > { %v427_v25 = vadd.f32 %v426_v20, %v425_v24  ;;  %v1933_v20 = vld [vmem:[%s2627_s8 + $0x8] sm:$0xff]   ;;  %s2182_s0 = sshll.u32 %s2284_s9, 4  ;;  %s2183_s0 = int_to_ptr.vmem [resolvable:$false] %s2182_s0 }
  0xf0   : > { %1282 = vrot.lane.b32.xlu1 %v1932_v19, %s2276_s10  ;;  %p2180_p12 = pnand %p2179_p1, %p3394_p8  ;;  %s2184_s22 = scalar_lea.vmem %s2183_s0, 1024 }
  0xf1   : > { %v429_v27 = vadd.f32 %v428_v21, %v427_v25  ;;  %v2277_v21 = vmov 0   ;;  %p2185_p4 = scmp.lt.s32.totalorder %s3231_s27, %s2183_s0  ;;  %p2186_p10 = scmp.lt.s32.totalorder %s2184_s22, %s2178_s29 }
  0xf2   : > { %1278 = vrot.lane.b32.xlu0 %v1933_v20, %s2276_s10  ;;  %1400 = vmatprep.subr.bf16.mxu0 %v2277_v21  ;;  %p2181_p6 = pneg %p2180_p12 }
  0xf3   : > { %v431_v28 = vadd.f32 %v430_v22, %v429_v27  ;;  %1792 = vmatprep.subr.bf16.mxu1 %v2277_v21  ;;  %p2187_p5 = por %p2186_p10, %p2185_p4 }
  0xf5   : > { %v433_v30 = vadd.f32 %v432_v23, %v431_v28  ;;  %v1686_v28 = vld [vmem:[#allocation9] ss:$0 sm:$0xff]  ;;  %p2188_p7 = pnand %p2187_p5, %p2181_p6 }
  0xf7   : > { %v435_v31 = vadd.f32 %v434_v29, %v433_v30 }
  0xf9   : > { %v436_v32 = vrot.slane %v435_v31, 4 }
  0xfb   : > { %v437_v33 = vadd.f32 %v436_v32, %v435_v31 }
  0xfd   : > { %v438_v34 = vrot.slane %v437_v33, 2 }
  0xff   : > { %v439_v35 = vadd.f32 %v438_v34, %v437_v33 }
 0x101   : > { %v440_v36 = vrot.slane %v439_v35, 1 }
 0x103   : > { %v441_v37 = vadd.f32 %v440_v36, %v439_v35 }
 0x105   : > { %1777 = vmatmul.mubr.msk.f32.vlgmr.msra.gmra.mrb[0].mxu0 %vm420_vm0, %v441_v37  ;;  %v1687_v37 = vld [vmem:[#allocation10] ss:$0 sm:$0xff] }
 0x1d8   : > { %v513_v41 = vpop.f32.mrb[0].mxu0 }
 0x1d9   : > { %v520_v42 = vrot.slane %v513_v41, %v519_v40  ;;  %v1778_v43 = vpop.f32.mrb[1].mxu0 }
 0x1db   : > { %v521_v44 = vsub.f32 %v1749_v6, %v520_v42  ;;  %v522_v45 = vsub.f32 %v1750_v7, %v520_v42  ;;  %v523_v46 = vsub.f32 %v1753_v11, %v520_v42  ;;  %v524_v47 = vsub.f32 %v1754_v12, %v520_v42 }
 0x1dc   : > { %v525_v48 = vsub.f32 %v1757_v13, %v520_v42  ;;  %v526_v52 = vsub.f32 %v1758_v14, %v520_v42  ;;  %v527_v57 = vsub.f32 %v1761_v15, %v520_v42  ;;  %v528_v61 = vsub.f32 %v1762_v26, %v520_v42 }
 0x1dd   : > { %v529_v49 = vmul.f32 %v521_v44, %v521_v44  ;;  %v530_v50 = vmul.f32 %v522_v45, %v522_v45  ;;  %v531_v51 = vmul.f32 %v523_v46, %v523_v46  ;;  %v532_v53 = vmul.f32 %v524_v47, %v524_v47 }
 0x1de   : > { %v533_v58 = vmul.f32 %v525_v48, %v525_v48  ;;  %v534_v62 = vmul.f32 %v526_v52, %v526_v52  ;;  %v535_v1 = vmul.f32 %v527_v57, %v527_v57  ;;  %v536_v4 = vmul.f32 %v528_v61, %v528_v61 }
 0x1df   : > { %v537_v54 = vsel %vm420_vm0, %v529_v49, 0.0  ;;  %v538_v55 = vsel %vm420_vm0, %v530_v50, 0.0  ;;  %v540_v59 = vsel %vm420_vm0, %v531_v51, 0.0  ;;  %v542_v63 = vsel %vm420_vm0, %v532_v53, 0.0 }
 0x1e0   : > { %v539_v56 = vadd.f32 %v538_v55, %v537_v54  ;;  %v544_v2 = vsel %vm420_vm0, %v533_v58, 0.0  ;;  %v546_v5 = vsel %vm420_vm0, %v534_v62, 0.0  ;;  %v548_v7 = vsel %vm420_vm0, %v535_v1, 0.0 }
 0x1e1   : > { %v550_v9 = vsel %vm420_vm0, %v536_v4, 0.0 }
 0x1e2   : > { %v541_v60 = vadd.f32 %v540_v59, %v539_v56 }
 0x1e4   : > { %v543_v0 = vadd.f32 %v542_v63, %v541_v60  ;;  %v746_v63 = vadd.s32 8, %v2650_v39 }
 0x1e6   : > { %v545_v3 = vadd.f32 %v544_v2, %v543_v0  ;;  %v749_v0 = vadd.s32 32, %v2650_v39  ;;  %v750_v2 = vadd.s32 40, %v2650_v39 }
 0x1e8   : > { %v547_v6 = vadd.f32 %v546_v5, %v545_v3  ;;  %v757_v5 = vand.u32 7, %v2650_v39 }
 0x1ea   : > { %v549_v8 = vadd.f32 %v548_v7, %v547_v6  ;;  %vm2700_vm2 = vcmp.lt.s32.totalorder %v757_v5, 7  ;;  %vm2728_vm8 = vcmp.gt.s32.totalorder %v757_v5, 0 }
 0x1eb   : > { %vm994_vm5 = vmpackc.low %vm2700_vm2, %vm2700_vm2 }
 0x1ec   : > { %v551_v10 = vadd.f32 %v550_v9, %v549_v8  ;;  %v764_v8 = vand.u32 7, %v746_v63  ;;  %vm893_vm14 = vmpackc.low %vm2728_vm8, %vm2728_vm8 }
 0x1ee   : > { %v552_v11 = vrot.slane %v551_v10, 4  ;;  %vm2705_vm3 = vcmp.lt.s32.totalorder %v764_v8, 7  ;;  %vm2735_vm10 = vcmp.gt.s32.totalorder %v764_v8, 0  ;;  %v933_v8 = vld [vmem:[#allocation2 + $0x8] sm:$0xff] }
 0x1ef   : > { %vm894_vm15 = vmpackc.low %vm2735_vm10, %vm2735_vm10 }
 0x1f0   : > { %v553_v12 = vadd.f32 %v552_v11, %v551_v10  ;;  %v785_v11 = vand.u32 7, %v749_v0  ;;  %v1935_v0 = vld [vmem:[#allocation12 + $0x8] sm:$0xff]   ;;  %vm3365_vm2 = vmpackc.low %vm2705_vm3, %vm2705_vm3 }
 0x1f2   : > { %v554_v13 = vrot.slane %v553_v12, 2  ;;  %vm2710_vm4 = vcmp.lt.s32.totalorder %v785_v11, 7  ;;  %vm2742_vm12 = vcmp.gt.s32.totalorder %v785_v11, 0 }
 0x1f3   : > { %vm3368_vm3 = vmpackc.low %vm2710_vm4, %vm2710_vm4 }
 0x1f4   : > { %v555_v14 = vadd.f32 %v554_v13, %v553_v12  ;;  %vm3372_vm4 = vmpackc.low %vm2742_vm12, %vm2742_vm12 }
 0x1f6   : > { %v556_v15 = vrot.slane %v555_v14, 1 }
 0x1f8   : > { %v557_v16 = vadd.f32 %v556_v15, %v555_v14  ;;  %v792_v14 = vand.u32 7, %v750_v2  ;;  %v2829_v2 = vsel %vm3365_vm2, 65537, %v2277_v21 }
 0x1fa   : > { %1784 = vmatmul.mubr.msk.f32.vlgmr.msra.gmra.mrb[0].mxu1 %vm420_vm0, %v557_v16  ;;  %vm2718_vm6 = vcmp.lt.s32.totalorder %v792_v14, 7  ;;  %vm2746_vm13 = vcmp.gt.s32.totalorder %v792_v14, 0 }
 0x1fb   : > { %vm3369_vm2 = vmpackc.low %vm2718_vm6, %vm2718_vm6 }
 0x1fc   : > { %vm3373_vm6 = vmpackc.low %vm2746_vm13, %vm2746_vm13 }
 0x1fd   : > { %v2875_v11 = vsel %vm3373_vm6, 65537, %v2277_v21 }
 0x2cd   : > { %v627_v22 = vpop.f32.mrb[0].mxu1 }
 0x2ce   : > { %v631_v23 = vmax.f32 %v627_v22, 0.0  ;;  %v1785_v24 = vpop.f32.mrb[1].mxu1 }
 0x2d0   : > { %v632_v25 = vadd.f32 1e-05, %v631_v23  ;;  %v752_v23 = vadd.s32 56, %v2650_v39 }
 0x2d2   : > { %1944 = vrsqrt.f32 %v632_v25 }
 0x2dc   : > { %v1945_v26 = vpop.eup %1944 }
 0x2dd   : > { %v637_v27 = vrot.slane %v1945_v26, %v519_v40 }
 0x2df   : > { %v638_v29 = vmul.f32 %v637_v27, %v521_v44  ;;  %v639_v30 = vmul.f32 %v637_v27, %v522_v45  ;;  %v640_v31 = vmul.f32 %v637_v27, %v523_v46  ;;  %v641_v32 = vmul.f32 %v637_v27, %v524_v47 }
 0x2e0   : > { %v642_v33 = vmul.f32 %v637_v27, %v525_v48  ;;  %v643_v34 = vmul.f32 %v637_v27, %v526_v52  ;;  %v644_v35 = vmul.f32 %v637_v27, %v527_v57  ;;  %v645_v36 = vmul.f32 %v637_v27, %v528_v61 }
 0x2e1   : > { %v653_v38 = vmul.f32 %v1686_v28, %v638_v29  ;;  %v656_v41 = vmul.f32 %v1686_v28, %v641_v32  ;;  %v654_v42 = vmul.f32 %v1686_v28, %v639_v30  ;;  %v655_v43 = vmul.f32 %v1686_v28, %v640_v31 }
 0x2e2   : > { %v657_v49 = vmul.f32 %v1686_v28, %v642_v33  ;;  %v658_v50 = vmul.f32 %v1686_v28, %v643_v34  ;;  %v659_v51 = vmul.f32 %v1686_v28, %v644_v35  ;;  %v660_v53 = vmul.f32 %v1686_v28, %v645_v36 }
 0x2e3   : > { %v2672_v54 = vadd.f32 %v1687_v37, %v653_v38  ;;  %v2674_v40 = vadd.f32 %v1687_v37, %v656_v41  ;;  %v2682_v47 = vadd.f32 %v1687_v37, %v654_v42  ;;  %v2690_v58 = vadd.f32 %v1687_v37, %v655_v43 }
 0x2e4   : > { %v2676_v44 = vadd.f32 %v1687_v37, %v657_v49  ;;  %v2678_v45 = vadd.f32 %v1687_v37, %v658_v50  ;;  %v2680_v46 = vadd.f32 %v1687_v37, %v659_v51  ;;  %v2685_v52 = vadd.f32 %v1687_v37, %v660_v53  ;;  %v1934_v50 = vld [vmem:[#allocation12] sm:$0xff]  }
 0x2e5   : > { %v1688_v48 = vmul.f32 -1.442695, %v2672_v54  ;;  %v1691_v59 = vmul.f32 -1.442695, %v2674_v40  ;;  %v1689_v60 = vmul.f32 -1.442695, %v2682_v47  ;;  %1401 = vmatpush1.bf16.msra.mxu0 %v1934_v50  ;;  %1802 = vmatpush1.bf16.msra.mxu1 %v1934_v50  ;;  %v1277_v50 = vpop.permute.xlu0 %1276 }
 0x2e6   : > { %v1692_v55 = vmul.f32 -1.442695, %v2676_v44  ;;  %v1693_v56 = vmul.f32 -1.442695, %v2678_v45  ;;  %v1694_v57 = vmul.f32 -1.442695, %v2680_v46  ;;  %1402 = vmatprep.subr.bf16.mxu0 %v2277_v21  ;;  %1793 = vmatprep.subr.bf16.mxu1 %v2277_v21 }
 0x2e7   : > { %1946 = vpow2.f32 %v1688_v48  ;;  %v1695_v61 = vmul.f32 -1.442695, %v2685_v52  ;;  %v1690_v62 = vmul.f32 -1.442695, %v2690_v58  ;;  %v747_v27 = vadd.s32 16, %v2650_v39 }
 0x2e8   : > { %1948 = vpow2.f32 %v1692_v55  ;;  %v2723_v30 = vadd.s32 24, %v2650_v39  ;;  %v799_v32 = vand.u32 7, %v751_v18  ;;  %v806_v39 = vand.u32 7, %v752_v23 }
 0x2e9   : > { %1950 = vpow2.f32 %v1693_v56  ;;  %v771_v35 = vand.u32 7, %v747_v27  ;;  %v902_v56 = vsel %vm894_vm15, 65537, %v2277_v21  ;;  %1403 = vmatpush1.bf16.msra.mxu0 %v1935_v0  ;;  %1803 = vmatpush1.bf16.msra.mxu1 %v1935_v0 }
 0x2ea   : > { %1952 = vpow2.f32 %v1694_v57  ;;  %v778_v37 = vand.u32 7, %v2723_v30  ;;  %vm2757_vm1 = vcmp.lt.s32.totalorder %v799_v32, 7  ;;  %vm2765_vm9 = vcmp.lt.s32.totalorder %v806_v39, 7  ;;  %1404 = vmatprep.subr.bf16.mxu0 %v2277_v21  ;;  %1794 = vmatprep.subr.bf16.mxu1 %v2277_v21 }
 0x2eb   : > { %1954 = vpow2.f32 %v1691_v59  ;;  %vm2773_vm7 = vcmp.lt.s32.totalorder %v771_v35, 7  ;;  %vm2817_vm8 = vcmp.gt.s32.totalorder %v806_v39, 0  ;;  %vm2834_vm10 = vcmp.gt.s32.totalorder %v771_v35, 0  ;;  %vm3379_vm6 = vmpackc.low %vm2765_vm9, %vm2765_vm9 }
 0x2ec   : > { %1956 = vpow2.f32 %v1689_v60  ;;  %vm2789_vm11 = vcmp.lt.s32.totalorder %v778_v37, 7  ;;  %vm2855_vm15 = vcmp.gt.s32.totalorder %v778_v37, 0  ;;  %vm3374_vm12 = vmpackc.low %vm2773_vm7, %vm2773_vm7  ;;  %v1009_v27 = vsel %vm3379_vm6, 65537, %v2277_v21 }
 0x2ed   : > { %1958 = vpow2.f32 %v1695_v61  ;;  %vm3375_vm13 = vmpackc.low %vm2789_vm11, %vm2789_vm11  ;;  %vm1497_vm6 = vcmask 125952  }
 0x2ee   : > { %1960 = vpow2.f32 %v1690_v62  ;;  %vm896_vm11 = vmpackc.low %vm2855_vm15, %vm2855_vm15 }
 0x2ef   : > { %v904_v34 = vsel %vm896_vm11, 65537, %v2277_v21  ;;  %vm1190_vm11 = vcmask 917248  }
 0x2f1   : > { %v1947_v1 = vpop.eup %1946 }
 0x2f2   : > { %v1949_v3 = vpop.eup %1948  ;;  %v700_v4 = vadd.f32 1.0, %v1947_v1 }
 0x2f3   : > { %v1951_v6 = vpop.eup %1950  ;;  %v704_v7 = vadd.f32 1.0, %v1949_v3 }
 0x2f4   : > { %v1953_v9 = vpop.eup %1952  ;;  %v705_v10 = vadd.f32 1.0, %v1951_v6  ;;  %1962 = vrcp.f32 %v700_v4  ;;  %v1006_v6 = vsel %vm3368_vm3, 65537, %v2277_v21  ;;  %vm900_vm3 = vmpackc.low %vm2817_vm8, %vm2817_vm8 }
 0x2f5   : > { %v1955_v12 = vpop.eup %1954  ;;  %1964 = vrcp.f32 %v704_v7  ;;  %v706_v13 = vadd.f32 1.0, %v1953_v9  ;;  %v1007_v7 = vsel %vm3369_vm2, 65537, %v2277_v21  ;;  %vm895_vm2 = vmpackc.low %vm2834_vm10, %vm2834_vm10  ;;  %v908_v30 = vsel %vm900_vm3, 65537, %v2277_v21 }
 0x2f6   : > { %v1957_v15 = vpop.eup %1956  ;;  %1966 = vrcp.f32 %v705_v10  ;;  %v703_v16 = vadd.f32 1.0, %v1955_v12  ;;  %v2867_v10 = vsel %vm3372_vm4, 65537, %v2277_v21  ;;  %v865_v12 = vld [vmem:[#allocation2 + $0x7] sm:$0xff]  ;;  %vm3378_vm4 = vmpackc.low %vm2757_vm1, %vm2757_vm1  ;;  %v903_v39 = vsel %vm895_vm2, 65537, %v2277_v21 }
 0x2f7   : > { %v1959_v19 = vpop.eup %1958  ;;  %1968 = vrcp.f32 %v706_v13  ;;  %v701_v20 = vadd.f32 1.0, %v1957_v15  ;;  %v1005_v13 = vsel %vm3375_vm13, 65537, %v2277_v21  ;;  %v1698_v22 = vcombine.low %v2867_v10, %v2875_v11 }
 0x2f8   : > { %v1961_v24 = vpop.eup %1960  ;;  %1970 = vrcp.f32 %v703_v16  ;;  %v707_v25 = vadd.f32 1.0, %v1959_v19  ;;  %v1702_v16 = vcombine.low %v1006_v6, %v1007_v7  ;;  %v1697_v57 = vcombine.low %v903_v39, %v904_v34 }
 0x2f9   : > { %1972 = vrcp.f32 %v701_v20  ;;  %v702_v28 = vadd.f32 1.0, %v1961_v24  ;;  %v2922_v24 = vsel %vm3378_vm4, 65537, %v2277_v21  ;;  %vm3002_vm10 = vcmp.ne.s16.totalorder %v1698_v22, 0 }
 0x2fa   : > { %1974 = vrcp.f32 %v707_v25  ;;  %v1936_v25 = vld [vmem:[#allocation12 + $0x10] sm:$0xff]   ;;  %vm2982_vm1 = vcmp.ne.s16.totalorder %v1702_v16, 0  ;;  %vm3055_vm3 = vcmp.ne.s16.totalorder %v1697_v57, 0  ;;  %v1938_v16 = vld [vmem:[#allocation12 + $0x20] sm:$0xff]   ;;  %vm1083_vm13 = vcmask 523648  }
 0x2fb   : > { %1976 = vrcp.f32 %v702_v28  ;;  %1405 = vmatpush1.bf16.msra.mxu0 %v1936_v25  ;;  %1804 = vmatpush1.bf16.msra.mxu1 %v1936_v25  ;;  %v1942_v57 = vld [vmem:[#allocation12 + $0x40] sm:$0xff]   ;;  %vm1116_vm2 = vcmask 654848   ;;  %vm1223_vm4 = vcmask 1048448  }
 0x2fc   : > { %1406 = vmatprep.subr.bf16.mxu0 %v2277_v21  ;;  %1795 = vmatprep.subr.bf16.mxu1 %v2277_v21 }
 0x2fe   : > { %v1963_v38 = vpop.eup %1962 }
 0x2ff   : > { %v1965_v42 = vpop.eup %1964  ;;  %v724_v43 = vmul.f32 %v1963_v38, %v2672_v54 }
 0x300   : > { %v1967_v51 = vpop.eup %1966  ;;  %v728_v53 = vmul.f32 %v1965_v42, %v2676_v44  ;;  %v901_v44 = vsel %vm893_vm14, 65537, %v2277_v21  ;;  %vm2798_vm14 = vcmp.gt.s32.totalorder %v799_v32, 0 }
 0x301   : > { %v1969_v54 = vpop.eup %1968  ;;  %v729_v55 = vmul.f32 %v1967_v51, %v2678_v45  ;;  %736 = vst.msk [vmem:[#allocation2 + $0x10] sm:$0xff] %vm420_vm0, %v724_v43  ;;  %v1696_v3 = vcombine.low %v901_v44, %v902_v56  ;;  %v1703_v44 = vcombine.low %v2922_v24, %v1009_v27  ;;  %v1235_v56 = vld [vmem:[#allocation2 + $0x51] sm:$0xff] }
 0x302   : > { %v1971_v45 = vpop.eup %1970  ;;  %740 = vst.msk [vmem:[#allocation2 + $0x30] sm:$0xff] %vm420_vm0, %v728_v53  ;;  %v730_v59 = vmul.f32 %v1969_v54, %v2680_v46  ;;  %v2812_v46 = vsel %vm994_vm5, 65537, %v2277_v21  ;;  %vm899_vm5 = vmpackc.low %vm2798_vm14, %vm2798_vm14  ;;  %vm961_vm14 = vcmask 261248  }
 0x303   : > { %v1973_v61 = vpop.eup %1972  ;;  %741 = vst.msk [vmem:[#allocation2 + $0x38] sm:$0xff] %vm420_vm0, %v729_v55  ;;  %v727_v62 = vmul.f32 %v1971_v45, %v2674_v40  ;;  %v1700_v15 = vcombine.low %v2812_v46, %v2829_v2  ;;  %vm2903_vm7 = vcmp.ne.s16.totalorder %v1696_v3, 0  ;;  %v907_v29 = vsel %vm899_vm5, 65537, %v2277_v21  ;;  %v1281_v45 = vpop.permute.xlu1 %1280 }
 0x304   : > { %v1975_v1 = vpop.eup %1974  ;;  %742 = vst.msk [vmem:[#allocation2 + $0x40] sm:$0xff] %vm420_vm0, %v730_v59  ;;  %v725_v40 = vmul.f32 %v1973_v61, %v2682_v47  ;;  %v1699_v49 = vcombine.low %v907_v29, %v908_v30  ;;  %vm3051_vm5 = vcmp.ne.s16.totalorder %v1703_v44, 0 }
 0x305   : > { %v1977_v5 = vpop.eup %1976  ;;  %739 = vst.msk [vmem:[#allocation2 + $0x28] sm:$0xff] %vm420_vm0, %v727_v62  ;;  %v731_v47 = vmul.f32 %v1975_v1, %v2685_v52  ;;  %vm2978_vm9 = vcmp.ne.s16.totalorder %v1700_v15, 0  ;;  %v1279_v15 = vpop.permute.xlu0 %1278 }
 0x306   : > { %737 = vst.msk [vmem:[#allocation2 + $0x18] sm:$0xff] %vm420_vm0, %v725_v40  ;;  %v726_v9 = vmul.f32 %v1977_v5, %v2690_v58  ;;  %v1004_v58 = vsel %vm3374_vm12, 65537, %v2277_v21  ;;  %vm3039_vm15 = vcmp.ne.s16.totalorder %v1699_v49, 0  ;;  %vm1387_vm12 = vcmask 261120  }
 0x307   : > { %743 = vst.msk [vmem:[#allocation2 + $0x48] sm:$0xff] %vm420_vm0, %v731_v47  ;;  %v1701_v28 = vcombine.low %v1004_v58, %v1005_v13 }
 0x308   : > { %v2898_v14 = vld [vmem:[#allocation2 + $0x10] sm:$0xff]  ;;  %738 = vst.msk [vmem:[#allocation2 + $0x20] sm:$0xff] %vm420_vm0, %v726_v9 }
 0x309   : > { %v2907_v18 = vld [vmem:[#allocation2 + $0xf] sm:$0xff]  ;;  %v941_v20 = vpack.c.bf16 %v2898_v14, %v933_v8  ;;  %vm3008_vm8 = vcmp.ne.s16.totalorder %v1701_v28, 0 }
 0x30a   : > { %v1092_v19 = vld [vmem:[#allocation2 + $0x30] sm:$0xff]  ;;  %v873_v23 = vpack.c.bf16 %v2907_v18, %v865_v12  ;;  %v1093_v26 = vld [vmem:[#allocation2 + $0x38] sm:$0xff] }
 0x30b   : > { %v1098_v31 = vpack.c.bf16 %v1093_v26, %v1092_v19  ;;  %949 = vrot.lane.b32.xlu0 %v941_v20, %s2276_s10  ;;  %v2943_v32 = vld [vmem:[#allocation2 + $0x31] sm:$0xff]  ;;  %v2959_v35 = vld [vmem:[#allocation2 + $0x40] sm:$0xff]  ;;  %v966_v25 = vld [vmem:[#allocation2 + $0x9] sm:$0xff] }
 0x30c   : > { %v925_v33 = vsel %vm2903_vm7, %v873_v23, 0  ;;  %v2961_v36 = vld [vmem:[#allocation2 + $0x28] sm:$0xff]  ;;  %v2963_v37 = vld [vmem:[#allocation2 + $0x39] sm:$0xff]  ;;  %v1205_v59 = vpack.c.bf16 %v2959_v35, %v1093_v26  ;;  %v1283_v23 = vpop.permute.xlu1 %1282 }
 0x30d   : > { %929 = vst.msk [vmem:[#allocation3] sm:$0xff] %vm420_vm0, %v925_v33  ;;  %1108 = vrot.lane.b32.xlu1 %v1098_v31, %s2278_s20  ;;  %v2969_v38 = vpack.c.bf16 %v1092_v19, %v2961_v36  ;;  %v2971_v41 = vld [vmem:[#allocation2 + $0x29] sm:$0xff]  ;;  %v2973_v42 = vld [vmem:[#allocation2 + $0x37] sm:$0xff]  ;;  %v2975_v43 = vld [vmem:[#allocation2 + $0x3f] sm:$0xff] }
 0x30e   : > { %v1089_v51 = vld [vmem:[#allocation2 + $0x18] sm:$0xff]  ;;  %v2986_v54 = vld [vmem:[#allocation2 + $0x41] sm:$0xff]  ;;  %v2988_v55 = vld [vmem:[#allocation2 + $0x2f] sm:$0xff]  ;;  %v3018_v40 = vpack.c.bf16 %v2943_v32, %v2971_v41  ;;  %v3024_v3 = vpack.c.bf16 %v2975_v43, %v2973_v42 }
 0x30f   : > { %953 = vrot.lane.b32.xlu0 %v2969_v38, %s2276_s10  ;;  %v2994_v60 = vld [vmem:[#allocation2 + $0x19] sm:$0xff]  ;;  %v2996_v61 = vld [vmem:[#allocation2 + $0x21] sm:$0xff]  ;;  %v3000_v62 = vpack.c.bf16 %v2986_v54, %v2963_v37  ;;  %v3028_v5 = vld [vmem:[#allocation2 + $0x49] sm:$0xff]  ;;  %v1096_v47 = vpack.c.bf16 %v1089_v51, %v2898_v14  ;;  %v1061_v44 = vpack.c.bf16 %v2973_v42, %v2988_v55 }
 0x310   : > { %v3006_v63 = vld [vmem:[#allocation2 + $0x17] sm:$0xff]  ;;  %v3014_v1 = vpack.c.bf16 %v2996_v61, %v2994_v60  ;;  %v3020_v2 = vld [vmem:[#allocation2 + $0x27] sm:$0xff]  ;;  %v3026_v4 = vld [vmem:[#allocation2 + $0x1f] sm:$0xff]  ;;  %v1239_v14 = vpack.c.bf16 %v1235_v56, %v3028_v5  ;;  %v1241_v20 = vsel %vm3008_vm8, %v3018_v40, 0  ;;  %v928_v22 = vsel %vm3039_vm15, %v3024_v3, 0 }
 0x311   : > { %1215 = vrot.lane.b32.xlu1 %v1205_v59, %s2279_s21  ;;  %v1242_v6 = vsel %vm2982_vm1, %v3000_v62, 0  ;;  %v3037_v7 = vpack.c.bf16 %v2988_v55, %v3020_v2  ;;  %v1937_v8 = vld [vmem:[#allocation12 + $0x18] sm:$0xff]   ;;  %v1196_v9 = vld [vmem:[#allocation2 + $0x20] sm:$0xff]  ;;  %v3049_v11 = vpack.c.bf16 %v3026_v4, %v3006_v63  ;;  %1245 = vst.msk [vmem:[#allocation3 + $0x18] sm:$0xff] %vm420_vm0, %v1241_v20  ;;  %932 = vst.msk [vmem:[#allocation3 + $0x30] sm:$0xff] %vm420_vm0, %v928_v22  ;;  %v1065_v42 = vsel %vm3002_vm10, %v1061_v44, 0 }
 0x312   : > { %v1240_v10 = vsel %vm2978_vm9, %v3014_v1, 0  ;;  %1246 = vst.msk [vmem:[#allocation3 + $0x28] sm:$0xff] %vm420_vm0, %v1242_v6  ;;  %1407 = vmatpush1.bf16.msra.mxu0 %v1937_v8  ;;  %v3066_v19 = vld [vmem:[#allocation2 + $0x48] sm:$0xff]  ;;  %1805 = vmatpush1.bf16.msra.mxu1 %v1937_v8  ;;  %v1203_v24 = vpack.c.bf16 %v1196_v9, %v1089_v51  ;;  %v967_v26 = vld [vmem:[#allocation2 + $0x11] sm:$0xff]  ;;  %v1243_v27 = vsel %vm3051_vm5, %v1239_v14, 0  ;;  %v1939_v31 = vld [vmem:[#allocation12 + $0x28] sm:$0xff]   ;;  %v1097_v49 = vpack.c.bf16 %v2961_v36, %v1196_v9 }
 0x313   : > { %1104 = vrot.lane.b32.xlu0 %v1096_v47, %s2278_s20  ;;  %1244 = vst.msk [vmem:[#allocation3 + $0x8] sm:$0xff] %vm420_vm0, %v1240_v10  ;;  %v927_v13 = vsel %vm3002_vm10, %v3037_v7, 0  ;;  %1408 = vmatprep.subr.bf16.mxu0 %v2277_v21  ;;  %v926_v28 = vsel %vm3055_vm3, %v3049_v11, 0  ;;  %1247 = vst.msk [vmem:[#allocation3 + $0x38] sm:$0xff] %vm420_vm0, %v1243_v27  ;;  %v1099_v29 = vpack.c.bf16 %v3066_v19, %v2959_v35  ;;  %v1940_v35 = vld [vmem:[#allocation12 + $0x30] sm:$0xff]   ;;  %v1028_v51 = vsel %vm2982_vm1, %v3018_v40, 0 }
 0x314   : > { %1290 = vst.msk [vmem:[#allocation3 + $0x28] sm:$0xff] %vm961_vm14, %v1281_v45  ;;  %1288 = vst.msk [vmem:[#allocation3 + $0x8] sm:$0xff] %vm961_vm14, %v1277_v50  ;;  %1796 = vmatprep.subr.bf16.mxu1 %v2277_v21  ;;  %v974_v30 = vpack.c.bf16 %v967_v26, %v966_v25  ;;  %v1059_v50 = vpack.c.bf16 %v3006_v63, %v2907_v18  ;;  %v1941_v56 = vld [vmem:[#allocation12 + $0x38] sm:$0xff]   ;;  %v1129_v36 = vpack.c.bf16 %v2994_v60, %v967_v26 }
 0x315   : > { %931 = vst.msk [vmem:[#allocation3 + $0x20] sm:$0xff] %vm420_vm0, %v927_v13  ;;  %955 = vrot.lane.b32.xlu1 %v1205_v59, %s2276_s10  ;;  %930 = vst.msk [vmem:[#allocation3 + $0x10] sm:$0xff] %vm420_vm0, %v926_v28  ;;  %v1131_v55 = vpack.c.bf16 %v2963_v37, %v2943_v32  ;;  %v1943_v32 = vld [vmem:[#allocation12 + $0x48] sm:$0xff]   ;;  %v1170_v37 = vsel %vm2903_vm7, %v3049_v11, 0  ;;  %v1172_v53 = vsel %vm3002_vm10, %v3024_v3, 0  ;;  %v1058_v48 = vld [vmem:[#allocation2 + $0x47] sm:$0xff]  ;;  %v1060_v17 = vpack.c.bf16 %v3020_v2, %v3026_v4 }
 0x316   : > { %1289 = vst.msk [vmem:[#allocation3 + $0x18] sm:$0xff] %vm961_vm14, %v1279_v15  ;;  %1291 = vst.msk [vmem:[#allocation3 + $0x38] sm:$0xff] %vm961_vm14, %v1283_v23  ;;  %1409 = vmatpush1.bf16.msra.mxu0 %v1938_v16  ;;  %1806 = vmatpush1.bf16.msra.mxu1 %v1938_v16  ;;  %v1026_v34 = vsel %vm2978_vm9, %v974_v30, 0  ;;  %v1063_v18 = vsel %vm2903_vm7, %v1059_v50, 0  ;;  %v1133_v45 = vsel %vm2978_vm9, %v1129_v36, 0  ;;  %v1027_v60 = vsel %vm3008_vm8, %v3014_v1, 0 }
 0x317   : > { %1211 = vrot.lane.b32.xlu0 %v1203_v24, %s2279_s21  ;;  %1410 = vmatprep.subr.bf16.mxu0 %v2277_v21  ;;  %v1135_v59 = vsel %vm2982_vm1, %v1131_v55, 0  ;;  %v1062_v46 = vpack.c.bf16 %v1058_v48, %v2975_v43  ;;  %v1064_v63 = vsel %vm3055_vm3, %v1060_v17, 0  ;;  %v1130_v40 = vpack.c.bf16 %v2971_v41, %v2996_v61  ;;  %v1202_v4 = vld [vmem:[#allocation2 + $0x50] sm:$0xff] }
 0x318   : > { %1797 = vmatprep.subr.bf16.mxu1 %v2277_v21  ;;  %v1132_v2 = vpack.c.bf16 %v3028_v5, %v2986_v54  ;;  %v1171_v61 = vsel %vm3055_vm3, %v3037_v7, 0  ;;  %v1206_v0 = vpack.c.bf16 %v1202_v4, %v3066_v19  ;;  %vm1046_vm0 = vcmask 392448  }
 0x319   : > { %1110 = vrot.lane.b32.xlu1 %v1099_v29, %s2278_s20  ;;  %v1066_v1 = vsel %vm3039_vm15, %v1062_v46, 0  ;;  %v1134_v43 = vsel %vm3008_vm8, %v1130_v40, 0  ;;  %vm1153_vm7 = vcmask 786048  }
 0x31a   : > { %1411 = vmatpush1.bf16.msra.mxu0 %v1939_v31  ;;  %1807 = vmatpush1.bf16.msra.mxu1 %v1939_v31  ;;  %v1136_v3 = vsel %vm3051_vm5, %v1132_v2, 0 }
 0x31b   : > { %v1297_v33 = vld [vmem:[#allocation3 + $0x28] sm:$0xff]  ;;  %951 = vrot.lane.b32.xlu0 %v1203_v24, %s2276_s10  ;;  %1412 = vmatprep.subr.bf16.mxu0 %v2277_v21 }
 0x31c   : > { %v1293_v39 = vld [vmem:[#allocation3 + $0x8] sm:$0xff]  ;;  %1721 = vmatprep.mubr.msk.bf16.mxu1 %vm1387_vm12, %v1297_v33  ;;  %1798 = vmatprep.subr.bf16.mxu1 %v2277_v21 }
 0x31d   : > { %1719 = vmatprep.mubr.msk.bf16.mxu0 %vm1387_vm12, %v1293_v39  ;;  %1034 = vrot.lane.b32.xlu1 %v1026_v34, %s2280_s23  ;;  %v1295_v27 = vld [vmem:[#allocation3 + $0x18] sm:$0xff] }
 0x31e   : > { %1413 = vmatpush1.bf16.msra.mxu0 %v1940_v35  ;;  %1808 = vmatpush1.bf16.msra.mxu1 %v1940_v35  ;;  %v1299_v29 = vld [vmem:[#allocation3 + $0x38] sm:$0xff] }
 0x31f   : > { %1106 = vrot.lane.b32.xlu0 %v1097_v49, %s2278_s20  ;;  %1414 = vmatprep.subr.bf16.mxu0 %v2277_v21 }
 0x320   : > { %1799 = vmatprep.subr.bf16.mxu1 %v2277_v21 }
 0x321   : > { %1038 = vrot.lane.b32.xlu1 %v1028_v51, %s2280_s23  ;;  %v1708_v51 = vld [vmem:[#allocation13] ss:$0 sm:$0xff] }
 0x322   : > { %1415 = vmatpush1.bf16.msra.mxu0 %v1941_v56  ;;  %1809 = vmatpush1.bf16.msra.mxu1 %v1941_v56 }
 0x323   : > { %1071 = vrot.lane.b32.xlu0 %v1063_v18, %s2281_s18  ;;  %1416 = vmatprep.subr.bf16.mxu0 %v2277_v21 }
 0x324   : > { %1800 = vmatprep.subr.bf16.mxu1 %v2277_v21 }
 0x325   : > { %1075 = vrot.lane.b32.xlu1 %v1065_v42, %s2281_s18 }
 0x326   : > { %1417 = vmatpush1.bf16.msra.mxu0 %v1942_v57  ;;  %1810 = vmatpush1.bf16.msra.mxu1 %v1942_v57 }
 0x327   : > { %1141 = vrot.lane.b32.xlu0 %v1133_v45, %s2282_s12  ;;  %1418 = vmatprep.subr.bf16.mxu0 %v2277_v21 }
 0x328   : > { %1801 = vmatprep.subr.bf16.mxu1 %v2277_v21  ;;  %v1029_v21 = vsel %vm3051_vm5, %v3000_v62, 0  ;;  %v1165_v62 = vld [vmem:[#allocation2 + $0x4f] sm:$0xff] }
 0x329   : > { %1145 = vrot.lane.b32.xlu1 %v1135_v59, %s2282_s12  ;;  %v1169_v41 = vpack.c.bf16 %v1165_v62, %v1058_v48 }
 0x32a   : > { %1419 = vmatpush1.bf16.msra.mxu0 %v1943_v32  ;;  %1811 = vmatpush1.bf16.msra.mxu1 %v1943_v32 }
 0x32b   : > { %1178 = vrot.lane.b32.xlu0 %v1170_v37, %s2283_s17  ;;  %v1173_v54 = vsel %vm3039_vm15, %v1169_v41, 0 }
 0x32d   : > { %1182 = vrot.lane.b32.xlu1 %v1172_v53, %s2283_s17 }
 0x32f   : > { %1036 = vrot.lane.b32.xlu0 %v1027_v60, %s2280_s23 }
 0x331   : > { %1040 = vrot.lane.b32.xlu1 %v1029_v21, %s2280_s23 }
 0x333   : > { %1073 = vrot.lane.b32.xlu0 %v1064_v63, %s2281_s18 }
 0x335   : > { %1077 = vrot.lane.b32.xlu1 %v1066_v1, %s2281_s18 }
 0x337   : > { %1143 = vrot.lane.b32.xlu0 %v1134_v43, %s2282_s12 }
 0x339   : > { %1147 = vrot.lane.b32.xlu1 %v1136_v3, %s2282_s12 }
 0x33b   : > { %1180 = vrot.lane.b32.xlu0 %v1171_v61, %s2283_s17 }
 0x33d   : > { %1184 = vrot.lane.b32.xlu1 %v1173_v54, %s2283_s17 }
 0x33f   : > { %1213 = vrot.lane.b32.xlu0 %v2969_v38, %s2279_s21 }
 0x341   : > { %1217 = vrot.lane.b32.xlu1 %v1206_v0, %s2279_s21 }
 0x37d   : > { %v950_v5 = vpop.permute.xlu0 %949 }
 0x37e   : > { %962 = vst.msk [vmem:[#allocation3] sm:$0xff] %vm961_vm14, %v950_v5 }
 0x37f   : > { %v1109_v47 = vpop.permute.xlu1 %1108 }
 0x381   : > { %v954_v6 = vpop.permute.xlu0 %953 }
 0x382   : > { %964 = vst.msk [vmem:[#allocation3 + $0x20] sm:$0xff] %vm961_vm14, %v954_v6 }
 0x383   : > { %v1216_v7 = vpop.permute.xlu1 %1215 }
 0x385   : > { %v1105_v8 = vpop.permute.xlu0 %1104 }
 0x387   : > { %v956_v52 = vpop.permute.xlu1 %955 }
 0x388   : > { %965 = vst.msk [vmem:[#allocation3 + $0x30] sm:$0xff] %vm961_vm14, %v956_v52 }
 0x389   : > { %v1212_v9 = vpop.permute.xlu0 %1211 }
 0x38b   : > { %v1111_v10 = vpop.permute.xlu1 %1110 }
 0x38d   : > { %v952_v11 = vpop.permute.xlu0 %951 }
 0x38e   : > { %963 = vst.msk [vmem:[#allocation3 + $0x10] sm:$0xff] %vm961_vm14, %v952_v11 }
 0x38f   : > { %v1035_v38 = vpop.permute.xlu1 %1034 }
 0x390   : > { %1047 = vst.msk [vmem:[#allocation3] sm:$0xff] %vm1046_vm0, %v1035_v38 }
 0x391   : > { %v1107_v12 = vpop.permute.xlu0 %1106 }
 0x393   : > { %v1039_v58 = vpop.permute.xlu1 %1038 }
 0x394   : > { %1049 = vst.msk [vmem:[#allocation3 + $0x20] sm:$0xff] %vm1046_vm0, %v1039_v58 }
 0x395   : > { %v1072_v13 = vpop.permute.xlu0 %1071 }
 0x396   : > { %1084 = vst.msk [vmem:[#allocation3] sm:$0xff] %vm1083_vm13, %v1072_v13 }
 0x397   : > { %v1076_v14 = vpop.permute.xlu1 %1075  ;;  %1117 = vst.msk [vmem:[#allocation3] sm:$0xff] %vm1116_vm2, %v1105_v8 }
 0x398   : > { %1086 = vst.msk [vmem:[#allocation3 + $0x20] sm:$0xff] %vm1083_vm13, %v1076_v14 }
 0x399   : > { %1119 = vst.msk [vmem:[#allocation3 + $0x20] sm:$0xff] %vm1116_vm2, %v1109_v47  ;;  %v1142_v15 = vpop.permute.xlu0 %1141 }
 0x39a   : > { %1154 = vst.msk [vmem:[#allocation3] sm:$0xff] %vm1153_vm7, %v1142_v15 }
 0x39b   : > { %v1146_v16 = vpop.permute.xlu1 %1145 }
 0x39c   : > { %1156 = vst.msk [vmem:[#allocation3 + $0x20] sm:$0xff] %vm1153_vm7, %v1146_v16 }
 0x39d   : > { %v1179_v19 = vpop.permute.xlu0 %1178 }
 0x39e   : > { %1191 = vst.msk [vmem:[#allocation3] sm:$0xff] %vm1190_vm11, %v1179_v19 }
 0x39f   : > { %v1183_v20 = vpop.permute.xlu1 %1182  ;;  %1224 = vst.msk [vmem:[#allocation3] sm:$0xff] %vm1223_vm4, %v1212_v9 }
 0x3a0   : > { %1193 = vst.msk [vmem:[#allocation3 + $0x20] sm:$0xff] %vm1190_vm11, %v1183_v20 }
 0x3a1   : > { %1226 = vst.msk [vmem:[#allocation3 + $0x20] sm:$0xff] %vm1223_vm4, %v1216_v7  ;;  %v1037_v22 = vpop.permute.xlu0 %1036 }
 0x3a2   : > { %1048 = vst.msk [vmem:[#allocation3 + $0x10] sm:$0xff] %vm1046_vm0, %v1037_v22 }
 0x3a3   : > { %v1041_v23 = vpop.permute.xlu1 %1040 }
 0x3a4   : > { %1050 = vst.msk [vmem:[#allocation3 + $0x30] sm:$0xff] %vm1046_vm0, %v1041_v23 }
 0x3a5   : > { %v1074_v24 = vpop.permute.xlu0 %1073 }
 0x3a6   : > { %1085 = vst.msk [vmem:[#allocation3 + $0x10] sm:$0xff] %vm1083_vm13, %v1074_v24  ;;  %v1292_v25 = vld [vmem:[#allocation3] sm:$0xff] }
 0x3a7   : > { %v1078_v26 = vpop.permute.xlu1 %1077  ;;  %1118 = vst.msk [vmem:[#allocation3 + $0x10] sm:$0xff] %vm1116_vm2, %v1107_v12  ;;  %1433 = vmatmul.mubr.bf16.vlgmr.msra.gmra.mrb[4].mxu0 %v1292_v25 }
 0x3a8   : > { %1087 = vst.msk [vmem:[#allocation3 + $0x30] sm:$0xff] %vm1083_vm13, %v1078_v26  ;;  %v1296_v28 = vld [vmem:[#allocation3 + $0x20] sm:$0xff]  ;;  %1720 = vmatprep.mubr.msk.bf16.mxu0 %vm1387_vm12, %v1295_v27 }
 0x3a9   : > { %1120 = vst.msk [vmem:[#allocation3 + $0x30] sm:$0xff] %vm1116_vm2, %v1111_v10  ;;  %1449 = vmatmul.mubr.bf16.vlgmr.msra.gmra.mrb[4].mxu1 %v1296_v28  ;;  %v1144_v30 = vpop.permute.xlu0 %1143 }
 0x3aa   : > { %1722 = vmatprep.mubr.msk.bf16.mxu1 %vm1387_vm12, %v1299_v29  ;;  %1155 = vst.msk [vmem:[#allocation3 + $0x10] sm:$0xff] %vm1153_vm7, %v1144_v30 }
 0x3ab   : > { %v1148_v31 = vpop.permute.xlu1 %1147 }
 0x3ac   : > { %1157 = vst.msk [vmem:[#allocation3 + $0x30] sm:$0xff] %vm1153_vm7, %v1148_v31 }
 0x3ad   : > { %v1181_v33 = vpop.permute.xlu0 %1180 }
 0x3ae   : > { %1192 = vst.msk [vmem:[#allocation3 + $0x10] sm:$0xff] %vm1190_vm11, %v1181_v33 }
 0x3af   : > { %v1185_v39 = vpop.permute.xlu1 %1184 }
 0x3b0   : > { %1194 = vst.msk [vmem:[#allocation3 + $0x30] sm:$0xff] %vm1190_vm11, %v1185_v39 }
 0x3b1   : > { %v1214_v34 = vpop.permute.xlu0 %1213 }
 0x3b2   : > { %1225 = vst.msk [vmem:[#allocation3 + $0x10] sm:$0xff] %vm1223_vm4, %v1214_v34 }
 0x3b3   : > { %v1218_v35 = vpop.permute.xlu1 %1217 }
 0x3b4   : > { %1227 = vst.msk [vmem:[#allocation3 + $0x30] sm:$0xff] %vm1223_vm4, %v1218_v35 }
 0x3b9   : > { %v1294_v49 = vld [vmem:[#allocation3 + $0x10] sm:$0xff] }
 0x3ba   : > { %1441 = vmatmul.mubr.bf16.gmra.mrb[8].mxu0 %v1294_v49 }
 0x3bb   : > { %v1298_v50 = vld [vmem:[#allocation3 + $0x30] sm:$0xff] }
 0x3bc   : > { %1457 = vmatmul.mubr.bf16.gmra.mrb[8].mxu1 %v1298_v50 }
 0x47a   : > { %v1434_v44 = vpop.f32.mrb[4].mxu0 }
 0x47b   : > { %v1435_v56 = vadd.f32 %v1708_v51, %v1434_v44  ;;  %v1436_v18 = vpop.f32.mrb[5].mxu0 }
 0x47c   : > { %v1450_v36 = vpop.f32.mrb[4].mxu1  ;;  %v1437_v42 = vpop.f32.mrb[6].mxu0 }
 0x47d   : > { %v1738_v55 = vpack.c.bf16 %v1435_v56, %v1435_v56  ;;  %v1451_v57 = vadd.f32 %v1708_v51, %v1450_v36  ;;  %v1452_v45 = vpop.f32.mrb[5].mxu1  ;;  %v1438_v59 = vadd.f32 %v1708_v51, %v1437_v42  ;;  %v1439_v32 = vpop.f32.mrb[7].mxu0 }
 0x47e   : > { %v1453_v37 = vpop.f32.mrb[6].mxu1 }
 0x47f   : > { %1498 = vst.msk [vmem:[%s3208_s3] sm:$0xf] %vm1497_vm6, %v1738_v55  ;;  %v1742_v53 = vpack.c.bf16 %v1451_v57, %v1451_v57  ;;  %v1739_v48 = vpack.c.bf16 %v1438_v59, %v1438_v59  ;;  %v1454_v60 = vadd.f32 %v1708_v51, %v1453_v37  ;;  %v1455_v17 = vpop.f32.mrb[7].mxu1 }
 0x481   : > { %1502 = vst.msk [vmem:[%s3208_s3 + $0x10] sm:$0xf] %vm1497_vm6, %v1742_v53  ;;  %1499 = vst.msk [vmem:[%s3208_s3 + $0x4] sm:$0xf] %vm1497_vm6, %v1739_v48  ;;  %v1743_v21 = vpack.c.bf16 %v1454_v60, %v1454_v60 }
 0x483   : > { %1503 = vst.msk [vmem:[%s3208_s3 + $0x14] sm:$0xf] %vm1497_vm6, %v1743_v21 }
 0x48d   : > { %v1442_v46 = vpop.f32.mrb[8].mxu0 }
 0x48e   : > { %v1443_v63 = vadd.f32 %v1708_v51, %v1442_v46  ;;  %v1444_v40 = vpop.f32.mrb[9].mxu0 }
 0x48f   : > { %v1458_v1 = vpop.f32.mrb[8].mxu1  ;;  %v1445_v2 = vpop.f32.mrb[10].mxu0 }
 0x490   : > { %v1740_v62 = vpack.c.bf16 %v1443_v63, %v1443_v63  ;;  %v1459_v43 = vadd.f32 %v1708_v51, %v1458_v1  ;;  %v1460_v3 = vpop.f32.mrb[9].mxu1  ;;  %v1446_v41 = vadd.f32 %v1708_v51, %v1445_v2  ;;  %v1447_v61 = vpop.f32.mrb[11].mxu0 }
 0x491   : > { %v1461_v54 = vpop.f32.mrb[10].mxu1 }
 0x492   : > { %1500 = vst.msk [vmem:[%s3208_s3 + $0x8] sm:$0xf] %vm1497_vm6, %v1740_v62  ;;  %v1744_v4 = vpack.c.bf16 %v1459_v43, %v1459_v43  ;;  %v1741_v0 = vpack.c.bf16 %v1446_v41, %v1446_v41  ;;  %v1462_v5 = vadd.f32 %v1708_v51, %v1461_v54  ;;  %v1463_v47 = vpop.f32.mrb[11].mxu1 }
 0x494   : > { %1504 = vst.msk [vmem:[%s3208_s3 + $0x18] sm:$0xf] %vm1497_vm6, %v1744_v4  ;;  %1501 = vst.msk [vmem:[%s3208_s3 + $0xc] sm:$0xf] %vm1497_vm6, %v1741_v0  ;;  %v1745_v6 = vpack.c.bf16 %v1462_v5, %v1462_v5 }
 0x496   : > { %1505 = vst.msk [vmem:[%s3208_s3 + $0x1c] sm:$0xf] %vm1497_vm6, %v1745_v6 }
 0x497   : > { %2191 = shalt.err (!%p2188_p7)
}
 0x498   : > { %s2192_s13 = scalar_lea.hbm %s3225_s16, 512  ;;  %s2196_s15 = scalar_lea.hbm %s3288_s7, 1024 }
 0x499   : > { %p2193_p0 = scmp.ne.s32.totalorder %s3225_s16, %s2192_s13  ;;  %p2197_p9 = scmp.lt.u32.totalorder %s3225_s16, %s3288_s7 }
 0x49a   : > { %p2198_p3 = scmp.lt.u32.totalorder %s2196_s15, %s2192_s13  ;;  %p2200_p1 = scmp.lt.u32.totalorder %s2192_s13, %s3225_s16 }
 0x49b   : > { %p2194_p13 = pnand %p2193_p0, %p3394_p8 }
 0x49c   : > { %p2199_p11 = por %p2198_p3, %p2197_p9 }
 0x49d   : > { %p2195_p2 = pneg %p2194_p13 }
 0x49e   : > { %p2201_p12 = por %p2200_p1, %p2199_p11 }
 0x4a0   : > { %p2202_p6 = pnand %p2201_p12, %p2195_p2 }
 0x4a2   : > { %2205 = shalt.err (!%p2202_p6)
}
 0x4a3   : > { %s2285_s21 = smov 4  }
 0x4a4   : > { %1836 = dma.vmem_to_hbm [thread:$0]  (%p3394_p8), %s3231_s27, 512, %s3225_s16, %s3237_s30, %s2278_s20, %s2278_s20, %s2285_s21  }
 0x4a5 PF: > { %s3395_s23 = sld [smem:[#allocation27_spill]]  ;;  %s3396_s18 = sld [smem:[#allocation24_spill]] }
 0x4a6   : > { %s1535_s12 = sand.u32 1, %s2248_s24  }
 0x4a7   : > { %s1536_s17 = scalar_lea.sflag [#allocation6], %s1535_s12 }
 0x4ab   : > { %p3397_p4 = scmp.ne.s32.totalorder %s3395_s23, 0  ;;  %p3398_p10 = scmp.ge.s32.totalorder %s3396_s18, 2 }
 0x4ad   : > { %p1862_p5 = pnand %p3398_p10, %p3397_p4 }
 0x4af   : > { %2243 = dma.done.wait (!%p1862_p5), %s1536_s17, 512  }
 0x4b0   : > { %2245 = vsyncadd (!%p1862_p5), %s1536_s17, 4294966784  ;;  %s3399_s27 = sld [smem:[#allocation25_spill]]  ;;  %s3400_s14 = sld [smem:[#allocation23_spill]] }
 0x4b1   : > { %s3401_s26 = sld [smem:[#allocation26_spill]]  ;;  %s3402_s24 = smov %s2252_s25 }
 0x4b6   : > { %p23_p7 = scmp.ge.s32.totalorder %s3399_s27, 4   ;;  %s3403_s25 = smov %s3400_s14 }
 0x4b8   :  { %25 = sbr.rel (!%p23_p7) target bundleno = 12 (0xc), region = 124 }
 0x4bf   :  { %1541 = vsyncpa [#allocation5], 1 }
 0x4c0   :  { %1543 = vsyncpa [#allocation5 + $0x1], 1 }
 0x4c1   :  { %1544 = vsyncpa [#allocation8], 1 }
 0x4c2   :  { %1545 = vsyncpa [#allocation11], 1 }
 0x4c3   :  { %1546 = vsyncpa [#allocation14], 1 }
 0x4c4   :  { %1547 = vsyncpa [#allocation6], 1 }
 0x4c5   :  { %1549 = vsyncpa [#allocation6 + $0x1], 1 }

</bundles_post_ra>
